<compile_context>
chip_gen: v5e
topology: v5e:2x2
jax: 0.10.0
libtpu: 0.0.40
codegen_flags: <defaults>
</compile_context>

<pallas_src>
import functools

import jax
import jax.numpy as jnp
from jax.experimental import pallas as pl
from jax.experimental.pallas import tpu as pltpu


def _conv_act_kernel(x_ref, w_ref, b_ref, o_ref, *, K, pad, TH, Q, Qp,
                     negative_slope, apply_act):
    # x_ref: (1, Cin, H, W)     whole NCHW image (resident across row blocks)
    # w_ref: (Cout, Qp)         weights, columns ordered (kh, kw, cin), zero-padded to Qp
    # b_ref: (Cout, 1)          bias (sublane vector, lane-broadcast in the epilogue)
    # o_ref: (1, Cout, TH*W)    NCHW row block with flattened-spatial (lane-dense) minor axis
    r = pl.program_id(1)
    Cin, H, W = x_ref.shape[1], x_ref.shape[2], x_ref.shape[3]

    row0 = r * TH
    if TH % 8 == 0:
        row0 = pl.multiple_of(row0, TH)

    # Replication-padded (Cin, TH+2p, W+2p) window for this row block.  Window row w is
    # padded-image row (row0 + w): the TH interior rows are one aligned dynamic slice, the
    # top/bottom halo rows are clamped single-row slices (clamping == edge replication), so
    # every block is independent (no cross-block scratch, both grid axes parallel).
    rows = []
    for i in range(pad):
        src = jnp.maximum(row0 - pad + i, 0)
        rows.append(x_ref[0, :, pl.ds(src, 1), :])                    # (Cin, 1, W)
    rows.append(x_ref[0, :, pl.ds(row0, TH), :])                      # (Cin, TH, W)
    for j in range(pad):
        src = jnp.minimum(row0 + TH + j, H - 1)
        rows.append(x_ref[0, :, pl.ds(src, 1), :])                    # (Cin, 1, W)
    win = rows[0] if len(rows) == 1 else jnp.concatenate(rows, axis=1)  # (Cin, TH+2p, W)
    if pad > 0:
        left, right = win[:, :, 0:1], win[:, :, W - 1:W]
        win = jnp.concatenate([left] * pad + [win] + [right] * pad, axis=2)  # (Cin, TH+2p, W+2p)

    # im2col: K sublane-shifted views (one per kh), K lane shifts each; tap order (kh, kw, cin)
    # matches the wrapper-side weight reorder.  Contraction zero-padded to Qp.
    taps = []
    for kh in range(K):
        win_kh = win[:, kh:kh + TH, :]                                # (Cin, TH, W+2p)
        for kw in range(K):
            taps.append(win_kh[:, :, kw:kw + W])                      # (Cin, TH, W)
    if Qp > Q:
        taps.append(jnp.zeros((Qp - Q, TH, W), win.dtype))
    col = taps[0] if len(taps) == 1 else jnp.concatenate(taps, axis=0)  # (Qp, TH, W)
    patches = col.reshape(Qp, TH * W).astype(w_ref.dtype)             # (Qp, TH*W)

    # Transposed MXU matmul: (Cout, Qp) @ (Qp, TH*W) -> NCHW-ordered, lane-dense result.
    acc = jnp.dot(w_ref[...], patches, preferred_element_type=jnp.float32)
    y = acc + b_ref[...].astype(jnp.float32)                          # (Cout, 1) lane-broadcast
    if apply_act:
        y = jnp.where(y >= 0, y, negative_slope * y)
    o_ref[0] = y.astype(o_ref.dtype)


def _round_up(x, m):
    return -(-x // m) * m


def _pick_row_block(H, W, Qp, Cin, Cout, budget_bytes=8 << 20):
    """Largest TH dividing H with a lane-aligned output slab (TH*W % 128 == 0) whose per-block
    f32 working set fits the budget; falls back to the whole image."""
    best = None
    for th in range(1, H + 1):
        if H % th or (th * W) % 128:
            continue
        per_block = 4 * (2 * Qp + 4 * Cin + 4 * Cout) * th * W
        if per_block <= budget_bytes:
            best = th
    return best if best is not None else H


def custom_conv_layer(x_nchw, weight_oihw, bias, *, non_linearity="leaky_relu",
                      conv_stride=1, row_block=None, matmul_dtype=None):
    """Forward of CustomConvLayer (padding_mode='replicate').

    x_nchw: (N, Cin, H, W)   weight_oihw: (Cout, Cin, K, K)   bias: (Cout,)
    returns: (N, Cout, H, W)
    """
    Cout, Cin, K, K2 = weight_oihw.shape
    N, Cin_x, H, W = x_nchw.shape
    assert K == K2 and Cin_x == Cin

    if conv_stride != 1:
        raise NotImplementedError("only conv_stride=1 (the module default) is implemented")
    if K % 2 == 0:
        raise NotImplementedError(
            "even k_size changes the output size under ReplicationPad2d(k//2); "
            "only odd k_size is implemented")

    if non_linearity == "leaky_relu":
        negative_slope, apply_act = 0.01, True          # torch LeakyReLU() default slope
    elif non_linearity == "relu":
        negative_slope, apply_act = 0.0, True
    elif non_linearity == "no":
        negative_slope, apply_act = 0.0, False
    else:
        # TODO(synk): GDN / GDN-inverse non-linearities are not implemented.
        raise NotImplementedError(f"non_linearity={non_linearity!r}")

    pad = K // 2
    Q = K * K * Cin
    Qp = 128 if Q <= 128 else _round_up(Q, 8)           # MXU-friendly contraction depth

    TH = _pick_row_block(H, W, Qp, Cin, Cout) if row_block is None else row_block
    if H % TH != 0 or not ((TH * W) % 128 == 0 or TH == H):
        raise ValueError(
            f"row_block={TH} must divide H={H} and give a lane-aligned output slab "
            f"(row_block*W % 128 == 0) or equal H")

    compute_dtype = (jnp.dtype(matmul_dtype) if matmul_dtype is not None
                     else jnp.dtype(x_nchw.dtype))

    # Wrapper glue on tiny tensors only: (Cout, Cin, K, K) -> (Cout, K, K, Cin) -> (Cout, Q),
    # matching the in-kernel (kh, kw, cin) tap order, then zero-pad the contraction to Qp.
    w_lhs = jnp.transpose(weight_oihw, (0, 2, 3, 1)).reshape(Cout, Q)
    if Qp > Q:
        w_lhs = jnp.pad(w_lhs, ((0, 0), (0, Qp - Q)))
    w_lhs = w_lhs.astype(compute_dtype)
    b_col = bias.astype(jnp.float32).reshape(Cout, 1)

    # Always set the scoped VMEM limit (v5e defaults to 16 MiB), capped below the physical
    # capacity of the current generation.
    itemsize = jnp.dtype(x_nchw.dtype).itemsize
    win_elems = Cin * (TH + 2 * pad) * (W + 2 * pad)
    vmem_est = (
        itemsize * (2 * Cin * H * W                     # image block (double-buffered)
                    + 2 * Cout * TH * W                 # output block (double-buffered)
                    + 2 * (Cout * Qp + Cout))           # weights + bias
        + 4 * (2 * Qp * TH * W                          # im2col taps + padded patches
               + 4 * win_elems                          # window-build temporaries
               + 3 * Cout * TH * W))                    # accumulator / epilogue temporaries
    try:
        vmem_cap = int(pltpu.get_tpu_info().vmem_capacity_bytes)
    except Exception:
        vmem_cap = 64 << 20                             # conservative: v7x physical VMEM
    vmem_limit = int(min(vmem_cap * 7 // 8, max(2 * vmem_est, 32 << 20)))

    kernel = functools.partial(_conv_act_kernel, K=K, pad=pad, TH=TH, Q=Q, Qp=Qp,
                               negative_slope=negative_slope, apply_act=apply_act)

    out = pl.pallas_call(
        kernel,
        out_shape=jax.ShapeDtypeStruct((N, Cout, H * W), x_nchw.dtype),
        grid=(N, H // TH),
        in_specs=[
            # Whole unpadded NCHW image; the index map ignores the row axis so it is only
            # re-fetched when the batch index changes.
            # TODO(synk): switch to a halo-row DMA (memory_space=pl.ANY) + pl.Buffered(1) once
            #             image footprints approach the per-core VMEM budget.
            pl.BlockSpec((1, Cin, H, W), lambda n, r: (n, 0, 0, 0)),
            pl.BlockSpec((Cout, Qp), lambda n, r: (0, 0)),
            pl.BlockSpec((Cout, 1), lambda n, r: (0, 0)),
        ],
        out_specs=pl.BlockSpec((1, Cout, TH * W), lambda n, r: (n, 0, r)),
        compiler_params=pltpu.CompilerParams(
            dimension_semantics=("parallel", "parallel"),
            vmem_limit_bytes=vmem_limit,
        ),
    )(x_nchw, w_lhs, b_col)

    # Contiguous reshape back to NCHW: metadata-only, no extra HBM pass.
    return out.reshape(N, Cout, H, W)


def _reference(x_nchw, weight_oihw, bias, negative_slope=0.01):
    """Plain-JAX reference (lax conv) for correctness checking."""
    K = weight_oihw.shape[-1]
    pad = K // 2
    x_pad = jnp.pad(x_nchw, ((0, 0), (0, 0), (pad, pad), (pad, pad)), mode="edge")
    y = jax.lax.conv_general_dilated(
        x_pad, weight_oihw, window_strides=(1, 1), padding="VALID",
        dimension_numbers=("NCHW", "OIHW", "NCHW"))
    y = y + bias.reshape(1, -1, 1, 1)
    return jnp.where(y >= 0, y, negative_slope * y)


if __name__ == "__main__":
    # Small shapes consistent with the module (k_size=5 conv, NCHW input).
    N, Cin, Cout, H, W, K = 2, 4, 8, 16, 16, 5

    key = jax.random.PRNGKey(0)
    kx, kwt, kb = jax.random.split(key, 3)
    x = jax.random.normal(kx, (N, Cin, H, W), dtype=jnp.float32)
    weight = jax.random.normal(kwt, (Cout, Cin, K, K), dtype=jnp.float32) * 0.1
    bias = jax.random.normal(kb, (Cout,), dtype=jnp.float32) * 0.1

    ref = jax.block_until_ready(_reference(x, weight, bias))

    # Default row block (whole image) plus an explicit 8-row block: the latter exercises the
    # top/bottom edge-replication halos and the interior-halo path across two row blocks.
    for rb in (None, 8):
        out = jax.block_until_ready(custom_conv_layer(x, weight, bias, row_block=rb))
        assert out.shape == (N, Cout, H, W)
        max_err = float(jnp.max(jnp.abs(out - ref)))
        assert max_err < 1e-3, f"row_block={rb}: max abs error {max_err}"

    print("KERNEL_OK")
</pallas_src>

<mosaic_0001>
module attributes {stable_mosaic.version = 11 : i64} {
  func.func @_conv_act_kernel(%arg0: i32, %arg1: i32, %arg2: memref<1x4x16x16xf32, #tpu.memory_space<vmem>>, %arg3: memref<8x128xf32, #tpu.memory_space<vmem>>, %arg4: memref<8x1xf32, #tpu.memory_space<vmem>>, %arg5: memref<1x8x256xf32, #tpu.memory_space<vmem>>) attributes {dimension_semantics = [#tpu.dimension_semantics<parallel>, #tpu.dimension_semantics<parallel>], iteration_bounds = array<i64: 2, 1>, scalar_prefetch = 0 : i64, scratch_operands = 0 : i64, tpu.core_type = #tpu.core_type<tc>, window_params = [{transform_indices = @transform_0, window_bounds = array<i64: 1, 4, 16, 16>}, {pipeline_mode = #tpu.pipeline_mode<synchronous>, transform_indices = @transform_1, window_bounds = array<i64: 8, 128>}, {pipeline_mode = #tpu.pipeline_mode<synchronous>, transform_indices = @transform_2, window_bounds = array<i64: 8, 1>}, {transform_indices = @transform_3, window_bounds = array<i64: 1, 8, 256>}]} {
    %c16_i32 = arith.constant 16 : i32
    %0 = arith.muli %arg1, %c16_i32 : i32
    %1 = tpu.assume_multiple %0, 16 : i32
    %c2_i32 = arith.constant 2 : i32
    %2 = arith.subi %1, %c2_i32 : i32
    %c0_i32 = arith.constant 0 : i32
    %3 = arith.addi %2, %c0_i32 : i32
    %c0_i32_0 = arith.constant 0 : i32
    %4 = arith.maxsi %3, %c0_i32_0 : i32
    %c0 = arith.constant 0 : index
    %c0_1 = arith.constant 0 : index
    %5 = arith.index_cast %4 : i32 to index
    %c0_2 = arith.constant 0 : index
    %6 = vector.load %arg2[%c0, %c0_1, %5, %c0_2] : memref<1x4x16x16xf32, #tpu.memory_space<vmem>>, vector<1x4x1x16xf32>
    %7 = vector.shape_cast %6 : vector<1x4x1x16xf32> to vector<4x1x16xf32>
    %c2_i32_3 = arith.constant 2 : i32
    %8 = arith.subi %1, %c2_i32_3 : i32
    %c1_i32 = arith.constant 1 : i32
    %9 = arith.addi %8, %c1_i32 : i32
    %c0_i32_4 = arith.constant 0 : i32
    %10 = arith.maxsi %9, %c0_i32_4 : i32
    %c0_5 = arith.constant 0 : index
    %c0_6 = arith.constant 0 : index
    %11 = arith.index_cast %10 : i32 to index
    %c0_7 = arith.constant 0 : index
    %12 = vector.load %arg2[%c0_5, %c0_6, %11, %c0_7] : memref<1x4x16x16xf32, #tpu.memory_space<vmem>>, vector<1x4x1x16xf32>
    %13 = vector.shape_cast %12 : vector<1x4x1x16xf32> to vector<4x1x16xf32>
    %c0_8 = arith.constant 0 : index
    %c0_9 = arith.constant 0 : index
    %14 = arith.index_cast %1 : i32 to index
    %c0_10 = arith.constant 0 : index
    %15 = vector.load %arg2[%c0_8, %c0_9, %14, %c0_10] : memref<1x4x16x16xf32, #tpu.memory_space<vmem>>, vector<1x4x16x16xf32>
    %16 = vector.shape_cast %15 : vector<1x4x16x16xf32> to vector<4x16x16xf32>
    %c16_i32_11 = arith.constant 16 : i32
    %17 = arith.addi %1, %c16_i32_11 : i32
    %c0_i32_12 = arith.constant 0 : i32
    %18 = arith.addi %17, %c0_i32_12 : i32
    %c15_i32 = arith.constant 15 : i32
    %19 = arith.minsi %18, %c15_i32 : i32
    %c0_13 = arith.constant 0 : index
    %c0_14 = arith.constant 0 : index
    %20 = arith.index_cast %19 : i32 to index
    %c0_15 = arith.constant 0 : index
    %21 = vector.load %arg2[%c0_13, %c0_14, %20, %c0_15] : memref<1x4x16x16xf32, #tpu.memory_space<vmem>>, vector<1x4x1x16xf32>
    %22 = vector.shape_cast %21 : vector<1x4x1x16xf32> to vector<4x1x16xf32>
    %c16_i32_16 = arith.constant 16 : i32
    %23 = arith.addi %1, %c16_i32_16 : i32
    %c1_i32_17 = arith.constant 1 : i32
    %24 = arith.addi %23, %c1_i32_17 : i32
    %c15_i32_18 = arith.constant 15 : i32
    %25 = arith.minsi %24, %c15_i32_18 : i32
    %c0_19 = arith.constant 0 : index
    %c0_20 = arith.constant 0 : index
    %26 = arith.index_cast %25 : i32 to index
    %c0_21 = arith.constant 0 : index
    %27 = vector.load %arg2[%c0_19, %c0_20, %26, %c0_21] : memref<1x4x16x16xf32, #tpu.memory_space<vmem>>, vector<1x4x1x16xf32>
    %28 = vector.shape_cast %27 : vector<1x4x1x16xf32> to vector<4x1x16xf32>
    %29 = tpu.concatenate %7, %13, %16, %22, %28 in 1 : vector<4x1x16xf32>, vector<4x1x16xf32>, vector<4x16x16xf32>, vector<4x1x16xf32>, vector<4x1x16xf32> -> vector<4x20x16xf32>
    %30 = vector.extract_strided_slice %29 {offsets = [0, 0, 0], sizes = [4, 20, 1], strides = [1, 1, 1]} : vector<4x20x16xf32> to vector<4x20x1xf32>
    %31 = vector.extract_strided_slice %29 {offsets = [0, 0, 15], sizes = [4, 20, 1], strides = [1, 1, 1]} : vector<4x20x16xf32> to vector<4x20x1xf32>
    %32 = tpu.concatenate %30, %30, %29, %31, %31 in 2 : vector<4x20x1xf32>, vector<4x20x1xf32>, vector<4x20x16xf32>, vector<4x20x1xf32>, vector<4x20x1xf32> -> vector<4x20x20xf32>
    %33 = vector.extract_strided_slice %32 {offsets = [0, 0, 0], sizes = [4, 16, 20], strides = [1, 1, 1]} : vector<4x20x20xf32> to vector<4x16x20xf32>
    %34 = vector.extract_strided_slice %33 {offsets = [0, 0, 0], sizes = [4, 16, 16], strides = [1, 1, 1]} : vector<4x16x20xf32> to vector<4x16x16xf32>
    %35 = vector.extract_strided_slice %33 {offsets = [0, 0, 1], sizes = [4, 16, 16], strides = [1, 1, 1]} : vector<4x16x20xf32> to vector<4x16x16xf32>
    %36 = vector.extract_strided_slice %33 {offsets = [0, 0, 2], sizes = [4, 16, 16], strides = [1, 1, 1]} : vector<4x16x20xf32> to vector<4x16x16xf32>
    %37 = vector.extract_strided_slice %33 {offsets = [0, 0, 3], sizes = [4, 16, 16], strides = [1, 1, 1]} : vector<4x16x20xf32> to vector<4x16x16xf32>
    %38 = vector.extract_strided_slice %33 {offsets = [0, 0, 4], sizes = [4, 16, 16], strides = [1, 1, 1]} : vector<4x16x20xf32> to vector<4x16x16xf32>
    %39 = vector.extract_strided_slice %32 {offsets = [0, 1, 0], sizes = [4, 16, 20], strides = [1, 1, 1]} : vector<4x20x20xf32> to vector<4x16x20xf32>
    %40 = vector.extract_strided_slice %39 {offsets = [0, 0, 0], sizes = [4, 16, 16], strides = [1, 1, 1]} : vector<4x16x20xf32> to vector<4x16x16xf32>
    %41 = vector.extract_strided_slice %39 {offsets = [0, 0, 1], sizes = [4, 16, 16], strides = [1, 1, 1]} : vector<4x16x20xf32> to vector<4x16x16xf32>
    %42 = vector.extract_strided_slice %39 {offsets = [0, 0, 2], sizes = [4, 16, 16], strides = [1, 1, 1]} : vector<4x16x20xf32> to vector<4x16x16xf32>
    %43 = vector.extract_strided_slice %39 {offsets = [0, 0, 3], sizes = [4, 16, 16], strides = [1, 1, 1]} : vector<4x16x20xf32> to vector<4x16x16xf32>
    %44 = vector.extract_strided_slice %39 {offsets = [0, 0, 4], sizes = [4, 16, 16], strides = [1, 1, 1]} : vector<4x16x20xf32> to vector<4x16x16xf32>
    %45 = vector.extract_strided_slice %32 {offsets = [0, 2, 0], sizes = [4, 16, 20], strides = [1, 1, 1]} : vector<4x20x20xf32> to vector<4x16x20xf32>
    %46 = vector.extract_strided_slice %45 {offsets = [0, 0, 0], sizes = [4, 16, 16], strides = [1, 1, 1]} : vector<4x16x20xf32> to vector<4x16x16xf32>
    %47 = vector.extract_strided_slice %45 {offsets = [0, 0, 1], sizes = [4, 16, 16], strides = [1, 1, 1]} : vector<4x16x20xf32> to vector<4x16x16xf32>
    %48 = vector.extract_strided_slice %45 {offsets = [0, 0, 2], sizes = [4, 16, 16], strides = [1, 1, 1]} : vector<4x16x20xf32> to vector<4x16x16xf32>
    %49 = vector.extract_strided_slice %45 {offsets = [0, 0, 3], sizes = [4, 16, 16], strides = [1, 1, 1]} : vector<4x16x20xf32> to vector<4x16x16xf32>
    %50 = vector.extract_strided_slice %45 {offsets = [0, 0, 4], sizes = [4, 16, 16], strides = [1, 1, 1]} : vector<4x16x20xf32> to vector<4x16x16xf32>
    %51 = vector.extract_strided_slice %32 {offsets = [0, 3, 0], sizes = [4, 16, 20], strides = [1, 1, 1]} : vector<4x20x20xf32> to vector<4x16x20xf32>
    %52 = vector.extract_strided_slice %51 {offsets = [0, 0, 0], sizes = [4, 16, 16], strides = [1, 1, 1]} : vector<4x16x20xf32> to vector<4x16x16xf32>
    %53 = vector.extract_strided_slice %51 {offsets = [0, 0, 1], sizes = [4, 16, 16], strides = [1, 1, 1]} : vector<4x16x20xf32> to vector<4x16x16xf32>
    %54 = vector.extract_strided_slice %51 {offsets = [0, 0, 2], sizes = [4, 16, 16], strides = [1, 1, 1]} : vector<4x16x20xf32> to vector<4x16x16xf32>
    %55 = vector.extract_strided_slice %51 {offsets = [0, 0, 3], sizes = [4, 16, 16], strides = [1, 1, 1]} : vector<4x16x20xf32> to vector<4x16x16xf32>
    %56 = vector.extract_strided_slice %51 {offsets = [0, 0, 4], sizes = [4, 16, 16], strides = [1, 1, 1]} : vector<4x16x20xf32> to vector<4x16x16xf32>
    %57 = vector.extract_strided_slice %32 {offsets = [0, 4, 0], sizes = [4, 16, 20], strides = [1, 1, 1]} : vector<4x20x20xf32> to vector<4x16x20xf32>
    %58 = vector.extract_strided_slice %57 {offsets = [0, 0, 0], sizes = [4, 16, 16], strides = [1, 1, 1]} : vector<4x16x20xf32> to vector<4x16x16xf32>
    %59 = vector.extract_strided_slice %57 {offsets = [0, 0, 1], sizes = [4, 16, 16], strides = [1, 1, 1]} : vector<4x16x20xf32> to vector<4x16x16xf32>
    %60 = vector.extract_strided_slice %57 {offsets = [0, 0, 2], sizes = [4, 16, 16], strides = [1, 1, 1]} : vector<4x16x20xf32> to vector<4x16x16xf32>
    %61 = vector.extract_strided_slice %57 {offsets = [0, 0, 3], sizes = [4, 16, 16], strides = [1, 1, 1]} : vector<4x16x20xf32> to vector<4x16x16xf32>
    %62 = vector.extract_strided_slice %57 {offsets = [0, 0, 4], sizes = [4, 16, 16], strides = [1, 1, 1]} : vector<4x16x20xf32> to vector<4x16x16xf32>
    %cst = arith.constant 0.000000e+00 : f32
    %63 = vector.broadcast %cst : f32 to vector<28x16x16xf32>
    %64 = tpu.concatenate %34, %35, %36, %37, %38, %40, %41, %42, %43, %44, %46, %47, %48, %49, %50, %52 in 0 : vector<4x16x16xf32>, vector<4x16x16xf32>, vector<4x16x16xf32>, vector<4x16x16xf32>, vector<4x16x16xf32>, vector<4x16x16xf32>, vector<4x16x16xf32>, vector<4x16x16xf32>, vector<4x16x16xf32>, vector<4x16x16xf32>, vector<4x16x16xf32>, vector<4x16x16xf32>, vector<4x16x16xf32>, vector<4x16x16xf32>, vector<4x16x16xf32>, vector<4x16x16xf32> -> vector<64x16x16xf32>
    %65 = tpu.concatenate %53, %54, %55, %56, %58, %59, %60, %61, %62, %63 in 0 : vector<4x16x16xf32>, vector<4x16x16xf32>, vector<4x16x16xf32>, vector<4x16x16xf32>, vector<4x16x16xf32>, vector<4x16x16xf32>, vector<4x16x16xf32>, vector<4x16x16xf32>, vector<4x16x16xf32>, vector<28x16x16xf32> -> vector<64x16x16xf32>
    %66 = tpu.concatenate %64, %65 in 0 : vector<64x16x16xf32>, vector<64x16x16xf32> -> vector<128x16x16xf32>
    %67 = vector.shape_cast %66 : vector<128x16x16xf32> to vector<128x256xf32>
    %c0_22 = arith.constant 0 : index
    %c0_23 = arith.constant 0 : index
    %68 = vector.load %arg3[%c0_22, %c0_23] : memref<8x128xf32, #tpu.memory_space<vmem>>, vector<8x128xf32>
    %cst_24 = arith.constant dense<0.000000e+00> : vector<8x256xf32>
    %69 = tpu.matmul %68, %67, %cst_24 {dimension_numbers = #tpu.dot_dimension_numbers<[1], [0], [0], [1], [0, 0, 1, 1], [], []>} : vector<8x128xf32>, vector<128x256xf32>, vector<8x256xf32> -> vector<8x256xf32>
    %c0_25 = arith.constant 0 : index
    %c0_26 = arith.constant 0 : index
    %70 = vector.load %arg4[%c0_25, %c0_26] : memref<8x1xf32, #tpu.memory_space<vmem>>, vector<8x1xf32>
    %71 = vector.broadcast %70 : vector<8x1xf32> to vector<8x256xf32>
    %72 = arith.addf %69, %71 : vector<8x256xf32>
    %cst_27 = arith.constant 0.000000e+00 : f32
    %73 = vector.broadcast %cst_27 : f32 to vector<8x256xf32>
    %74 = arith.cmpf oge, %72, %73 : vector<8x256xf32>
    %cst_28 = arith.constant 0.00999999977 : f32
    %75 = vector.broadcast %cst_28 : f32 to vector<8x256xf32>
    %76 = arith.mulf %75, %72 : vector<8x256xf32>
    %77 = arith.select %74, %72, %76 : vector<8x256xi1>, vector<8x256xf32>
    %c0_29 = arith.constant 0 : index
    %c0_30 = arith.constant 0 : index
    %c0_31 = arith.constant 0 : index
    %78 = vector.load %arg5[%c0_29, %c0_30, %c0_31] : memref<1x8x256xf32, #tpu.memory_space<vmem>>, vector<1x8x256xf32>
    %79 = vector.shape_cast %78 : vector<1x8x256xf32> to vector<8x256xf32>
    %80 = vector.shape_cast %77 : vector<8x256xf32> to vector<1x8x256xf32>
    tpu.vector_store %arg5[%c0_29, %c0_30, %c0_31], %80 {strides = array<i32>} : memref<1x8x256xf32, #tpu.memory_space<vmem>>, vector<1x8x256xf32>,
    return
  }
  func.func @transform_0(%arg0: i32, %arg1: i32) -> (i32, i32, i32, i32) {
    %c0_i32 = arith.constant 0 : i32
    %c0_i32_0 = arith.constant 0 : i32
    %c0_i32_1 = arith.constant 0 : i32
    %c0_i32_2 = arith.constant 0 : i32
    return %arg0, %c0_i32, %c0_i32_0, %c0_i32_1 : i32, i32, i32, i32
  }
  func.func @transform_1(%arg0: i32, %arg1: i32) -> (i32, i32) {
    %c0_i32 = arith.constant 0 : i32
    %c0_i32_0 = arith.constant 0 : i32
    %c0_i32_1 = arith.constant 0 : i32
    return %c0_i32, %c0_i32_0 : i32, i32
  }
  func.func @transform_2(%arg0: i32, %arg1: i32) -> (i32, i32) {
    %c0_i32 = arith.constant 0 : i32
    %c0_i32_0 = arith.constant 0 : i32
    %c0_i32_1 = arith.constant 0 : i32
    return %c0_i32, %c0_i32_0 : i32, i32
  }
  func.func @transform_3(%arg0: i32, %arg1: i32) -> (i32, i32, i32) {
    %c0_i32 = arith.constant 0 : i32
    %c0_i32_0 = arith.constant 0 : i32
    return %arg0, %c0_i32, %arg1 : i32, i32, i32
  }
}

</mosaic_0001>

<bundles_post_ra>
// kernel: tpu_custom_call.1
= control target key start
LH: loop header
LB: loop body
LE: loop exit
PB: predicated region body
PF: predicated region fallthrough
CT: control target
= control target key end

     0   :  { %8 = vsyncpa [#allocation3], 0  ;;  %s12477_s0 = inlined_call_operand.hbm [shape: f32[2,4,16,16], index: 0, kind: input, shape index: {}]   ;;  %s12478_s1 = inlined_call_operand.vmem [shape: f32[8,128], index: 1, kind: input, shape index: {}]   ;;  %s12479_s2 = inlined_call_operand.vmem [shape: f32[8,1], index: 2, kind: input, shape index: {}]   ;;  %s12480_s3 = inlined_call_operand.hbm [shape: f32[2,8,256], index: 3, kind: output, shape index: {}]  }
   0x1   :  { %10 = vsyncpa [#allocation3 + $0x1], 0 }
   0x2   :  { %11 = vsyncpa [#allocation4], 0 }
   0x3   :  { %13 = vsyncpa [#allocation4 + $0x1], 0  ;;  %s6696_s12 = smov 0   ;;  %s6698_s13 = smov 0  }
   0x4   :  { %s6700_s14 = smov 0   ;;  %s6702_s15 = smov 0  }
   0x5   :  { %s6704_s16 = smov 0   ;;  %s6706_s17 = smov 0  }
   0x6 LB: > { %s5347_s18 = sadd.s32 4294967295, %s6653_s17   ;;  %s5348_s19 = sadd.s32 4294967294, %s6653_s17   ;;  %s6653_s17 = sphi %s6706_s17, %s19_s17   ;;  %s6649_s16 = sphi %s6704_s16, %s14017_s16   ;;  %s6645_s15 = sphi %s6702_s15, %s14016_s15   ;;  %s6641_s14 = sphi %s6700_s14, %s14015_s14   ;;  %s6637_s13 = sphi %s6698_s13, %s14014_s13   ;;  %s6633_s12 = sphi %s6696_s12, %s14013_s12  }
   0x7   : > { %s31_s20 = sadd.s32 1, %s6649_s16  ;;  %s38_s21 = sadd.s32 1, %s6641_s14 }
   0x8   : > { %p33_p0 = scmp.ge.s32.totalorder %s31_s20, 2  ;;  %p45_p1 = scmp.ne.s32.totalorder %s6641_s14, %s6637_s13 }
   0x9   : > { %p46_p2 = scmp.eq.s32.totalorder %s6653_s17, 0  ;;  %p51_p3 = scmp.ne.s32.totalorder %s6637_s13, %s6633_s12 }
   0xa   : > { %s14019_s20 = smov (%p33_p0, %s31_s20), 0  ;;  %p52_p5 = scmp.eq.s32.totalorder %s5347_s18, 0 }
   0xb   : > { %p6737_p4 = por %p46_p2, %p45_p1  ;;  %s35_s23 = ssub.s32 %s6649_s16, %s14019_s20 }
   0xc   : > { %p119_p6 = scmp.eq.s32.totalorder %s5347_s18, 1  ;;  %p36_p7 = scmp.eq.s32.totalorder %s35_s23, 0 }
   0xd   : > { %p6743_p8 = por %p52_p5, %p51_p3  ;;  %p125_p10 = scmp.eq.s32.totalorder %s5348_s19, 1 }
   0xe   : > { %p6747_p9 = por %p119_p6, %p45_p1  ;;  %p5350_p12 = scmp.ge.s32.totalorder %s6653_s17, 2 }
   0xf   : > { %s6752_s26 = scalar_select %p36_p7, %s6641_s14, %s38_s21  }
  0x10   : > { %p6754_p11 = por %p125_p10, %p51_p3  ;;  %p5384_p13 = scmp.lt.s32.totalorder %s6653_s17, 2 }
  0x11   : > { %s151_s28 = sand.u32 1, %s6641_s14   ;;  %s5370_s30 = sshll.u32 %s6649_s16, 6 }
  0x12   : > { %s5351_s29 = sshll.u32 %s151_s28, 6  ;;  %s160_s6 = scalar_lea.hbm %s12477_s0, %s5370_s30 }
  0x13   : > { %s155_s7 = scalar_lea.vmem [#allocation2], %s5351_s29  ;;  %s161_s9 = sshll.u32 %s160_s6, 4  ;;  %s162_s9 = int_to_ptr.hbm [resolvable:$true] %s161_s9 }
  0x14   : > { %s163_s8 = sshll.u32 %s155_s7, 4  ;;  %p5377_p0 = pnand %p5384_p13, %p6737_p4  ;;  %s164_s8 = int_to_ptr.vmem [resolvable:$true] %s163_s8 }
  0x15   : > { %p5354_p1 = scmp.ge.s32.totalorder %s6653_s17, 1  ;;  %s152_s10 = scalar_lea.sflag [#allocation3], %s151_s28 }
  0x16   : > { %s6655_s11 = smov 128   ;;  %s6656_s18 = smov 8  }
  0x17   : > { %5379 = dma.hbm_to_vmem [thread:$0]  (!%p5377_p0), %s162_s9, 1024, %s164_s8, %s152_s10, %s6655_s11, %s6655_s11, %s6656_s18  }
  0x18   : > { %p171_p2 = scmp.lt.s32.totalorder %s6653_s17, 3 }
  0x1a   : > { %p172_p3 = pnand %p5354_p1, %p171_p2 }
  0x1c   : > { %175 = sbr.rel (%p172_p3) target bundleno = 1261 (0x4ed), region = 32 }
  0x21   : > { %s6770_s19 = sand.u32 1, %s6637_s13  }
  0x22   : > { %s5355_s21 = sshll.u32 %s6770_s19, 6  ;;  %s178_s23 = scalar_lea.sflag [#allocation3], %s6770_s19 }
  0x23   : > { %s6774_s29 = scalar_lea.vmem [#allocation2], %s5355_s21 }
  0x24   : > { %6624 = dma.done.wait (%p6743_p8), %s178_s23, 1024  }
  0x25   : > { %6626 = vsyncadd (%p6743_p8), %s178_s23, 4294966272  ;;  %vm268_vm0 = vcmask 1041408   ;;  %vm330_vm1 = vcmask 1042432   ;;  %v6781_v0 = vld [vmem:[%s6774_s29 + $0x10] sm:$0xff]  ;;  %v227_v1 = vld [vmem:[%s6774_s29 + $0x18] sm:$0xff]  ;;  %vm317_vm2 = vcmask 1040384  }
  0x26   : > { %v5358_v2 = vld [vmem:[%s6774_s29 + $0x1f] sm:$0x1]  ;;  %v272_v4 = vrot.slane %v6781_v0, 6  ;;  %v273_v5 = vrot.slane %v227_v1, 6  ;;  %v229_v7 = vld [vmem:[%s6774_s29 + $0x28] sm:$0xff]  ;;  %v230_v11 = vld [vmem:[%s6774_s29 + $0x30] sm:$0xff] }
  0x27   : > { %v5362_v3 = vld [vmem:[%s6774_s29 + $0x1f] sm:$0x1]  ;;  %v298_v6 = vrot.slane %v5358_v2, 6  ;;  %v214_v9 = vld [vmem:[%s6774_s29 + $0x30] sm:$0x1]  ;;  %v276_v17 = vrot.slane %v229_v7, 6 }
  0x28   : > { %v310_v8 = vrot.slane %v5362_v3, 5  ;;  %v222_v10 = vld [vmem:[%s6774_s29 + $0x30] sm:$0x1]  ;;  %v6794_v12 = vsel %vm268_vm0, %v272_v4, %v273_v5  ;;  %v5359_v14 = vld [vmem:[%s6774_s29 + $0x2f] sm:$0x1]  ;;  %v278_v19 = vrot.slane %v230_v11, 6 }
  0x29   : > { %v327_v13 = vsel %vm268_vm0, %v273_v5, %v298_v6  ;;  %v5363_v15 = vld [vmem:[%s6774_s29 + $0x2f] sm:$0x1]  ;;  %v255_v16 = vrot.slane %v222_v10, 7  ;;  %v299_v20 = vrot.slane %v5359_v14, 6  ;;  %v211_v22 = vld [vmem:[%s6774_s29] sm:$0x1] }
  0x2a   : > { %v6800_v18 = vsel %vm330_vm1, %v327_v13, %v310_v8  ;;  %v311_v21 = vrot.slane %v5363_v15, 5  ;;  %v224_v23 = vld [vmem:[%s6774_s29] sm:$0xff]  ;;  %v225_v27 = vld [vmem:[%s6774_s29 + $0x8] sm:$0xff]  ;;  %v231_v29 = vld [vmem:[%s6774_s29 + $0x38] sm:$0xff]  ;;  %s6657_s22 = smov 1   ;;  %s6658_s24 = smov 2  }
  0x2b   : > { %v6806_v24 = vpack.i.bf16 %v6800_v18, %v6794_v12  ;;  %v321_v25 = vsel %vm317_vm2, %v214_v9, %v255_v16  ;;  %v219_v26 = vld [vmem:[%s6774_s29] sm:$0x1]  ;;  %v269_v28 = vrot.slane %v224_v23, 6  ;;  %v328_v31 = vsel %vm268_vm0, %v276_v17, %v299_v20  ;;  %v5360_v34 = vld [vmem:[%s6774_s29 + $0x3f] sm:$0x1]  ;;  %s6659_s28 = smov 3  }
  0x2c   : > { %v6813_v30 = vsel %vm268_vm0, %v321_v25, %v278_v19  ;;  %v252_v32 = vrot.slane %v219_v26, 7  ;;  %v270_v33 = vrot.slane %v225_v27, 6  ;;  %v5364_v35 = vld [vmem:[%s6774_s29 + $0x3f] sm:$0x1]  ;;  %v6821_v36 = vsel %vm330_vm1, %v328_v31, %v311_v21  ;;  %v213_v40 = vld [vmem:[%s6774_s29 + $0x20] sm:$0x1] }
  0x2d   : > { %5466 = vrot.lane.b32.xlu1 %v6806_v24, %s6657_s22  ;;  %v279_v37 = vrot.slane %v231_v29, 6  ;;  %v300_v38 = vrot.slane %v5360_v34, 6  ;;  %v312_v39 = vrot.slane %v5364_v35, 5  ;;  %v228_v41 = vld [vmem:[%s6774_s29 + $0x20] sm:$0xff]  ;;  %v5475_v42 = vpack.i.bf16 %v6813_v30, %v6821_v36  ;;  %v212_v47 = vld [vmem:[%s6774_s29 + $0x10] sm:$0x1] }
  0x2e   : > { %v6828_v43 = vsel %vm268_vm0, %v269_v28, %v270_v33  ;;  %v318_v44 = vsel %vm317_vm2, %v211_v22, %v252_v32  ;;  %v221_v45 = vld [vmem:[%s6774_s29 + $0x20] sm:$0x1]  ;;  %v275_v46 = vrot.slane %v228_v41, 6  ;;  %v220_v51 = vld [vmem:[%s6774_s29 + $0x10] sm:$0x1]  ;;  %s6660_s30 = smov 4  }
  0x2f   : > { %v6834_v48 = vsel %vm268_vm0, %v318_v44, %v269_v28  ;;  %v329_v49 = vsel %vm268_vm0, %v279_v37, %v300_v38  ;;  %v254_v50 = vrot.slane %v221_v45, 7  ;;  %v5357_v52 = vld [vmem:[%s6774_s29 + $0xf] sm:$0x1]  ;;  %5476 = vrot.lane.b32.xlu2 %v5475_v42, %s6657_s22  ;;  %v6843_v54 = vsel %vm268_vm0, %v278_v19, %v279_v37  ;;  %s6661_s4 = smov 127   ;;  %s6662_s5 = smov 126  }
  0x30   : > { %v5455_v53 = vpack.i.bf16 %v6828_v43, %v6834_v48  ;;  %v6846_v55 = vsel %vm268_vm0, %v275_v46, %v276_v17  ;;  %v5361_v56 = vld [vmem:[%s6774_s29 + $0xf] sm:$0x1]  ;;  %v253_v57 = vrot.slane %v220_v51, 7  ;;  %v6850_v58 = vsel %vm330_vm1, %v329_v49, %v312_v39  ;;  %s6664_s6 = smov 125   ;;  %s6665_s7 = smov 124  }
  0x31   : > { %v320_v59 = vsel %vm317_vm2, %v213_v40, %v254_v50  ;;  %v297_v60 = vrot.slane %v5357_v52, 6  ;;  %v309_v61 = vrot.slane %v5361_v56, 5  ;;  %v5480_v5 = vpack.i.bf16 %v6850_v58, %v6843_v54  ;;  %s6668_s8 = smov 16   ;;  %s6669_s9 = smov 32  }
  0x32   : > { %5456 = vrot.lane.b32.xlu0 %v5455_v53, %s6657_s22  ;;  %v6855_v62 = vsel %vm268_vm0, %v320_v59, %v275_v46  ;;  %v319_v63 = vsel %vm317_vm2, %v212_v47, %v253_v57  ;;  %vm487_vm3 = vcmask 7168   ;;  %vm500_vm4 = vcmask 15360   ;;  %s6670_s10 = smov 48   ;;  %s6671_s11 = smov 64  }
  0x33   : > { %v5470_v1 = vpack.i.bf16 %v6846_v55, %v6855_v62  ;;  %v6863_v2 = vsel %vm268_vm0, %v319_v63, %v272_v4  ;;  %v326_v3 = vsel %vm268_vm0, %v270_v33, %v297_v60  ;;  %vm513_vm5 = vcmask 146432   ;;  %s6672_s18 = smov 80   ;;  %s6673_s21 = smov 96  }
  0x34   : > { %v6869_v6 = vsel %vm330_vm1, %v326_v3, %v309_v61  ;;  %vm526_vm6 = vcmask 154624   ;;  %vm897_vm7 = vcmask 1044480   ;;  %vm1381_vm8 = vcmask 1047556   ;;  %s6674_s23 = smov 112   ;;  %s6591_s29 = scalar_lea.hbm %s12480_s3, 32 }
  0x35   : > { %5471 = vrot.lane.b32.xlu1 %v5470_v1, %s6657_s22  ;;  %v5460_v7 = vpack.i.bf16 %v6863_v2, %v6869_v6  ;;  %vm647_vm9 = vcmask 1046528   ;;  %vm772_vm10 = vcmask 1045504   ;;  %vm4990_vm11 = vcmask 130048  }
  0x36   : > { %vm5005_vm12 = vcmask 261120   ;;  %vm5020_vm13 = vcmask 392192   ;;  %vm5035_vm14 = vcmask 523264   ;;  %vm5050_vm15 = vcmask 654336  }
  0x37   : > { %5481 = vrot.lane.b32.xlu2 %v5480_v5, %s6657_s22  ;;  %vm5065_vm0 = vcmask 785408   ;;  %vm5080_vm1 = vcmask 916480  }
  0x3a   : > { %5461 = vrot.lane.b32.xlu0 %v5460_v7, %s6657_s22 }
  0x3d   : > { %5491 = vrot.lane.b32.xlu1 %v5460_v7, %s6658_s24 }
  0x3f   : > { %5496 = vrot.lane.b32.xlu2 %v6806_v24, %s6658_s24 }
  0x42   : > { %5486 = vrot.lane.b32.xlu0 %v5455_v53, %s6658_s24 }
  0x45   : > { %5506 = vrot.lane.b32.xlu1 %v5475_v42, %s6658_s24 }
  0x47   : > { %5511 = vrot.lane.b32.xlu2 %v5480_v5, %s6658_s24 }
  0x4a   : > { %5501 = vrot.lane.b32.xlu0 %v5470_v1, %s6658_s24 }
  0x4d   : > { %5521 = vrot.lane.b32.xlu1 %v5460_v7, %s6659_s28 }
  0x4f   : > { %5526 = vrot.lane.b32.xlu2 %v6806_v24, %s6659_s28 }
  0x52   : > { %5516 = vrot.lane.b32.xlu0 %v5455_v53, %s6659_s28 }
  0x55   : > { %5536 = vrot.lane.b32.xlu1 %v5475_v42, %s6659_s28 }
  0x57   : > { %5541 = vrot.lane.b32.xlu2 %v5480_v5, %s6659_s28 }
  0x5a   : > { %5531 = vrot.lane.b32.xlu0 %v5470_v1, %s6659_s28 }
  0x5d   : > { %5551 = vrot.lane.b32.xlu1 %v5460_v7, %s6660_s30 }
  0x5f   : > { %5556 = vrot.lane.b32.xlu2 %v6806_v24, %s6660_s30 }
  0x62   : > { %5546 = vrot.lane.b32.xlu0 %v5455_v53, %s6660_s30 }
  0x65   : > { %5566 = vrot.lane.b32.xlu1 %v5475_v42, %s6660_s30 }
  0x67   : > { %5571 = vrot.lane.b32.xlu2 %v5480_v5, %s6660_s30 }
  0x6a   : > { %5561 = vrot.lane.b32.xlu0 %v5470_v1, %s6660_s30  ;;  %s5356_s30 = sshll.u32 %s6770_s19, 4 }
  0x89   : > { %v6879_v0 = vpop.permute.xlu2 %5476 }
  0x91   : > { %v5482_v4 = vpop.permute.xlu2 %5481 }
  0x92   : > { %v5484_v33 = vunpack.i.h.bf16 %v5482_v4  ;;  %v5483_v34 = vunpack.i.l.bf16 %v5482_v4 }
  0x94   : > { %v499_v45 = vsel %vm487_vm3, %v6850_v58, %v5484_v33  ;;  %v498_v46 = vsel %vm487_vm3, %v6843_v54, %v5483_v34 }
  0x99   : > { %v5497_v8 = vpop.permute.xlu2 %5496 }
  0x9a   : > { %v5499_v23 = vunpack.i.h.bf16 %v5497_v8  ;;  %v5498_v24 = vunpack.i.l.bf16 %v5497_v8 }
  0x9f   : > { %v5467_v9 = vpop.permute.xlu1 %5466 }
  0xa0   : > { %v5469_v20 = vunpack.i.h.bf16 %v5467_v9  ;;  %v5468_v21 = vunpack.i.l.bf16 %v5467_v9 }
  0xa1   : > { %v5512_v10 = vpop.permute.xlu2 %5511 }
  0xa2   : > { %v493_v25 = vsel %vm487_vm3, %v6800_v18, %v5469_v20  ;;  %v492_v26 = vsel %vm487_vm3, %v6794_v12, %v5468_v21  ;;  %v5514_v41 = vunpack.i.h.bf16 %v5512_v10  ;;  %v5513_v42 = vunpack.i.l.bf16 %v5512_v10 }
  0xa3   : > { %v505_v35 = vsel %vm500_vm4, %v492_v26, %v5498_v24  ;;  %v506_v37 = vsel %vm500_vm4, %v493_v25, %v5499_v23 }
  0xa4   : > { %v6881_v11 = vpop.permute.xlu0 %5456  ;;  %v511_v53 = vsel %vm500_vm4, %v498_v46, %v5513_v42  ;;  %v512_v56 = vsel %vm500_vm4, %v499_v45, %v5514_v41  ;;  %v5479_v42 = vunpack.i.h.bf16 %v6879_v0 }
  0xa7   : > { %v6883_v13 = vpop.permute.xlu1 %5471 }
  0xa9   : > { %v5527_v14 = vpop.permute.xlu2 %5526 }
  0xaa   : > { %v5529_v27 = vunpack.i.h.bf16 %v5527_v14  ;;  %v5528_v28 = vunpack.i.l.bf16 %v5527_v14 }
  0xac   : > { %v6885_v15 = vpop.permute.xlu0 %5461  ;;  %v518_v18 = vsel %vm513_vm5, %v505_v35, %v5528_v28  ;;  %v519_v39 = vsel %vm513_vm5, %v506_v37, %v5529_v27  ;;  %v5459_v28 = vunpack.i.h.bf16 %v6881_v11 }
  0xad   : > { %v5464_v9 = vunpack.i.h.bf16 %v6885_v15  ;;  %v5463_v10 = vunpack.i.l.bf16 %v6885_v15 }
  0xaf   : > { %v6887_v16 = vpop.permute.xlu1 %5491  ;;  %v491_v15 = vsel %vm487_vm3, %v6863_v2, %v5464_v9  ;;  %v490_v27 = vsel %vm487_vm3, %v6869_v6, %v5463_v10 }
  0xb0   : > { %v5494_v20 = vunpack.i.h.bf16 %v6887_v16  ;;  %v5493_v21 = vunpack.i.l.bf16 %v6887_v16 }
  0xb1   : > { %v5542_v17 = vpop.permute.xlu2 %5541 }
  0xb2   : > { %v5544_v47 = vunpack.i.h.bf16 %v5542_v17  ;;  %v5543_v49 = vunpack.i.l.bf16 %v5542_v17  ;;  %v503_v16 = vsel %vm500_vm4, %v490_v27, %v5493_v21 }
  0xb4   : > { %v6889_v19 = vpop.permute.xlu0 %5486  ;;  %v524_v60 = vsel %vm513_vm5, %v511_v53, %v5543_v49  ;;  %v525_v58 = vsel %vm513_vm5, %v512_v56, %v5544_v47 }
  0xb5   : > { %v5489_v33 = vunpack.i.h.bf16 %v6889_v19  ;;  %v5488_v34 = vunpack.i.l.bf16 %v6889_v19 }
  0xb7   : > { %v6891_v22 = vpop.permute.xlu1 %5506 }
  0xb8   : > { %v5509_v49 = vunpack.i.h.bf16 %v6891_v22 }
  0xb9   : > { %v5557_v29 = vpop.permute.xlu2 %5556 }
  0xba   : > { %v5559_v31 = vunpack.i.h.bf16 %v5557_v29  ;;  %v5558_v32 = vunpack.i.l.bf16 %v5557_v29  ;;  %v5458_v29 = vunpack.i.l.bf16 %v6881_v11 }
  0xbc   : > { %v6899_v38 = vpop.permute.xlu0 %5501  ;;  %v6904_v12 = vsel %vm526_vm6, %v518_v18, %v5558_v32  ;;  %v6907_v40 = vsel %vm526_vm6, %v519_v39, %v5559_v31  ;;  %v504_v31 = vsel %vm500_vm4, %v491_v15, %v5494_v20  ;;  %v488_v19 = vsel %vm487_vm3, %v6834_v48, %v5458_v29 }
  0xbd   : > { %12895 = vst [vmem:[#allocation8_spill] sm:$0xff] %v6904_v12  ;;  %v904_v50 = vrot.slane %v6904_v12, 3  ;;  %v906_v51 = vrot.slane %v6907_v40, 3  ;;  %v501_v46 = vsel %vm500_vm4, %v488_v19, %v5488_v34  ;;  %v5503_v20 = vunpack.i.l.bf16 %v6899_v38 }
  0xbf   : > { %v5522_v44 = vpop.permute.xlu1 %5521  ;;  %v6928_v1 = vsel %vm897_vm7, %v904_v50, %v906_v51 }
  0xc0   : > { %v3652_v4 = vrot.slane %v6928_v1, 4  ;;  %v5524_v25 = vunpack.i.h.bf16 %v5522_v44  ;;  %v5523_v26 = vunpack.i.l.bf16 %v5522_v44  ;;  %v489_v44 = vsel %vm487_vm3, %v6828_v43, %v5459_v28 }
  0xc1   : > { %v5572_v52 = vpop.permute.xlu2 %5571  ;;  %v502_v47 = vsel %vm500_vm4, %v489_v44, %v5489_v33 }
  0xc2   : > { %v5574_v57 = vunpack.i.h.bf16 %v5572_v52  ;;  %v5573_v59 = vunpack.i.l.bf16 %v5572_v52  ;;  %v516_v2 = vsel %vm513_vm5, %v503_v16, %v5523_v26  ;;  %v517_v18 = vsel %vm513_vm5, %v504_v31, %v5524_v25 }
  0xc4   : > { %v5517_v61 = vpop.permute.xlu0 %5516  ;;  %v6920_v54 = vsel %vm526_vm6, %v524_v60, %v5573_v59  ;;  %v6923_v63 = vsel %vm526_vm6, %v525_v58, %v5574_v57  ;;  %v497_v59 = vsel %vm487_vm3, %v6813_v30, %v5479_v42  ;;  %v5504_v30 = vunpack.i.h.bf16 %v6899_v38 }
  0xc5   : > { %12896 = vst [vmem:[#allocation9_spill] sm:$0xff] %v6920_v54  ;;  %v914_v5 = vrot.slane %v6920_v54, 3  ;;  %v916_v7 = vrot.slane %v6923_v63, 3  ;;  %v5519_v6 = vunpack.i.h.bf16 %v5517_v61  ;;  %v5518_v39 = vunpack.i.l.bf16 %v5517_v61 }
  0xc7   : > { %v6930_v3 = vpop.permute.xlu1 %5536  ;;  %v6938_v8 = vsel %vm897_vm7, %v914_v5, %v916_v7  ;;  %v514_v48 = vsel %vm513_vm5, %v501_v46, %v5518_v39  ;;  %v515_v56 = vsel %vm513_vm5, %v502_v47, %v5519_v6  ;;  %v5474_v7 = vunpack.i.h.bf16 %v6883_v13 }
  0xc8   : > { %v3650_v14 = vrot.slane %v6938_v8, 4  ;;  %v6945_v17 = vsel %vm1381_vm8, %v6938_v8, %v3652_v4  ;;  %v5539_v57 = vunpack.i.h.bf16 %v6930_v3  ;;  %v5473_v4 = vunpack.i.l.bf16 %v6883_v13 }
  0xc9   : > { %v495_v15 = vsel %vm487_vm3, %v6846_v55, %v5474_v7 }
  0xca   : > { %v6953_v24 = vsel %vm1381_vm8, %v3650_v14, %v6928_v1  ;;  %v510_v14 = vsel %vm500_vm4, %v497_v59, %v5509_v49  ;;  %v494_v27 = vsel %vm487_vm3, %v6855_v62, %v5473_v4  ;;  %v508_v38 = vsel %vm500_vm4, %v495_v15, %v5504_v30 }
  0xcb   : > { %v523_v21 = vsel %vm513_vm5, %v510_v14, %v5539_v57  ;;  %v507_v29 = vsel %vm500_vm4, %v494_v27, %v5503_v20 }
  0xcc   : > { %v6949_v23 = vpop.permute.xlu0 %5531 }
  0xcd   : > { %v5534_v25 = vunpack.i.h.bf16 %v6949_v23  ;;  %v5533_v26 = vunpack.i.l.bf16 %v6949_v23 }
  0xcf   : > { %v5552_v32 = vpop.permute.xlu1 %5551  ;;  %v520_v23 = vsel %vm513_vm5, %v507_v29, %v5533_v26 }
  0xd0   : > { %v5554_v35 = vunpack.i.h.bf16 %v5552_v32  ;;  %v5553_v37 = vunpack.i.l.bf16 %v5552_v32  ;;  %v521_v32 = vsel %vm513_vm5, %v508_v38, %v5534_v25 }
  0xd2   : > { %v6968_v41 = vsel %vm526_vm6, %v516_v2, %v5553_v37  ;;  %v6971_v11 = vsel %vm526_vm6, %v517_v18, %v5554_v35  ;;  %v5478_v35 = vunpack.i.l.bf16 %v6879_v0  ;;  %v5508_v37 = vunpack.i.l.bf16 %v6891_v22 }
  0xd3   : > { %12897 = vst [vmem:[#allocation10_spill] sm:$0xff] %v6971_v11  ;;  %v6980_v45 = vpack.i.bf16 %v6904_v12, %v6971_v11  ;;  %v6989_v43 = vpack.i.bf16 %v6907_v40, %v6968_v41  ;;  %v5538_v2 = vunpack.i.l.bf16 %v6930_v3  ;;  %v6663_v22 = vmov 1983009808  }
  0xd4   : > { %v5547_v51 = vpop.permute.xlu0 %5546  ;;  %v496_v6 = vsel %vm487_vm3, %v6821_v36, %v5478_v35  ;;  %v1386_v42 = vunpack.c.l.s4 %v6663_v22  ;;  %v7076_v46 = vrot.slane %v6968_v41, 1  ;;  %v7178_v22 = vrot.slane %v6923_v63, 1 }
  0xd5   : > { %v5549_v52 = vunpack.i.h.bf16 %v5547_v51  ;;  %v5548_v53 = vunpack.i.l.bf16 %v5547_v51  ;;  %5581 = vrot.lane.b32.xlu1 %v6980_v45, %s6661_s4  ;;  %v509_v39 = vsel %vm500_vm4, %v496_v6, %v5508_v37  ;;  %v901_v51 = vrot.slane %v6968_v41, 3 }
  0xd6   : > { %v522_v0 = vsel %vm513_vm5, %v509_v39, %v5538_v2  ;;  %v7063_v3 = vunpack.c.0.s8 %v1386_v42  ;;  %12904 = vst [vmem:[#allocation17_spill] sm:$0xff] %v7076_v46  ;;  %v664_v42 = vrot.slane %v6920_v54, 1 }
  0xd7   : > { %v6997_v60 = vsel %vm526_vm6, %v514_v48, %v5548_v53  ;;  %v7000_v58 = vsel %vm526_vm6, %v515_v56, %v5549_v52  ;;  %v5567_v61 = vpop.permute.xlu1 %5566  ;;  %v903_v52 = vrot.slane %v6971_v11, 3  ;;  %12912 = vst [vmem:[#allocation25_spill] sm:$0xff] %v7178_v22 }
  0xd8   : > { %12898 = vst [vmem:[#allocation11_spill] sm:$0xff] %v6997_v60  ;;  %v7006_v9 = vpack.i.bf16 %v7000_v58, %v6997_v60  ;;  %v5569_v10 = vunpack.i.h.bf16 %v5567_v61  ;;  %v5568_v18 = vunpack.i.l.bf16 %v5567_v61  ;;  %v7073_v19 = vperm.slane %v6945_v17, %v7063_v3 }
  0xd9   : > { %12899 = vst [vmem:[#allocation12_spill] sm:$0xff] %v7000_v58  ;;  %v898_v47 = vrot.slane %v6997_v60, 3  ;;  %v899_v49 = vrot.slane %v7000_v58, 3  ;;  %v648_v59 = vrot.slane %v6997_v60, 1  ;;  %v7096_v7 = vsel %vm897_vm7, %v903_v52, %v904_v50 }
  0xda   : > { %5576 = vrot.lane.b32.xlu0 %v7006_v9, %s6661_s4  ;;  %v7017_v13 = vsel %vm526_vm6, %v523_v21, %v5569_v10  ;;  %v7057_v44 = vsel %vm526_vm6, %v522_v0, %v5568_v18  ;;  %12903 = vst [vmem:[#allocation16_spill] sm:$0xff] %v7073_v19  ;;  %v2203_v10 = vrot.slane %v7096_v7, 4  ;;  %v649_v50 = vrot.slane %v7000_v58, 1 }
  0xdb   : > { %12900 = vst [vmem:[#allocation13_spill] sm:$0xff] %v7017_v13  ;;  %v7031_v55 = vpack.i.bf16 %v6920_v54, %v7017_v13  ;;  %v7067_v36 = vpack.i.bf16 %v6923_v63, %v7057_v44  ;;  %v913_v53 = vrot.slane %v7017_v13, 3  ;;  %v7085_v56 = vsel %vm897_vm7, %v898_v47, %v899_v49 }
  0xdc   : > { %v5562_v28 = vpop.permute.xlu0 %5561  ;;  %v911_v57 = vrot.slane %v7057_v44, 3  ;;  %v7091_v61 = vsel %vm897_vm7, %v899_v49, %v901_v51  ;;  %v2191_v4 = vrot.slane %v7085_v56, 4  ;;  %v7152_v37 = vsel %vm647_vm9, %v648_v59, %v649_v50 }
  0xdd   : > { %v5564_v16 = vunpack.i.h.bf16 %v5562_v28  ;;  %v5563_v31 = vunpack.i.l.bf16 %v5562_v28  ;;  %5596 = vrot.lane.b32.xlu1 %v7006_v9, %s6662_s5  ;;  %v7107_v14 = vsel %vm897_vm7, %v913_v53, %v914_v5  ;;  %v3640_v26 = vrot.slane %v7091_v61, 4  ;;  %12908 = vst [vmem:[#allocation21_spill] sm:$0xff] %v7152_v37 }
  0xde   : > { %v2201_v20 = vrot.slane %v7107_v14, 4  ;;  %v2204_v15 = vsel %vm1381_vm8, %v7107_v14, %v2203_v10  ;;  %v7156_v2 = vsel %vm647_vm9, %v649_v50, %v7076_v46  ;;  %v663_v0 = vrot.slane %v7017_v13, 1 }
  0xdf   : > { %v7034_v62 = vsel %vm526_vm6, %v520_v23, %v5563_v31  ;;  %v7037_v33 = vsel %vm526_vm6, %v521_v32, %v5564_v16  ;;  %v7131_v38 = vperm.slane %v2204_v15, %v7063_v3  ;;  %12909 = vst [vmem:[#allocation22_spill] sm:$0xff] %v7156_v2  ;;  %v7172_v39 = vpack.i.bf16 %v7156_v2, %v7152_v37 }
  0xe0   : > { %12901 = vst [vmem:[#allocation14_spill] sm:$0xff] %v7034_v62  ;;  %v7041_v34 = vpack.i.bf16 %v7037_v33, %v7034_v62  ;;  %v908_v48 = vrot.slane %v7034_v62, 3  ;;  %v909_v17 = vrot.slane %v7037_v33, 3  ;;  %v7128_v28 = vsel %vm1381_vm8, %v2201_v20, %v7096_v7 }
  0xe1   : > { %12902 = vst [vmem:[#allocation15_spill] sm:$0xff] %v7037_v33  ;;  %v2249_v23 = vrot.slane %v7131_v38, 4  ;;  %v7182_v47 = vsel %vm647_vm9, %v663_v0, %v664_v42  ;;  %v7185_v49 = vrot.slane %v7057_v44, 1  ;;  %v658_v51 = vrot.slane %v7034_v62, 1 }
  0xe2   : > { %5586 = vrot.lane.b32.xlu2 %v7041_v34, %s6661_s4  ;;  %5591 = vrot.lane.b32.xlu0 %v7031_v55, %s6661_s4  ;;  %v7110_v30 = vsel %vm897_vm7, %v908_v48, %v909_v17  ;;  %v7115_v21 = vsel %vm897_vm7, %v909_v17, %v911_v57  ;;  %12905 = vst [vmem:[#allocation18_spill] sm:$0xff] %v7131_v38  ;;  %v659_v52 = vrot.slane %v7037_v33, 1  ;;  %v7199_v48 = vrot.slane %v6907_v40, 1 }
  0xe3   : > { %v2189_v25 = vrot.slane %v7110_v30, 4  ;;  %v3638_v5 = vrot.slane %v7115_v21, 4  ;;  %v2192_v27 = vsel %vm1381_vm8, %v7110_v30, %v2191_v4  ;;  %v3641_v31 = vsel %vm1381_vm8, %v7115_v21, %v3640_v26  ;;  %12913 = vst [vmem:[#allocation26_spill] sm:$0xff] %v7182_v47 }
  0xe4   : > { %v7146_v32 = vperm.slane %v2192_v27, %v7063_v3  ;;  %v7149_v35 = vperm.slane %v3641_v31, %v7063_v3  ;;  %12914 = vst [vmem:[#allocation27_spill] sm:$0xff] %v7185_v49  ;;  %v7196_v53 = vsel %vm647_vm9, %v664_v42, %v7178_v22  ;;  %v654_v17 = vrot.slane %v6904_v12, 1 }
  0xe5   : > { %5611 = vrot.lane.b32.xlu1 %v7031_v55, %s6662_s5  ;;  %v7135_v29 = vsel %vm1381_vm8, %v2189_v25, %v7085_v56  ;;  %v7139_v16 = vsel %vm1381_vm8, %v3638_v5, %v7091_v61  ;;  %12915 = vst [vmem:[#allocation28_spill] sm:$0xff] %v7196_v53  ;;  %v5670_v57 = vpack.i.bf16 %v7196_v53, %v7182_v47  ;;  %v786_v20 = vrot.slane %v7057_v44, 2 }
  0xe6   : > { %12906 = vst [vmem:[#allocation19_spill] sm:$0xff] %v7146_v32  ;;  %v7160_v18 = vsel %vm1381_vm8, %v2249_v23, %v7146_v32  ;;  %v7217_v4 = vsel %vm647_vm9, %v654_v17, %v7199_v48  ;;  %v783_v25 = vrot.slane %v7034_v62, 2  ;;  %v784_v26 = vrot.slane %v7037_v33, 2 }
  0xe7   : > { %12907 = vst [vmem:[#allocation20_spill] sm:$0xff] %v7149_v35  ;;  %v776_v27 = vrot.slane %v6968_v41, 2  ;;  %v778_v31 = vrot.slane %v6971_v11, 2  ;;  %v774_v44 = vrot.slane %v7000_v58, 2  ;;  %v781_v23 = vrot.slane %v6907_v40, 2 }
  0xe8   : > { %12910 = vst [vmem:[#allocation23_spill] sm:$0xff] %v7160_v18  ;;  %v7247_v15 = vsel %vm772_vm10, %v783_v25, %v784_v26  ;;  %v7250_v5 = vsel %vm772_vm10, %v784_v26, %v786_v20  ;;  %v779_v0 = vrot.slane %v6904_v12, 2  ;;  %v789_v20 = vrot.slane %v6920_v54, 2 }
  0xe9   : > { %12919 = vst [vmem:[#allocation32_spill] sm:$0xff] %v7217_v4  ;;  %v5745_v42 = vpack.i.bf16 %v7250_v5, %v7247_v15 }
  0xea   : > { %5601 = vrot.lane.b32.xlu2 %v6980_v45, %s6662_s5  ;;  %5606 = vrot.lane.b32.xlu0 %v7041_v34, %s6662_s5  ;;  %12920 = vst [vmem:[#allocation33_spill] sm:$0xff] %v7247_v15  ;;  %v7264_v41 = vsel %vm772_vm10, %v778_v31, %v779_v0 }
  0xeb   : > { %12921 = vst [vmem:[#allocation34_spill] sm:$0xff] %v7250_v5 }
  0xec   : > { %12922 = vst [vmem:[#allocation35_spill] sm:$0xff] %v7264_v41 }
  0xed   : > { %5626 = vrot.lane.b32.xlu1 %v7041_v34, %s6664_s6 }
  0xf2   : > { %5616 = vrot.lane.b32.xlu2 %v7006_v9, %s6664_s6  ;;  %5621 = vrot.lane.b32.xlu0 %v6980_v45, %s6664_s6 }
  0xf5   : > { %5641 = vrot.lane.b32.xlu1 %v6980_v45, %s6665_s7  ;;  %v3698_v45 = vrot.slane %v7073_v19, 4 }
  0xf7   : > { %v7164_v6 = vsel %vm1381_vm8, %v3698_v45, %v7149_v35  ;;  %v773_v45 = vrot.slane %v6997_v60, 2 }
  0xf8   : > { %12911 = vst [vmem:[#allocation24_spill] sm:$0xff] %v7164_v6 }
  0xfa   : > { %5631 = vrot.lane.b32.xlu2 %v7031_v55, %s6664_s6  ;;  %5636 = vrot.lane.b32.xlu0 %v7006_v9, %s6665_s7  ;;  %v653_v9 = vrot.slane %v6971_v11, 1 }
  0xfc   : > { %v7205_v59 = vsel %vm647_vm9, %v653_v9, %v654_v17  ;;  %v7267_v9 = vsel %vm772_vm10, %v773_v45, %v774_v44 }
  0xfd   : > { %5656 = vrot.lane.b32.xlu1 %v7172_v39, %s6661_s4  ;;  %12916 = vst [vmem:[#allocation29_spill] sm:$0xff] %v7205_v59  ;;  %v5660_v10 = vpack.i.bf16 %v7217_v4, %v7205_v59 }
  0xfe   : > { %12923 = vst [vmem:[#allocation36_spill] sm:$0xff] %v7267_v9 }
 0x102   : > { %5646 = vrot.lane.b32.xlu2 %v7041_v34, %s6665_s7  ;;  %5651 = vrot.lane.b32.xlu0 %v7031_v55, %s6665_s7  ;;  %v7208_v34 = vsel %vm647_vm9, %v658_v51, %v659_v52  ;;  %v7212_v55 = vsel %vm647_vm9, %v659_v52, %v7185_v49  ;;  %v7270_v51 = vsel %vm772_vm10, %v774_v44, %v776_v27 }
 0x103   : > { %12917 = vst [vmem:[#allocation30_spill] sm:$0xff] %v7208_v34  ;;  %v7223_v50 = vpack.i.bf16 %v7212_v55, %v7208_v34  ;;  %v7274_v52 = vsel %vm772_vm10, %v779_v0, %v781_v23  ;;  %v5735_v17 = vpack.i.bf16 %v7270_v51, %v7267_v9 }
 0x104   : > { %12918 = vst [vmem:[#allocation31_spill] sm:$0xff] %v7212_v55  ;;  %v5740_v40 = vpack.i.bf16 %v7274_v52, %v7264_v41 }
 0x105   : > { %5671 = vrot.lane.b32.xlu1 %v5670_v57, %s6661_s4  ;;  %12924 = vst [vmem:[#allocation37_spill] sm:$0xff] %v7270_v51 }
 0x106   : > { %12925 = vst [vmem:[#allocation38_spill] sm:$0xff] %v7274_v52 }
 0x10a   : > { %5661 = vrot.lane.b32.xlu2 %v5660_v10, %s6661_s4  ;;  %5666 = vrot.lane.b32.xlu0 %v7223_v50, %s6661_s4 }
 0x10d   : > { %5686 = vrot.lane.b32.xlu1 %v7223_v50, %s6662_s5 }
 0x112   : > { %5681 = vrot.lane.b32.xlu0 %v5660_v10, %s6662_s5  ;;  %5676 = vrot.lane.b32.xlu2 %v7172_v39, %s6662_s5 }
 0x115   : > { %5701 = vrot.lane.b32.xlu1 %v5660_v10, %s6664_s6 }
 0x11a   : > { %5696 = vrot.lane.b32.xlu0 %v7172_v39, %s6664_s6  ;;  %5691 = vrot.lane.b32.xlu2 %v5670_v57, %s6662_s5 }
 0x11d   : > { %5716 = vrot.lane.b32.xlu1 %v7172_v39, %s6665_s7 }
 0x122   : > { %5711 = vrot.lane.b32.xlu0 %v5670_v57, %s6664_s6  ;;  %5706 = vrot.lane.b32.xlu2 %v7223_v50, %s6664_s6 }
 0x125   : > { %5731 = vrot.lane.b32.xlu1 %v5670_v57, %s6665_s7  ;;  %v788_v57 = vrot.slane %v7017_v13, 2 }
 0x127   : > { %v7286_v25 = vsel %vm772_vm10, %v788_v57, %v789_v20 }
 0x128   : > { %12926 = vst [vmem:[#allocation39_spill] sm:$0xff] %v7286_v25 }
 0x12a   : > { %5726 = vrot.lane.b32.xlu0 %v7223_v50, %s6665_s7  ;;  %5721 = vrot.lane.b32.xlu2 %v5660_v10, %s6665_s7  ;;  %v791_v10 = vrot.slane %v6923_v63, 2 }
 0x12c   : > { %v7290_v26 = vsel %vm772_vm10, %v789_v20, %v791_v10 }
 0x12d   : > { %5746 = vrot.lane.b32.xlu1 %v5745_v42, %s6661_s4  ;;  %12927 = vst [vmem:[#allocation40_spill] sm:$0xff] %v7290_v26  ;;  %v5750_v27 = vpack.i.bf16 %v7290_v26, %v7286_v25 }
 0x132   : > { %5741 = vrot.lane.b32.xlu0 %v5740_v40, %s6661_s4  ;;  %5736 = vrot.lane.b32.xlu2 %v5735_v17, %s6661_s4 }
 0x135   : > { %5761 = vrot.lane.b32.xlu1 %v5740_v40, %s6662_s5 }
 0x13a   : > { %5756 = vrot.lane.b32.xlu0 %v5735_v17, %s6662_s5  ;;  %5751 = vrot.lane.b32.xlu2 %v5750_v27, %s6661_s4 }
 0x13c   : > { %v5587_v31 = vpop.permute.xlu2 %5586 }
 0x13d   : > { %5776 = vrot.lane.b32.xlu1 %v5735_v17, %s6664_s6  ;;  %v7300_v44 = vunpack.i.h.bf16 %v5587_v31  ;;  %v7304_v23 = vunpack.i.l.bf16 %v5587_v31 }
 0x13f   : > { %12928 = vst [vmem:[#allocation41_spill] sm:$0xff] %v7300_v44  ;;  %v2854_v6 = vrot.slane %v7300_v44, 4  ;;  %v1405_v19 = vrot.slane %v7304_v23, 4 }
 0x142   : > { %5771 = vrot.lane.b32.xlu0 %v5750_v27, %s6662_s5  ;;  %5766 = vrot.lane.b32.xlu2 %v5745_v42, %s6662_s5 }
 0x144   : > { %v5602_v63 = vpop.permute.xlu2 %5601 }
 0x145   : > { %5791 = vrot.lane.b32.xlu1 %v5750_v27, %s6664_s6  ;;  %v7355_v11 = vunpack.i.l.bf16 %v5602_v63 }
 0x147   : > { %v5582_v45 = vpop.permute.xlu1 %5581  ;;  %v1024_v41 = vrot.slane %v7355_v11, 3 }
 0x148   : > { %v7325_v54 = vunpack.i.h.bf16 %v5582_v45 }
 0x14a   : > { %5786 = vrot.lane.b32.xlu0 %v5745_v42, %s6664_s6  ;;  %5781 = vrot.lane.b32.xlu2 %v5740_v40, %s6664_s6 }
 0x14c   : > { %v7306_v0 = vpop.permute.xlu2 %5616  ;;  %v5577_v57 = vpop.permute.xlu0 %5576 }
 0x14d   : > { %v7308_v10 = vunpack.i.h.bf16 %v5577_v57  ;;  %v7310_v20 = vunpack.i.l.bf16 %v5577_v57  ;;  %5806 = vrot.lane.b32.xlu1 %v5745_v42, %s6665_s7 }
 0x14f   : > { %12929 = vst [vmem:[#allocation42_spill] sm:$0xff] %v7308_v10  ;;  %v5597_v58 = vpop.permute.xlu1 %5596  ;;  %v7317_v12 = vsel %vm1381_vm8, %v2854_v6, %v7308_v10  ;;  %v2856_v31 = vrot.slane %v7308_v10, 4  ;;  %v7322_v33 = vsel %vm1381_vm8, %v1405_v19, %v7310_v20  ;;  %v1407_v57 = vrot.slane %v7310_v20, 4 }
 0x150   : > { %12930 = vst [vmem:[#allocation43_spill] sm:$0xff] %v7310_v20  ;;  %v7333_v6 = vunpack.i.l.bf16 %v5582_v45 }
 0x151   : > { %12931 = vst [vmem:[#allocation44_spill] sm:$0xff] %v7317_v12  ;;  %v7329_v42 = vsel %vm1381_vm8, %v7300_v44, %v2856_v31  ;;  %v1408_v18 = vsel %vm1381_vm8, %v7304_v23, %v1407_v57  ;;  %v2868_v31 = vrot.slane %v7325_v54, 4 }
 0x152   : > { %12932 = vst [vmem:[#allocation45_spill] sm:$0xff] %v7322_v33  ;;  %5801 = vrot.lane.b32.xlu0 %v5740_v40, %s6665_s7  ;;  %5796 = vrot.lane.b32.xlu2 %v5735_v17, %s6665_s7  ;;  %v7347_v17 = vunpack.i.h.bf16 %v5602_v63  ;;  %v1419_v45 = vrot.slane %v7333_v6, 4  ;;  %v7388_v33 = vunpack.i.l.bf16 %v5597_v58  ;;  %v1004_v9 = vrot.slane %v7333_v6, 3 }
 0x153   : > { %12933 = vst [vmem:[#allocation46_spill] sm:$0xff] %v7329_v42  ;;  %v1416_v42 = vperm.slane %v1408_v18, %v7063_v3 }
 0x154   : > { %v7337_v38 = vpop.permute.xlu2 %5631  ;;  %v5592_v19 = vpop.permute.xlu0 %5591  ;;  %12936 = vst [vmem:[#allocation49_spill] sm:$0xff] %v7347_v17  ;;  %v2956_v63 = vrot.slane %v7347_v17, 4 }
 0x155   : > { %v7339_v60 = vunpack.i.h.bf16 %v5592_v19  ;;  %5821 = vrot.lane.b32.xlu1 %v7067_v36, %s6661_s4  ;;  %v7345_v40 = vunpack.i.l.bf16 %v5592_v19  ;;  %v1467_v13 = vrot.slane %v1416_v42, 4 }
 0x157   : > { %12934 = vst [vmem:[#allocation47_spill] sm:$0xff] %v7339_v60  ;;  %v5612_v55 = vpop.permute.xlu1 %5611  ;;  %v2866_v57 = vrot.slane %v7339_v60, 4  ;;  %v7353_v34 = vsel %vm1381_vm8, %v7339_v60, %v2868_v31  ;;  %v1417_v62 = vrot.slane %v7345_v40, 4  ;;  %v1420_v18 = vsel %vm1381_vm8, %v7345_v40, %v1419_v45 }
 0x158   : > { %12935 = vst [vmem:[#allocation48_spill] sm:$0xff] %v7345_v40  ;;  %v7360_v19 = vunpack.i.h.bf16 %v5612_v55  ;;  %v1428_v37 = vperm.slane %v1420_v18, %v7063_v3  ;;  %v7371_v31 = vunpack.i.h.bf16 %v5597_v58  ;;  %v7383_v60 = vunpack.i.l.bf16 %v5612_v55 }
 0x159   : > { %12937 = vst [vmem:[#allocation50_spill] sm:$0xff] %v7353_v34  ;;  %v7364_v2 = vsel %vm1381_vm8, %v2866_v57, %v7325_v54  ;;  %v7375_v45 = vsel %vm1381_vm8, %v1417_v62, %v7333_v6 }
 0x15a   : > { %12938 = vst [vmem:[#allocation51_spill] sm:$0xff] %v7360_v19  ;;  %5816 = vrot.lane.b32.xlu0 %v6989_v43, %s6661_s4  ;;  %5811 = vrot.lane.b32.xlu2 %v5750_v27, %s6665_s7  ;;  %v1465_v34 = vrot.slane %v1428_v37, 4  ;;  %v7378_v40 = vsel %vm1381_vm8, %v1428_v37, %v1467_v13  ;;  %v2954_v18 = vrot.slane %v7360_v19, 4  ;;  %v1507_v27 = vrot.slane %v7355_v11, 4 }
 0x15b   : > { %12939 = vst [vmem:[#allocation52_spill] sm:$0xff] %v7364_v2  ;;  %v2957_v37 = vsel %vm1381_vm8, %v7360_v19, %v2956_v63  ;;  %v2944_v55 = vrot.slane %v7371_v31, 4  ;;  %v1505_v20 = vrot.slane %v7383_v60, 4 }
 0x15c   : > { %12940 = vst [vmem:[#allocation53_spill] sm:$0xff] %v7371_v31  ;;  %v7380_v57 = vpop.permute.xlu2 %5646  ;;  %v5607_v2 = vpop.permute.xlu0 %5606  ;;  %v7391_v62 = vsel %vm1381_vm8, %v1465_v34, %v1416_v42  ;;  %v7395_v13 = vsel %vm1381_vm8, %v2954_v18, %v7347_v17  ;;  %v1508_v58 = vsel %vm1381_vm8, %v7383_v60, %v1507_v27  ;;  %v7411_v18 = vunpack.i.h.bf16 %v7306_v0 }
 0x15d   : > { %12941 = vst [vmem:[#allocation54_spill] sm:$0xff] %v7375_v45  ;;  %5836 = vrot.lane.b32.xlu1 %v6989_v43, %s6664_s6  ;;  %v7406_v34 = vunpack.i.h.bf16 %v5607_v2  ;;  %v7408_v42 = vunpack.i.l.bf16 %v5607_v2 }
 0x15e   : > { %12942 = vst [vmem:[#allocation55_spill] sm:$0xff] %v7378_v40  ;;  %v7401_v40 = vperm.slane %v2957_v37, %v7063_v3  ;;  %v1495_v37 = vrot.slane %v7388_v33, 4  ;;  %v2968_v19 = vrot.slane %v7411_v18, 4 }
 0x15f   : > { %12943 = vst [vmem:[#allocation56_spill] sm:$0xff] %v7383_v60  ;;  %v5627_v45 = vpop.permute.xlu1 %5626  ;;  %v2942_v27 = vrot.slane %v7406_v34, 4  ;;  %v2945_v2 = vsel %vm1381_vm8, %v7406_v34, %v2944_v55  ;;  %v1493_v55 = vrot.slane %v7408_v42, 4 }
 0x160   : > { %12944 = vst [vmem:[#allocation57_spill] sm:$0xff] %v7391_v62  ;;  %v3002_v63 = vrot.slane %v7401_v40, 4  ;;  %v7415_v62 = vperm.slane %v1508_v58, %v7063_v3  ;;  %v7430_v58 = vperm.slane %v2945_v2, %v7063_v3 }
 0x161   : > { %12945 = vst [vmem:[#allocation58_spill] sm:$0xff] %v7395_v13  ;;  %v7420_v13 = vsel %vm1381_vm8, %v1505_v20, %v7355_v11  ;;  %v5850_v20 = vpack.i.bf16 %v7205_v59, %v7076_v46  ;;  %v7439_v60 = vsel %vm1381_vm8, %v2942_v27, %v7371_v31  ;;  %v7457_v27 = vsel %vm1381_vm8, %v1493_v55, %v7388_v33 }
 0x162   : > { %12946 = vst [vmem:[#allocation59_spill] sm:$0xff] %v7401_v40  ;;  %5831 = vrot.lane.b32.xlu0 %v7067_v36, %s6662_s5  ;;  %5826 = vrot.lane.b32.xlu2 %v6989_v43, %s6662_s5  ;;  %v7432_v40 = vunpack.i.h.bf16 %v5627_v45  ;;  %v7449_v12 = vsel %vm1381_vm8, %v3002_v63, %v7430_v58 }
 0x163   : > { %12947 = vst [vmem:[#allocation60_spill] sm:$0xff] %v7406_v34  ;;  %v1496_v34 = vsel %vm1381_vm8, %v7408_v42, %v1495_v37 }
 0x164   : > { %12948 = vst [vmem:[#allocation61_spill] sm:$0xff] %v7408_v42  ;;  %v7444_v43 = vpop.permute.xlu2 %5661  ;;  %v5622_v2 = vpop.permute.xlu0 %5621  ;;  %v7460_v37 = vperm.slane %v1496_v34, %v7063_v3  ;;  %v7463_v42 = vunpack.i.h.bf16 %v7337_v38  ;;  %v7468_v63 = vsel %vm1381_vm8, %v7432_v40, %v2968_v19 }
 0x165   : > { %12949 = vst [vmem:[#allocation62_spill] sm:$0xff] %v7411_v18  ;;  %5851 = vrot.lane.b32.xlu1 %v5850_v20, %s6657_s22 }
 0x166   : > { %12950 = vst [vmem:[#allocation63_spill] sm:$0xff] %v7415_v62  ;;  %v2978_v19 = vrot.slane %v7463_v42, 4 }
 0x167   : > { %12951 = vst [vmem:[#allocation64_spill] sm:$0xff] %v7420_v13  ;;  %v1553_v13 = vrot.slane %v7415_v62, 4  ;;  %v7453_v62 = vunpack.i.l.bf16 %v7306_v0  ;;  %v7470_v20 = vpop.permute.xlu1 %5641 }
 0x168   : > { %12952 = vst [vmem:[#allocation65_spill] sm:$0xff] %v7430_v58  ;;  %v7482_v58 = vunpack.i.l.bf16 %v5627_v45 }
 0x169   : > { %12953 = vst [vmem:[#allocation66_spill] sm:$0xff] %v7432_v40  ;;  %v7474_v0 = vsel %vm1381_vm8, %v1553_v13, %v7460_v37  ;;  %v1519_v34 = vrot.slane %v7453_v62, 4  ;;  %v7491_v13 = vunpack.i.l.bf16 %v5622_v2 }
 0x16a   : > { %12954 = vst [vmem:[#allocation67_spill] sm:$0xff] %v7439_v60  ;;  %v2966_v60 = vrot.slane %v7432_v40, 4  ;;  %5846 = vrot.lane.b32.xlu0 %v7172_v39, %s6657_s22  ;;  %5841 = vrot.lane.b32.xlu2 %v7067_v36, %s6664_s6 }
 0x16b   : > { %12955 = vst [vmem:[#allocation68_spill] sm:$0xff] %v7449_v12  ;;  %v7498_v45 = vsel %vm1381_vm8, %v7482_v58, %v1519_v34 }
 0x16c   : > { %12956 = vst [vmem:[#allocation69_spill] sm:$0xff] %v7453_v62  ;;  %v2967_v55 = vsel %vm1381_vm8, %v2966_v60, %v7411_v18  ;;  %v5865_v60 = vpack.i.bf16 %v7182_v47, %v7185_v49  ;;  %v1531_v47 = vrot.slane %v7491_v13, 4 }
 0x16d   : > { %12957 = vst [vmem:[#allocation70_spill] sm:$0xff] %v7457_v27  ;;  %v7480_v12 = vperm.slane %v2967_v55, %v7063_v3  ;;  %v7484_v27 = vunpack.i.h.bf16 %v5622_v2 }
 0x16e   : > { %12958 = vst [vmem:[#allocation71_spill] sm:$0xff] %v7460_v37  ;;  %5866 = vrot.lane.b32.xlu1 %v5865_v60, %s6657_s22  ;;  %v5855_v60 = vpack.i.bf16 %v7199_v48, %v7217_v4 }
 0x16f   : > { %12959 = vst [vmem:[#allocation72_spill] sm:$0xff] %v7463_v42  ;;  %v3016_v55 = vrot.slane %v7480_v12, 4  ;;  %v2979_v36 = vsel %vm1381_vm8, %v2978_v19, %v7484_v27  ;;  %v2980_v39 = vrot.slane %v7484_v27, 4 }
 0x170   : > { %12960 = vst [vmem:[#allocation73_spill] sm:$0xff] %v7468_v63  ;;  %v7500_v63 = vpop.permute.xlu0 %5636  ;;  %v7509_v2 = vperm.slane %v2979_v36, %v7063_v3 }
 0x171   : > { %12961 = vst [vmem:[#allocation74_spill] sm:$0xff] %v7470_v20  ;;  %v7516_v34 = vsel %vm1381_vm8, %v7463_v42, %v2980_v39  ;;  %v12539_v39 = vunpack.i.l.bf16 %v7500_v63 }
 0x172   : > { %12962 = vst [vmem:[#allocation75_spill] sm:$0xff] %v7474_v0  ;;  %v7502_v0 = vpop.permute.xlu2 %5676  ;;  %v7521_v19 = vsel %vm1381_vm8, %v7509_v2, %v3016_v55  ;;  %5861 = vrot.lane.b32.xlu0 %v7223_v50, %s6657_s22  ;;  %5856 = vrot.lane.b32.xlu2 %v5855_v60, %s6657_s22  ;;  %v7536_v55 = vpack.i.bf16 %v7178_v22, %v7185_v49  ;;  %v12545_v50 = vunpack.i.h.bf16 %v7380_v57  ;;  %v12544_v60 = vunpack.i.l.bf16 %v7380_v57 }
 0x173   : > { %12963 = vst [vmem:[#allocation76_spill] sm:$0xff] %v7480_v12  ;;  %v7512_v12 = vunpack.i.l.bf16 %v7337_v38  ;;  %v12536_v38 = vunpack.i.h.bf16 %v7500_v63 }
 0x174   : > { %12964 = vst [vmem:[#allocation77_spill] sm:$0xff] %v7482_v58 }
 0x175   : > { %12965 = vst [vmem:[#allocation78_spill] sm:$0xff] %v7484_v27  ;;  %v7527_v36 = vsel %vm1381_vm8, %v7512_v12, %v1531_v47  ;;  %v3056_v27 = vrot.slane %v12536_v38, 4  ;;  %v12975_v38 = vunpack.i.l.bf16 %v7470_v20 }
 0x176   : > { %12966 = vst [vmem:[#allocation79_spill] sm:$0xff] %v7491_v13  ;;  %5881 = vrot.lane.b32.xlu1 %v7536_v55, %s6661_s4  ;;  %v12974_v13 = vunpack.i.h.bf16 %v7470_v20 }
 0x177   : > { %12967 = vst [vmem:[#allocation80_spill] sm:$0xff] %v7498_v45  ;;  %v5657_v45 = vpop.permute.xlu1 %5656  ;;  %v1619_v58 = vrot.slane %v12975_v38, 4 }
 0x178   : > { %12968 = vst [vmem:[#allocation81_spill] sm:$0xff] %v7500_v63  ;;  %v3068_v37 = vrot.slane %v12974_v13, 4  ;;  %v5870_v63 = vpack.i.bf16 %v7178_v22, %v7196_v53 }
 0x179   : > { %12969 = vst [vmem:[#allocation82_spill] sm:$0xff] %v7509_v2  ;;  %v7540_v2 = vpop.permute.xlu0 %5651 }
 0x17a   : > { %12970 = vst [vmem:[#allocation83_spill] sm:$0xff] %v7512_v12  ;;  %v7542_v47 = vpop.permute.xlu2 %5691  ;;  %5871 = vrot.lane.b32.xlu2 %v5870_v63, %s6657_s22 }
 0x17b   : > { %12971 = vst [vmem:[#allocation84_spill] sm:$0xff] %v7516_v34 }
 0x17c   : > { %12972 = vst [vmem:[#allocation85_spill] sm:$0xff] %v7521_v19  ;;  %v3057_v19 = vsel %vm1381_vm8, %v12545_v50, %v3056_v27 }
 0x17d   : > { %12973 = vst [vmem:[#allocation86_spill] sm:$0xff] %v7527_v36  ;;  %v1607_v36 = vrot.slane %v12539_v39, 4  ;;  %v5875_v39 = vpack.i.bf16 %v7199_v48, %v7076_v46  ;;  %v7567_v40 = vperm.slane %v3057_v19, %v7063_v3  ;;  %v7592_v46 = vunpack.i.h.bf16 %v5657_v45 }
 0x17f   : > { %v1608_v34 = vsel %vm1381_vm8, %v12544_v60, %v1607_v36  ;;  %v5672_v49 = vpop.permute.xlu1 %5671  ;;  %12976 = vst [vmem:[#allocation87_spill] sm:$0xff] %v7567_v40  ;;  %v12551_v36 = vunpack.i.h.bf16 %v7540_v2  ;;  %v12550_v60 = vunpack.i.l.bf16 %v7540_v2  ;;  %5876 = vrot.lane.b32.xlu0 %v5875_v39, %s6661_s4  ;;  %v3116_v53 = vrot.slane %v7567_v40, 4  ;;  %5896 = vrot.lane.b32.xlu1 %v5875_v39, %s6664_s6 }
 0x180   : > { %v7570_v27 = vperm.slane %v1608_v34, %v7063_v3  ;;  %12980 = vst [vmem:[#allocation91_spill] sm:$0xff] %v7592_v46  ;;  %v7612_v40 = vunpack.i.h.bf16 %v7444_v43  ;;  %v7644_v20 = vunpack.i.l.bf16 %v5672_v49 }
 0x181   : > { %v3069_v13 = vsel %vm1381_vm8, %v12551_v36, %v3068_v37  ;;  %v1620_v19 = vsel %vm1381_vm8, %v12550_v60, %v1619_v58  ;;  %v5667_v50 = vpop.permute.xlu0 %5666  ;;  %v7594_v37 = vunpack.i.l.bf16 %v5657_v45  ;;  %v3168_v45 = vrot.slane %v7592_v46, 4 }
 0x182   : > { %12977 = vst [vmem:[#allocation88_spill] sm:$0xff] %v7570_v27  ;;  %v7583_v38 = vperm.slane %v3069_v13, %v7063_v3  ;;  %v7586_v34 = vperm.slane %v1620_v19, %v7063_v3  ;;  %v7588_v22 = vpop.permute.xlu2 %5706  ;;  %v1667_v63 = vrot.slane %v7570_v27, 4  ;;  %v7607_v60 = vunpack.i.h.bf16 %v5667_v50  ;;  %5886 = vrot.lane.b32.xlu2 %v5875_v39, %s6662_s5 }
 0x183   : > { %12981 = vst [vmem:[#allocation92_spill] sm:$0xff] %v7594_v37  ;;  %v7609_v36 = vunpack.i.l.bf16 %v5667_v50  ;;  %v1719_v27 = vrot.slane %v7594_v37, 4 }
 0x184   : > { %12978 = vst [vmem:[#allocation89_spill] sm:$0xff] %v7583_v38  ;;  %v7599_v58 = vsel %vm1381_vm8, %v7586_v34, %v1667_v63  ;;  %v7603_v13 = vsel %vm1381_vm8, %v7583_v38, %v3116_v53  ;;  %v7618_v63 = vperm.slane %v6953_v24, %v7063_v3  ;;  %v7621_v53 = vunpack.i.l.bf16 %v7444_v43 }
 0x185   : > { %12979 = vst [vmem:[#allocation90_spill] sm:$0xff] %v7586_v34  ;;  %v7624_v38 = vunpack.i.h.bf16 %v5672_v49  ;;  %v3169_v24 = vsel %vm1381_vm8, %v7607_v60, %v3168_v45  ;;  %v5910_v43 = vpack.i.bf16 %v6928_v1, %v7096_v7  ;;  %v6666_v45 = vmov 1934713408  }
 0x186   : > { %12982 = vst [vmem:[#allocation93_spill] sm:$0xff] %v7599_v58  ;;  %v1720_v58 = vsel %vm1381_vm8, %v7609_v36, %v1719_v27  ;;  %v3177_v39 = vperm.slane %v3169_v24, %v7063_v3  ;;  %v3180_v1 = vrot.slane %v7612_v40, 4  ;;  %v7655_v49 = vunpack.i.h.bf16 %v7542_v47 }
 0x187   : > { %12983 = vst [vmem:[#allocation94_spill] sm:$0xff] %v7603_v13  ;;  %v7605_v19 = vpop.permute.xlu1 %5686  ;;  %v3166_v13 = vrot.slane %v7607_v60, 4  ;;  %5891 = vrot.lane.b32.xlu0 %v7536_v55, %s6662_s5  ;;  %v7637_v37 = vperm.slane %v1720_v58, %v7063_v3  ;;  %5911 = vrot.lane.b32.xlu1 %v5910_v43, %s6661_s4  ;;  %v1731_v58 = vrot.slane %v7621_v53, 4  ;;  %v3178_v24 = vrot.slane %v7624_v38, 4  ;;  %s5371_s5 = sshll.u32 %s6645_s15, 4 }
 0x188   : > { %12984 = vst [vmem:[#allocation95_spill] sm:$0xff] %v7607_v60  ;;  %v1434_v60 = vunpack.c.l.s4 %v6666_v45  ;;  %v3181_v27 = vsel %vm1381_vm8, %v7624_v38, %v3180_v1  ;;  %v5905_v45 = vpack.i.bf16 %v7091_v61, %v7085_v56 }
 0x189   : > { %12985 = vst [vmem:[#allocation96_spill] sm:$0xff] %v7609_v36  ;;  %v7641_v34 = vsel %vm1381_vm8, %v3166_v13, %v7592_v46  ;;  %v5682_v50 = vpop.permute.xlu0 %5681  ;;  %v3228_v13 = vrot.slane %v3177_v39, 4  ;;  %v7666_v43 = vsel %vm1381_vm8, %v3178_v24, %v7612_v40  ;;  %v3189_v7 = vperm.slane %v3181_v27, %v7063_v3 }
 0x18a   : > { %12986 = vst [vmem:[#allocation97_spill] sm:$0xff] %v7612_v40  ;;  %v7646_v52 = vpop.permute.xlu2 %5721  ;;  %v7671_v36 = vunpack.i.h.bf16 %v5682_v50  ;;  %v7674_v46 = vunpack.c.0.s8 %v1434_v60  ;;  %v7679_v56 = vunpack.i.l.bf16 %v5682_v50  ;;  %5901 = vrot.lane.b32.xlu2 %v7536_v55, %s6664_s6  ;;  %v7690_v60 = vunpack.i.h.bf16 %v7502_v0 }
 0x18b   : > { %12987 = vst [vmem:[#allocation98_spill] sm:$0xff] %v7618_v63  ;;  %v1732_v63 = vsel %vm1381_vm8, %v7644_v20, %v1731_v58  ;;  %v7684_v27 = vsel %vm1381_vm8, %v3189_v7, %v3228_v13  ;;  %v7701_v13 = vunpack.i.l.bf16 %v7502_v0 }
 0x18c   : > { %12988 = vst [vmem:[#allocation99_spill] sm:$0xff] %v7624_v38  ;;  %v7677_v1 = vperm.slane %v1732_v63, %v7063_v3  ;;  %v3226_v38 = vrot.slane %v3189_v7, 4  ;;  %v3202_v63 = vrot.slane %v7655_v49, 4  ;;  %v3204_v58 = vrot.slane %v7671_v36, 4 }
 0x18d   : > { %12989 = vst [vmem:[#allocation100_spill] sm:$0xff] %v7637_v37  ;;  %v3192_v7 = vrot.slane %v7690_v60, 4 }
 0x18e   : > { %12990 = vst [vmem:[#allocation101_spill] sm:$0xff] %v7641_v34  ;;  %v1779_v34 = vrot.slane %v7637_v37, 4  ;;  %v7704_v55 = vsel %vm1381_vm8, %v3226_v38, %v3177_v39  ;;  %v7709_v37 = vunpack.i.l.bf16 %v7542_v47  ;;  %v3205_v61 = vsel %vm1381_vm8, %v7655_v49, %v3204_v58 }
 0x18f   : > { %12991 = vst [vmem:[#allocation102_spill] sm:$0xff] %v7646_v52  ;;  %v7662_v26 = vpop.permute.xlu1 %5701  ;;  %5906 = vrot.lane.b32.xlu0 %v5905_v45, %s6661_s4  ;;  %v3213_v38 = vperm.slane %v3205_v61, %v7063_v3  ;;  %v5920_v39 = vpack.i.bf16 %v6938_v8, %v7107_v14  ;;  %v5915_v47 = vpack.i.bf16 %v7115_v21, %v7110_v30  ;;  %v7731_v58 = vunpack.i.l.bf16 %v7605_v19 }
 0x190   : > { %12992 = vst [vmem:[#allocation103_spill] sm:$0xff] %v7655_v49  ;;  %v7695_v50 = vsel %vm1381_vm8, %v7677_v1, %v1779_v34  ;;  %v1755_v34 = vrot.slane %v7679_v56, 4  ;;  %v7738_v8 = vperm.slane %v7135_v29, %v7063_v3  ;;  %v7742_v14 = vperm.slane %v7139_v16, %v7063_v3 }
 0x191   : > { %12993 = vst [vmem:[#allocation104_spill] sm:$0xff] %v7677_v1  ;;  %v5697_v45 = vpop.permute.xlu0 %5696  ;;  %v3250_v5 = vrot.slane %v3213_v38, 4  ;;  %v1743_v30 = vrot.slane %v7701_v13, 4 }
 0x192   : > { %12994 = vst [vmem:[#allocation105_spill] sm:$0xff] %v7684_v27  ;;  %v7706_v24 = vpop.permute.xlu2 %5736  ;;  %v7714_v27 = vsel %vm1381_vm8, %v3202_v63, %v7671_v36  ;;  %v7728_v63 = vunpack.i.h.bf16 %v7605_v19  ;;  %5916 = vrot.lane.b32.xlu2 %v5915_v47, %s6661_s4  ;;  %v7764_v15 = vunpack.i.l.bf16 %v5697_v45 }
 0x193   : > { %12995 = vst [vmem:[#allocation106_spill] sm:$0xff] %v7690_v60 }
 0x194   : > { %12996 = vst [vmem:[#allocation107_spill] sm:$0xff] %v7695_v50  ;;  %v3190_v21 = vrot.slane %v7728_v63, 4  ;;  %v3193_v19 = vsel %vm1381_vm8, %v7728_v63, %v3192_v7  ;;  %v1744_v7 = vsel %vm1381_vm8, %v7731_v58, %v1743_v30 }
 0x195   : > { %12997 = vst [vmem:[#allocation108_spill] sm:$0xff] %v7704_v55  ;;  %v1756_v55 = vsel %vm1381_vm8, %v7709_v37, %v1755_v34  ;;  %v1087_v34 = vrot.slane %v7199_v48, 3  ;;  %v3201_v29 = vperm.slane %v3193_v19, %v7063_v3  ;;  %v7762_v48 = vunpack.i.h.bf16 %v5697_v45 }
 0x196   : > { %12998 = vst [vmem:[#allocation109_spill] sm:$0xff] %v7706_v24  ;;  %v1764_v61 = vperm.slane %v1756_v55, %v7063_v3  ;;  %v7750_v55 = vunpack.i.h.bf16 %v7588_v22  ;;  %v7758_v50 = vsel %vm1381_vm8, %v3190_v21, %v7690_v60  ;;  %v1009_v19 = vrot.slane %v7304_v23, 3 }
 0x197   : > { %12999 = vst [vmem:[#allocation110_spill] sm:$0xff] %v7709_v37  ;;  %v7733_v0 = vpop.permute.xlu1 %5716  ;;  %5921 = vrot.lane.b32.xlu0 %v5920_v39, %s6661_s4  ;;  %v7769_v39 = vsel %vm1381_vm8, %v3250_v5, %v3201_v29  ;;  %v3252_v47 = vrot.slane %v3201_v29, 4  ;;  %v1752_v30 = vperm.slane %v1744_v7, %v7063_v3  ;;  %v3280_v45 = vrot.slane %v7762_v48, 4 }
 0x198   : > { %13000 = vst [vmem:[#allocation111_spill] sm:$0xff] %v7728_v63  ;;  %v1801_v51 = vrot.slane %v1764_v61, 4  ;;  %v3278_v23 = vrot.slane %v7750_v55, 4  ;;  %v7784_v29 = vunpack.i.l.bf16 %v7588_v22  ;;  %v1831_v7 = vrot.slane %v7764_v15, 4 }
 0x199   : > { %13001 = vst [vmem:[#allocation112_spill] sm:$0xff] %v7733_v0  ;;  %v5712_v16 = vpop.permute.xlu0 %5711  ;;  %v7781_v5 = vsel %vm1381_vm8, %v3213_v38, %v3252_v47  ;;  %v1803_v11 = vrot.slane %v1752_v30, 4  ;;  %v3281_v6 = vsel %vm1381_vm8, %v7750_v55, %v3280_v45  ;;  %v7800_v38 = vperm.slane %v7128_v28, %v7063_v3 }
 0x19a   : > { %13002 = vst [vmem:[#allocation113_spill] sm:$0xff] %v7738_v8  ;;  %v7771_v25 = vpop.permute.xlu2 %5751  ;;  %v7787_v21 = vsel %vm1381_vm8, %v1801_v51, %v1752_v30  ;;  %v7794_v63 = vsel %vm1381_vm8, %v3278_v23, %v7762_v48  ;;  %v1832_v47 = vsel %vm1381_vm8, %v7784_v29, %v1831_v7  ;;  %v13014_v45 = vrot.slane %v7300_v44, 3  ;;  %v13023_v30 = vld [vmem:[#allocation43_spill] sm:$0xff]  ;;  %v13091_v44 = vld [vmem:[#allocation80_spill] sm:$0xff] }
 0x19b   : > { %13003 = vst [vmem:[#allocation114_spill] sm:$0xff] %v7742_v14  ;;  %v7804_v51 = vsel %vm1381_vm8, %v1764_v61, %v1803_v11  ;;  %v13016_v28 = vrot.slane %v7347_v17, 3  ;;  %v13018_v61 = vrot.slane %v7217_v4, 3  ;;  %v7828_v23 = vunpack.i.h.bf16 %v7662_v26 }
 0x19c   : > { %13004 = vst [vmem:[#allocation115_spill] sm:$0xff] %v7750_v55  ;;  %v7847_v35 = vunpack.i.h.bf16 %v5712_v16  ;;  %v7862_v8 = vunpack.i.l.bf16 %v5712_v16 }
 0x19d   : > { %13005 = vst [vmem:[#allocation116_spill] sm:$0xff] %v7762_v48  ;;  %v7819_v22 = vsel %vm897_vm7, %v1024_v41, %v13016_v28  ;;  %v7824_v11 = vsel %vm897_vm7, %v13018_v61, %v1087_v34  ;;  %v13021_v41 = vld [vmem:[#allocation44_spill] sm:$0xff]  ;;  %v999_v34 = vrot.slane %v13023_v30, 3  ;;  %v13024_v61 = vld [vmem:[#allocation45_spill] sm:$0xff]  ;;  %v3289_v30 = vperm.slane %v3281_v6, %v7063_v3 }
 0x19e   : > { %13006 = vst [vmem:[#allocation117_spill] sm:$0xff] %v7764_v15  ;;  %v7840_v28 = vperm.slane %v13021_v41, %v7063_v3  ;;  %v7845_v7 = vperm.slane %v13024_v61, %v7063_v3  ;;  %v3292_v41 = vrot.slane %v7828_v23, 4  ;;  %v3290_v32 = vrot.slane %v7847_v35, 4 }
 0x19f   : > { %13007 = vst [vmem:[#allocation118_spill] sm:$0xff] %v7769_v39  ;;  %v7790_v39 = vpop.permute.xlu1 %5731  ;;  %v13163_v1 = vld [vmem:[#allocation111_spill] sm:$0xff] }
 0x1a0   : > { %13008 = vst [vmem:[#allocation119_spill] sm:$0xff] %v7781_v5  ;;  %v7831_v5 = vunpack.i.l.bf16 %v7662_v26  ;;  %v7876_v16 = vsel %vm1381_vm8, %v3290_v32, %v7828_v23  ;;  %v13034_v32 = vrot.slane %v7371_v31, 3 }
 0x1a1   : > { %13009 = vst [vmem:[#allocation120_spill] sm:$0xff] %v7784_v29  ;;  %v7849_v14 = vpop.permute.xlu0 %5726 }
 0x1a2   : > { %13010 = vst [vmem:[#allocation121_spill] sm:$0xff] %v7787_v21  ;;  %v7814_v21 = vsel %vm897_vm7, %v1009_v19, %v13014_v45  ;;  %v13020_v19 = vrot.slane %v7325_v54, 3  ;;  %v7851_v26 = vpop.permute.xlu2 %5766  ;;  %v1843_v61 = vrot.slane %v7831_v5, 4 }
 0x1a3   : > { %13011 = vst [vmem:[#allocation122_spill] sm:$0xff] %v7790_v39 }
 0x1a4   : > { %13012 = vst [vmem:[#allocation123_spill] sm:$0xff] %v7800_v38  ;;  %v7836_v45 = vsel %vm897_vm7, %v1004_v9, %v13020_v19  ;;  %v1019_v9 = vrot.slane %v7388_v33, 3  ;;  %v7856_v19 = vperm.slane %v1832_v47, %v7063_v3  ;;  %v3293_v33 = vsel %vm1381_vm8, %v7847_v35, %v3292_v41 }
 0x1a5   : > { %13013 = vst [vmem:[#allocation124_spill] sm:$0xff] %v7804_v51  ;;  %v1844_v6 = vsel %vm1381_vm8, %v7862_v8, %v1843_v61  ;;  %v13031_v38 = vrot.slane %v7308_v10, 3  ;;  %v3301_v18 = vperm.slane %v3293_v33, %v7063_v3  ;;  %v13037_v33 = vunpack.i.l.bf16 %v7733_v0 }
 0x1a6   : > { %13015 = vst [vmem:[#allocation125_spill] sm:$0xff] %v7814_v21  ;;  %v1891_v41 = vrot.slane %v7856_v19, 4  ;;  %v7885_v47 = vperm.slane %v1844_v6, %v7063_v3  ;;  %v7893_v17 = vsel %vm897_vm7, %v1019_v9, %v13034_v32  ;;  %v13050_v9 = vld [vmem:[#allocation48_spill] sm:$0xff] }
 0x1a7   : > { %13017 = vst [vmem:[#allocation126_spill] sm:$0xff] %v7819_v22  ;;  %v7869_v51 = vpop.permute.xlu1 %5746  ;;  %v1855_v22 = vrot.slane %v13037_v33, 4  ;;  %v3338_v61 = vrot.slane %v3301_v18, 4  ;;  %v13043_v33 = vunpack.i.h.bf16 %v7733_v0 }
 0x1a8   : > { %13019 = vst [vmem:[#allocation127_spill] sm:$0xff] %v7824_v11  ;;  %v7881_v11 = vsel %vm897_vm7, %v999_v34, %v13031_v38  ;;  %v1084_v38 = vrot.slane %v7205_v59, 3  ;;  %v7900_v6 = vsel %vm1381_vm8, %v7885_v47, %v1891_v41  ;;  %v13041_v41 = vld [vmem:[#allocation52_spill] sm:$0xff] }
 0x1a9   : > { %13022 = vst [vmem:[#allocation44_spill] sm:$0xff] %v7840_v28  ;;  %v3340_v28 = vrot.slane %v3289_v30, 4  ;;  %v7909_v59 = vpop.permute.xlu0 %5741  ;;  %v3304_v42 = vrot.slane %v13043_v33, 4  ;;  %v7924_v32 = vsel %vm1381_vm8, %v3338_v61, %v3289_v30  ;;  %v13051_v61 = vld [vmem:[#allocation51_spill] sm:$0xff]  ;;  %v13060_v30 = vunpack.i.l.bf16 %v7646_v52 }
 0x1aa   : > { %13025 = vst [vmem:[#allocation43_spill] sm:$0xff] %v7845_v7  ;;  %v7911_v34 = vpop.permute.xlu2 %5781  ;;  %v12634_v0 = vunpack.i.l.bf16 %v7909_v59 }
 0x1ab   : > { %13026 = vst [vmem:[#allocation45_spill] sm:$0xff] %v7847_v35  ;;  %v7905_v7 = vsel %vm1381_vm8, %v3301_v18, %v3340_v28  ;;  %v13048_v18 = vunpack.i.h.bf16 %v7849_v14 }
 0x1ac   : > { %13027 = vst [vmem:[#allocation128_spill] sm:$0xff] %v7856_v19 }
 0x1ad   : > { %13028 = vst [vmem:[#allocation129_spill] sm:$0xff] %v7862_v8  ;;  %v3305_v28 = vsel %vm1381_vm8, %v13048_v18, %v3304_v42  ;;  %v13057_v42 = vld [vmem:[#allocation58_spill] sm:$0xff] }
 0x1ae   : > { %13029 = vst [vmem:[#allocation130_spill] sm:$0xff] %v7869_v51  ;;  %v7955_v18 = vperm.slane %v13057_v42, %v7063_v3  ;;  %v13064_v42 = vld [vmem:[#allocation56_spill] sm:$0xff] }
 0x1af   : > { %13030 = vst [vmem:[#allocation131_spill] sm:$0xff] %v7876_v16  ;;  %v7936_v21 = vpop.permute.xlu1 %5761  ;;  %v7941_v16 = vperm.slane %v3305_v28, %v7063_v3 }
 0x1b0   : > { %13032 = vst [vmem:[#allocation132_spill] sm:$0xff] %v7881_v11 }
 0x1b1   : > { %13033 = vst [vmem:[#allocation133_spill] sm:$0xff] %v7885_v47 }
 0x1b2   : > { %13035 = vst [vmem:[#allocation134_spill] sm:$0xff] %v7893_v17  ;;  %v13046_v17 = vld [vmem:[#allocation47_spill] sm:$0xff] }
 0x1b3   : > { %13036 = vst [vmem:[#allocation135_spill] sm:$0xff] %v7900_v6  ;;  %v7916_v6 = vperm.slane %v13041_v41, %v7063_v3  ;;  %v13047_v41 = vunpack.i.h.bf16 %v7646_v52 }
 0x1b4   : > { %13038 = vst [vmem:[#allocation136_spill] sm:$0xff] %v7905_v7  ;;  %v13045_v7 = vunpack.i.l.bf16 %v7849_v14 }
 0x1b5   : > { %13039 = vst [vmem:[#allocation137_spill] sm:$0xff] %v7909_v59  ;;  %v3316_v47 = vrot.slane %v13047_v41, 4  ;;  %v13055_v41 = vld [vmem:[#allocation54_spill] sm:$0xff] }
 0x1b6   : > { %13040 = vst [vmem:[#allocation138_spill] sm:$0xff] %v7911_v34  ;;  %v1856_v19 = vsel %vm1381_vm8, %v13045_v7, %v1855_v22  ;;  %v13053_v22 = vrot.slane %v7217_v4, 3  ;;  %v7951_v31 = vperm.slane %v13055_v41, %v7063_v3  ;;  %v1867_v4 = vrot.slane %v13060_v30, 4  ;;  %v13062_v41 = vld [vmem:[#allocation55_spill] sm:$0xff] }
 0x1b7   : > { %13042 = vst [vmem:[#allocation52_spill] sm:$0xff] %v7916_v6  ;;  %v1864_v33 = vperm.slane %v1856_v19, %v7063_v3  ;;  %v12624_v19 = vunpack.i.l.bf16 %v7790_v39  ;;  %v7969_v6 = vperm.slane %v13062_v41, %v7674_v46  ;;  %v13066_v30 = vunpack.i.l.bf16 %v7380_v57 }
 0x1b8   : > { %13044 = vst [vmem:[#allocation139_spill] sm:$0xff] %v7924_v32  ;;  %v7946_v7 = vsel %vm897_vm7, %v1084_v38, %v13053_v22  ;;  %v13059_v32 = vunpack.i.h.bf16 %v7790_v39  ;;  %v3364_v38 = vrot.slane %v7941_v16, 4 }
 0x1b9   : > { %13049 = vst [vmem:[#allocation47_spill] sm:$0xff] %v7936_v21 }
 0x1ba   : > { %13052 = vst [vmem:[#allocation48_spill] sm:$0xff] %v7941_v16  ;;  %v3317_v28 = vsel %vm1381_vm8, %v13059_v32, %v3316_v47  ;;  %v13065_v47 = vunpack.i.h.bf16 %v7380_v57  ;;  %v7979_v16 = vrot.slane %v13066_v30, 4 }
 0x1bb   : > { %13054 = vst [vmem:[#allocation51_spill] sm:$0xff] %v7946_v7  ;;  %v7964_v22 = vperm.slane %v3317_v28, %v7063_v3  ;;  %v1915_v7 = vrot.slane %v1864_v33, 4  ;;  %v1868_v28 = vsel %vm1381_vm8, %v12624_v19, %v1867_v4  ;;  %v13072_v4 = vld [vmem:[#allocation67_spill] sm:$0xff] }
 0x1bc   : > { %13056 = vst [vmem:[#allocation54_spill] sm:$0xff] %v7951_v31  ;;  %v7975_v32 = vrot.slane %v13065_v47, 4  ;;  %v7988_v31 = vpop.permute.xlu0 %5756  ;;  %v13069_v47 = vld [vmem:[#allocation64_spill] sm:$0xff]  ;;  %v1876_v39 = vperm.slane %v1868_v28, %v7063_v3  ;;  %v8001_v19 = vperm.slane %v13072_v4, %v7063_v3  ;;  %v8012_v28 = vpop.permute.xlu1 %5776  ;;  %v13088_v4 = vunpack.i.l.bf16 %v7706_v24 }
 0x1bd   : > { %13058 = vst [vmem:[#allocation58_spill] sm:$0xff] %v7955_v18  ;;  %v7986_v41 = vsel %vm1381_vm8, %v7964_v22, %v3364_v38  ;;  %v7995_v52 = vperm.slane %v13069_v47, %v7063_v3  ;;  %v1979_v38 = vrot.slane %v12634_v0, 4  ;;  %v13080_v47 = vld [vmem:[#allocation77_spill] sm:$0xff]  ;;  %v13083_v0 = vld [vmem:[#allocation70_spill] sm:$0xff] }
 0x1be   : > { %13061 = vst [vmem:[#allocation140_spill] sm:$0xff] %v7964_v22  ;;  %v1913_v11 = vrot.slane %v1876_v39, 4  ;;  %v8010_v30 = vsel %vm1381_vm8, %v1876_v39, %v1915_v7  ;;  %v1517_v10 = vrot.slane %v13080_v47, 4  ;;  %v1967_v57 = vrot.slane %v13088_v4, 4 }
 0x1bf   : > { %13063 = vst [vmem:[#allocation55_spill] sm:$0xff] %v7969_v6  ;;  %v7990_v6 = vpop.permute.xlu2 %5796  ;;  %v13123_v47 = vrot.slane %v13064_v42, 3 }
 0x1c0   : > { %13067 = vst [vmem:[#allocation56_spill] sm:$0xff] %v7986_v41  ;;  %v13074_v41 = vunpack.i.h.bf16 %v7909_v59  ;;  %v8024_v39 = vsel %vm1381_vm8, %v1913_v11, %v1864_v33  ;;  %v13087_v11 = vunpack.i.h.bf16 %v7706_v24  ;;  %v13100_v59 = vrot.slane %v13046_v17, 3 }
 0x1c1   : > { %13068 = vst [vmem:[#allocation141_spill] sm:$0xff] %v7988_v31 }
 0x1c2   : > { %13070 = vst [vmem:[#allocation64_spill] sm:$0xff] %v7995_v52  ;;  %v3428_v22 = vrot.slane %v13074_v41, 4  ;;  %v13078_v41 = vunpack.i.h.bf16 %v7771_v25  ;;  %v3416_v33 = vrot.slane %v13087_v11, 4 }
 0x1c3   : > { %13073 = vst [vmem:[#allocation67_spill] sm:$0xff] %v8001_v19 }
 0x1c4   : > { %13076 = vst [vmem:[#allocation142_spill] sm:$0xff] %v8010_v30  ;;  %v3429_v35 = vsel %vm1381_vm8, %v13078_v41, %v3428_v22  ;;  %v8033_v30 = vperm.slane %v13083_v0, %v7063_v3  ;;  %v13085_v22 = vunpack.i.l.bf16 %v7771_v25  ;;  %v13095_v0 = vunpack.i.l.bf16 %v7988_v31 }
 0x1c5   : > { %13077 = vst [vmem:[#allocation143_spill] sm:$0xff] %v8012_v28  ;;  %v8027_v7 = vperm.slane %v3429_v35, %v7063_v3 }
 0x1c6   : > { %13081 = vst [vmem:[#allocation144_spill] sm:$0xff] %v8024_v39  ;;  %v1980_v41 = vsel %vm1381_vm8, %v13085_v22, %v1979_v38  ;;  %v12642_v39 = vunpack.i.h.bf16 %v7869_v51  ;;  %v1518_v38 = vsel %vm1381_vm8, %v1517_v10, %v7453_v62  ;;  %v8068_v62 = vperm.slane %v13091_v44, %v7063_v3 }
 0x1c7   : > { %13082 = vst [vmem:[#allocation145_spill] sm:$0xff] %v8027_v7  ;;  %v1988_v35 = vperm.slane %v1980_v41, %v7063_v3  ;;  %v3474_v19 = vrot.slane %v8027_v7, 4  ;;  %v8056_v18 = vpop.permute.xlu2 %5811  ;;  %v13090_v7 = vunpack.i.l.bf16 %v7869_v51  ;;  %v2055_v40 = vrot.slane %v13095_v0, 4 }
 0x1c8   : > { %13084 = vst [vmem:[#allocation70_spill] sm:$0xff] %v8033_v30  ;;  %v8048_v30 = vpop.permute.xlu0 %5771  ;;  %v3417_v41 = vsel %vm1381_vm8, %v12642_v39, %v3416_v33  ;;  %v13093_v33 = vld [vmem:[#allocation79_spill] sm:$0xff]  ;;  %v13094_v39 = vrot.slane %v7512_v12, 4  ;;  %v8080_v24 = vperm.slane %v1518_v38, %v7063_v3  ;;  %v13101_v38 = vrot.slane %v13050_v9, 3 }
 0x1c9   : > { %v2025_v22 = vrot.slane %v1988_v35, 4  ;;  %v8061_v52 = vperm.slane %v3417_v41, %v7063_v3  ;;  %v1968_v10 = vsel %vm1381_vm8, %v13090_v7, %v1967_v57  ;;  %13092 = vst [vmem:[#allocation80_spill] sm:$0xff] %v8068_v62  ;;  %v8077_v41 = vpop.permute.xlu1 %5791  ;;  %v13098_v7 = vunpack.i.h.bf16 %v7988_v31 }
 0x1ca   : > { %v1530_v11 = vsel %vm1381_vm8, %v13094_v39, %v13093_v33  ;;  %v1976_v4 = vperm.slane %v1968_v10, %v7063_v3  ;;  %13096 = vst [vmem:[#allocation79_spill] sm:$0xff] %v8080_v24  ;;  %v8098_v51 = vsel %vm897_vm7, %v13101_v38, %v13100_v59  ;;  %v13113_v59 = vld [vmem:[#allocation85_spill] sm:$0xff]  ;;  %v13125_v62 = vunpack.i.h.bf16 %v8048_v30 }
 0x1cb   : > { %13089 = vst [vmem:[#allocation146_spill] sm:$0xff] %v8061_v52  ;;  %v8085_v44 = vsel %vm1381_vm8, %v3474_v19, %v8061_v52  ;;  %v3504_v12 = vrot.slane %v13098_v7, 4  ;;  %v8101_v57 = vperm.slane %v1530_v11, %v7063_v3  ;;  %v13103_v19 = vld [vmem:[#allocation86_spill] sm:$0xff]  ;;  %v8130_v9 = vperm.slane %v13113_v59, %v7674_v46 }
 0x1cc   : > { %13097 = vst [vmem:[#allocation147_spill] sm:$0xff] %v8085_v44  ;;  %v8091_v10 = vsel %vm1381_vm8, %v2025_v22, %v1976_v4  ;;  %v2027_v0 = vrot.slane %v1976_v4, 4  ;;  %v8105_v52 = vperm.slane %v13103_v19, %v7063_v3  ;;  %v13105_v22 = vunpack.i.l.bf16 %v7851_v26  ;;  %v13106_v44 = vld [vmem:[#allocation78_spill] sm:$0xff] }
 0x1cd   : > { %13099 = vst [vmem:[#allocation148_spill] sm:$0xff] %v8091_v10  ;;  %v13109_v10 = vld [vmem:[#allocation81_spill] sm:$0xff]  ;;  %v13120_v11 = vunpack.i.h.bf16 %v7540_v2  ;;  %v1753_v24 = vrot.slane %v7709_v37, 4 }
 0x1ce   : > { %13102 = vst [vmem:[#allocation149_spill] sm:$0xff] %v8101_v57  ;;  %v2056_v4 = vsel %vm1381_vm8, %v13105_v22, %v2055_v40  ;;  %v8115_v38 = vsel %vm1381_vm8, %v1988_v35, %v2027_v0  ;;  %v13110_v31 = vunpack.i.h.bf16 %v13109_v10  ;;  %v13111_v40 = vunpack.i.h.bf16 %v7851_v26 }
 0x1cf   : > { %13104 = vst [vmem:[#allocation86_spill] sm:$0xff] %v8105_v52  ;;  %v13115_v35 = vunpack.i.l.bf16 %v13109_v10  ;;  %v8148_v10 = vperm.slane %v2056_v4, %v7063_v3  ;;  %v13122_v4 = vrot.slane %v13051_v61, 3 }
 0x1d0   : > { %13107 = vst [vmem:[#allocation78_spill] sm:$0xff] %v8115_v38  ;;  %v3055_v7 = vsel %vm1381_vm8, %v7975_v32, %v13110_v31  ;;  %v3505_v22 = vsel %vm1381_vm8, %v13111_v40, %v3504_v12  ;;  %v8126_v39 = vpop.permute.xlu0 %5786  ;;  %v12657_v31 = vunpack.i.h.bf16 %v7936_v21  ;;  %v3066_v40 = vrot.slane %v13120_v11, 4 }
 0x1d1   : > { %13112 = vst [vmem:[#allocation81_spill] sm:$0xff] %v8126_v39  ;;  %v1606_v0 = vsel %vm1381_vm8, %v7979_v16, %v13115_v35  ;;  %v8137_v19 = vperm.slane %v3505_v22, %v7063_v3  ;;  %v8145_v59 = vperm.slane %v3055_v7, %v7063_v3  ;;  %v8153_v35 = vpop.permute.xlu2 %5826  ;;  %v8155_v32 = vpop.permute.xlu1 %5806  ;;  %v13121_v7 = vunpack.i.l.bf16 %v7936_v21 }
 0x1d2   : > { %13114 = vst [vmem:[#allocation85_spill] sm:$0xff] %v8130_v9  ;;  %v3516_v16 = vrot.slane %v12657_v31, 4  ;;  %v8158_v12 = vperm.slane %v1606_v0, %v7063_v3  ;;  %v8169_v31 = vsel %vm897_vm7, %v13123_v47, %v13122_v4  ;;  %v13124_v38 = vunpack.i.l.bf16 %v7540_v2 }
 0x1d3   : > { %13116 = vst [vmem:[#allocation150_spill] sm:$0xff] %v8137_v19  ;;  %v2067_v9 = vrot.slane %v13121_v7, 4  ;;  %v3564_v0 = vrot.slane %v8137_v19, 4  ;;  %v13126_v7 = vunpack.i.l.bf16 %v8048_v30  ;;  %v2115_v22 = vrot.slane %v8148_v10, 4 }
 0x1d4   : > { %13117 = vst [vmem:[#allocation151_spill] sm:$0xff] %v8145_v59  ;;  %v1617_v52 = vrot.slane %v13124_v38, 4  ;;  %v3517_v11 = vsel %vm1381_vm8, %v13125_v62, %v3516_v16  ;;  %v13129_v16 = vld [vmem:[#allocation74_spill] sm:$0xff]  ;;  %v13138_v59 = vld [vmem:[#allocation96_spill] sm:$0xff] }
 0x1d5   : > { %13118 = vst [vmem:[#allocation152_spill] sm:$0xff] %v8148_v10  ;;  %v2068_v57 = vsel %vm1381_vm8, %v13126_v7, %v2067_v9  ;;  %v8182_v42 = vperm.slane %v3517_v11, %v7063_v3  ;;  %v13130_v9 = vunpack.i.h.bf16 %v13129_v16  ;;  %v13132_v38 = vunpack.i.l.bf16 %v13129_v16 }
 0x1d6   : > { %13119 = vst [vmem:[#allocation153_spill] sm:$0xff] %v8158_v12  ;;  %v8190_v19 = vperm.slane %v2068_v57, %v7063_v3  ;;  %v12677_v16 = vunpack.i.l.bf16 %v8126_v39  ;;  %v1717_v62 = vrot.slane %v13138_v59, 4 }
 0x1d7   : > { %13127 = vst [vmem:[#allocation154_spill] sm:$0xff] %v8182_v42  ;;  %v3067_v11 = vsel %vm1381_vm8, %v3066_v40, %v13130_v9  ;;  %v8199_v4 = vsel %vm1381_vm8, %v8182_v42, %v3564_v0  ;;  %v1618_v47 = vsel %vm1381_vm8, %v1617_v52, %v13132_v38  ;;  %v13135_v40 = vunpack.i.h.bf16 %v8012_v28 }
 0x1d8   : > { %13128 = vst [vmem:[#allocation155_spill] sm:$0xff] %v8190_v19  ;;  %v8201_v2 = vpop.permute.xlu0 %5801  ;;  %v8210_v10 = vsel %vm1381_vm8, %v8190_v19, %v2115_v22  ;;  %v13136_v0 = vunpack.i.l.bf16 %v8012_v28  ;;  %v8219_v52 = vperm.slane %v3067_v11, %v7063_v3  ;;  %v8236_v38 = vperm.slane %v1618_v47, %v7063_v3  ;;  %v13144_v22 = vld [vmem:[#allocation92_spill] sm:$0xff] }
 0x1d9   : > { %13131 = vst [vmem:[#allocation74_spill] sm:$0xff] %v8199_v4  ;;  %v3528_v9 = vrot.slane %v13135_v40, 4  ;;  %v12678_v4 = vunpack.i.h.bf16 %v8126_v39  ;;  %v8224_v42 = vpop.permute.xlu1 %5821  ;;  %v13139_v40 = vunpack.i.h.bf16 %v7911_v34  ;;  %v1718_v37 = vsel %vm1381_vm8, %v1717_v62, %v13144_v22 }
 0x1da   : > { %13134 = vst [vmem:[#allocation156_spill] sm:$0xff] %v8210_v10  ;;  %v2079_v7 = vrot.slane %v13136_v0, 4 }
 0x1db   : > { %13137 = vst [vmem:[#allocation157_spill] sm:$0xff] %v8219_v52  ;;  %v3540_v10 = vrot.slane %v13139_v40, 4  ;;  %v3529_v11 = vsel %vm1381_vm8, %v12678_v4, %v3528_v9  ;;  %v8241_v40 = vpop.permute.xlu2 %5841  ;;  %v13142_v4 = vunpack.i.h.bf16 %v8077_v41 }
 0x1dc   : > { %v2080_v0 = vsel %vm1381_vm8, %v12677_v16, %v2079_v7  ;;  %13140 = vst [vmem:[#allocation96_spill] sm:$0xff] %v8236_v38  ;;  %v3537_v60 = vperm.slane %v3529_v11, %v7063_v3  ;;  %v1729_v7 = vrot.slane %v7644_v20, 4  ;;  %v13141_v16 = vunpack.i.l.bf16 %v7911_v34  ;;  %v13147_v11 = vld [vmem:[#allocation101_spill] sm:$0xff] }
 0x1dd   : > { %v2088_v49 = vperm.slane %v2080_v0, %v7063_v3  ;;  %v3541_v47 = vsel %vm1381_vm8, %v13142_v4, %v3540_v10  ;;  %v13145_v34 = vunpack.i.l.bf16 %v8077_v41  ;;  %v13146_v4 = vld [vmem:[#allocation95_spill] sm:$0xff]  ;;  %v8267_v52 = vperm.slane %v13147_v11, %v7063_v3 }
 0x1de   : > { %v2091_v9 = vrot.slane %v13141_v16, 4  ;;  %v3588_v39 = vrot.slane %v3537_v60, 4  ;;  %v3549_v19 = vperm.slane %v3541_v47, %v7063_v3  ;;  %v1730_v62 = vsel %vm1381_vm8, %v1729_v7, %v7621_v53 }
 0x1df   : > { %v2139_v0 = vrot.slane %v2088_v49, 4  ;;  %13148 = vst [vmem:[#allocation92_spill] sm:$0xff] %v8267_v52  ;;  %v8286_v7 = vperm.slane %v7666_v43, %v7063_v3  ;;  %v12692_v11 = vunpack.i.l.bf16 %v8201_v2  ;;  %v1829_v43 = vrot.slane %v7784_v29, 4  ;;  %v13178_v29 = vld [vmem:[#allocation132_spill] sm:$0xff] }
 0x1e0   : > { %v2092_v16 = vsel %vm1381_vm8, %v13145_v34, %v2091_v9  ;;  %v8259_v21 = vpop.permute.xlu0 %5816  ;;  %v3586_v47 = vrot.slane %v3549_v19, 4  ;;  %v8272_v34 = vsel %vm1381_vm8, %v3549_v19, %v3588_v39  ;;  %v8275_v9 = vperm.slane %v1718_v37, %v7063_v3 }
 0x1e1   : > { %v2100_v12 = vperm.slane %v2092_v16, %v7063_v3  ;;  %13149 = vst [vmem:[#allocation95_spill] sm:$0xff] %v8272_v34  ;;  %v8281_v16 = vpop.permute.xlu1 %5836  ;;  %v1754_v39 = vsel %vm1381_vm8, %v1753_v24, %v7679_v56  ;;  %v8294_v19 = vperm.slane %v1730_v62, %v7063_v3  ;;  %v13156_v34 = vld [vmem:[#allocation99_spill] sm:$0xff]  ;;  %v8319_v24 = vperm.slane %v7714_v27, %v7063_v3 }
 0x1e2   : > { %13150 = vst [vmem:[#allocation101_spill] sm:$0xff] %v8275_v9  ;;  %v8291_v37 = vsel %vm1381_vm8, %v3586_v47, %v3537_v60  ;;  %v8306_v60 = vperm.slane %v1754_v39, %v7063_v3  ;;  %v13159_v52 = vunpack.i.l.bf16 %v8056_v18  ;;  %v1830_v27 = vsel %vm1381_vm8, %v1829_v43, %v7764_v15 }
 0x1e3   : > { %v2137_v57 = vrot.slane %v2100_v12, 4  ;;  %v8279_v28 = vsel %vm1381_vm8, %v2100_v12, %v2139_v0  ;;  %13152 = vst [vmem:[#allocation159_spill] sm:$0xff] %v8286_v7  ;;  %v1741_v12 = vrot.slane %v7731_v58, 4  ;;  %v8364_v43 = vperm.slane %v7794_v63, %v7063_v3 }
 0x1e4   : > { %13151 = vst [vmem:[#allocation158_spill] sm:$0xff] %v8279_v28  ;;  %v5828_v63 = vunpack.i.l.bf16 %v8153_v35  ;;  %v13173_v38 = vunpack.i.l.bf16 %v7849_v14 }
 0x1e5   : > { %13153 = vst [vmem:[#allocation160_spill] sm:$0xff] %v8291_v37  ;;  %v8298_v0 = vsel %vm1381_vm8, %v2137_v57, %v2088_v49  ;;  %v2179_v49 = vrot.slane %v12692_v11, 4  ;;  %v8312_v57 = vpop.permute.xlu2 %5856  ;;  %v1742_v11 = vsel %vm1381_vm8, %v1741_v12, %v7701_v13  ;;  %v8332_v37 = vperm.slane %v7758_v50, %v7063_v3 }
 0x1e6   : > { %13154 = vst [vmem:[#allocation161_spill] sm:$0xff] %v8294_v19  ;;  %v13162_v12 = vunpack.i.l.bf16 %v7990_v6 }
 0x1e7   : > { %13155 = vst [vmem:[#allocation162_spill] sm:$0xff] %v8298_v0  ;;  %v2180_v10 = vsel %vm1381_vm8, %v13159_v52, %v2179_v49  ;;  %v5819_v0 = vunpack.i.h.bf16 %v8259_v21  ;;  %v5818_v52 = vunpack.i.l.bf16 %v8259_v21  ;;  %v13166_v21 = vunpack.i.l.bf16 %v8155_v32 }
 0x1e8   : > { %13157 = vst [vmem:[#allocation99_spill] sm:$0xff] %v8306_v60  ;;  %v8321_v39 = vpop.permute.xlu0 %5831  ;;  %v8337_v28 = vperm.slane %v2180_v10, %v7063_v3  ;;  %v2167_v7 = vrot.slane %v13162_v12, 4  ;;  %v8350_v10 = vperm.slane %v1742_v11, %v7063_v3  ;;  %v8356_v12 = vperm.slane %v1830_v27, %v7063_v3 }
 0x1e9   : > { %13158 = vst [vmem:[#allocation163_spill] sm:$0xff] %v8319_v24  ;;  %v8345_v49 = vpop.permute.xlu1 %5851  ;;  %v1007_v24 = vrot.slane %v5819_v0, 3  ;;  %v1841_v60 = vrot.slane %v7862_v8, 4  ;;  %v1002_v27 = vrot.slane %v5818_v52, 3  ;;  %v13172_v52 = vunpack.i.h.bf16 %v7849_v14 }
 0x1ea   : > { %13160 = vst [vmem:[#allocation164_spill] sm:$0xff] %v8332_v37  ;;  %v2225_v62 = vrot.slane %v8337_v28, 4  ;;  %v2168_v19 = vsel %vm1381_vm8, %v13166_v21, %v2167_v7  ;;  %v13169_v7 = vld [vmem:[#allocation121_spill] sm:$0xff]  ;;  %v5824_v37 = vunpack.i.h.bf16 %v8224_v42 }
 0x1eb   : > { %13161 = vst [vmem:[#allocation165_spill] sm:$0xff] %v8337_v28  ;;  %v8367_v11 = vperm.slane %v2168_v19, %v7063_v3  ;;  %v5823_v28 = vunpack.i.l.bf16 %v8224_v42  ;;  %v8375_v21 = vperm.slane %v13169_v7, %v7674_v46  ;;  %v3302_v47 = vrot.slane %v13172_v52, 4  ;;  %v13175_v42 = vld [vmem:[#allocation42_spill] sm:$0xff] }
 0x1ec   : > { %13164 = vst [vmem:[#allocation111_spill] sm:$0xff] %v8350_v10  ;;  %v1842_v50 = vsel %vm1381_vm8, %v1841_v60, %v7831_v5  ;;  %v5829_v52 = vunpack.i.h.bf16 %v8153_v35  ;;  %v13181_v35 = vld [vmem:[#allocation122_spill] sm:$0xff] }
 0x1ed   : > { %13165 = vst [vmem:[#allocation166_spill] sm:$0xff] %v8356_v12  ;;  %v8380_v19 = vsel %vm1381_vm8, %v2225_v62, %v8367_v11  ;;  %v1012_v9 = vrot.slane %v5823_v28, 3  ;;  %v8388_v10 = vpop.permute.xlu2 %5871  ;;  %v1853_v62 = vrot.slane %v13173_v38, 4  ;;  %v13176_v12 = vrot.slane %v13175_v42, 3 }
 0x1ee   : > { %13167 = vst [vmem:[#allocation167_spill] sm:$0xff] %v8364_v43  ;;  %v1022_v38 = vrot.slane %v5828_v63, 3  ;;  %v13182_v15 = vunpack.i.h.bf16 %v13181_v35  ;;  %v8419_v63 = vperm.slane %v1842_v50, %v7063_v3  ;;  %v13191_v50 = vunpack.i.l.bf16 %v7771_v25 }
 0x1ef   : > { %13168 = vst [vmem:[#allocation168_spill] sm:$0xff] %v8367_v11  ;;  %v1003_v7 = vsel %vm897_vm7, %v13176_v12, %v1002_v27  ;;  %v13183_v12 = vld [vmem:[#allocation41_spill] sm:$0xff] }
 0x1f0   : > { %13170 = vst [vmem:[#allocation121_spill] sm:$0xff] %v8375_v21  ;;  %v8382_v0 = vpop.permute.xlu0 %5846  ;;  %v13184_v27 = vrot.slane %v13183_v12, 3  ;;  %v1977_v12 = vrot.slane %v13191_v50, 4  ;;  %v13198_v50 = vrot.slane %v13046_v17, 3  ;;  %v13203_v17 = vld [vmem:[#allocation134_spill] sm:$0xff] }
 0x1f1   : > { %13171 = vst [vmem:[#allocation169_spill] sm:$0xff] %v8380_v19  ;;  %v13174_v19 = vrot.slane %v7325_v54, 3  ;;  %v5925_v54 = vpack.i.bf16 %v1003_v7, %v13178_v29  ;;  %v8407_v55 = vpop.permute.xlu1 %5866  ;;  %v13186_v29 = vld [vmem:[#allocation131_spill] sm:$0xff] }
 0x1f2   : > { %v1013_v42 = vsel %vm897_vm7, %v13184_v27, %v1012_v9  ;;  %13185 = vst [vmem:[#allocation42_spill] sm:$0xff] %v8419_v63  ;;  %v8423_v7 = vperm.slane %v13186_v29, %v7063_v3  ;;  %v1027_v27 = vrot.slane %v5829_v52, 3  ;;  %v13208_v63 = vunpack.i.l.bf16 %v7851_v26 }
 0x1f3   : > { %v1008_v11 = vsel %vm897_vm7, %v13174_v19, %v1007_v24  ;;  %v13179_v24 = vld [vmem:[#allocation112_spill] sm:$0xff]  ;;  %5926 = vrot.lane.b32.xlu1 %v5925_v54, %s6661_s4 }
 0x1f4   : > { %v5930_v28 = vpack.i.bf16 %v1008_v11, %v7836_v45  ;;  %v13180_v19 = vunpack.i.h.bf16 %v13179_v24  ;;  %v3314_v45 = vrot.slane %v13182_v15, 4  ;;  %v1017_v11 = vrot.slane %v5824_v37, 3  ;;  %13187 = vst [vmem:[#allocation132_spill] sm:$0xff] %v8423_v7  ;;  %v13189_v15 = vld [vmem:[#allocation125_spill] sm:$0xff] }
 0x1f5   : > { %v13188_v14 = vunpack.i.l.bf16 %v13179_v24  ;;  %v5935_v37 = vpack.i.bf16 %v1013_v42, %v13189_v15 }
 0x1f6   : > { %v3303_v60 = vsel %vm1381_vm8, %v3302_v47, %v13180_v19  ;;  %5931 = vrot.lane.b32.xlu2 %v5930_v28, %s6661_s4  ;;  %v13190_v19 = vunpack.i.h.bf16 %v7771_v25  ;;  %v13196_v25 = vld [vmem:[#allocation102_spill] sm:$0xff]  ;;  %v1018_v29 = vsel %vm897_vm7, %v13198_v50, %v1017_v11  ;;  %v13204_v11 = vld [vmem:[#allocation49_spill] sm:$0xff] }
 0x1f7   : > { %v1854_v47 = vsel %vm1381_vm8, %v1853_v62, %v13188_v14  ;;  %v8437_v43 = vperm.slane %v3303_v60, %v7063_v3  ;;  %v5834_v62 = vunpack.i.h.bf16 %v8321_v39  ;;  %5936 = vrot.lane.b32.xlu0 %v5935_v37, %s6661_s4  ;;  %v13194_v14 = vld [vmem:[#allocation53_spill] sm:$0xff]  ;;  %v13197_v52 = vunpack.i.h.bf16 %v13196_v25  ;;  %v13200_v28 = vld [vmem:[#allocation130_spill] sm:$0xff] }
 0x1f8   : > { %v3426_v9 = vrot.slane %v13190_v19, 4  ;;  %v13195_v54 = vrot.slane %v13194_v14, 3  ;;  %v8444_v42 = vpop.permute.xlu0 %5861  ;;  %v8447_v15 = vperm.slane %v1854_v47, %v7063_v3  ;;  %v5833_v60 = vunpack.i.l.bf16 %v8321_v39  ;;  %v8465_v39 = vpop.permute.xlu2 %5886 }
 0x1f9   : > { %13193 = vst [vmem:[#allocation112_spill] sm:$0xff] %v8437_v43  ;;  %v3315_v19 = vsel %vm1381_vm8, %v3314_v45, %v13197_v52  ;;  %v13201_v47 = vunpack.i.h.bf16 %v13200_v28  ;;  %v13202_v8 = vunpack.i.l.bf16 %v13200_v28  ;;  %v5838_v45 = vunpack.i.l.bf16 %v8281_v16 }
 0x1fa   : > { %v1023_v24 = vsel %vm897_vm7, %v13195_v54, %v1022_v38  ;;  %v13199_v38 = vunpack.i.l.bf16 %v13181_v35  ;;  %v13205_v50 = vrot.slane %v13204_v11, 3  ;;  %v3352_v14 = vrot.slane %v8437_v43, 4 }
 0x1fb   : > { %v3414_v21 = vrot.slane %v13201_v47, 4  ;;  %v1965_v48 = vrot.slane %v13202_v8, 4  ;;  %v5945_v52 = vpack.i.bf16 %v1023_v24, %v13203_v17  ;;  %v8473_v35 = vperm.slane %v3315_v19, %v7063_v3  ;;  %v13210_v19 = vld [vmem:[#allocation137_spill] sm:$0xff] }
 0x1fc   : > { %v1865_v54 = vrot.slane %v13199_v38, 4  ;;  %v1028_v37 = vsel %vm897_vm7, %v13205_v50, %v1027_v27  ;;  %v1037_v38 = vrot.slane %v5834_v62, 3  ;;  %v5940_v47 = vpack.i.bf16 %v1018_v29, %v8098_v51  ;;  %v13217_v8 = vld [vmem:[#allocation141_spill] sm:$0xff] }
 0x1fd   : > { %13206 = vst [vmem:[#allocation122_spill] sm:$0xff] %v8473_v35  ;;  %v13207_v28 = vunpack.i.h.bf16 %v7851_v26  ;;  %v2053_v24 = vrot.slane %v13208_v63, 4  ;;  %v1032_v17 = vrot.slane %v5833_v60, 3  ;;  %v13209_v27 = vunpack.i.l.bf16 %v13196_v25  ;;  %v8493_v63 = vpop.permute.xlu1 %5881  ;;  %v13214_v60 = vld [vmem:[#allocation109_spill] sm:$0xff] }
 0x1fe   : > { %5946 = vrot.lane.b32.xlu2 %v5945_v52, %s6661_s4  ;;  %v13211_v50 = vunpack.i.l.bf16 %v13210_v19  ;;  %v13212_v51 = vunpack.i.h.bf16 %v13210_v19  ;;  %5941 = vrot.lane.b32.xlu1 %v5940_v47, %s6661_s4  ;;  %v13215_v52 = vunpack.i.h.bf16 %v13214_v60  ;;  %v5843_v47 = vunpack.i.l.bf16 %v8241_v40 }
 0x1ff   : > { %v3502_v7 = vrot.slane %v13207_v28, 4  ;;  %v1866_v11 = vsel %vm1381_vm8, %v1865_v54, %v13209_v27  ;;  %v13213_v28 = vld [vmem:[#allocation126_spill] sm:$0xff]  ;;  %v13216_v54 = vunpack.i.l.bf16 %v13214_v60 }
 0x200   : > { %v1978_v62 = vsel %vm1381_vm8, %v1977_v12, %v13211_v50  ;;  %v3427_v29 = vsel %vm1381_vm8, %v3426_v9, %v13212_v51  ;;  %v5950_v26 = vpack.i.bf16 %v1028_v37, %v13213_v28  ;;  %v3415_v25 = vsel %vm1381_vm8, %v3414_v21, %v13215_v52 }
 0x201   : > { %v1966_v27 = vsel %vm1381_vm8, %v1965_v48, %v13216_v54  ;;  %v13218_v12 = vunpack.i.l.bf16 %v13217_v8  ;;  %v1042_v50 = vrot.slane %v5838_v45, 3  ;;  %v8507_v37 = vsel %vm1381_vm8, %v8473_v35, %v3352_v14  ;;  %v8514_v48 = vpop.permute.xlu0 %5876  ;;  %v13222_v14 = vld [vmem:[#allocation60_spill] sm:$0xff] }
 0x202   : > { %13219 = vst [vmem:[#allocation41_spill] sm:$0xff] %v8507_v37  ;;  %5951 = vrot.lane.b32.xlu0 %v5950_v26, %s6661_s4  ;;  %v13220_v21 = vrot.slane %v13051_v61, 3  ;;  %v8517_v28 = vperm.slane %v1866_v11, %v7063_v3  ;;  %v8520_v45 = vperm.slane %v3427_v29, %v7063_v3  ;;  %v13223_v60 = vrot.slane %v13222_v14, 3 }
 0x203   : > { %v2054_v19 = vsel %vm1381_vm8, %v2053_v24, %v13218_v12  ;;  %v5839_v24 = vunpack.i.h.bf16 %v8281_v16  ;;  %v8527_v26 = vperm.slane %v1978_v62, %v7063_v3  ;;  %v8530_v61 = vperm.slane %v3415_v25, %v7063_v3  ;;  %v13227_v12 = vld [vmem:[#allocation61_spill] sm:$0xff] }
 0x204   : > { %v1038_v51 = vsel %vm897_vm7, %v13220_v21, %v1037_v38  ;;  %13221 = vst [vmem:[#allocation131_spill] sm:$0xff] %v8520_v45  ;;  %v1033_v52 = vsel %vm897_vm7, %v13223_v60, %v1032_v17  ;;  %v8533_v38 = vperm.slane %v1966_v27, %v7063_v3  ;;  %v8536_v11 = vperm.slane %v2054_v19, %v7063_v3  ;;  %v13229_v21 = vld [vmem:[#allocation62_spill] sm:$0xff] }
 0x205   : > { %13224 = vst [vmem:[#allocation125_spill] sm:$0xff] %v8530_v61  ;;  %v5844_v29 = vunpack.i.h.bf16 %v8241_v40  ;;  %v5960_v16 = vpack.i.bf16 %v1038_v51, %v8169_v31  ;;  %v13226_v54 = vmov %v13223_v60  ;;  %v13228_v17 = vrot.slane %v13227_v12, 3  ;;  %v13231_v27 = vld [vmem:[#allocation142_spill] sm:$0xff] }
 0x206   : > { %13225 = vst [vmem:[#allocation53_spill] sm:$0xff] %v8536_v11  ;;  %v13230_v60 = vrot.slane %v13229_v21, 3  ;;  %v8550_v9 = vperm.slane %v13231_v27, %v7674_v46  ;;  %v13233_v19 = vunpack.i.h.bf16 %v13217_v8  ;;  %v1052_v37 = vrot.slane %v5843_v47, 3  ;;  %v13237_v47 = vld [vmem:[#allocation148_spill] sm:$0xff]  ;;  %v13243_v8 = vld [vmem:[#allocation77_spill] sm:$0xff] }
 0x207   : > { %v1031_v62 = vsel %vm897_vm7, %v13228_v17, %v13226_v54  ;;  %v1047_v12 = vrot.slane %v5839_v24, 3  ;;  %v8557_v54 = vpop.permute.xlu2 %5901  ;;  %5961 = vrot.lane.b32.xlu2 %v5960_v16, %s6661_s4  ;;  %v13235_v17 = vld [vmem:[#allocation69_spill] sm:$0xff]  ;;  %v5853_v14 = vunpack.i.l.bf16 %v8345_v49  ;;  %v13242_v16 = vrot.slane %v13106_v44, 3  ;;  %v13252_v44 = vld [vmem:[#allocation83_spill] sm:$0xff] }
 0x208   : > { %v1043_v25 = vsel %vm897_vm7, %v13230_v60, %v1042_v50  ;;  %13232 = vst [vmem:[#allocation102_spill] sm:$0xff] %v8550_v9  ;;  %v3503_v40 = vsel %vm1381_vm8, %v3502_v7, %v13233_v19  ;;  %v5955_v31 = vpack.i.bf16 %v1033_v52, %v1031_v62  ;;  %v13234_v50 = vmov %v13230_v60 }
 0x209   : > { %v13236_v60 = vrot.slane %v13235_v17, 3  ;;  %v8569_v52 = vperm.slane %v13237_v47, %v7674_v46  ;;  %v8575_v21 = vperm.slane %v3503_v40, %v7063_v3  ;;  %v1057_v19 = vrot.slane %v5844_v29, 3  ;;  %v13240_v47 = vld [vmem:[#allocation66_spill] sm:$0xff] }
 0x20a   : > { %5956 = vrot.lane.b32.xlu1 %v5955_v31, %s6661_s4  ;;  %v5859_v17 = vunpack.i.h.bf16 %v8312_v57  ;;  %v13241_v7 = vrot.slane %v13240_v47, 3  ;;  %v8584_v31 = vpop.permute.xlu0 %5891  ;;  %v5849_v40 = vunpack.i.h.bf16 %v8382_v0  ;;  %v5848_v29 = vunpack.i.l.bf16 %v8382_v0 }
 0x20b   : > { %v1041_v27 = vsel %vm897_vm7, %v13236_v60, %v13234_v50  ;;  %13238 = vst [vmem:[#allocation130_spill] sm:$0xff] %v8569_v52  ;;  %v5854_v60 = vunpack.i.h.bf16 %v8345_v49  ;;  %v1048_v62 = vsel %vm897_vm7, %v13242_v16, %v1047_v12  ;;  %v5864_v51 = vunpack.i.h.bf16 %v8444_v42 }
 0x20c   : > { %v5965_v24 = vpack.i.bf16 %v1043_v25, %v1041_v27  ;;  %13239 = vst [vmem:[#allocation134_spill] sm:$0xff] %v8575_v21  ;;  %v1053_v25 = vsel %vm897_vm7, %v13241_v7, %v1052_v37  ;;  %v8586_v27 = vpop.permute.xlu1 %5896  ;;  %v5863_v37 = vunpack.i.l.bf16 %v8444_v42  ;;  %v13244_v50 = vrot.slane %v13243_v8, 3 }
 0x20d   : > { %v5868_v0 = vunpack.i.l.bf16 %v8407_v55  ;;  %v13245_v49 = vmov %v13242_v16  ;;  %v13246_v45 = vrot.slane %v13093_v33, 3  ;;  %v13249_v42 = vunpack.i.h.bf16 %v8048_v30 }
 0x20e   : > { %5966 = vrot.lane.b32.xlu0 %v5965_v24, %s6661_s4  ;;  %v5858_v24 = vunpack.i.l.bf16 %v8312_v57  ;;  %v1051_v35 = vsel %vm897_vm7, %v13244_v50, %v13241_v7  ;;  %v13247_v57 = vld [vmem:[#allocation72_spill] sm:$0xff]  ;;  %v13250_v8 = vunpack.i.l.bf16 %v8048_v30  ;;  %v1064_v50 = vrot.slane %v5854_v60, 3 }
 0x20f   : > { %v5975_v43 = vpack.i.bf16 %v1053_v25, %v1051_v35  ;;  %v1046_v12 = vsel %vm897_vm7, %v13246_v45, %v13245_v49  ;;  %v13248_v16 = vrot.slane %v13247_v57, 3  ;;  %v3514_v47 = vrot.slane %v13249_v42, 4 }
 0x210   : > { %v2065_v9 = vrot.slane %v13250_v8, 4  ;;  %v5970_v7 = vpack.i.bf16 %v1048_v62, %v1046_v12  ;;  %v1060_v52 = vrot.slane %v5849_v40, 3  ;;  %v1059_v35 = vrot.slane %v5848_v29, 3  ;;  %v8624_v29 = vpop.permute.xlu2 %5916 }
 0x211   : > { %v1058_v61 = vsel %vm897_vm7, %v13248_v16, %v1057_v19  ;;  %v1062_v25 = vrot.slane %v5853_v14, 3  ;;  %5976 = vrot.lane.b32.xlu2 %v5975_v43, %s6661_s4  ;;  %v13251_v33 = vmov %v13248_v16  ;;  %v13253_v45 = vrot.slane %v13252_v44, 3  ;;  %13254 = vst [vmem:[#allocation49_spill] sm:$0xff] %v8624_v29  ;;  %v13255_v43 = vld [vmem:[#allocation47_spill] sm:$0xff] }
 0x212   : > { %v1067_v19 = vrot.slane %v5859_v17, 3  ;;  %v1065_v16 = vrot.slane %v5858_v24, 3  ;;  %v5869_v42 = vunpack.i.h.bf16 %v8407_v55  ;;  %5971 = vrot.lane.b32.xlu1 %v5970_v7, %s6661_s4  ;;  %v1070_v60 = vrot.slane %v5864_v51, 3  ;;  %v8635_v24 = vpop.permute.xlu0 %5906 }
 0x213   : > { %v1056_v49 = vsel %vm897_vm7, %v13253_v45, %v13251_v33  ;;  %v1069_v40 = vrot.slane %v5863_v37, 3  ;;  %v1072_v14 = vrot.slane %v5868_v0, 3  ;;  %v13256_v12 = vunpack.i.l.bf16 %v13255_v43  ;;  %13258 = vst [vmem:[#allocation137_spill] sm:$0xff] %v8635_v24 }
 0x214   : > { %v5980_v30 = vpack.i.bf16 %v1058_v61, %v1056_v49  ;;  %v13257_v8 = vunpack.i.h.bf16 %v13255_v43  ;;  %v12740_v55 = vunpack.i.h.bf16 %v8056_v18  ;;  %v1066_v61 = vsel %vm897_vm7, %v1064_v50, %v1065_v16  ;;  %v8644_v45 = vpop.permute.xlu1 %5911 }
 0x215   : > { %v2066_v57 = vsel %vm1381_vm8, %v2065_v9, %v13256_v12  ;;  %v5874_v51 = vunpack.i.h.bf16 %v8388_v10  ;;  %v1061_v37 = vsel %vm897_vm7, %v1059_v35, %v1060_v52  ;;  %v1063_v0 = vsel %vm897_vm7, %v1060_v52, %v1062_v25  ;;  %13259 = vst [vmem:[#allocation126_spill] sm:$0xff] %v8644_v45  ;;  %v13260_v25 = vld [vmem:[#allocation21_spill] sm:$0xff]  ;;  %v13261_v12 = vld [vmem:[#allocation22_spill] sm:$0xff] }
 0x216   : > { %v3515_v17 = vsel %vm1381_vm8, %v3514_v47, %v13257_v8  ;;  %5981 = vrot.lane.b32.xlu0 %v5980_v30, %s6661_s4  ;;  %v12738_v9 = vunpack.i.l.bf16 %v8635_v24  ;;  %v5873_v7 = vunpack.i.l.bf16 %v8388_v10  ;;  %v1074_v33 = vrot.slane %v5869_v42, 3  ;;  %v13262_v42 = vld [vmem:[#allocation17_spill] sm:$0xff] }
 0x217   : > { %v12739_v47 = vunpack.i.l.bf16 %v8624_v29  ;;  %v1068_v44 = vsel %vm897_vm7, %v1065_v16, %v1067_v19  ;;  %v1071_v49 = vsel %vm897_vm7, %v1069_v40, %v1070_v60  ;;  %v1073_v30 = vsel %vm897_vm7, %v1070_v60, %v1072_v14  ;;  %v13278_v29 = vld [vmem:[#allocation14_spill] sm:$0xff] }
 0x218   : > { %v5990_v50 = vpack.i.bf16 %v1068_v44, %v1066_v61  ;;  %v2279_v35 = vrot.slane %v12738_v9, 4  ;;  %v5985_v52 = vpack.i.bf16 %v1063_v0, %v1061_v37  ;;  %v1079_v43 = vrot.slane %v13260_v25, 3 }
 0x219   : > { %v1080_v10 = vrot.slane %v13261_v12, 3  ;;  %v1082_v8 = vrot.slane %v13262_v42, 3  ;;  %v13263_v62 = vunpack.i.h.bf16 %v7990_v6  ;;  %v8659_v16 = vrot.slane %v12740_v55, 4 }
 0x21a   : > { %5991 = vrot.lane.b32.xlu2 %v5990_v50, %s6661_s4  ;;  %v2280_v60 = vsel %vm1381_vm8, %v12739_v47, %v2279_v35  ;;  %v12743_v40 = vunpack.i.l.bf16 %v8644_v45  ;;  %v8667_v14 = vperm.slane %v3515_v17, %v7063_v3  ;;  %v1077_v61 = vrot.slane %v5874_v51, 3  ;;  %5986 = vrot.lane.b32.xlu1 %v5985_v52, %s6661_s4  ;;  %v13270_v35 = vld [vmem:[#allocation81_spill] sm:$0xff] }
 0x21b   : > { %v8655_v19 = vrot.slane %v13263_v62, 4  ;;  %13265 = vst [vmem:[#allocation141_spill] sm:$0xff] %v8659_v16  ;;  %v1075_v37 = vrot.slane %v5873_v7, 3  ;;  %v5995_v62 = vpack.i.bf16 %v1073_v30, %v1071_v49  ;;  %v8671_v0 = vperm.slane %v2066_v57, %v7063_v3  ;;  %v8685_v49 = vpop.permute.xlu0 %5921 }
 0x21c   : > { %13266 = vst [vmem:[#allocation60_spill] sm:$0xff] %v8667_v14  ;;  %v13269_v50 = vunpack.i.l.bf16 %v8056_v18  ;;  %v13271_v47 = vunpack.i.h.bf16 %v13270_v35  ;;  %v2288_v17 = vperm.slane %v2280_v60, %v7063_v3  ;;  %v1081_v7 = vsel %vm897_vm7, %v1079_v43, %v1080_v10  ;;  %v13293_v14 = vld [vmem:[#allocation138_spill] sm:$0xff] }
 0x21d   : > { %13264 = vst [vmem:[#allocation109_spill] sm:$0xff] %v8655_v19  ;;  %v1076_v51 = vsel %vm897_vm7, %v1074_v33, %v1075_v37  ;;  %v1083_v57 = vsel %vm897_vm7, %v1080_v10, %v1082_v8  ;;  %v13273_v30 = vunpack.i.l.bf16 %v13270_v35  ;;  %v13275_v60 = vunpack.i.l.bf16 %v8077_v41  ;;  %v13276_v8 = vld [vmem:[#allocation13_spill] sm:$0xff]  ;;  %v13280_v19 = vld [vmem:[#allocation51_spill] sm:$0xff] }
 0x21e   : > { %13267 = vst [vmem:[#allocation61_spill] sm:$0xff] %v8671_v0  ;;  %v8676_v9 = vrot.slane %v13269_v50, 4  ;;  %v3526_v55 = vrot.slane %v13271_v47, 4  ;;  %5996 = vrot.lane.b32.xlu0 %v5995_v62, %s6661_s4  ;;  %v13274_v50 = vunpack.i.h.bf16 %v8077_v41  ;;  %v2291_v47 = vrot.slane %v12743_v40, 4 }
 0x21f   : > { %13272 = vst [vmem:[#allocation62_spill] sm:$0xff] %v8685_v49  ;;  %v2077_v52 = vrot.slane %v13273_v30, 4  ;;  %v12750_v62 = vunpack.i.l.bf16 %v8685_v49  ;;  %v2089_v33 = vrot.slane %v13275_v60, 4  ;;  %v5878_v43 = vunpack.i.l.bf16 %v8514_v48  ;;  %v13279_v60 = vld [vmem:[#allocation10_spill] sm:$0xff] }
 0x220   : > { %v3538_v42 = vrot.slane %v13274_v50, 4  ;;  %v1078_v10 = vsel %vm897_vm7, %v1075_v37, %v1077_v61  ;;  %v1393_v21 = vrot.slane %v13276_v8, 4  ;;  %v6005_v35 = vpack.i.bf16 %v1083_v57, %v1081_v7  ;;  %v13277_v50 = vld [vmem:[#allocation26_spill] sm:$0xff]  ;;  %v13281_v61 = vld [vmem:[#allocation127_spill] sm:$0xff] }
 0x221   : > { %v6000_v12 = vpack.i.bf16 %v1078_v10, %v1076_v51  ;;  %v2292_v30 = vsel %vm1381_vm8, %v12750_v62, %v2291_v47  ;;  %v1094_v44 = vrot.slane %v13277_v50, 3  ;;  %v2339_v40 = vrot.slane %v2288_v17, 4  ;;  %v13282_v51 = vld [vmem:[#allocation30_spill] sm:$0xff]  ;;  %v13283_v57 = vld [vmem:[#allocation31_spill] sm:$0xff] }
 0x222   : > { %v2300_v45 = vperm.slane %v2292_v30, %v7063_v3  ;;  %v1380_v41 = vrot.slane %v13278_v29, 4  ;;  %v1394_v24 = vsel %vm1381_vm8, %v1393_v21, %v13279_v60  ;;  %v6010_v37 = vpack.i.bf16 %v13281_v61, %v13280_v19  ;;  %6006 = vrot.lane.b32.xlu2 %v6005_v35, %s6661_s4  ;;  %v13284_v47 = vld [vmem:[#allocation27_spill] sm:$0xff]  ;;  %v13286_v29 = vld [vmem:[#allocation28_spill] sm:$0xff]  ;;  %v13287_v21 = vld [vmem:[#allocation25_spill] sm:$0xff] }
 0x223   : > { %v1089_v7 = vrot.slane %v13282_v51, 3  ;;  %v1090_v10 = vrot.slane %v13283_v57, 3  ;;  %v1092_v62 = vrot.slane %v13284_v47, 3  ;;  %6001 = vrot.lane.b32.xlu1 %v6000_v12, %s6661_s4  ;;  %v1095_v49 = vrot.slane %v13286_v29, 3  ;;  %v13288_v61 = vld [vmem:[#allocation143_spill] sm:$0xff] }
 0x224   : > { %v2337_v8 = vrot.slane %v2300_v45, 4  ;;  %v8715_v30 = vsel %vm1381_vm8, %v2300_v45, %v2339_v40  ;;  %v1097_v60 = vrot.slane %v13287_v21, 3  ;;  %v13289_v35 = vunpack.i.l.bf16 %v13288_v61  ;;  %v13291_v47 = vld [vmem:[#allocation11_spill] sm:$0xff] }
 0x225   : > { %13285 = vst [vmem:[#allocation142_spill] sm:$0xff] %v8715_v30  ;;  %v1102_v16 = vrot.slane %v5878_v43, 3  ;;  %v8724_v57 = vperm.slane %v1394_v24, %v7063_v3  ;;  %v5883_v12 = vunpack.i.l.bf16 %v8493_v63  ;;  %v1096_v40 = vsel %vm897_vm7, %v1094_v44, %v1095_v49  ;;  %v13296_v29 = vld [vmem:[#allocation91_spill] sm:$0xff] }
 0x226   : > { %v2078_v11 = vsel %vm1381_vm8, %v2077_v52, %v13289_v35  ;;  %6011 = vrot.lane.b32.xlu0 %v6010_v37, %s6661_s4  ;;  %v8729_v45 = vsel %vm1381_vm8, %v2337_v8, %v2288_v17  ;;  %v1382_v21 = vsel %vm1381_vm8, %v1380_v41, %v13291_v47  ;;  %v13292_v19 = vunpack.i.h.bf16 %v13288_v61 }
 0x227   : > { %13290 = vst [vmem:[#allocation69_spill] sm:$0xff] %v8729_v45  ;;  %v5879_v43 = vunpack.i.h.bf16 %v8514_v48  ;;  %v1091_v24 = vsel %vm897_vm7, %v1089_v7, %v1090_v10  ;;  %v1093_v35 = vsel %vm897_vm7, %v1090_v10, %v1092_v62  ;;  %v13294_v37 = vunpack.i.h.bf16 %v13293_v14 }
 0x228   : > { %v3527_v52 = vsel %vm1381_vm8, %v3526_v55, %v13292_v19  ;;  %v13295_v8 = vunpack.i.l.bf16 %v13293_v14  ;;  %v5884_v41 = vunpack.i.h.bf16 %v8493_v63  ;;  %v1098_v61 = vsel %vm897_vm7, %v1095_v49, %v1097_v60 }
 0x229   : > { %v3539_v17 = vsel %vm1381_vm8, %v3538_v42, %v13294_v37  ;;  %v13297_v55 = vrot.slane %v13296_v29, 3  ;;  %v6020_v19 = vpack.i.bf16 %v1098_v61, %v1096_v40  ;;  %v8752_v7 = vperm.slane %v1382_v21, %v7063_v3 }
 0x22a   : > { %v2090_v44 = vsel %vm1381_vm8, %v2089_v33, %v13295_v8  ;;  %v1429_v62 = vrot.slane %v8724_v57, 4  ;;  %v8757_v14 = vperm.slane %v2078_v11, %v7063_v3  ;;  %v1112_v33 = vrot.slane %v5883_v12, 3 }
 0x22b   : > { %v1103_v48 = vsel %vm897_vm7, %v13297_v55, %v1102_v16  ;;  %v6015_v10 = vpack.i.bf16 %v1093_v35, %v1091_v24  ;;  %v8760_v63 = vperm.slane %v3527_v52, %v7063_v3  ;;  %v1107_v49 = vrot.slane %v5879_v43, 3  ;;  %6021 = vrot.lane.b32.xlu2 %v6020_v19, %s6661_s4  ;;  %v13302_v35 = vld [vmem:[#allocation123_spill] sm:$0xff]  ;;  %v13306_v19 = vld [vmem:[#allocation97_spill] sm:$0xff] }
 0x22c   : > { %v13299_v60 = vmov %v13297_v55  ;;  %v13300_v16 = vrot.slane %v13144_v22, 3  ;;  %v1430_v21 = vsel %vm1381_vm8, %v1429_v62, %v8752_v7  ;;  %v8771_v11 = vperm.slane %v3539_v17, %v7063_v3  ;;  %v13305_v55 = vld [vmem:[#allocation54_spill] sm:$0xff] }
 0x22d   : > { %13298 = vst [vmem:[#allocation148_spill] sm:$0xff] %v8760_v63  ;;  %v8774_v12 = vperm.slane %v2090_v44, %v7063_v3  ;;  %6016 = vrot.lane.b32.xlu1 %v6015_v10, %s6661_s4  ;;  %v5889_v22 = vunpack.i.h.bf16 %v8465_v39  ;;  %v5888_v43 = vunpack.i.l.bf16 %v8465_v39  ;;  %v1117_v24 = vrot.slane %v5884_v41, 3 }
 0x22e   : > { %v1101_v40 = vsel %vm897_vm7, %v13300_v16, %v13299_v60  ;;  %13301 = vst [vmem:[#allocation66_spill] sm:$0xff] %v8771_v11  ;;  %v2237_v37 = vrot.slane %v13302_v35, 4  ;;  %v5893_v8 = vunpack.i.l.bf16 %v8584_v31  ;;  %v13303_v17 = vrot.slane %v13146_v4, 3  ;;  %v13310_v16 = vld [vmem:[#allocation70_spill] sm:$0xff] }
 0x22f   : > { %v6025_v29 = vpack.i.bf16 %v1103_v48, %v1101_v40  ;;  %v8787_v61 = vperm.slane %v1430_v21, %v7674_v46  ;;  %v1453_v48 = vrot.slane %v13305_v55, 4  ;;  %v13307_v62 = vrot.slane %v13306_v19, 3  ;;  %v13311_v40 = vld [vmem:[#allocation64_spill] sm:$0xff]  ;;  %v13314_v21 = vld [vmem:[#allocation149_spill] sm:$0xff] }
 0x230   : > { %v1113_v44 = vsel %vm897_vm7, %v13303_v17, %v1112_v33  ;;  %v13308_v39 = vrot.slane %v7621_v53, 3  ;;  %v13313_v17 = vld [vmem:[#allocation79_spill] sm:$0xff]  ;;  %v13315_v42 = vrot.slane %v13314_v21, 4  ;;  %v13316_v45 = vrot.slane %v13146_v4, 3 }
 0x231   : > { %6026 = vrot.lane.b32.xlu0 %v6025_v29, %s6661_s4  ;;  %13304 = vst [vmem:[#allocation77_spill] sm:$0xff] %v8787_v61  ;;  %v13309_v10 = vmov %v13307_v62  ;;  %v13312_v29 = vrot.slane %v13311_v40, 4  ;;  %v13317_v53 = vrot.slane %v13138_v59, 3  ;;  %v13321_v59 = vld [vmem:[#allocation113_spill] sm:$0xff] }
 0x232   : > { %v1106_v41 = vsel %vm897_vm7, %v13308_v39, %v13307_v62  ;;  %v1108_v60 = vsel %vm897_vm7, %v13309_v10, %v1107_v49  ;;  %v1566_v52 = vsel %vm1381_vm8, %v13315_v42, %v13313_v17  ;;  %v13318_v39 = vld [vmem:[#allocation43_spill] sm:$0xff] }
 0x233   : > { %v1542_v33 = vsel %vm1381_vm8, %v13312_v29, %v13310_v16  ;;  %v1111_v62 = vsel %vm897_vm7, %v13317_v53, %v13316_v45  ;;  %v1454_v19 = vsel %vm1381_vm8, %v1453_v48, %v13318_v39  ;;  %v8817_v10 = vperm.slane %v1566_v52, %v7674_v46 }
 0x234   : > { %v8814_v49 = vperm.slane %v1542_v33, %v7674_v46  ;;  %v13320_v29 = vrot.slane %v13156_v34, 3  ;;  %v6035_v42 = vpack.i.bf16 %v1113_v44, %v1111_v62  ;;  %v8823_v4 = vperm.slane %v1454_v19, %v7674_v46 }
 0x235   : > { %v8827_v45 = vsel %vm1381_vm8, %v2237_v37, %v13321_v59  ;;  %v1127_v53 = vrot.slane %v5889_v22, 3  ;;  %v6030_v48 = vpack.i.bf16 %v1108_v60, %v1106_v41  ;;  %v1479_v33 = vrot.slane %v8787_v61, 4 }
 0x236   : > { %13319 = vst [vmem:[#allocation72_spill] sm:$0xff] %v8814_v49  ;;  %v1118_v47 = vsel %vm897_vm7, %v13320_v29, %v1117_v24  ;;  %v1591_v30 = vrot.slane %v8814_v49, 4  ;;  %v13322_v52 = vunpack.i.l.bf16 %v8201_v2  ;;  %v1122_v24 = vrot.slane %v5888_v43, 3  ;;  %6036 = vrot.lane.b32.xlu2 %v6035_v42, %s6661_s4  ;;  %v13378_v49 = vld [vmem:[#allocation99_spill] sm:$0xff] }
 0x237   : > { %v5894_v44 = vunpack.i.h.bf16 %v8584_v31  ;;  %v13323_v62 = vmov %v13320_v29  ;;  %v13324_v19 = vrot.slane %v7644_v20, 3  ;;  %v5899_v22 = vunpack.i.h.bf16 %v8586_v27  ;;  %6031 = vrot.lane.b32.xlu1 %v6030_v48, %s6661_s4 }
 0x238   : > { %v2178_v0 = vsel %vm1381_vm8, %v8676_v9, %v13322_v52  ;;  %v8846_v60 = vsel %vm1381_vm8, %v8823_v4, %v1479_v33  ;;  %v8850_v31 = vsel %vm1381_vm8, %v8817_v10, %v1591_v30  ;;  %v1132_v9 = vrot.slane %v5893_v8, 3 }
 0x239   : > { %v1116_v37 = vsel %vm897_vm7, %v13324_v19, %v13323_v62  ;;  %v13325_v29 = vunpack.i.h.bf16 %v8201_v2  ;;  %v5898_v33 = vunpack.i.l.bf16 %v8586_v27  ;;  %v13327_v30 = vrot.slane %v7671_v36, 3 }
 0x23a   : > { %v6040_v41 = vpack.i.bf16 %v1118_v47, %v1116_v37  ;;  %v13326_v47 = vunpack.i.l.bf16 %v8155_v32  ;;  %v8867_v8 = vperm.slane %v2178_v0, %v7063_v3  ;;  %v1137_v19 = vrot.slane %v5894_v44, 3  ;;  %v13328_v37 = vld [vmem:[#allocation106_spill] sm:$0xff] }
 0x23b   : > { %v3628_v42 = vrot.slane %v13325_v29, 4  ;;  %v1128_v52 = vsel %vm897_vm7, %v13327_v30, %v1127_v53  ;;  %v13329_v20 = vrot.slane %v13328_v37, 3  ;;  %v5903_v27 = vunpack.i.l.bf16 %v8557_v54 }
 0x23c   : > { %v2165_v48 = vrot.slane %v13326_v47, 4  ;;  %6041 = vrot.lane.b32.xlu0 %v6040_v41, %s6661_s4  ;;  %v1147_v34 = vrot.slane %v5899_v22, 3  ;;  %v13330_v41 = vmov %v13327_v30  ;;  %v13331_v43 = vrot.slane %v7679_v56, 3 }
 0x23d   : > { %v1123_v29 = vsel %vm897_vm7, %v13329_v20, %v1122_v24  ;;  %v5904_v30 = vunpack.i.h.bf16 %v8557_v54  ;;  %v13332_v0 = vmov %v13329_v20  ;;  %v13333_v44 = vrot.slane %v7701_v13, 3  ;;  %v13362_v13 = vld [vmem:[#allocation29_spill] sm:$0xff] }
 0x23e   : > { %v1126_v53 = vsel %vm897_vm7, %v13331_v43, %v13330_v41  ;;  %v13334_v24 = vrot.slane %v13163_v1, 3  ;;  %v13335_v22 = vunpack.i.h.bf16 %v8056_v18  ;;  %v13336_v56 = vunpack.i.l.bf16 %v7990_v6  ;;  %v13339_v18 = vld [vmem:[#allocation103_spill] sm:$0xff] }
 0x23f   : > { %v1121_v62 = vsel %vm897_vm7, %v13333_v44, %v13332_v0  ;;  %v6050_v47 = vpack.i.bf16 %v1128_v52, %v1126_v53  ;;  %v1142_v43 = vrot.slane %v5898_v33, 3  ;;  %v13338_v0 = vrot.slane %v7731_v58, 3 }
 0x240   : > { %v1133_v20 = vsel %vm897_vm7, %v13334_v24, %v1132_v9  ;;  %v8891_v36 = vsel %vm1381_vm8, %v13335_v22, %v3628_v42  ;;  %v2166_v54 = vsel %vm1381_vm8, %v2165_v48, %v13336_v56  ;;  %v6045_v37 = vpack.i.bf16 %v1123_v29, %v1121_v62  ;;  %v13346_v56 = vld [vmem:[#allocation39_spill] sm:$0xff] }
 0x241   : > { %v13337_v41 = vmov %v13334_v24  ;;  %6051 = vrot.lane.b32.xlu2 %v6050_v47, %s6661_s4  ;;  %v13340_v52 = vrot.slane %v13339_v18, 3  ;;  %v1641_v53 = vrot.slane %v13277_v50, 4  ;;  %v1152_v44 = vrot.slane %v5903_v27, 3  ;;  %v13343_v24 = vld [vmem:[#allocation110_spill] sm:$0xff]  ;;  %v13345_v27 = vld [vmem:[#allocation35_spill] sm:$0xff]  ;;  %v13352_v18 = vld [vmem:[#allocation36_spill] sm:$0xff] }
 0x242   : > { %v1131_v9 = vsel %vm897_vm7, %v13338_v0, %v13337_v41  ;;  %6046 = vrot.lane.b32.xlu1 %v6045_v37, %s6661_s4  ;;  %v13341_v33 = vrot.slane %v7828_v23, 3  ;;  %v1431_v58 = vrot.slane %v8752_v7, 4  ;;  %v8913_v62 = vperm.slane %v2166_v54, %v7063_v3  ;;  %v13350_v41 = vld [vmem:[#allocation116_spill] sm:$0xff] }
 0x243   : > { %v1138_v42 = vsel %vm897_vm7, %v13340_v52, %v1137_v19  ;;  %v6055_v48 = vpack.i.bf16 %v1133_v20, %v1131_v9  ;;  %v1157_v29 = vrot.slane %v5904_v30, 3  ;;  %v13342_v47 = vmov %v13340_v52  ;;  %v13353_v52 = vld [vmem:[#allocation33_spill] sm:$0xff] }
 0x244   : > { %v1148_v1 = vsel %vm897_vm7, %v13341_v33, %v1147_v34  ;;  %v13344_v19 = vrot.slane %v13343_v24, 3  ;;  %v13347_v37 = vrot.slane %v13346_v56, 4  ;;  %v13348_v7 = vmov %v13341_v33 }
 0x245   : > { %6056 = vrot.lane.b32.xlu0 %v6055_v48, %s6661_s4  ;;  %v13349_v54 = vrot.slane %v7831_v5, 3  ;;  %v13351_v0 = vrot.slane %v13350_v41, 3  ;;  %v13354_v33 = vrot.slane %v13353_v52, 4  ;;  %v13356_v48 = vld [vmem:[#allocation117_spill] sm:$0xff]  ;;  %v1432_v41 = vsel %vm1381_vm8, %v8724_v57, %v1431_v58 }
 0x246   : > { %v1136_v22 = vsel %vm897_vm7, %v13344_v19, %v13342_v47  ;;  %v1954_v20 = vsel %vm1381_vm8, %v13347_v37, %v13345_v27  ;;  %v13360_v37 = vld [vmem:[#allocation120_spill] sm:$0xff]  ;;  %v13379_v61 = vrot.slane %v13378_v49, 4 }
 0x247   : > { %v6060_v34 = vpack.i.bf16 %v1138_v42, %v1136_v22  ;;  %v1146_v30 = vsel %vm897_vm7, %v13349_v54, %v13348_v7  ;;  %v1143_v9 = vsel %vm897_vm7, %v13351_v0, %v1142_v43  ;;  %v1942_v47 = vsel %vm1381_vm8, %v13354_v33, %v13352_v18  ;;  %v13358_v22 = vld [vmem:[#allocation115_spill] sm:$0xff] }
 0x248   : > { %v6070_v24 = vpack.i.bf16 %v1148_v1, %v1146_v30  ;;  %v13355_v19 = vmov %v13351_v0  ;;  %v13357_v42 = vrot.slane %v13356_v48, 3  ;;  %v13359_v5 = vrot.slane %v13358_v22, 3 }
 0x249   : > { %v13361_v7 = vrot.slane %v13360_v37, 3  ;;  %v1642_v43 = vsel %vm1381_vm8, %v1641_v53, %v13362_v13  ;;  %v8953_v1 = vperm.slane %v1954_v20, %v7063_v3  ;;  %v1629_v30 = vrot.slane %v13282_v51, 4 }
 0x24a   : > { %v1141_v23 = vsel %vm897_vm7, %v13357_v42, %v13355_v19  ;;  %v13363_v0 = vmov %v13359_v5  ;;  %v8959_v48 = vperm.slane %v1942_v47, %v7063_v3  ;;  %v13364_v42 = vrot.slane %v13318_v39, 4  ;;  %6061 = vrot.lane.b32.xlu1 %v6060_v34, %s6661_s4 }
 0x24b   : > { %v1151_v54 = vsel %vm897_vm7, %v13361_v7, %v13359_v5  ;;  %v1153_v33 = vsel %vm897_vm7, %v13363_v0, %v1152_v44  ;;  %v6065_v19 = vpack.i.bf16 %v1143_v9, %v1141_v23  ;;  %v1543_v22 = vrot.slane %v13310_v16, 4  ;;  %v13366_v7 = vld [vmem:[#allocation153_spill] sm:$0xff] }
 0x24c   : > { %v1456_v53 = vsel %vm1381_vm8, %v13305_v55, %v13364_v42  ;;  %v8967_v44 = vperm.slane %v1642_v43, %v7063_v3  ;;  %v13365_v5 = vrot.slane %v13313_v17, 4  ;;  %v6075_v58 = vpack.i.bf16 %v1153_v33, %v1151_v54  ;;  %v13367_v54 = vld [vmem:[#allocation96_spill] sm:$0xff]  ;;  %v13370_v33 = vld [vmem:[#allocation161_spill] sm:$0xff] }
 0x24d   : > { %v1464_v20 = vperm.slane %v1456_v53, %v7674_v46  ;;  %6066 = vrot.lane.b32.xlu2 %v6065_v19, %s6661_s4  ;;  %v1440_v39 = vperm.slane %v1432_v41, %v7674_v46  ;;  %v1544_v55 = vsel %vm1381_vm8, %v13311_v40, %v1543_v22  ;;  %v1989_v9 = vrot.slane %v8953_v1, 4  ;;  %v13369_v40 = vld [vmem:[#allocation101_spill] sm:$0xff]  ;;  %6071 = vrot.lane.b32.xlu0 %v6070_v24, %s6661_s4 }
 0x24e   : > { %v1568_v57 = vsel %vm1381_vm8, %v13314_v21, %v13365_v5  ;;  %v1630_v17 = vsel %vm1381_vm8, %v1629_v30, %v13260_v25  ;;  %v1552_v21 = vperm.slane %v1544_v55, %v7674_v46  ;;  %v6667_v23 = vmov 0.0   ;;  %v13372_v42 = vld [vmem:[#allocation45_spill] sm:$0xff] }
 0x24f   : > { %v1576_v16 = vperm.slane %v1568_v57, %v7674_v46  ;;  %v1481_v47 = vrot.slane %v1464_v20, 4  ;;  %v1159_v37 = vrot.slane %v6667_v23, 3  ;;  %v13368_v43 = vrot.slane %v13367_v54, 4  ;;  %v13374_v53 = vld [vmem:[#allocation129_spill] sm:$0xff] }
 0x250   : > { %v13371_v41 = vrot.slane %v13370_v33, 4  ;;  %v13373_v30 = vrot.slane %v13372_v42, 3  ;;  %v13375_v22 = vrot.slane %v13374_v53, 3  ;;  %v1677_v23 = vrot.slane %v8967_v44, 4 }
 0x251   : > { %v1654_v0 = vsel %vm1381_vm8, %v13368_v43, %v13366_v7  ;;  %v1593_v19 = vrot.slane %v1576_v16, 4  ;;  %v13377_v43 = vld [vmem:[#allocation111_spill] sm:$0xff]  ;;  %v9007_v52 = vsel %vm1381_vm8, %v1481_v47, %v1440_v39  ;;  %v1483_v53 = vrot.slane %v1440_v39, 4 }
 0x252   : > { %v1766_v34 = vsel %vm1381_vm8, %v13371_v41, %v13369_v40  ;;  %v1156_v5 = vsel %vm897_vm7, %v13375_v22, %v13373_v30  ;;  %v13376_v57 = vmov %v13373_v30  ;;  %v1790_v41 = vsel %vm1381_vm8, %v13379_v61, %v13377_v43  ;;  %6076 = vrot.lane.b32.xlu1 %v6075_v58, %s6661_s4  ;;  %v13397_v61 = vld [vmem:[#allocation61_spill] sm:$0xff] }
 0x253   : > { %v1158_v55 = vsel %vm897_vm7, %v13376_v57, %v1157_v29  ;;  %v9010_v24 = vsel %vm1381_vm8, %v1593_v19, %v1552_v21  ;;  %v1595_v18 = vrot.slane %v1552_v21, 4  ;;  %v1990_v42 = vsel %vm1381_vm8, %v1989_v9, %v8959_v48  ;;  %v13382_v21 = vld [vmem:[#allocation166_spill] sm:$0xff] }
 0x254   : > { %v9015_v29 = vperm.slane %v1654_v0, %v7674_v46  ;;  %v9018_v30 = vperm.slane %v1766_v34, %v7674_v46  ;;  %v6080_v22 = vpack.i.bf16 %v1158_v55, %v1156_v5  ;;  %v1636_v47 = vperm.slane %v1630_v17, %v7063_v3  ;;  %v13383_v9 = vld [vmem:[#allocation42_spill] sm:$0xff] }
 0x255   : > { %v9024_v19 = vsel %vm1381_vm8, %v1464_v20, %v1483_v53  ;;  %v9027_v39 = vsel %vm1381_vm8, %v1576_v16, %v1595_v18  ;;  %v13384_v57 = vrot.slane %v13383_v9, 4  ;;  %v13385_v34 = vrot.slane %v8527_v26, 4  ;;  %1305 = vrot.lane.b32.xlu0 %v1159_v37, %s6661_s4  ;;  %v13396_v20 = vld [vmem:[#allocation53_spill] sm:$0xff] }
 0x256   : > { %13380 = vst [vmem:[#allocation83_spill] sm:$0xff] %v9015_v29  ;;  %v9038_v5 = vperm.slane %v1790_v41, %v7674_v46  ;;  %v5809_v17 = vunpack.i.h.bf16 %v8155_v32  ;;  %6081 = vrot.lane.b32.xlu2 %v6080_v22, %s6661_s4  ;;  %v9045_v18 = vperm.slane %v1990_v42, %v7674_v46  ;;  %v1678_v16 = vsel %vm1381_vm8, %v1677_v23, %v1636_v47  ;;  %s204_s4 = scalar_lea.vmem [#allocation5], %s5356_s30 }
 0x257   : > { %13381 = vst [vmem:[#allocation47_spill] sm:$0xff] %v9018_v30  ;;  %v1878_v0 = vsel %vm1381_vm8, %v13384_v57, %v13382_v21  ;;  %v2014_v51 = vsel %vm1381_vm8, %v13385_v34, %v8533_v38  ;;  %v13388_v55 = vrot.slane %v13321_v59, 4  ;;  %v13389_v41 = vrot.slane %v8517_v28, 4  ;;  %v13392_v34 = vld [vmem:[#allocation141_spill] sm:$0xff] }
 0x258   : > { %13386 = vst [vmem:[#allocation21_spill] sm:$0xff] %v9038_v5  ;;  %v1703_v32 = vrot.slane %v9015_v29, 4  ;;  %v1815_v22 = vrot.slane %v9018_v30, 4  ;;  %v13390_v42 = vrot.slane %v8867_v8, 4  ;;  %v13391_v59 = vunpack.i.h.bf16 %v8201_v2 }
 0x259   : > { %13387 = vst [vmem:[#allocation17_spill] sm:$0xff] %v9045_v18  ;;  %v2240_v53 = vsel %vm1381_vm8, %v13302_v35, %v13388_v55  ;;  %v1902_v57 = vsel %vm1381_vm8, %v13389_v41, %v8447_v15  ;;  %v9071_v58 = vperm.slane %v8891_v36, %v7063_v3  ;;  %v9074_v55 = vperm.slane %v1878_v0, %v7674_v46 }
 0x25a   : > { %v2214_v23 = vsel %vm1381_vm8, %v13390_v42, %v8913_v62  ;;  %v9067_v35 = vsel %vm1381_vm8, %v13392_v34, %v13391_v59  ;;  %v9077_v41 = vperm.slane %v2014_v51, %v7674_v46  ;;  %v9081_v42 = vperm.slane %v1678_v16, %v7674_v46 }
 0x25b   : > { %13393 = vst [vmem:[#allocation81_spill] sm:$0xff] %v9071_v58  ;;  %v1816_v2 = vsel %vm1381_vm8, %v9038_v5, %v1815_v22  ;;  %v1679_v59 = vrot.slane %v1636_v47, 4  ;;  %v13395_v34 = vrot.slane %v13377_v43, 4  ;;  %v9090_v0 = vperm.slane %v1902_v57, %v7674_v46  ;;  %v13399_v47 = vld [vmem:[#allocation109_spill] sm:$0xff] }
 0x25c   : > { %13394 = vst [vmem:[#allocation26_spill] sm:$0xff] %v9074_v55  ;;  %v2039_v51 = vrot.slane %v9045_v18, 4  ;;  %v13398_v37 = vrot.slane %v13397_v61, 4  ;;  %v9098_v29 = vperm.slane %v2214_v23, %v7674_v46  ;;  %v9100_v22 = vrot.slane %v5809_v17, 4 }
 0x25d   : > { %v1792_v36 = vsel %vm1381_vm8, %v13378_v49, %v13395_v34  ;;  %v9104_v43 = vsel %vm1381_vm8, %v5809_v17, %v13399_v47  ;;  %v1704_v49 = vsel %vm1381_vm8, %v9081_v42, %v1703_v32  ;;  %v1767_v57 = vrot.slane %v13369_v40, 4  ;;  %v13401_v47 = vld [vmem:[#allocation137_spill] sm:$0xff] }
 0x25e   : > { %v2102_v16 = vsel %vm1381_vm8, %v13398_v37, %v13396_v20  ;;  %v1927_v34 = vrot.slane %v9074_v55, 4  ;;  %v2040_v18 = vsel %vm1381_vm8, %v9077_v41, %v2039_v51  ;;  %v6090_v37 = vpack.i.bf16 %v1816_v2, %v1704_v49 }
 0x25f   : > { %v9113_v23 = vperm.slane %v1792_v36, %v7674_v46  ;;  %v2215_v30 = vrot.slane %v8913_v62, 4  ;;  %v9117_v5 = vperm.slane %v2102_v16, %v7674_v46  ;;  %v13400_v17 = vrot.slane %v8774_v12, 4 }
 0x260   : > { %v1680_v40 = vsel %vm1381_vm8, %v8967_v44, %v1679_v59  ;;  %v12768_v55 = vunpack.i.h.bf16 %v13401_v47  ;;  %v1928_v2 = vsel %vm1381_vm8, %v9090_v0, %v1927_v34  ;;  %6091 = vrot.lane.b32.xlu2 %v6090_v37, %s6668_s8  ;;  %v2263_v62 = vrot.slane %v9098_v29, 4  ;;  %v9148_v37 = vpop.permute.xlu2 %5931 }
 0x261   : > { %v2126_v32 = vsel %vm1381_vm8, %v13400_v17, %v8757_v14  ;;  %v13402_v36 = vrot.slane %v13366_v7, 4  ;;  %v13403_v16 = vpack.i.bf16 %v8850_v31, %v8846_v60  ;;  %v6095_v44 = vpack.i.bf16 %v2040_v18, %v1928_v2  ;;  %v13407_v2 = vld [vmem:[#allocation49_spill] sm:$0xff] }
 0x262   : > { %v9140_v59 = vperm.slane %v8827_v45, %v7674_v46  ;;  %v1768_v49 = vsel %vm1381_vm8, %v13370_v33, %v1767_v57  ;;  %v13404_v34 = vrot.slane %v8533_v38, 4  ;;  %v9154_v60 = vperm.slane %v1680_v40, %v7674_v46 }
 0x263   : > { %v1656_v51 = vsel %vm1381_vm8, %v13367_v54, %v13402_v36  ;;  %6086 = vrot.lane.b32.xlu1 %v13403_v16, %s6668_s8  ;;  %v9151_v54 = vperm.slane %v2126_v32, %v7674_v46  ;;  %v1817_v31 = vrot.slane %v9113_v23, 4  ;;  %v13405_v45 = vrot.slane %v8757_v14, 4  ;;  %6096 = vrot.lane.b32.xlu0 %v6095_v44, %s6668_s8 }
 0x264   : > { %v2016_v7 = vsel %vm1381_vm8, %v8527_v26, %v13404_v34  ;;  %v2151_v38 = vrot.slane %v9117_v5, 4  ;;  %v9164_v26 = vperm.slane %v1656_v51, %v7674_v46  ;;  %v13406_v18 = vrot.slane %v8447_v15, 4  ;;  %v13408_v15 = vld [vmem:[#allocation126_spill] sm:$0xff] }
 0x265   : > { %v2128_v33 = vsel %vm1381_vm8, %v8774_v12, %v13405_v45  ;;  %v1991_v17 = vrot.slane %v8959_v48, 4  ;;  %v2264_v14 = vsel %vm1381_vm8, %v9140_v59, %v2263_v62  ;;  %v9174_v32 = vperm.slane %v1768_v49, %v7674_v46 }
 0x266   : > { %v1904_v57 = vsel %vm1381_vm8, %v8517_v28, %v13406_v18  ;;  %v9177_v12 = vperm.slane %v2016_v7, %v7674_v46  ;;  %v2216_v40 = vsel %vm1381_vm8, %v8867_v8, %v2215_v30  ;;  %v5919_v36 = vunpack.i.h.bf16 %v13407_v2  ;;  %v13411_v7 = vld [vmem:[#allocation62_spill] sm:$0xff] }
 0x267   : > { %v5914_v51 = vunpack.i.h.bf16 %v13408_v15  ;;  %v9184_v28 = vperm.slane %v2128_v33, %v7674_v46  ;;  %v9187_v48 = vperm.slane %v2240_v53, %v7674_v46  ;;  %v2152_v62 = vsel %vm1381_vm8, %v9151_v54, %v2151_v38 }
 0x268   : > { %v1705_v16 = vrot.slane %v9154_v60, 4  ;;  %v1818_v44 = vsel %vm1381_vm8, %v1817_v31, %v9174_v32  ;;  %v9195_v8 = vperm.slane %v1904_v57, %v7674_v46  ;;  %v3728_v30 = vrot.slane %v12768_v55, 4 }
 0x269   : > { %13409 = vst [vmem:[#allocation51_spill] sm:$0xff] %v9184_v28  ;;  %v6100_v49 = vpack.i.bf16 %v2264_v14, %v2152_v62  ;;  %v1992_v34 = vsel %vm1381_vm8, %v8953_v1, %v1991_v17  ;;  %v9202_v53 = vperm.slane %v2216_v40, %v7674_v46  ;;  %v5924_v45 = vunpack.i.h.bf16 %v13411_v7 }
 0x26a   : > { %13410 = vst [vmem:[#allocation127_spill] sm:$0xff] %v9187_v48  ;;  %v1706_v33 = vsel %vm1381_vm8, %v1705_v16, %v9164_v26  ;;  %v13412_v31 = vpack.i.bf16 %v9010_v24, %v9007_v52  ;;  %v2041_v38 = vrot.slane %v9177_v12, 4  ;;  %v13413_v18 = vrot.slane %v13396_v20, 4  ;;  %v13415_v24 = vld [vmem:[#allocation158_spill] sm:$0xff] }
 0x26b   : > { %6101 = vrot.lane.b32.xlu1 %v6100_v49, %s6668_s8  ;;  %v6110_v57 = vpack.i.bf16 %v1818_v44, %v1706_v33  ;;  %v13414_v17 = vrot.slane %v13382_v21, 4  ;;  %v2153_v40 = vrot.slane %v9184_v28, 4  ;;  %v2265_v52 = vrot.slane %v9187_v48, 4  ;;  %v9239_v44 = vpop.permute.xlu2 %5946 }
 0x26c   : > { %6106 = vrot.lane.b32.xlu2 %v13412_v31, %s6669_s9  ;;  %v2104_v1 = vsel %vm1381_vm8, %v13397_v61, %v13413_v18  ;;  %v9225_v62 = vperm.slane %v13415_v24, %v7674_v46  ;;  %v9229_v20 = vperm.slane %v9067_v35, %v7063_v3  ;;  %v1929_v61 = vrot.slane %v9195_v8, 4 }
 0x26d   : > { %v1880_v14 = vsel %vm1381_vm8, %v13383_v9, %v13414_v17  ;;  %v2000_v16 = vperm.slane %v1992_v34, %v7674_v46  ;;  %v3674_v21 = vrot.slane %v9071_v58, 4  ;;  %v9236_v9 = vperm.slane %v9104_v43, %v7063_v3  ;;  %6111 = vrot.lane.b32.xlu0 %v6110_v57, %s6669_s9 }
 0x26e   : > { %13416 = vst [vmem:[#allocation27_spill] sm:$0xff] %v9225_v62  ;;  %v9242_v49 = vperm.slane %v2104_v1, %v7674_v46  ;;  %v2266_v35 = vsel %vm1381_vm8, %v2265_v52, %v9202_v53  ;;  %v3740_v33 = vrot.slane %v5914_v51, 4  ;;  %v3738_v31 = vrot.slane %v5924_v45, 4 }
 0x26f   : > { %13417 = vst [vmem:[#allocation25_spill] sm:$0xff] %v9229_v20  ;;  %v1888_v34 = vperm.slane %v1880_v14, %v7674_v46  ;;  %v2042_v18 = vsel %vm1381_vm8, %v2041_v38, %v2000_v16  ;;  %v13419_v17 = vunpack.i.h.bf16 %v7990_v6  ;;  %v3726_v57 = vrot.slane %v5919_v36, 4 }
 0x270   : > { %13418 = vst [vmem:[#allocation143_spill] sm:$0xff] %v9236_v9  ;;  %v3729_v24 = vsel %vm1381_vm8, %v5919_v36, %v3728_v30  ;;  %v2154_v1 = vsel %vm1381_vm8, %v2153_v40, %v9242_v49  ;;  %v13420_v55 = vunpack.i.l.bf16 %v13411_v7  ;;  %v3741_v58 = vsel %vm1381_vm8, %v5924_v45, %v3740_v33 }
 0x271   : > { %v3615_v43 = vsel %vm1381_vm8, %v9100_v22, %v13419_v17  ;;  %v1930_v14 = vsel %vm1381_vm8, %v1929_v61, %v1888_v34  ;;  %v6120_v62 = vpack.i.bf16 %v2266_v35, %v2154_v1  ;;  %v13421_v38 = vrot.slane %v8760_v63, 4 }
 0x272   : > { %v2289_v52 = vrot.slane %v13420_v55, 4  ;;  %v3662_v22 = vrot.slane %v9229_v20, 4  ;;  %v13423_v36 = vunpack.i.l.bf16 %v13407_v2  ;;  %v6115_v40 = vpack.i.bf16 %v2042_v18, %v1930_v14 }
 0x273   : > { %v9263_v6 = vsel %vm1381_vm8, %v8771_v11, %v13421_v38  ;;  %v9269_v7 = vperm.slane %v3615_v43, %v7063_v3  ;;  %v9273_v55 = vsel %vm1381_vm8, %v3674_v21, %v9236_v9  ;;  %v13426_v45 = vunpack.i.h.bf16 %v13401_v47 }
 0x274   : > { %13422 = vst [vmem:[#allocation138_spill] sm:$0xff] %v9263_v6  ;;  %v2277_v30 = vrot.slane %v13423_v36, 4  ;;  %v3739_v35 = vsel %vm1381_vm8, %v3738_v31, %v5914_v51  ;;  %6121 = vrot.lane.b32.xlu2 %v6120_v62, %s6669_s9  ;;  %v13427_v33 = vunpack.i.l.bf16 %v13401_v47  ;;  %v3737_v18 = vperm.slane %v3729_v24, %v7063_v3  ;;  %6116 = vrot.lane.b32.xlu1 %v6115_v40, %s6669_s9 }
 0x275   : > { %13424 = vst [vmem:[#allocation91_spill] sm:$0xff] %v9269_v7  ;;  %v3727_v61 = vsel %vm1381_vm8, %v3726_v57, %v13426_v45  ;;  %v3749_v17 = vperm.slane %v3741_v58, %v7063_v3  ;;  %v2043_v21 = vrot.slane %v2000_v16, 4  ;;  %v13428_v1 = vunpack.i.l.bf16 %v13408_v15 }
 0x276   : > { %13425 = vst [vmem:[#allocation123_spill] sm:$0xff] %v9273_v55  ;;  %v2278_v2 = vsel %vm1381_vm8, %v2277_v30, %v13427_v33  ;;  %v1707_v51 = vrot.slane %v9164_v26, 4  ;;  %v1819_v62 = vrot.slane %v9174_v32, 4  ;;  %v3733_v47 = vperm.slane %v3727_v61, %v7063_v3  ;;  %v13452_v33 = vld [vmem:[#allocation18_spill] sm:$0xff] }
 0x277   : > { %v2290_v57 = vsel %vm1381_vm8, %v2289_v52, %v13428_v1  ;;  %v3745_v31 = vperm.slane %v3739_v35, %v7063_v3  ;;  %v13429_v58 = vpack.i.bf16 %v9027_v39, %v9024_v19  ;;  %v1931_v16 = vrot.slane %v1888_v34, 4  ;;  %v9313_v34 = vpop.permute.xlu2 %5961 }
 0x278   : > { %v2044_v15 = vsel %vm1381_vm8, %v9177_v12, %v2043_v21  ;;  %v9302_v24 = vsel %vm1381_vm8, %v3662_v22, %v9269_v7  ;;  %v9305_v26 = vperm.slane %v2278_v2, %v7063_v3  ;;  %v1820_v32 = vsel %vm1381_vm8, %v9113_v23, %v1819_v62 }
 0x279   : > { %6126 = vrot.lane.b32.xlu0 %v13429_v58, %s6670_s10  ;;  %13430 = vst [vmem:[#allocation54_spill] sm:$0xff] %v9302_v24  ;;  %v1643_v52 = vrot.slane %v13362_v13, 4  ;;  %v3788_v14 = vrot.slane %v3737_v18, 4  ;;  %v9311_v19 = vperm.slane %v2290_v57, %v7063_v3  ;;  %v3786_v39 = vrot.slane %v3749_v17, 4 }
 0x27a   : > { %v1932_v12 = vsel %vm1381_vm8, %v9195_v8, %v1931_v16  ;;  %v1708_v22 = vsel %vm1381_vm8, %v9154_v60, %v1707_v51  ;;  %v3776_v13 = vrot.slane %v3733_v47, 4  ;;  %v3774_v30 = vrot.slane %v3745_v31, 4  ;;  %v13432_v8 = vld [vmem:[#allocation142_spill] sm:$0xff] }
 0x27b   : > { %v6135_v36 = vpack.i.bf16 %v2044_v15, %v1932_v12  ;;  %v1644_v23 = vsel %vm1381_vm8, %v13277_v50, %v1643_v52  ;;  %v3789_v40 = vsel %vm1381_vm8, %v3749_v17, %v3788_v14  ;;  %v6130_v45 = vpack.i.bf16 %v1820_v32, %v1708_v22  ;;  %v13434_v60 = vld [vmem:[#allocation10_spill] sm:$0xff]  ;;  %v13449_v32 = vld [vmem:[#allocation21_spill] sm:$0xff] }
 0x27c   : > { %v9327_v2 = vperm.slane %v13432_v8, %v7674_v46  ;;  %v1395_v21 = vrot.slane %v13434_v60, 4  ;;  %v9333_v50 = vsel %vm1381_vm8, %v3745_v31, %v3776_v13  ;;  %v9336_v17 = vsel %vm1381_vm8, %v3786_v39, %v3737_v18  ;;  %v13440_v31 = vld [vmem:[#allocation13_spill] sm:$0xff]  ;;  %v9358_v39 = vpop.permute.xlu1 %5926  ;;  %v13442_v12 = vld [vmem:[#allocation30_spill] sm:$0xff]  ;;  %v13443_v13 = vld [vmem:[#allocation11_spill] sm:$0xff] }
 0x27d   : > { %6136 = vrot.lane.b32.xlu2 %v6135_v36, %s6670_s10  ;;  %13435 = vst [vmem:[#allocation70_spill] sm:$0xff] %v9333_v50  ;;  %6131 = vrot.lane.b32.xlu1 %v6130_v45, %s6670_s10  ;;  %v9340_v57 = vperm.slane %v1644_v23, %v7063_v3  ;;  %v9343_v51 = vperm.slane %v3789_v40, %v7674_v46  ;;  %v1631_v62 = vrot.slane %v13260_v25, 4  ;;  %v13439_v58 = vrot.slane %v13345_v27, 4  ;;  %v9365_v36 = vpop.permute.xlu0 %5936  ;;  %v13448_v14 = vld [vmem:[#allocation14_spill] sm:$0xff] }
 0x27e   : > { %13433 = vst [vmem:[#allocation97_spill] sm:$0xff] %v9327_v2  ;;  %v1396_v15 = vsel %vm1381_vm8, %v13440_v31, %v1395_v21  ;;  %v9353_v18 = vsel %vm1381_vm8, %v3774_v30, %v3733_v47  ;;  %v5929_v27 = vunpack.i.h.bf16 %v9358_v39  ;;  %v1383_v30 = vrot.slane %v13443_v13, 4  ;;  %v13447_v13 = vld [vmem:[#allocation33_spill] sm:$0xff] }
 0x27f   : > { %13436 = vst [vmem:[#allocation64_spill] sm:$0xff] %v9336_v17  ;;  %v1956_v16 = vsel %vm1381_vm8, %v13346_v56, %v13439_v58  ;;  %v12771_v56 = vunpack.i.l.bf16 %v9358_v39  ;;  %v1632_v22 = vsel %vm1381_vm8, %v13442_v12, %v1631_v62  ;;  %v1689_v47 = vrot.slane %v9340_v57, 4  ;;  %v9381_v31 = vpop.permute.xlu2 %5976  ;;  %v13445_v12 = vld [vmem:[#allocation36_spill] sm:$0xff] }
 0x280   : > { %13437 = vst [vmem:[#allocation79_spill] sm:$0xff] %v9340_v57  ;;  %v9369_v23 = vperm.slane %v1956_v16, %v7063_v3  ;;  %v9373_v40 = vperm.slane %v1396_v15, %v7063_v3  ;;  %v3752_v45 = vrot.slane %v5929_v27, 4  ;;  %v5939_v60 = vunpack.i.h.bf16 %v9365_v36 }
 0x281   : > { %13438 = vst [vmem:[#allocation149_spill] sm:$0xff] %v9343_v51  ;;  %v2303_v8 = vrot.slane %v12771_v56, 4  ;;  %v12772_v21 = vunpack.i.l.bf16 %v9365_v36  ;;  %v5934_v58 = vunpack.i.h.bf16 %v9148_v37  ;;  %v9384_v16 = vperm.slane %v1632_v22, %v7063_v3 }
 0x282   : > { %13441 = vst [vmem:[#allocation43_spill] sm:$0xff] %v9353_v18  ;;  %v13446_v15 = vrot.slane %v13445_v12, 4  ;;  %v3750_v38 = vrot.slane %v5939_v60, 4  ;;  %v3753_v35 = vsel %vm1381_vm8, %v5939_v60, %v3752_v45  ;;  %v1384_v52 = vsel %vm1381_vm8, %v13448_v14, %v1383_v30  ;;  %v13450_v60 = vld [vmem:[#allocation19_spill] sm:$0xff] }
 0x283   : > { %13444 = vst [vmem:[#allocation113_spill] sm:$0xff] %v9384_v16  ;;  %v2304_v25 = vsel %vm1381_vm8, %v12772_v21, %v2303_v8  ;;  %v12774_v22 = vunpack.i.l.bf16 %v9148_v37  ;;  %v2001_v1 = vrot.slane %v9369_v23, 4  ;;  %v1441_v12 = vrot.slane %v9373_v40, 4 }
 0x284   : > { %v1944_v43 = vsel %vm1381_vm8, %v13447_v13, %v13446_v15  ;;  %v3751_v13 = vsel %vm1381_vm8, %v3750_v38, %v5929_v27  ;;  %v1690_v45 = vsel %vm1381_vm8, %v1689_v47, %v9384_v16  ;;  %v13451_v8 = vrot.slane %v13450_v60, 4  ;;  %v9411_v56 = vpop.permute.xlu1 %5941 }
 0x285   : > { %v3764_v30 = vrot.slane %v5934_v58, 4  ;;  %v3761_v62 = vperm.slane %v3753_v35, %v7063_v3  ;;  %v9414_v21 = vperm.slane %v1944_v43, %v7063_v3  ;;  %v9417_v15 = vperm.slane %v1384_v52, %v7063_v3  ;;  %v9427_v60 = vpop.permute.xlu0 %5951 }
 0x286   : > { %v9408_v14 = vsel %vm1381_vm8, %v13452_v33, %v13451_v8  ;;  %v9420_v38 = vperm.slane %v3751_v13, %v7063_v3  ;;  %v2312_v27 = vperm.slane %v2304_v25, %v7063_v3  ;;  %v5944_v47 = vunpack.i.h.bf16 %v9411_v56 }
 0x287   : > { %v2315_v35 = vrot.slane %v12774_v22, 4  ;;  %v9430_v43 = vperm.slane %v1690_v45, %v7674_v46  ;;  %v2002_v52 = vsel %vm1381_vm8, %v2001_v1, %v9414_v21  ;;  %v1442_v13 = vsel %vm1381_vm8, %v1441_v12, %v9417_v15  ;;  %v9447_v8 = vpop.permute.xlu2 %5991 }
 0x288   : > { %13453 = vst [vmem:[#allocation106_spill] sm:$0xff] %v9420_v38  ;;  %v5949_v25 = vunpack.i.h.bf16 %v9239_v44  ;;  %v3762_v51 = vrot.slane %v5944_v47, 4  ;;  %v3765_v33 = vsel %vm1381_vm8, %v5944_v47, %v3764_v30  ;;  %v5964_v22 = vunpack.i.h.bf16 %v9313_v34 }
 0x289   : > { %13454 = vst [vmem:[#allocation103_spill] sm:$0xff] %v9430_v43  ;;  %v3812_v9 = vrot.slane %v3761_v62, 4  ;;  %v3773_v17 = vperm.slane %v3765_v33, %v7063_v3  ;;  %v13455_v45 = vunpack.i.l.bf16 %v9411_v56  ;;  %v3800_v1 = vrot.slane %v9420_v38, 4 }
 0x28a   : > { %v2363_v20 = vrot.slane %v2312_v27, 4  ;;  %v3763_v12 = vsel %vm1381_vm8, %v3762_v51, %v5934_v58  ;;  %v5954_v33 = vunpack.i.h.bf16 %v9427_v60  ;;  %v13458_v51 = vunpack.i.l.bf16 %v9239_v44 }
 0x28b   : > { %v2316_v55 = vsel %vm1381_vm8, %v13455_v45, %v2315_v35  ;;  %v9450_v30 = vperm.slane %v3763_v12, %v7063_v3  ;;  %v3810_v47 = vrot.slane %v3773_v17, 4  ;;  %v9453_v50 = vsel %vm1381_vm8, %v3773_v17, %v3812_v9 }
 0x28c   : > { %v2324_v7 = vperm.slane %v2316_v55, %v7063_v3  ;;  %v3850_v55 = vrot.slane %v5964_v22, 4  ;;  %v9468_v9 = vpop.permute.xlu1 %5956  ;;  %v5979_v35 = vunpack.i.h.bf16 %v9381_v31  ;;  %v3852_v11 = vrot.slane %v5954_v33, 4 }
 0x28d   : > { %13456 = vst [vmem:[#allocation110_spill] sm:$0xff] %v9450_v30  ;;  %v9463_v58 = vsel %vm1381_vm8, %v9450_v30, %v3800_v1  ;;  %v9466_v12 = vsel %vm1381_vm8, %v3810_v47, %v3761_v62  ;;  %v3840_v1 = vrot.slane %v5949_v25, 4  ;;  %v2391_v62 = vrot.slane %v13458_v51, 4  ;;  %v9484_v63 = vpop.permute.xlu0 %5966 }
 0x28e   : > { %v2361_v45 = vrot.slane %v2324_v7, 4  ;;  %v9458_v6 = vsel %vm1381_vm8, %v2324_v7, %v2363_v20  ;;  %v9476_v20 = vperm.slane %v2002_v52, %v7674_v46  ;;  %v9479_v7 = vperm.slane %v1442_v13, %v7674_v46 }
 0x28f   : > { %v3851_v47 = vsel %vm1381_vm8, %v3850_v55, %v5954_v33  ;;  %v5963_v17 = vunpack.i.l.bf16 %v9313_v34  ;;  %v5959_v52 = vunpack.i.h.bf16 %v9468_v9  ;;  %v1443_v38 = vrot.slane %v9417_v15, 4  ;;  %v13460_v55 = vld [vmem:[#allocation23_spill] sm:$0xff] }
 0x290   : > { %v9473_v18 = vsel %vm1381_vm8, %v2361_v45, %v2312_v27  ;;  %13457 = vst [vmem:[#allocation35_spill] sm:$0xff] %v9479_v7  ;;  %v13459_v27 = vunpack.i.l.bf16 %v9427_v60  ;;  %v3853_v13 = vsel %vm1381_vm8, %v5964_v22, %v3852_v11  ;;  %v5969_v51 = vunpack.i.h.bf16 %v9484_v63 }
 0x291   : > { %v9496_v33 = vperm.slane %v13460_v55, %v7674_v46  ;;  %v3862_v2 = vrot.slane %v5979_v35, 4  ;;  %v9499_v34 = vperm.slane %v3851_v47, %v7063_v3  ;;  %v13463_v15 = vunpack.i.l.bf16 %v9365_v36 }
 0x292   : > { %v2403_v45 = vrot.slane %v13459_v27, 4  ;;  %v3861_v27 = vperm.slane %v3853_v13, %v7063_v3  ;;  %v3838_v22 = vrot.slane %v5959_v52, 4  ;;  %v3841_v24 = vsel %vm1381_vm8, %v5959_v52, %v3840_v1 }
 0x293   : > { %13461 = vst [vmem:[#allocation39_spill] sm:$0xff] %v9496_v33  ;;  %v2301_v16 = vrot.slane %v13463_v15, 4  ;;  %v3849_v55 = vperm.slane %v3841_v24, %v7063_v3  ;;  %v13464_v43 = vunpack.i.l.bf16 %v9468_v9  ;;  %v3863_v48 = vsel %vm1381_vm8, %v3862_v2, %v5969_v51 }
 0x294   : > { %13462 = vst [vmem:[#allocation116_spill] sm:$0xff] %v9499_v34  ;;  %v2404_v57 = vsel %vm1381_vm8, %v5963_v17, %v2403_v45  ;;  %v3898_v61 = vrot.slane %v3861_v27, 4  ;;  %v3839_v45 = vsel %vm1381_vm8, %v3838_v22, %v5949_v25  ;;  %v9517_v28 = vpop.permute.xlu1 %5971  ;;  %v3886_v1 = vrot.slane %v9499_v34, 4 }
 0x295   : > { %v2412_v11 = vperm.slane %v2404_v57, %v7063_v3  ;;  %v2392_v47 = vsel %vm1381_vm8, %v13464_v43, %v2391_v62  ;;  %v9515_v57 = vpop.permute.xlu2 %6006  ;;  %v9521_v24 = vperm.slane %v3839_v45, %v7063_v3  ;;  %v3900_v52 = vrot.slane %v3849_v55, 4  ;;  %v9529_v22 = vpop.permute.xlu0 %5981 }
 0x296   : > { %v2400_v36 = vperm.slane %v2392_v47, %v7063_v3  ;;  %v9524_v43 = vsel %vm1381_vm8, %v3898_v61, %v3849_v55  ;;  %v3864_v62 = vrot.slane %v5969_v51, 4  ;;  %v1444_v47 = vsel %vm1381_vm8, %v9373_v40, %v1443_v38 }
 0x297   : > { %v2449_v13 = vrot.slane %v2412_v11, 4  ;;  %13465 = vst [vmem:[#allocation117_spill] sm:$0xff] %v9521_v24  ;;  %v5978_v15 = vunpack.i.l.bf16 %v9381_v31  ;;  %v13466_v34 = vunpack.i.l.bf16 %v9358_v39  ;;  %v9539_v61 = vsel %vm1381_vm8, %v3886_v1, %v9521_v24 }
 0x298   : > { %v2451_v25 = vrot.slane %v2400_v36, 4  ;;  %v9548_v40 = vsel %vm1381_vm8, %v3861_v27, %v3900_v52  ;;  %v3865_v31 = vsel %vm1381_vm8, %v5979_v35, %v3864_v62  ;;  %v2401_v39 = vrot.slane %v5963_v17, 4 }
 0x299   : > { %v9527_v2 = vsel %vm1381_vm8, %v2449_v13, %v2400_v36  ;;  %v2302_v45 = vsel %vm1381_vm8, %v2301_v16, %v13466_v34  ;;  %v13467_v13 = vunpack.i.l.bf16 %v9411_v56  ;;  %13469 = vst [vmem:[#allocation120_spill] sm:$0xff] %v9548_v40  ;;  %v13470_v16 = vunpack.i.l.bf16 %v9484_v63 }
 0x29a   : > { %v9545_v36 = vsel %vm1381_vm8, %v2412_v11, %v2451_v25  ;;  %v9555_v1 = vperm.slane %v1444_v47, %v7674_v46  ;;  %v9558_v56 = vperm.slane %v2302_v45, %v7063_v3  ;;  %v5974_v11 = vunpack.i.h.bf16 %v9517_v28 }
 0x29b   : > { %v2313_v51 = vrot.slane %v13467_v13, 4  ;;  %13468 = vst [vmem:[#allocation115_spill] sm:$0xff] %v9545_v36  ;;  %v2415_v38 = vrot.slane %v13470_v16, 4  ;;  %v2003_v27 = vrot.slane %v9414_v21, 4  ;;  %v9563_v52 = vrot.slane %v5978_v15, 4 }
 0x29c   : > { %13471 = vst [vmem:[#allocation29_spill] sm:$0xff] %v9555_v1  ;;  %v12789_v62 = vunpack.i.l.bf16 %v9517_v28  ;;  %v13472_v13 = vunpack.i.l.bf16 %v9148_v37  ;;  %v3873_v16 = vperm.slane %v3865_v31, %v7063_v3  ;;  %v9574_v34 = vpop.permute.xlu1 %5986  ;;  %v3876_v21 = vrot.slane %v5974_v11, 4 }
 0x29d   : > { %v2416_v17 = vsel %vm1381_vm8, %v5978_v15, %v2415_v38  ;;  %v5984_v15 = vunpack.i.h.bf16 %v9529_v22  ;;  %v5983_v38 = vunpack.i.l.bf16 %v9529_v22  ;;  %v9581_v35 = vpop.permute.xlu2 %6021  ;;  %v5989_v37 = vunpack.i.h.bf16 %v9574_v34 }
 0x29e   : > { %v2314_v45 = vsel %vm1381_vm8, %v2313_v51, %v13472_v13  ;;  %v2424_v25 = vperm.slane %v2416_v17, %v7063_v3  ;;  %v2427_v55 = vrot.slane %v12789_v62, 4  ;;  %v9584_v51 = vpop.permute.xlu0 %5996  ;;  %v2004_v31 = vsel %vm1381_vm8, %v9369_v23, %v2003_v27 }
 0x29f   : > { %v9590_v17 = vperm.slane %v9408_v14, %v7674_v46  ;;  %v9593_v13 = vperm.slane %v3863_v48, %v7063_v3  ;;  %v3874_v62 = vrot.slane %v5984_v15, 4  ;;  %v3877_v22 = vsel %vm1381_vm8, %v5984_v15, %v3876_v21 }
 0x2a0   : > { %v2428_v47 = vsel %vm1381_vm8, %v5983_v38, %v2427_v55  ;;  %v9598_v40 = vperm.slane %v2314_v45, %v7063_v3  ;;  %v13475_v36 = vunpack.i.l.bf16 %v9468_v9  ;;  %v3885_v23 = vperm.slane %v3877_v22, %v7063_v3 }
 0x2a1   : > { %13473 = vst [vmem:[#allocation153_spill] sm:$0xff] %v9590_v17  ;;  %v2436_v27 = vperm.slane %v2428_v47, %v7063_v3  ;;  %v13476_v14 = vunpack.i.l.bf16 %v9427_v60  ;;  %v3924_v17 = vrot.slane %v3873_v16, 4  ;;  %v2475_v33 = vrot.slane %v2424_v25, 4 }
 0x2a2   : > { %13474 = vst [vmem:[#allocation96_spill] sm:$0xff] %v9593_v13  ;;  %v2389_v1 = vrot.slane %v13475_v36, 4  ;;  %v3875_v21 = vsel %vm1381_vm8, %v3874_v62, %v5974_v11  ;;  %v3922_v45 = vrot.slane %v3885_v23, 4  ;;  %v3952_v7 = vrot.slane %v5989_v37, 4 }
 0x2a3   : > { %v2402_v48 = vsel %vm1381_vm8, %v2401_v39, %v13476_v14  ;;  %v9609_v55 = vperm.slane %v3875_v21, %v7063_v3  ;;  %v2473_v15 = vrot.slane %v2436_v27, 4  ;;  %v3912_v9 = vrot.slane %v9593_v13, 4 }
 0x2a4   : > { %v9613_v36 = vsel %vm1381_vm8, %v2436_v27, %v2475_v33  ;;  %v9616_v47 = vsel %vm1381_vm8, %v3885_v23, %v3924_v17  ;;  %v5999_v60 = vunpack.i.h.bf16 %v9584_v51  ;;  %v13478_v39 = vunpack.i.h.bf16 %v9447_v8  ;;  %v9631_v33 = vpop.permute.xlu1 %6001 }
 0x2a5   : > { %13477 = vst [vmem:[#allocation101_spill] sm:$0xff] %v9609_v55  ;;  %v13479_v11 = vunpack.i.l.bf16 %v9447_v8  ;;  %v13480_v14 = vunpack.i.l.bf16 %v9239_v44  ;;  %v9629_v13 = vsel %vm1381_vm8, %v2473_v15, %v2424_v25  ;;  %v9634_v17 = vperm.slane %v2402_v48, %v7063_v3 }
 0x2a6   : > { %v3964_v22 = vrot.slane %v13478_v39, 4  ;;  %v9638_v23 = vsel %vm1381_vm8, %v9609_v55, %v3912_v9  ;;  %v9641_v27 = vsel %vm1381_vm8, %v3922_v45, %v3873_v16  ;;  %v9644_v39 = vperm.slane %v2004_v31, %v7674_v46 }
 0x2a7   : > { %v9623_v62 = vrot.slane %v13479_v11, 4  ;;  %v2390_v21 = vsel %vm1381_vm8, %v2389_v1, %v13480_v14  ;;  %13481 = vst [vmem:[#allocation161_spill] sm:$0xff] %v9641_v27  ;;  %v9649_v1 = vperm.slane %v9453_v50, %v7674_v46  ;;  %v3950_v25 = vrot.slane %v5999_v60, 4  ;;  %v9669_v14 = vpop.permute.xlu0 %6011 }
 0x2a8   : > { %13482 = vst [vmem:[#allocation45_spill] sm:$0xff] %v9644_v39  ;;  %v3953_v48 = vsel %vm1381_vm8, %v5999_v60, %v3952_v7  ;;  %v9655_v9 = vperm.slane %v9458_v6, %v7674_v46  ;;  %v9658_v16 = vperm.slane %v2390_v21, %v7063_v3  ;;  %v6004_v31 = vunpack.i.h.bf16 %v9631_v33  ;;  %v9667_v60 = vpop.permute.xlu2 %6036 }
 0x2a9   : > { %13483 = vst [vmem:[#allocation129_spill] sm:$0xff] %v9649_v1  ;;  %v9663_v45 = vperm.slane %v9463_v58, %v7674_v46  ;;  %v2425_v50 = vrot.slane %v5983_v38, 4  ;;  %v3951_v11 = vsel %vm1381_vm8, %v3950_v25, %v5989_v37  ;;  %v3961_v7 = vperm.slane %v3953_v48, %v7063_v3 }
 0x2aa   : > { %13484 = vst [vmem:[#allocation111_spill] sm:$0xff] %v9655_v9  ;;  %v9673_v6 = vperm.slane %v9473_v18, %v7674_v46  ;;  %v9677_v21 = vperm.slane %v9466_v12, %v7674_v46  ;;  %v9682_v38 = vperm.slane %v9524_v43, %v7674_v46  ;;  %v13488_v37 = vunpack.i.l.bf16 %v9484_v63 }
 0x2ab   : > { %13485 = vst [vmem:[#allocation99_spill] sm:$0xff] %v9663_v45  ;;  %v3957_v48 = vperm.slane %v3951_v11, %v7063_v3  ;;  %v3962_v44 = vrot.slane %v6004_v31, 4  ;;  %v3965_v18 = vsel %vm1381_vm8, %v6004_v31, %v3964_v22  ;;  %v2439_v12 = vrot.slane %v9658_v16, 4 }
 0x2ac   : > { %13486 = vst [vmem:[#allocation166_spill] sm:$0xff] %v9677_v21  ;;  %v2414_v25 = vsel %vm1381_vm8, %v9563_v52, %v13488_v37  ;;  %v6024_v58 = vunpack.i.h.bf16 %v9581_v35  ;;  %v3973_v1 = vperm.slane %v3965_v18, %v7063_v3  ;;  %v13489_v43 = vunpack.i.l.bf16 %v9517_v28 }
 0x2ad   : > { %13487 = vst [vmem:[#allocation42_spill] sm:$0xff] %v9682_v38  ;;  %v4012_v21 = vrot.slane %v3961_v7, 4  ;;  %v13490_v52 = vunpack.i.h.bf16 %v9447_v8  ;;  %v6014_v37 = vunpack.i.h.bf16 %v9669_v14  ;;  %v2420_v22 = vperm.slane %v2414_v25, %v7063_v3 }
 0x2ae   : > { %v2426_v63 = vsel %vm1381_vm8, %v2425_v50, %v13489_v43  ;;  %v4010_v38 = vrot.slane %v3973_v1, 4  ;;  %v4000_v27 = vrot.slane %v3957_v48, 4  ;;  %v9713_v25 = vperm.slane %v9527_v2, %v7674_v46 }
 0x2af   : > { %v3963_v11 = vsel %vm1381_vm8, %v3962_v44, %v13490_v52  ;;  %v9706_v28 = vsel %vm1381_vm8, %v3973_v1, %v4012_v21  ;;  %v3988_v50 = vrot.slane %v6014_v37, 4  ;;  %v2432_v44 = vperm.slane %v2426_v63, %v7063_v3  ;;  %v9721_v1 = vpop.permute.xlu1 %6016 }
 0x2b0   : > { %v3969_v15 = vperm.slane %v3963_v11, %v7063_v3  ;;  %v3986_v11 = vrot.slane %v6024_v58, 4  ;;  %v9719_v18 = vsel %vm1381_vm8, %v4010_v38, %v3961_v7  ;;  %v9725_v21 = vperm.slane %v9539_v61, %v7674_v46  ;;  %v9739_v61 = vpop.permute.xlu0 %6026 }
 0x2b1   : > { %v13493_v63 = vunpack.i.l.bf16 %v9574_v34  ;;  %v5998_v43 = vunpack.i.l.bf16 %v9584_v51  ;;  %v2463_v45 = vrot.slane %v2420_v22, 4  ;;  %v3989_v38 = vsel %vm1381_vm8, %v6024_v58, %v3988_v50 }
 0x2b2   : > { %v3998_v24 = vrot.slane %v3969_v15, 4  ;;  %v9716_v31 = vsel %vm1381_vm8, %v3969_v15, %v4000_v27  ;;  %13492 = vst [vmem:[#allocation53_spill] sm:$0xff] %v9725_v21  ;;  %v13495_v27 = vunpack.i.h.bf16 %v9515_v57  ;;  %v3987_v7 = vsel %vm1381_vm8, %v3986_v11, %v6014_v37 }
 0x2b3   : > { %13491 = vst [vmem:[#allocation141_spill] sm:$0xff] %v9716_v31  ;;  %v2503_v52 = vrot.slane %v13493_v63, 4  ;;  %v9737_v31 = vpop.permute.xlu2 %6051  ;;  %v13496_v21 = vunpack.i.l.bf16 %v9515_v57  ;;  %v9752_v37 = vperm.slane %v9629_v13, %v7674_v46  ;;  %v9756_v58 = vperm.slane %v9613_v36, %v7674_v46 }
 0x2b4   : > { %v9731_v2 = vsel %vm1381_vm8, %v3998_v24, %v3957_v48  ;;  %v3976_v15 = vrot.slane %v13495_v27, 4  ;;  %v2461_v24 = vrot.slane %v2432_v44, 4  ;;  %v13497_v48 = vunpack.i.l.bf16 %v9581_v35 }
 0x2b5   : > { %13494 = vst [vmem:[#allocation61_spill] sm:$0xff] %v9731_v2  ;;  %v9743_v63 = vrot.slane %v13496_v21, 4  ;;  %v13499_v50 = vrot.slane %v9305_v26, 4  ;;  %v13500_v21 = vrot.slane %v9558_v56, 4  ;;  %v2504_v51 = vsel %vm1381_vm8, %v5998_v43, %v2503_v52 }
 0x2b6   : > { %v9748_v2 = vrot.slane %v13497_v48, 4  ;;  %13498 = vst [vmem:[#allocation109_spill] sm:$0xff] %v9756_v58  ;;  %v2501_v48 = vrot.slane %v5998_v43, 4  ;;  %v6003_v13 = vunpack.i.l.bf16 %v9631_v33  ;;  %v2440_v55 = vsel %vm1381_vm8, %v9634_v17, %v2439_v12 }
 0x2b7   : > { %v2328_v11 = vsel %vm1381_vm8, %v9311_v19, %v13499_v50  ;;  %v2352_v27 = vsel %vm1381_vm8, %v9598_v40, %v13500_v21  ;;  %v6013_v36 = vunpack.i.l.bf16 %v9669_v14  ;;  %v2464_v50 = vsel %vm1381_vm8, %v2432_v44, %v2463_v45 }
 0x2b8   : > { %v9772_v30 = vperm.slane %v2352_v27, %v7674_v46  ;;  %v13502_v58 = vrot.slane %v9311_v19, 4  ;;  %v9780_v9 = vperm.slane %v2328_v11, %v7674_v46  ;;  %v9783_v33 = vperm.slane %v2464_v50, %v7674_v46  ;;  %v9814_v50 = vpop.permute.xlu1 %6031 }
 0x2b9   : > { %v13504_v14 = vrot.slane %v9598_v40, 4  ;;  %v9794_v19 = vperm.slane %v2440_v55, %v7674_v46  ;;  %v2462_v52 = vsel %vm1381_vm8, %v2461_v24, %v2420_v22  ;;  %v2512_v55 = vperm.slane %v2504_v51, %v7063_v3 }
 0x2ba   : > { %13501 = vst [vmem:[#allocation137_spill] sm:$0xff] %v9772_v30  ;;  %v2326_v21 = vsel %vm1381_vm8, %v13502_v58, %v9305_v26  ;;  %v2377_v45 = vrot.slane %v9772_v30, 4  ;;  %v13505_v26 = vrot.slane %v9634_v17, 4  ;;  %v2489_v58 = vrot.slane %v9783_v33, 4 }
 0x2bb   : > { %v9786_v12 = vperm.slane %v2326_v21, %v7674_v46  ;;  %v2350_v43 = vsel %vm1381_vm8, %v13504_v14, %v9558_v56  ;;  %v9809_v56 = vperm.slane %v2462_v52, %v7674_v46  ;;  %v6039_v27 = vunpack.i.h.bf16 %v9667_v60  ;;  %v9828_v52 = vpop.permute.xlu2 %6066 }
 0x2bc   : > { %v2438_v44 = vsel %vm1381_vm8, %v13505_v26, %v9658_v16  ;;  %v9803_v11 = vperm.slane %v2350_v43, %v7674_v46  ;;  %v2513_v17 = vrot.slane %v6003_v13, 4  ;;  %v3997_v16 = vperm.slane %v3989_v38, %v7063_v3 }
 0x2bd   : > { %13503 = vst [vmem:[#allocation49_spill] sm:$0xff] %v9786_v12  ;;  %v9806_v40 = vperm.slane %v2438_v44, %v7674_v46  ;;  %v2378_v22 = vsel %vm1381_vm8, %v2377_v45, %v9780_v9  ;;  %v2490_v24 = vsel %vm1381_vm8, %v2489_v58, %v9794_v19  ;;  %v2375_v21 = vrot.slane %v9786_v12, 4  ;;  %v9830_v45 = vpop.permute.xlu0 %6041 }
 0x2be   : > { %13506 = vst [vmem:[#allocation126_spill] sm:$0xff] %v9803_v11  ;;  %v13509_v43 = vunpack.i.l.bf16 %v9574_v34  ;;  %v2516_v26 = vsel %vm1381_vm8, %v6003_v13, %v9623_v62  ;;  %v6145_v38 = vpack.i.bf16 %v2490_v24, %v2378_v22  ;;  %v6019_v44 = vunpack.i.h.bf16 %v9721_v1 }
 0x2bf   : > { %13507 = vst [vmem:[#allocation62_spill] sm:$0xff] %v9806_v40  ;;  %v2487_v14 = vrot.slane %v9806_v40, 4  ;;  %v2539_v39 = vrot.slane %v6013_v36, 4  ;;  %v3993_v58 = vperm.slane %v3987_v7, %v7063_v3  ;;  %v2376_v40 = vsel %vm1381_vm8, %v9803_v11, %v2375_v21 }
 0x2c0   : > { %13508 = vst [vmem:[#allocation158_spill] sm:$0xff] %v9809_v56  ;;  %v2502_v51 = vsel %vm1381_vm8, %v2501_v48, %v13509_v43  ;;  %6146 = vrot.lane.b32.xlu0 %v6145_v38, %s6669_s9  ;;  %v3974_v62 = vrot.slane %v6019_v44, 4  ;;  %v3977_v13 = vsel %vm1381_vm8, %v6019_v44, %v3976_v15  ;;  %v6029_v22 = vunpack.i.h.bf16 %v9739_v61 }
 0x2c1   : > { %v2488_v34 = vsel %vm1381_vm8, %v9809_v56, %v2487_v14  ;;  %v13510_v24 = vunpack.i.l.bf16 %v9447_v8  ;;  %v2524_v7 = vperm.slane %v2516_v26, %v7063_v3  ;;  %v4034_v12 = vrot.slane %v3997_v16, 4 }
 0x2c2   : > { %v6140_v48 = vpack.i.bf16 %v2488_v34, %v2376_v40  ;;  %v3985_v21 = vperm.slane %v3977_v13, %v7063_v3  ;;  %v9846_v30 = vperm.slane %v2502_v51, %v7063_v3  ;;  %v2563_v14 = vrot.slane %v2512_v55, 4 }
 0x2c3   : > { %v2514_v43 = vsel %vm1381_vm8, %v2513_v17, %v13510_v24  ;;  %v13511_v15 = vunpack.i.h.bf16 %v9515_v57  ;;  %v4022_v8 = vrot.slane %v3993_v58, 4  ;;  %v2538_v51 = vsel %vm1381_vm8, %v9748_v2, %v6013_v36  ;;  %v9877_v36 = vpop.permute.xlu1 %6046 }
 0x2c4   : > { %6141 = vrot.lane.b32.xlu2 %v6140_v48, %s6668_s8  ;;  %v9855_v26 = vsel %vm1381_vm8, %v4034_v12, %v3985_v21  ;;  %v4036_v44 = vrot.slane %v3985_v21, 4  ;;  %v9858_v34 = vperm.slane %v2514_v43, %v7063_v3  ;;  %v13512_v13 = vunpack.i.l.bf16 %v9581_v35 }
 0x2c5   : > { %v3975_v38 = vsel %vm1381_vm8, %v3974_v62, %v13511_v15  ;;  %v4064_v24 = vrot.slane %v6029_v22, 4  ;;  %v2561_v40 = vrot.slane %v2524_v7, 4  ;;  %v9873_v43 = vperm.slane %v9616_v47, %v7674_v46 }
 0x2c6   : > { %v3981_v17 = vperm.slane %v3975_v38, %v7063_v3  ;;  %v2540_v48 = vsel %vm1381_vm8, %v13512_v13, %v2539_v39  ;;  %v9869_v12 = vsel %vm1381_vm8, %v3997_v16, %v4036_v44  ;;  %v4062_v21 = vrot.slane %v6039_v27, 4  ;;  %v9899_v44 = vpop.permute.xlu0 %6056 }
 0x2c7   : > { %13514 = vst [vmem:[#allocation10_spill] sm:$0xff] %v9873_v43  ;;  %v2564_v2 = vsel %vm1381_vm8, %v2524_v7, %v2563_v14  ;;  %v6018_v35 = vunpack.i.l.bf16 %v9721_v1  ;;  %v9881_v39 = vperm.slane %v9638_v23, %v7674_v46  ;;  %v9884_v38 = vperm.slane %v2538_v51, %v7063_v3  ;;  %v9897_v23 = vpop.permute.xlu2 %6081 }
 0x2c8   : > { %v9866_v62 = vsel %vm1381_vm8, %v4022_v8, %v3981_v17  ;;  %v4024_v15 = vrot.slane %v3981_v17, 4  ;;  %v9887_v16 = vperm.slane %v2540_v48, %v7063_v3  ;;  %v13517_v7 = vunpack.i.l.bf16 %v9667_v60 }
 0x2c9   : > { %13513 = vst [vmem:[#allocation142_spill] sm:$0xff] %v9866_v62  ;;  %v4063_v14 = vsel %vm1381_vm8, %v4062_v21, %v6029_v22  ;;  %v4065_v17 = vsel %vm1381_vm8, %v6039_v27, %v4064_v24  ;;  %v9903_v13 = vsel %vm1381_vm8, %v2561_v40, %v2512_v55  ;;  %v9910_v48 = vperm.slane %v9706_v28, %v7674_v46 }
 0x2ca   : > { %13515 = vst [vmem:[#allocation13_spill] sm:$0xff] %v9881_v39  ;;  %v9890_v47 = vsel %vm1381_vm8, %v3993_v58, %v4024_v15  ;;  %v2613_v1 = vrot.slane %v13517_v7, 4  ;;  %v9906_v58 = vperm.slane %v2564_v2, %v7674_v46  ;;  %v9914_v22 = vperm.slane %v9719_v18, %v7674_v46 }
 0x2cb   : > { %13516 = vst [vmem:[#allocation30_spill] sm:$0xff] %v9890_v47  ;;  %v2525_v27 = vrot.slane %v6018_v35, 4  ;;  %v6034_v24 = vunpack.i.h.bf16 %v9814_v50  ;;  %v6044_v15 = vunpack.i.h.bf16 %v9830_v45  ;;  %v2585_v55 = vrot.slane %v9887_v16, 4 }
 0x2cc   : > { %13518 = vst [vmem:[#allocation11_spill] sm:$0xff] %v9903_v13  ;;  %v2528_v2 = vsel %vm1381_vm8, %v6018_v35, %v9743_v63  ;;  %v4069_v28 = vperm.slane %v4063_v14, %v7063_v3  ;;  %v4073_v7 = vperm.slane %v4065_v17, %v7063_v3  ;;  %v6049_v21 = vunpack.i.h.bf16 %v9877_v36 }
 0x2cd   : > { %13519 = vst [vmem:[#allocation36_spill] sm:$0xff] %v9906_v58  ;;  %v4076_v18 = vrot.slane %v6034_v24, 4  ;;  %v4074_v8 = vrot.slane %v6044_v15, 4  ;;  %v2536_v63 = vperm.slane %v2528_v2, %v7063_v3  ;;  %v13523_v17 = vunpack.i.h.bf16 %v9737_v31 }
 0x2ce   : > { %13520 = vst [vmem:[#allocation33_spill] sm:$0xff] %v9910_v48  ;;  %v6028_v51 = vunpack.i.l.bf16 %v9739_v61  ;;  %v4112_v62 = vrot.slane %v4069_v28, 4  ;;  %v4124_v47 = vrot.slane %v4073_v7, 4  ;;  %v9958_v56 = vpop.permute.xlu0 %6071 }
 0x2cf   : > { %13521 = vst [vmem:[#allocation14_spill] sm:$0xff] %v9914_v22  ;;  %v13522_v22 = vunpack.i.l.bf16 %v9515_v57  ;;  %v4075_v35 = vsel %vm1381_vm8, %v4074_v8, %v6034_v24  ;;  %v4077_v14 = vsel %vm1381_vm8, %v6044_v15, %v4076_v18  ;;  %v4100_v39 = vrot.slane %v13523_v17, 4  ;;  %v6092_v58 = vpop.permute.xlu2 %6091 }
 0x2d0   : > { %v4081_v48 = vperm.slane %v4075_v35, %v7063_v3  ;;  %v4085_v43 = vperm.slane %v4077_v14, %v7063_v3  ;;  %v4088_v57 = vrot.slane %v6049_v21, 4  ;;  %v13524_v8 = vunpack.i.l.bf16 %v9737_v31 }
 0x2d1   : > { %v2526_v40 = vsel %vm1381_vm8, %v2525_v27, %v13522_v22  ;;  %v6059_v22 = vunpack.i.h.bf16 %v9899_v44  ;;  %v9941_v27 = vpop.permute.xlu1 %6061  ;;  %v2586_v18 = vsel %vm1381_vm8, %v2585_v55, %v2536_v63  ;;  %v2615_v11 = vrot.slane %v6028_v51, 4 }
 0x2d2   : > { %v9945_v24 = vrot.slane %v13524_v8, 4  ;;  %v9948_v15 = vperm.slane %v2526_v40, %v7063_v3  ;;  %v4110_v2 = vrot.slane %v4081_v48, 4  ;;  %v4122_v61 = vrot.slane %v4085_v43, 4 }
 0x2d3   : > { %v9953_v14 = vsel %vm1381_vm8, %v4081_v48, %v4112_v62  ;;  %v9956_v17 = vsel %vm1381_vm8, %v4085_v43, %v4124_v47  ;;  %v2614_v8 = vsel %vm1381_vm8, %v2613_v1, %v6028_v51  ;;  %v2587_v55 = vrot.slane %v2536_v63, 4 }
 0x2d4   : > { %13525 = vst [vmem:[#allocation21_spill] sm:$0xff] %v9953_v14  ;;  %v9962_v40 = vsel %vm1381_vm8, %v4110_v2, %v4069_v28  ;;  %v9965_v13 = vsel %vm1381_vm8, %v4122_v61, %v4073_v7  ;;  %v9969_v62 = vperm.slane %v9855_v26, %v7674_v46  ;;  %v4086_v48 = vrot.slane %v6059_v22, 4  ;;  %v13530_v7 = vld [vmem:[#allocation47_spill] sm:$0xff] }
 0x2d5   : > { %13526 = vst [vmem:[#allocation19_spill] sm:$0xff] %v9962_v40  ;;  %v4089_v43 = vsel %vm1381_vm8, %v6059_v22, %v4088_v57  ;;  %v9974_v35 = vperm.slane %v2586_v18, %v7674_v46  ;;  %v6094_v1 = vunpack.i.h.bf16 %v6092_v58  ;;  %v6084_v51 = vunpack.i.h.bf16 %v9897_v23  ;;  %v13532_v22 = vld [vmem:[#allocation83_spill] sm:$0xff] }
 0x2d6   : > { %13527 = vst [vmem:[#allocation18_spill] sm:$0xff] %v9965_v13  ;;  %v4087_v28 = vsel %vm1381_vm8, %v4086_v48, %v6049_v21  ;;  %v13531_v63 = vrot.slane %v13449_v32, 4  ;;  %v6093_v2 = vunpack.i.l.bf16 %v6092_v58  ;;  %v6033_v61 = vunpack.i.l.bf16 %v9814_v50 }
 0x2d7   : > { %13528 = vst [vmem:[#allocation23_spill] sm:$0xff] %v9969_v62  ;;  %v6043_v57 = vunpack.i.l.bf16 %v9830_v45  ;;  %v13533_v18 = vrot.slane %v9081_v42, 4  ;;  %v13534_v21 = vunpack.i.l.bf16 %v9667_v60  ;;  %v4097_v32 = vperm.slane %v4089_v43, %v7063_v3 }
 0x2d8   : > { %13529 = vst [vmem:[#allocation170_spill] sm:$0xff] %v9974_v35  ;;  %v1814_v26 = vsel %vm1381_vm8, %v13531_v63, %v13530_v7  ;;  %v6064_v50 = vunpack.i.h.bf16 %v9941_v27  ;;  %v2588_v45 = vsel %vm1381_vm8, %v9887_v16, %v2587_v55  ;;  %v6048_v42 = vunpack.i.l.bf16 %v9877_v36 }
 0x2d9   : > { %v1702_v47 = vsel %vm1381_vm8, %v13533_v18, %v13532_v22  ;;  %v9989_v62 = vsel %vm4990_vm11, %v1814_v26, %v6094_v1  ;;  %v2616_v48 = vsel %vm1381_vm8, %v13534_v21, %v2615_v11  ;;  %v10003_v7 = vperm.slane %v4087_v28, %v7063_v3  ;;  %v10011_v63 = vpop.permute.xlu1 %6076 }
 0x2da   : > { %v9996_v58 = vsel %vm4990_vm11, %v1702_v47, %v6093_v2  ;;  %v6074_v1 = vunpack.i.h.bf16 %v9958_v56  ;;  %v10008_v60 = vperm.slane %v9869_v12, %v7674_v46  ;;  %v4186_v11 = vrot.slane %v6084_v51, 4 }
 0x2db   : > { %13535 = vst [vmem:[#allocation47_spill] sm:$0xff] %v10003_v7  ;;  %v4098_v43 = vrot.slane %v6064_v50, 4  ;;  %v4101_v47 = vsel %vm1381_vm8, %v6064_v50, %v4100_v39  ;;  %v10014_v26 = vperm.slane %v2616_v48, %v7063_v3  ;;  %v2627_v16 = vrot.slane %v6033_v61, 4  ;;  %v10024_v39 = vpop.permute.xlu0 %1305 }
 0x2dc   : > { %13536 = vst [vmem:[#allocation83_spill] sm:$0xff] %v10008_v60  ;;  %v2625_v36 = vrot.slane %v6043_v57, 4  ;;  %v4109_v55 = vperm.slane %v4101_v47, %v7063_v3  ;;  %v4148_v28 = vrot.slane %v4097_v32, 4  ;;  %v6058_v2 = vunpack.i.l.bf16 %v9899_v44 }
 0x2dd   : > { %v13537_v22 = vunpack.i.h.bf16 %v9737_v31  ;;  %v10022_v18 = vsel %vm1381_vm8, %v4186_v11, %v6074_v1  ;;  %v2639_v21 = vrot.slane %v6048_v42, 4  ;;  %v4136_v48 = vrot.slane %v10003_v7, 4 }
 0x2de   : > { %13538 = vst [vmem:[#allocation171_spill] sm:$0xff] %v10022_v18  ;;  %v4188_v60 = vrot.slane %v6074_v1, 4  ;;  %v6063_v44 = vunpack.i.l.bf16 %v9941_v27  ;;  %v4146_v13 = vrot.slane %v4109_v55, 4  ;;  %v10033_v40 = vsel %vm1381_vm8, %v4109_v55, %v4148_v28 }
 0x2df   : > { %v4099_v12 = vsel %vm1381_vm8, %v4098_v43, %v13537_v22  ;;  %13540 = vst [vmem:[#allocation173_spill] sm:$0xff] %v10033_v40  ;;  %v10036_v11 = vperm.slane %v2588_v45, %v7674_v46  ;;  %v10039_v43 = vperm.slane %v2614_v8, %v7063_v3  ;;  %v13542_v22 = vunpack.i.h.bf16 %v9828_v52 }
 0x2e0   : > { %v10028_v50 = vperm.slane %v4099_v12, %v7063_v3  ;;  %v6068_v12 = vunpack.i.l.bf16 %v9828_v52  ;;  %v2628_v27 = vsel %vm1381_vm8, %v6043_v57, %v2627_v16  ;;  %v2637_v47 = vrot.slane %v6058_v2, 4 }
 0x2e1   : > { %13541 = vst [vmem:[#allocation174_spill] sm:$0xff] %v10036_v11  ;;  %v4176_v14 = vrot.slane %v13542_v22, 4  ;;  %v10050_v55 = vsel %vm1381_vm8, %v4146_v13, %v4097_v32  ;;  %v2675_v45 = vrot.slane %v10014_v26, 4  ;;  %v2626_v8 = vsel %vm1381_vm8, %v2625_v36, %v6033_v61 }
 0x2e2   : > { %13539 = vst [vmem:[#allocation172_spill] sm:$0xff] %v10028_v50  ;;  %v10045_v1 = vsel %vm1381_vm8, %v10028_v50, %v4136_v48  ;;  %v2640_v28 = vsel %vm1381_vm8, %v6058_v2, %v2639_v21  ;;  %v4189_v22 = vsel %vm1381_vm8, %v6084_v51, %v4188_v60  ;;  %v13545_v7 = vunpack.i.l.bf16 %v9897_v23 }
 0x2e3   : > { %13543 = vst [vmem:[#allocation175_spill] sm:$0xff] %v10045_v1  ;;  %v2649_v11 = vrot.slane %v6063_v44, 4  ;;  %v2652_v18 = vsel %vm1381_vm8, %v6063_v44, %v9945_v24  ;;  %v6073_v57 = vunpack.i.l.bf16 %v9958_v56  ;;  %v2636_v13 = vperm.slane %v2628_v27, %v7063_v3  ;;  %v6087_v24 = vpop.permute.xlu1 %6086 }
 0x2e4   : > { %13544 = vst [vmem:[#allocation176_spill] sm:$0xff] %v10050_v55  ;;  %v2737_v48 = vrot.slane %v13545_v7, 4  ;;  %v4197_v32 = vperm.slane %v4189_v22, %v7063_v3  ;;  %v6079_v16 = vunpack.i.h.bf16 %v10011_v63  ;;  %v12822_v61 = vunpack.i.l.bf16 %v10011_v63 }
 0x2e5   : > { %v10066_v36 = vperm.slane %v2626_v8, %v7063_v3  ;;  %v2638_v51 = vsel %vm1381_vm8, %v2637_v47, %v6048_v42  ;;  %v2648_v7 = vperm.slane %v2640_v28, %v7063_v3  ;;  %v12823_v60 = vrot.slane %v10024_v39, 4 }
 0x2e6   : > { %v2660_v56 = vperm.slane %v2652_v18, %v7063_v3  ;;  %v4174_v2 = vrot.slane %v6079_v16, 4  ;;  %v2725_v21 = vrot.slane %v12822_v61, 4  ;;  %v4177_v44 = vsel %vm1381_vm8, %v6079_v16, %v4176_v14  ;;  %v6097_v18 = vpop.permute.xlu0 %6096 }
 0x2e7   : > { %v13546_v27 = vunpack.i.l.bf16 %v9737_v31  ;;  %v2738_v22 = vsel %vm1381_vm8, %v2737_v48, %v6073_v57  ;;  %v4185_v42 = vperm.slane %v4177_v44, %v7063_v3  ;;  %v2750_v47 = vsel %vm1381_vm8, %v12823_v60, %v10024_v39 }
 0x2e8   : > { %v4210_v28 = vrot.slane %v4197_v32, 4  ;;  %v2726_v55 = vsel %vm1381_vm8, %v2725_v21, %v6068_v12  ;;  %v13547_v61 = vunpack.i.h.bf16 %v9828_v52  ;;  %v2755_v31 = vperm.slane %v2750_v47, %v7063_v3 }
 0x2e9   : > { %v2650_v8 = vsel %vm1381_vm8, %v2649_v11, %v13546_v27  ;;  %v2673_v48 = vrot.slane %v2636_v13, 4  ;;  %v2676_v16 = vsel %vm1381_vm8, %v2636_v13, %v2675_v45  ;;  %v10094_v44 = vperm.slane %v2638_v51, %v7063_v3  ;;  %v10105_v11 = vpop.permute.xlu2 %6106 }
 0x2ea   : > { %v10088_v14 = vsel %vm1381_vm8, %v4174_v2, %v13547_v61  ;;  %v10097_v27 = vperm.slane %v2650_v8, %v7063_v3  ;;  %v2697_v60 = vrot.slane %v2660_v56, 4  ;;  %v10100_v21 = vsel %vm1381_vm8, %v4210_v28, %v4185_v42 }
 0x2eb   : > { %13548 = vst [vmem:[#allocation177_spill] sm:$0xff] %v10088_v14  ;;  %v4212_v52 = vrot.slane %v4185_v42, 4  ;;  %v10102_v61 = vrot.slane %v6068_v12, 4  ;;  %v2699_v2 = vrot.slane %v2648_v7, 4  ;;  %v2744_v47 = vperm.slane %v2738_v22, %v7063_v3  ;;  %v13555_v42 = vld [vmem:[#allocation72_spill] sm:$0xff] }
 0x2ec   : > { %13549 = vst [vmem:[#allocation178_spill] sm:$0xff] %v10100_v21  ;;  %v2732_v45 = vperm.slane %v2726_v55, %v7063_v3  ;;  %v2661_v13 = vrot.slane %v10066_v36, 4  ;;  %v10110_v51 = vperm.slane %v2676_v16, %v7674_v46  ;;  %v2784_v28 = vrot.slane %v2755_v31, 4  ;;  %v6102_v21 = vpop.permute.xlu1 %6101 }
 0x2ed   : > { %v10113_v8 = vsel %vm1381_vm8, %v4197_v32, %v4212_v52  ;;  %v10117_v12 = vsel %vm1381_vm8, %v2673_v48, %v10014_v26  ;;  %v10121_v22 = vperm.slane %v9956_v17, %v7674_v46  ;;  %v10125_v55 = vsel %vm1381_vm8, %v2660_v56, %v2699_v2  ;;  %v13557_v52 = vld [vmem:[#allocation26_spill] sm:$0xff] }
 0x2ee   : > { %13550 = vst [vmem:[#allocation179_spill] sm:$0xff] %v10110_v51  ;;  %v2685_v16 = vrot.slane %v10097_v27, 4  ;;  %v10129_v51 = vsel %vm1381_vm8, %v2697_v60, %v2648_v7  ;;  %v10131_v32 = vrot.slane %v6073_v57, 4  ;;  %v2760_v26 = vrot.slane %v2744_v47, 4 }
 0x2ef   : > { %13551 = vst [vmem:[#allocation180_spill] sm:$0xff] %v10113_v8  ;;  %v2762_v48 = vrot.slane %v2732_v45, 4  ;;  %v13553_v8 = vld [vmem:[#allocation77_spill] sm:$0xff]  ;;  %v13554_v17 = vrot.slane %v8823_v4, 4  ;;  %v13556_v56 = vrot.slane %v8817_v10, 4  ;;  %v2785_v7 = vsel %vm1381_vm8, %v2784_v28, %v2755_v31 }
 0x2f0   : > { %13552 = vst [vmem:[#allocation181_spill] sm:$0xff] %v10121_v22  ;;  %v2786_v57 = vsel %vm1381_vm8, %v2755_v31, %v2784_v28  ;;  %v6089_v60 = vunpack.i.h.bf16 %v6087_v24  ;;  %v6088_v14 = vunpack.i.l.bf16 %v6087_v24  ;;  %v13558_v40 = vrot.slane %v9090_v0, 4  ;;  %v13559_v4 = vld [vmem:[#allocation17_spill] sm:$0xff] }
 0x2f1   : > { %v1478_v22 = vsel %vm1381_vm8, %v13554_v17, %v13553_v8  ;;  %v1590_v2 = vsel %vm1381_vm8, %v13556_v56, %v13555_v42  ;;  %v13560_v8 = vrot.slane %v9077_v41, 4  ;;  %v6099_v10 = vunpack.i.h.bf16 %v6097_v18  ;;  %v6112_v42 = vpop.permute.xlu0 %6111 }
 0x2f2   : > { %v1926_v50 = vsel %vm1381_vm8, %v13558_v40, %v13557_v52  ;;  %v6098_v1 = vunpack.i.l.bf16 %v6097_v18  ;;  %v4992_v56 = vsel %vm4990_vm11, %v1590_v2, %v6089_v60  ;;  %v4991_v35 = vsel %vm4990_vm11, %v1478_v22, %v6088_v14 }
 0x2f3   : > { %v2038_v17 = vsel %vm1381_vm8, %v13560_v8, %v13559_v4  ;;  %v13561_v24 = vrot.slane %v9858_v34, 4  ;;  %v13562_v0 = vrot.slane %v9884_v38, 4  ;;  %v10171_v14 = vperm.slane %v2786_v57, %v7674_v46 }
 0x2f4   : > { %v4996_v41 = vsel %vm4990_vm11, %v2038_v17, %v6099_v10  ;;  %v4995_v28 = vsel %vm4990_vm11, %v1926_v50, %v6098_v1  ;;  %v2662_v22 = vsel %vm1381_vm8, %v2661_v13, %v10039_v43  ;;  %v2686_v2 = vsel %vm1381_vm8, %v2685_v16, %v10094_v44 }
 0x2f5   : > { %v2550_v31 = vsel %vm1381_vm8, %v13561_v24, %v9846_v30  ;;  %v2574_v40 = vsel %vm1381_vm8, %v13562_v0, %v9948_v15  ;;  %13564 = vst [vmem:[#allocation72_spill] sm:$0xff] %v10171_v14  ;;  %v6104_v60 = vunpack.i.h.bf16 %v6102_v21  ;;  %v10179_v50 = vperm.slane %v2662_v22, %v7674_v46 }
 0x2f6   : > { %v10165_v18 = vperm.slane %v2550_v31, %v7674_v46  ;;  %v10168_v52 = vperm.slane %v2574_v40, %v7674_v46  ;;  %v10182_v1 = vperm.slane %v2686_v2, %v7674_v46  ;;  %v13566_v8 = vrot.slane %v9140_v59, 4 }
 0x2f7   : > { %13565 = vst [vmem:[#allocation26_spill] sm:$0xff] %v10179_v50  ;;  %v10189_v17 = vperm.slane %v2785_v7, %v7674_v46  ;;  %v6103_v16 = vunpack.i.l.bf16 %v6102_v21  ;;  %v13569_v10 = vrot.slane %v9151_v54, 4  ;;  %v2711_v0 = vrot.slane %v10179_v50, 4 }
 0x2f8   : > { %13563 = vst [vmem:[#allocation77_spill] sm:$0xff] %v10165_v18  ;;  %v2599_v4 = vrot.slane %v10165_v18, 4  ;;  %v2262_v57 = vsel %vm1381_vm8, %v13566_v8, %v9098_v29  ;;  %v6114_v59 = vunpack.i.h.bf16 %v6112_v42  ;;  %v6113_v7 = vunpack.i.l.bf16 %v6112_v42 }
 0x2f9   : > { %13567 = vst [vmem:[#allocation17_spill] sm:$0xff] %v10189_v17  ;;  %v10192_v13 = vsel %vm4990_vm11, %v2262_v57, %v6104_v60  ;;  %v2150_v24 = vsel %vm1381_vm8, %v13569_v10, %v9117_v5  ;;  %v2763_v40 = vsel %vm1381_vm8, %v2744_v47, %v2762_v48  ;;  %v10206_v21 = vrot.slane %v10171_v14, 4  ;;  %v6117_v60 = vpop.permute.xlu1 %6116  ;;  %v6127_v57 = vpop.permute.xlu0 %6126 }
 0x2fa   : > { %13568 = vst [vmem:[#allocation182_spill] sm:$0xff] %v10192_v13  ;;  %v2600_v31 = vsel %vm1381_vm8, %v10168_v52, %v2599_v4  ;;  %v10202_v29 = vsel %vm4990_vm11, %v2150_v24, %v6103_v16  ;;  %v2712_v54 = vsel %vm1381_vm8, %v10182_v1, %v2711_v0  ;;  %v10212_v5 = vsel %vm5005_vm12, %v9989_v62, %v6114_v59  ;;  %v13576_v59 = vld [vmem:[#allocation51_spill] sm:$0xff] }
 0x2fb   : > { %13570 = vst [vmem:[#allocation183_spill] sm:$0xff] %v10202_v29  ;;  %v2771_v22 = vperm.slane %v2763_v40, %v7674_v46  ;;  %v2761_v2 = vsel %vm1381_vm8, %v2760_v26, %v2732_v45  ;;  %v6155_v4 = vpack.i.bf16 %v2712_v54, %v2600_v31  ;;  %v10218_v42 = vsel %vm5005_vm12, %v9996_v58, %v6113_v7  ;;  %v13661_v13 = vld [vmem:[#allocation79_spill] sm:$0xff] }
 0x2fc   : > { %13571 = vst [vmem:[#allocation184_spill] sm:$0xff] %v10206_v21  ;;  %v2824_v47 = vsel %vm1381_vm8, %v10206_v21, %v10171_v14  ;;  %v10224_v48 = vperm.slane %v2761_v2, %v7674_v46  ;;  %v6108_v62 = vunpack.i.l.bf16 %v10105_v11  ;;  %v10230_v45 = vrot.slane %v10189_v17, 4 }
 0x2fd   : > { %13572 = vst [vmem:[#allocation185_spill] sm:$0xff] %v10212_v5  ;;  %v2811_v8 = vsel %vm1381_vm8, %v10206_v21, %v2771_v22  ;;  %v2155_v26 = vrot.slane %v9242_v49, 4  ;;  %6156 = vrot.lane.b32.xlu0 %v6155_v4, %s6668_s8  ;;  %v2267_v10 = vrot.slane %v9202_v53, 4  ;;  %v6119_v24 = vunpack.i.h.bf16 %v6117_v60 }
 0x2fe   : > { %13573 = vst [vmem:[#allocation186_spill] sm:$0xff] %v10218_v42  ;;  %v6150_v58 = vpack.i.bf16 %v2824_v47, %v2811_v8  ;;  %v2808_v16 = vrot.slane %v10224_v48, 4  ;;  %v2812_v31 = vrot.slane %v2771_v22, 4  ;;  %v2823_v0 = vsel %vm1381_vm8, %v10189_v17, %v10230_v45  ;;  %v13578_v22 = vld [vmem:[#allocation127_spill] sm:$0xff] }
 0x2ff   : > { %13574 = vst [vmem:[#allocation187_spill] sm:$0xff] %v10224_v48  ;;  %v2156_v7 = vsel %vm1381_vm8, %v13576_v59, %v2155_v26  ;;  %v6118_v40 = vunpack.i.l.bf16 %v6117_v60  ;;  %v10245_v54 = vsel %vm5005_vm12, %v4996_v41, %v6119_v24  ;;  %v6129_v53 = vunpack.i.h.bf16 %v6127_v57  ;;  %v13651_v48 = vld [vmem:[#allocation165_spill] sm:$0xff] }
 0x300   : > { %13575 = vst [vmem:[#allocation188_spill] sm:$0xff] %v10230_v45  ;;  %6151 = vrot.lane.b32.xlu2 %v6150_v58, %s6669_s9  ;;  %v2809_v49 = vsel %vm1381_vm8, %v10189_v17, %v2808_v16  ;;  %v2268_v4 = vsel %vm1381_vm8, %v13578_v22, %v2267_v10  ;;  %v6128_v8 = vunpack.i.l.bf16 %v6127_v57  ;;  %v5006_v60 = vsel %vm5005_vm12, %v4991_v35, %v6108_v62 }
 0x301   : > { %13577 = vst [vmem:[#allocation51_spill] sm:$0xff] %v10245_v54  ;;  %v6165_v2 = vpack.i.bf16 %v2823_v0, %v2809_v49  ;;  %v10250_v47 = vsel %vm5005_vm12, %v4995_v28, %v6118_v40  ;;  %v13580_v26 = vunpack.i.h.bf16 %v10105_v11  ;;  %v13581_v16 = vrot.slane %v9846_v30, 4  ;;  %v13590_v49 = vld [vmem:[#allocation90_spill] sm:$0xff]  ;;  %v13657_v54 = vld [vmem:[#allocation176_spill] sm:$0xff] }
 0x302   : > { %13579 = vst [vmem:[#allocation127_spill] sm:$0xff] %v10250_v47  ;;  %v13582_v24 = vrot.slane %v9948_v15, 4  ;;  %v10266_v28 = vsel %vm5020_vm13, %v5006_v60, %v6128_v8  ;;  %v6160_v15 = vpack.i.bf16 %v2268_v4, %v2156_v7  ;;  %v13586_v62 = vrot.slane %v10094_v44, 4 }
 0x303   : > { %v5007_v58 = vsel %vm5005_vm12, %v4992_v56, %v13580_v26  ;;  %v2552_v41 = vsel %vm1381_vm8, %v9858_v34, %v13581_v16  ;;  %6166 = vrot.lane.b32.xlu1 %v6165_v2, %s6668_s8  ;;  %13583 = vst [vmem:[#allocation189_spill] sm:$0xff] %v10266_v28  ;;  %v10275_v34 = vperm.slane %v10125_v55, %v7674_v46  ;;  %v13585_v56 = vrot.slane %v10039_v43, 4  ;;  %v13592_v26 = vld [vmem:[#allocation100_spill] sm:$0xff] }
 0x304   : > { %v2576_v10 = vsel %vm1381_vm8, %v9884_v38, %v13582_v24  ;;  %v10269_v35 = vsel %vm5020_vm13, %v5007_v58, %v6129_v53  ;;  %v2560_v11 = vperm.slane %v2552_v41, %v7674_v46  ;;  %v2688_v57 = vsel %vm1381_vm8, %v10097_v27, %v13586_v62  ;;  %v13593_v58 = vld [vmem:[#allocation104_spill] sm:$0xff] }
 0x305   : > { %13584 = vst [vmem:[#allocation190_spill] sm:$0xff] %v10269_v35  ;;  %v2584_v30 = vperm.slane %v2576_v10, %v7674_v46  ;;  %v2664_v38 = vsel %vm1381_vm8, %v10066_v36, %v13585_v56  ;;  %v10287_v0 = vperm.slane %v10129_v51, %v7674_v46  ;;  %v2696_v55 = vperm.slane %v2688_v57, %v7674_v46  ;;  %v13589_v51 = vld [vmem:[#allocation88_spill] sm:$0xff]  ;;  %v13596_v57 = vld [vmem:[#allocation103_spill] sm:$0xff] }
 0x306   : > { %v2672_v59 = vperm.slane %v2664_v38, %v7674_v46  ;;  %v13587_v43 = vunpack.i.l.bf16 %v9897_v23  ;;  %v13588_v36 = vrot.slane %v10024_v39, 4  ;;  %6161 = vrot.lane.b32.xlu0 %v6160_v15, %s6670_s10  ;;  %v2603_v27 = vrot.slane %v2560_v11, 4  ;;  %v13595_v15 = vld [vmem:[#allocation121_spill] sm:$0xff] }
 0x307   : > { %v2601_v40 = vrot.slane %v2584_v30, 4  ;;  %v13591_v53 = vrot.slane %v13590_v49, 4  ;;  %v2713_v4 = vrot.slane %v2696_v55, 4  ;;  %v2813_v23 = vsel %vm1381_vm8, %v10171_v14, %v2812_v31  ;;  %v13601_v49 = vld [vmem:[#allocation144_spill] sm:$0xff] }
 0x308   : > { %v2740_v7 = vsel %vm1381_vm8, %v13587_v43, %v10131_v32  ;;  %v2751_v44 = vsel %vm1381_vm8, %v10024_v39, %v13588_v36  ;;  %v2715_v22 = vrot.slane %v2672_v59, 4  ;;  %v2825_v32 = vsel %vm1381_vm8, %v10171_v14, %v10206_v21  ;;  %v13599_v36 = vld [vmem:[#allocation133_spill] sm:$0xff]  ;;  %v13649_v21 = vld [vmem:[#allocation168_spill] sm:$0xff] }
 0x309   : > { %v1666_v2 = vsel %vm1381_vm8, %v13591_v53, %v13589_v51  ;;  %v2604_v8 = vsel %vm1381_vm8, %v2584_v30, %v2603_v27  ;;  %v2602_v39 = vsel %vm1381_vm8, %v2601_v40, %v2560_v11  ;;  %v13594_v16 = vrot.slane %v13593_v58, 4 }
 0x30a   : > { %v10312_v60 = vperm.slane %v1666_v2, %v7674_v46  ;;  %v2716_v24 = vsel %vm1381_vm8, %v2696_v55, %v2715_v22  ;;  %v2714_v31 = vsel %vm1381_vm8, %v2713_v4, %v2672_v59  ;;  %v1821_v56 = vrot.slane %v13595_v15, 4  ;;  %v13598_v59 = vld [vmem:[#allocation128_spill] sm:$0xff]  ;;  %v13602_v4 = vld [vmem:[#allocation130_spill] sm:$0xff] }
 0x30b   : > { %v1778_v41 = vsel %vm1381_vm8, %v13594_v16, %v13592_v26  ;;  %v10325_v30 = vperm.slane %v2751_v44, %v7063_v3  ;;  %v6180_v11 = vpack.i.bf16 %v2716_v24, %v2604_v8  ;;  %v6170_v38 = vpack.i.bf16 %v2714_v31, %v2602_v39  ;;  %v13603_v26 = vld [vmem:[#allocation69_spill] sm:$0xff] }
 0x30c   : > { %v10321_v10 = vperm.slane %v1778_v41, %v7674_v46  ;;  %v6185_v62 = vpack.i.bf16 %v2825_v32, %v2813_v23  ;;  %v13597_v40 = vrot.slane %v13596_v57, 4  ;;  %v13600_v27 = vrot.slane %v13599_v36, 4  ;;  %v10346_v32 = vpop.permute.xlu2 %6121  ;;  %v13604_v24 = vld [vmem:[#allocation57_spill] sm:$0xff] }
 0x30d   : > { %v10339_v44 = vperm.slane %v13601_v49, %v7674_v46  ;;  %6181 = vrot.lane.b32.xlu2 %v6180_v11, %s6670_s10  ;;  %6171 = vrot.lane.b32.xlu1 %v6170_v38, %s6669_s9  ;;  %v2379_v2 = vrot.slane %v9780_v9, 4  ;;  %v2491_v22 = vrot.slane %v9794_v19, 4  ;;  %v2045_v23 = vrot.slane %v13602_v4, 4  ;;  %v13605_v38 = vld [vmem:[#allocation75_spill] sm:$0xff] }
 0x30e   : > { %v1710_v43 = vsel %vm1381_vm8, %v13597_v40, %v10312_v60  ;;  %v1822_v55 = vsel %vm1381_vm8, %v1821_v56, %v10321_v10  ;;  %v1890_v51 = vsel %vm1381_vm8, %v13600_v27, %v13598_v59  ;;  %v10354_v58 = vperm.slane %v13603_v26, %v7674_v46  ;;  %6186 = vrot.lane.b32.xlu0 %v6185_v62, %s6670_s10  ;;  %v13606_v40 = vld [vmem:[#allocation80_spill] sm:$0xff] }
 0x30f   : > { %v6195_v53 = vpack.i.bf16 %v1822_v55, %v1710_v43  ;;  %v10349_v8 = vperm.slane %v1890_v51, %v7674_v46  ;;  %v1933_v39 = vrot.slane %v10339_v44, 4  ;;  %v2381_v16 = vrot.slane %v9673_v6, 4  ;;  %v13607_v43 = vld [vmem:[#allocation86_spill] sm:$0xff] }
 0x310   : > { %v2492_v9 = vsel %vm1381_vm8, %v9783_v33, %v2491_v22  ;;  %v2046_v19 = vsel %vm1381_vm8, %v2045_v23, %v9476_v20  ;;  %v2493_v41 = vrot.slane %v9752_v37, 4  ;;  %v1472_v31 = vperm.slane %v13604_v24, %v7674_v46 }
 0x311   : > { %v1934_v56 = vsel %vm1381_vm8, %v1933_v39, %v10349_v8  ;;  %v2382_v11 = vsel %vm1381_vm8, %v2381_v16, %v10354_v58  ;;  %v1560_v62 = vperm.slane %v13605_v38, %v7674_v46  ;;  %v13608_v33 = vrot.slane %v13607_v43, 4  ;;  %v13610_v39 = vld [vmem:[#allocation137_spill] sm:$0xff] }
 0x312   : > { %v6200_v59 = vpack.i.bf16 %v2046_v19, %v1934_v56  ;;  %v2494_v36 = vsel %vm1381_vm8, %v2493_v41, %v9713_v25  ;;  %v1485_v27 = vrot.slane %v1472_v31, 4  ;;  %v10379_v49 = vperm.slane %v2740_v7, %v7063_v3 }
 0x313   : > { %v1578_v55 = vsel %vm1381_vm8, %v13608_v33, %v13606_v40  ;;  %v13609_v22 = vunpack.i.l.bf16 %v10011_v63  ;;  %v2380_v26 = vsel %vm1381_vm8, %v13610_v39, %v2379_v2  ;;  %v6210_v16 = vpack.i.bf16 %v2494_v36, %v2382_v11  ;;  %v13611_v33 = vld [vmem:[#allocation152_spill] sm:$0xff] }
 0x314   : > { %v1584_v51 = vperm.slane %v1578_v55, %v7674_v46  ;;  %v12829_v19 = vrot.slane %v10325_v30, 4  ;;  %v6175_v24 = vpack.i.bf16 %v2492_v9, %v2380_v26  ;;  %v10390_v41 = vperm.slane %v10117_v12, %v7674_v46  ;;  %v13612_v55 = vld [vmem:[#allocation155_spill] sm:$0xff] }
 0x315   : > { %v2728_v23 = vsel %vm1381_vm8, %v13609_v22, %v10102_v61  ;;  %v2717_v7 = vrot.slane %v10287_v0, 4  ;;  %v1599_v38 = vrot.slane %v1560_v62, 4  ;;  %v13613_v63 = vrot.slane %v13612_v55, 4  ;;  %v13614_v22 = vld [vmem:[#allocation162_spill] sm:$0xff]  ;;  %6196 = vrot.lane.b32.xlu2 %v6195_v53, %s6671_s11  ;;  %v13615_v9 = vld [vmem:[#allocation35_spill] sm:$0xff] }
 0x316   : > { %v1597_v56 = vrot.slane %v1584_v51, 4  ;;  %v2144_v2 = vperm.slane %v13614_v22, %v7674_v46  ;;  %6176 = vrot.lane.b32.xlu1 %v6175_v24, %s6670_s10  ;;  %v1486_v12 = vsel %vm1381_vm8, %v1485_v27, %v13615_v9  ;;  %v1711_v39 = vrot.slane %v10312_v60, 4  ;;  %6201 = vrot.lane.b32.xlu0 %v6200_v59, %s6671_s11  ;;  %v13617_v27 = vld [vmem:[#allocation11_spill] sm:$0xff]  ;;  %v13618_v60 = vld [vmem:[#allocation169_spill] sm:$0xff]  ;;  %v13620_v22 = vld [vmem:[#allocation170_spill] sm:$0xff] }
 0x317   : > { %v2114_v61 = vsel %vm1381_vm8, %v13613_v63, %v13611_v33  ;;  %v13616_v33 = vrot.slane %v13615_v9, 4  ;;  %v10412_v63 = vsel %vm1381_vm8, %v1584_v51, %v1599_v38  ;;  %v10417_v24 = vperm.slane %v13617_v27, %v7674_v46 }
 0x318   : > { %v1598_v11 = vsel %vm1381_vm8, %v1597_v56, %v1560_v62  ;;  %v2120_v36 = vperm.slane %v2114_v61, %v7674_v46  ;;  %v2157_v53 = vrot.slane %v2144_v2, 4  ;;  %v2232_v56 = vperm.slane %v13618_v60, %v7674_v46 }
 0x319   : > { %v6190_v26 = vpack.i.bf16 %v1598_v11, %v1486_v12  ;;  %v10409_v55 = vsel %vm1381_vm8, %v1472_v31, %v13616_v33  ;;  %v1823_v61 = vrot.slane %v10321_v10, 4  ;;  %v10424_v31 = vpop.permute.xlu2 %6136  ;;  %v2605_v51 = vrot.slane %v13620_v22, 4  ;;  %v13621_v12 = vld [vmem:[#allocation39_spill] sm:$0xff] }
 0x31a   : > { %v6225_v62 = vpack.i.bf16 %v10412_v63, %v10409_v55  ;;  %13619 = vst [vmem:[#allocation88_spill] sm:$0xff] %v10424_v31  ;;  %v2718_v38 = vsel %vm1381_vm8, %v2717_v7, %v10390_v41  ;;  %v2158_v59 = vsel %vm1381_vm8, %v2157_v53, %v2120_v36  ;;  %v2159_v9 = vrot.slane %v2120_v36, 4 }
 0x31b   : > { %v13622_v11 = vrot.slane %v13621_v12, 4  ;;  %v10435_v55 = vsel %vm1381_vm8, %v13596_v57, %v1711_v39  ;;  %v1824_v10 = vsel %vm1381_vm8, %v13595_v15, %v1823_v61  ;;  %v2271_v63 = vrot.slane %v2232_v56, 4 }
 0x31c   : > { %v6230_v60 = vpack.i.bf16 %v1824_v10, %v10435_v55  ;;  %v10441_v7 = vsel %vm1381_vm8, %v2144_v2, %v2159_v9  ;;  %v2383_v36 = vrot.slane %v10354_v58, 4  ;;  %v10445_v53 = vperm.slane %v2728_v23, %v7063_v3  ;;  %v13654_v58 = vld [vmem:[#allocation113_spill] sm:$0xff] }
 0x31d   : > { %v2270_v33 = vsel %vm1381_vm8, %v13622_v11, %v2232_v56  ;;  %v2796_v57 = vsel %vm1381_vm8, %v12829_v19, %v10325_v30  ;;  %v10453_v15 = vsel %vm1381_vm8, %v13621_v12, %v2271_v63  ;;  %v2495_v39 = vrot.slane %v9713_v25, 4  ;;  %6211 = vrot.lane.b32.xlu2 %v6210_v16, %s6671_s11  ;;  %v13629_v11 = vld [vmem:[#allocation63_spill] sm:$0xff] }
 0x31e   : > { %v6205_v27 = vpack.i.bf16 %v2270_v33, %v2158_v59  ;;  %v2772_v56 = vrot.slane %v10379_v49, 4  ;;  %v2606_v2 = vsel %vm1381_vm8, %v2605_v51, %v10417_v24  ;;  %v10463_v23 = vsel %vm1381_vm8, %v9673_v6, %v2383_v36  ;;  %6191 = vrot.lane.b32.xlu1 %v6190_v26, %s6671_s11  ;;  %v13624_v6 = vld [vmem:[#allocation175_spill] sm:$0xff]  ;;  %v13631_v33 = vld [vmem:[#allocation126_spill] sm:$0xff] }
 0x31f   : > { %v6215_v61 = vpack.i.bf16 %v2718_v38, %v2606_v2  ;;  %v10469_v25 = vsel %vm1381_vm8, %v9752_v37, %v2495_v39  ;;  %v1935_v59 = vrot.slane %v10349_v8, 4  ;;  %v13623_v51 = vrot.slane %v9476_v20, 4  ;;  %v13627_v37 = vld [vmem:[#allocation71_spill] sm:$0xff] }
 0x320   : > { %v10480_v12 = vperm.slane %v13624_v6, %v7674_v46  ;;  %v10483_v16 = vperm.slane %v2796_v57, %v7674_v46  ;;  %v13628_v38 = vrot.slane %v13627_v37, 4  ;;  %v2773_v20 = vsel %vm1381_vm8, %v2772_v56, %v10445_v53  ;;  %v13634_v2 = vld [vmem:[#allocation55_spill] sm:$0xff] }
 0x321   : > { %v10476_v9 = vsel %vm1381_vm8, %v13602_v4, %v13623_v51  ;;  %6216 = vrot.lane.b32.xlu0 %v6215_v61, %s6671_s11  ;;  %v13630_v4 = vld [vmem:[#allocation49_spill] sm:$0xff]  ;;  %v13632_v55 = vrot.slane %v13631_v33, 4  ;;  %v10500_v63 = vsel %vm1381_vm8, %v10339_v44, %v1935_v59  ;;  %v13633_v36 = vrot.slane %v13606_v40, 4  ;;  %v6142_v39 = vpop.permute.xlu2 %6141  ;;  %v13635_v6 = vld [vmem:[#allocation135_spill] sm:$0xff]  ;;  %v13639_v33 = vld [vmem:[#allocation158_spill] sm:$0xff] }
 0x322   : > { %13625 = vst [vmem:[#allocation90_spill] sm:$0xff] %v10480_v12  ;;  %v1556_v8 = vsel %vm1381_vm8, %v13629_v11, %v13628_v38  ;;  %v1489_v61 = vrot.slane %v13634_v2, 4  ;;  %v10514_v37 = vperm.slane %v13635_v6, %v7674_v46  ;;  %v6144_v44 = vunpack.i.h.bf16 %v6142_v39  ;;  %v13636_v38 = vld [vmem:[#allocation102_spill] sm:$0xff] }
 0x323   : > { %13626 = vst [vmem:[#allocation100_spill] sm:$0xff] %v10483_v16  ;;  %v2374_v10 = vsel %vm1381_vm8, %v13632_v55, %v13630_v4  ;;  %v1580_v57 = vsel %vm1381_vm8, %v13607_v43, %v13633_v36  ;;  %v6143_v59 = vunpack.i.l.bf16 %v6142_v39  ;;  %v1937_v40 = vrot.slane %v13636_v38, 4  ;;  %v13637_v11 = vld [vmem:[#allocation78_spill] sm:$0xff] }
 0x324   : > { %v10510_v51 = vperm.slane %v1580_v57, %v7674_v46  ;;  %v10519_v43 = vperm.slane %v13637_v11, %v7674_v46  ;;  %v13638_v4 = vld [vmem:[#allocation62_spill] sm:$0xff]  ;;  %v13640_v55 = vrot.slane %v13639_v33, 4  ;;  %v10526_v57 = vrot.slane %v10483_v16, 4  ;;  %v13642_v33 = vld [vmem:[#allocation29_spill] sm:$0xff] }
 0x325   : > { %v10529_v56 = vperm.slane %v1556_v8, %v7674_v46  ;;  %v10536_v19 = vsel %vm4990_vm11, %v2374_v10, %v6143_v59  ;;  %v10540_v11 = vsel %vm1381_vm8, %v1937_v40, %v10514_v37  ;;  %v13644_v10 = vld [vmem:[#allocation27_spill] sm:$0xff]  ;;  %v13646_v40 = vld [vmem:[#allocation173_spill] sm:$0xff]  ;;  %6226 = vrot.lane.b32.xlu2 %v6225_v62, %s6672_s18  ;;  %v2779_v35 = vperm.slane %v2773_v20, %v7674_v46 }
 0x326   : > { %v2486_v36 = vsel %vm1381_vm8, %v13640_v55, %v13638_v4  ;;  %13641 = vst [vmem:[#allocation104_spill] sm:$0xff] %v10526_v57  ;;  %v1601_v6 = vrot.slane %v10510_v51, 4  ;;  %v2049_v4 = vrot.slane %v10519_v43, 4  ;;  %v10545_v55 = vsel %vm1381_vm8, %v1489_v61, %v13642_v33  ;;  %6206 = vrot.lane.b32.xlu1 %v6205_v27, %s6671_s11  ;;  %v13653_v20 = vld [vmem:[#allocation93_spill] sm:$0xff] }
 0x327   : > { %v10533_v39 = vsel %vm4990_vm11, %v2486_v36, %v6144_v44  ;;  %v13643_v44 = vld [vmem:[#allocation156_spill] sm:$0xff]  ;;  %v2161_v59 = vrot.slane %v13644_v10, 4  ;;  %v10559_v28 = vperm.slane %v13646_v40, %v7674_v46  ;;  %v13650_v62 = vrot.slane %v13649_v21, 4 }
 0x328   : > { %v10549_v8 = vsel %vm1381_vm8, %v1601_v6, %v10529_v56  ;;  %v10553_v36 = vperm.slane %v13643_v44, %v7674_v46  ;;  %v13648_v6 = vld [vmem:[#allocation45_spill] sm:$0xff]  ;;  %v1691_v14 = vrot.slane %v13654_v58, 4  ;;  %v2826_v21 = vsel %vm1381_vm8, %v10526_v57, %v10483_v16 }
 0x329   : > { %13647 = vst [vmem:[#allocation121_spill] sm:$0xff] %v10559_v28  ;;  %v10567_v44 = vsel %vm1381_vm8, %v2049_v4, %v13648_v6  ;;  %v2228_v27 = vsel %vm1381_vm8, %v13651_v48, %v13650_v62  ;;  %6231 = vrot.lane.b32.xlu0 %v6230_v60, %s6672_s18  ;;  %v13652_v4 = vld [vmem:[#allocation153_spill] sm:$0xff]  ;;  %v1676_v28 = vperm.slane %v13653_v20, %v7674_v46  ;;  %v13655_v48 = vld [vmem:[#allocation107_spill] sm:$0xff]  ;;  %v13656_v62 = vld [vmem:[#allocation124_spill] sm:$0xff] }
 0x32a   : > { %v10574_v40 = vsel %vm1381_vm8, %v2161_v59, %v10553_v36  ;;  %v10582_v61 = vperm.slane %v2228_v27, %v7674_v46  ;;  %v2273_v45 = vrot.slane %v13652_v4, 4  ;;  %v2815_v59 = vsel %vm1381_vm8, %v10526_v57, %v2779_v35  ;;  %v13659_v20 = vld [vmem:[#allocation171_spill] sm:$0xff] }
 0x32b   : > { %v1788_v60 = vperm.slane %v13655_v48, %v7674_v46  ;;  %v1812_v27 = vperm.slane %v13656_v62, %v7674_v46  ;;  %v10599_v47 = vperm.slane %v13657_v54, %v7674_v46  ;;  %v10603_v58 = vperm.slane %v13659_v20, %v7063_v3  ;;  %v13691_v62 = vld [vmem:[#allocation82_spill] sm:$0xff] }
 0x32c   : > { %v10607_v12 = vsel %vm1381_vm8, %v2273_v45, %v10582_v61  ;;  %v1692_v29 = vsel %vm1381_vm8, %v13661_v13, %v1691_v14  ;;  %v2774_v48 = vrot.slane %v10445_v53, 4  ;;  %v6220_v20 = vpack.i.bf16 %v2826_v21, %v2815_v59  ;;  %v13665_v59 = vld [vmem:[#allocation115_spill] sm:$0xff] }
 0x32d   : > { %13658 = vst [vmem:[#allocation103_spill] sm:$0xff] %v10599_v47  ;;  %v1700_v18 = vperm.slane %v1692_v29, %v7674_v46  ;;  %v1825_v54 = vrot.slane %v1812_v27, 4  ;;  %v13662_v47 = vld [vmem:[#allocation177_spill] sm:$0xff]  ;;  %v1715_v17 = vrot.slane %v1676_v28, 4  ;;  %v1827_v26 = vrot.slane %v1788_v60, 4 }
 0x32e   : > { %13660 = vst [vmem:[#allocation128_spill] sm:$0xff] %v10603_v58  ;;  %v10617_v50 = vperm.slane %v13662_v47, %v7063_v3  ;;  %v2816_v45 = vrot.slane %v2779_v35, 4  ;;  %v2051_v14 = vrot.slane %v13648_v6, 4  ;;  %v13663_v13 = vpack.i.bf16 %v10453_v15, %v10441_v7  ;;  %6221 = vrot.lane.b32.xlu1 %v6220_v20, %s6671_s11  ;;  %v13664_v35 = vld [vmem:[#allocation111_spill] sm:$0xff]  ;;  %v13666_v15 = vld [vmem:[#allocation109_spill] sm:$0xff] }
 0x32f   : > { %v1713_v5 = vrot.slane %v1700_v18, 4  ;;  %v10620_v42 = vsel %vm1381_vm8, %v1825_v54, %v1788_v60  ;;  %v10629_v29 = vsel %vm1381_vm8, %v1700_v18, %v1715_v17  ;;  %v10632_v47 = vsel %vm1381_vm8, %v1812_v27, %v1827_v26  ;;  %v13668_v26 = vld [vmem:[#allocation97_spill] sm:$0xff] }
 0x330   : > { %6241 = vrot.lane.b32.xlu2 %v13663_v13, %s6672_s18  ;;  %v2385_v53 = vrot.slane %v13664_v35, 4  ;;  %v2460_v21 = vperm.slane %v13665_v59, %v7674_v46  ;;  %v2497_v60 = vrot.slane %v13666_v15, 4  ;;  %v1939_v54 = vrot.slane %v10514_v37, 4  ;;  %v13688_v13 = vld [vmem:[#allocation58_spill] sm:$0xff] }
 0x331   : > { %v10638_v6 = vsel %vm1381_vm8, %v1713_v5, %v1676_v28  ;;  %v13667_v18 = vpack.i.bf16 %v10469_v25, %v10463_v23  ;;  %v10656_v5 = vsel %vm1381_vm8, %v10519_v43, %v2051_v14  ;;  %v2387_v28 = vrot.slane %v13668_v26, 4  ;;  %v13678_v43 = vld [vmem:[#allocation9_spill] sm:$0xff] }
 0x332   : > { %v10652_v27 = vsel %vm1381_vm8, %v2385_v53, %v13668_v26  ;;  %v2827_v37 = vsel %vm1381_vm8, %v10483_v16, %v10526_v57  ;;  %v10663_v23 = vsel %vm1381_vm8, %v2497_v60, %v2460_v21  ;;  %v10667_v25 = vsel %vm1381_vm8, %v13636_v38, %v1939_v54 }
 0x333   : > { %6246 = vrot.lane.b32.xlu0 %v13667_v18, %s6672_s18  ;;  %v2499_v20 = vrot.slane %v2460_v21, 4  ;;  %v10676_v53 = vsel %vm1381_vm8, %v13664_v35, %v2387_v28  ;;  %v2775_v59 = vsel %vm1381_vm8, %v10379_v49, %v2774_v48  ;;  %v13669_v60 = vrot.slane %v10325_v30, 4  ;;  %v13670_v28 = vld [vmem:[#allocation114_spill] sm:$0xff]  ;;  %v6147_v35 = vpop.permute.xlu0 %6146 }
 0x334   : > { %v2817_v21 = vsel %vm1381_vm8, %v10483_v16, %v2816_v45  ;;  %v13671_v49 = vld [vmem:[#allocation98_spill] sm:$0xff]  ;;  %v13675_v45 = vld [vmem:[#allocation180_spill] sm:$0xff]  ;;  %v2842_v18 = vrot.slane %v13678_v43, 4  ;;  %v13689_v17 = vrot.slane %v13688_v13, 4  ;;  %v13710_v16 = vld [vmem:[#allocation185_spill] sm:$0xff] }
 0x335   : > { %v2797_v38 = vsel %vm1381_vm8, %v10325_v30, %v13669_v60  ;;  %v10688_v54 = vsel %vm1381_vm8, %v13666_v15, %v2499_v20  ;;  %v6255_v26 = vpack.i.bf16 %v2827_v37, %v2817_v21  ;;  %v13672_v48 = vrot.slane %v13671_v49, 4  ;;  %v13673_v30 = vld [vmem:[#allocation178_spill] sm:$0xff]  ;;  %v13680_v20 = vld [vmem:[#allocation15_spill] sm:$0xff] }
 0x336   : > { %v10701_v60 = vperm.slane %v13673_v30, %v7674_v46  ;;  %v10705_v15 = vperm.slane %v13675_v45, %v7674_v46  ;;  %v10710_v21 = vperm.slane %v2797_v38, %v7674_v46  ;;  %v1491_v30 = vrot.slane %v13642_v33, 4 }
 0x337   : > { %v10697_v14 = vsel %vm1381_vm8, %v13672_v48, %v13670_v28  ;;  %v13677_v48 = vpack.i.bf16 %v10476_v9, %v10500_v63  ;;  %v1603_v45 = vrot.slane %v10529_v56, 4  ;;  %v2607_v37 = vrot.slane %v10417_v24, 4 }
 0x338   : > { %13674 = vst [vmem:[#allocation133_spill] sm:$0xff] %v10701_v60  ;;  %6256 = vrot.lane.b32.xlu2 %v6255_v26, %s6672_s18  ;;  %v2719_v38 = vrot.slane %v10390_v41, 4  ;;  %v13679_v26 = vpack.i.bf16 %v10549_v8, %v10545_v55  ;;  %v6149_v9 = vunpack.i.h.bf16 %v6147_v35  ;;  %v6148_v63 = vunpack.i.l.bf16 %v6147_v35  ;;  %v6132_v41 = vpop.permute.xlu1 %6131  ;;  %v13681_v8 = vld [vmem:[#allocation44_spill] sm:$0xff] }
 0x339   : > { %13676 = vst [vmem:[#allocation144_spill] sm:$0xff] %v10705_v15  ;;  %6236 = vrot.lane.b32.xlu1 %v13677_v48, %s6672_s18  ;;  %v10730_v56 = vsel %vm1381_vm8, %v13634_v2, %v1491_v30  ;;  %v10734_v24 = vsel %vm1381_vm8, %v10510_v51, %v1603_v45  ;;  %v2830_v55 = vrot.slane %v13680_v20, 4  ;;  %v2608_v51 = vsel %vm1381_vm8, %v13620_v22, %v2607_v37  ;;  %v13686_v45 = vld [vmem:[#allocation8_spill] sm:$0xff]  ;;  %v13687_v48 = vld [vmem:[#allocation67_spill] sm:$0xff] }
 0x33a   : > { %v2720_v33 = vsel %vm1381_vm8, %v10287_v0, %v2719_v38  ;;  %v10750_v30 = vsel %vm5005_vm12, %v10536_v19, %v6148_v63  ;;  %v10754_v0 = vsel %vm5005_vm12, %v10533_v39, %v6149_v9  ;;  %v2843_v38 = vsel %vm1381_vm8, %v2842_v18, %v13686_v45  ;;  %v13690_v2 = vld [vmem:[#allocation76_spill] sm:$0xff]  ;;  %v13694_v18 = vld [vmem:[#allocation174_spill] sm:$0xff] }
 0x33b   : > { %6261 = vrot.lane.b32.xlu0 %v13679_v26, %s6673_s21  ;;  %v13682_v26 = vld [vmem:[#allocation52_spill] sm:$0xff]  ;;  %13684 = vst [vmem:[#allocation130_spill] sm:$0xff] %v10750_v30  ;;  %v13692_v20 = vrot.slane %v13691_v62, 4  ;;  %v6134_v43 = vunpack.i.h.bf16 %v6132_v41  ;;  %v6250_v39 = vpack.i.bf16 %v2720_v33, %v2608_v51  ;;  %v2721_v9 = vrot.slane %v10275_v34, 4 }
 0x33c   : > { %v13683_v35 = vrot.slane %v13682_v26, 4  ;;  %13685 = vst [vmem:[#allocation69_spill] sm:$0xff] %v10754_v0  ;;  %v13693_v37 = vld [vmem:[#allocation28_spill] sm:$0xff]  ;;  %v6133_v30 = vunpack.i.l.bf16 %v6132_v41  ;;  %v2609_v45 = vrot.slane %v13694_v18, 4  ;;  %v10771_v0 = vrot.slane %v10710_v21, 4 }
 0x33d   : > { %v3015_v22 = vsel %vm1381_vm8, %v13692_v20, %v13690_v2  ;;  %v3090_v19 = vrot.slane %v13693_v37, 4  ;;  %v13696_v62 = vpack.i.bf16 %v10567_v44, %v10540_v11  ;;  %v10781_v20 = vperm.slane %v2843_v38, %v7063_v3  ;;  %v13697_v2 = vld [vmem:[#allocation31_spill] sm:$0xff]  ;;  %v13699_v37 = vld [vmem:[#allocation92_spill] sm:$0xff] }
 0x33e   : > { %v2903_v7 = vsel %vm1381_vm8, %v13683_v35, %v13681_v8  ;;  %v2991_v35 = vsel %vm1381_vm8, %v13689_v17, %v13687_v48  ;;  %v13695_v17 = vld [vmem:[#allocation12_spill] sm:$0xff]  ;;  %v2163_v41 = vrot.slane %v10553_v36, 4  ;;  %v2275_v33 = vrot.slane %v10582_v61, 4  ;;  %v13700_v11 = vld [vmem:[#allocation159_spill] sm:$0xff] }
 0x33f   : > { %v2831_v15 = vsel %vm1381_vm8, %v2830_v55, %v13695_v17  ;;  %v3078_v51 = vrot.slane %v13697_v2, 4  ;;  %v10787_v63 = vperm.slane %v2775_v59, %v7674_v46  ;;  %v13698_v55 = vld [vmem:[#allocation32_spill] sm:$0xff]  ;;  %v13701_v44 = vrot.slane %v13700_v11, 4  ;;  %v13703_v38 = vld [vmem:[#allocation163_spill] sm:$0xff] }
 0x340   : > { %6271 = vrot.lane.b32.xlu2 %v13696_v62, %s6673_s21  ;;  %v3091_v17 = vsel %vm1381_vm8, %v3090_v19, %v13698_v55  ;;  %v13702_v62 = vld [vmem:[#allocation164_spill] sm:$0xff]  ;;  %v13704_v31 = vrot.slane %v13703_v38, 4  ;;  %v13705_v61 = vpack.i.bf16 %v10607_v12, %v10574_v40  ;;  %v13706_v59 = vld [vmem:[#allocation179_spill] sm:$0xff]  ;;  %v10806_v19 = vperm.slane %v2831_v15, %v7063_v3 }
 0x341   : > { %6251 = vrot.lane.b32.xlu1 %v6250_v39, %s6672_s18  ;;  %v3215_v39 = vsel %vm1381_vm8, %v13701_v44, %v13699_v37  ;;  %v2722_v2 = vsel %vm1381_vm8, %v2721_v9, %v13706_v59  ;;  %v10810_v55 = vsel %vm1381_vm8, %v13644_v10, %v2163_v41  ;;  %v10814_v44 = vsel %vm1381_vm8, %v13652_v4, %v2275_v33  ;;  %v13707_v9 = vld [vmem:[#allocation186_spill] sm:$0xff] }
 0x342   : > { %v3239_v36 = vsel %vm1381_vm8, %v13704_v31, %v13702_v62  ;;  %v2819_v31 = vsel %vm1381_vm8, %v10771_v0, %v10787_v63  ;;  %v2828_v12 = vsel %vm1381_vm8, %v10771_v0, %v10710_v21  ;;  %v2723_v40 = vrot.slane %v13706_v59, 4  ;;  %v13709_v41 = vld [vmem:[#allocation22_spill] sm:$0xff]  ;;  %v13712_v59 = vld [vmem:[#allocation36_spill] sm:$0xff] }
 0x343   : > { %6276 = vrot.lane.b32.xlu0 %v13705_v61, %s6673_s21  ;;  %v10827_v10 = vsel %vm5020_vm13, %v13707_v9, %v6133_v30  ;;  %v2878_v4 = vrot.slane %v10781_v20, 4  ;;  %v3079_v33 = vsel %vm1381_vm8, %v3078_v51, %v13709_v41  ;;  %v10833_v61 = vperm.slane %v3091_v17, %v7063_v3  ;;  %v13713_v17 = vld [vmem:[#allocation37_spill] sm:$0xff]  ;;  %v13714_v41 = vld [vmem:[#allocation34_spill] sm:$0xff] }
 0x344   : > { %13708 = vst [vmem:[#allocation57_spill] sm:$0xff] %v10827_v10  ;;  %v10837_v57 = vsel %vm5020_vm13, %v13710_v16, %v6134_v43  ;;  %v2610_v60 = vsel %vm1381_vm8, %v2609_v45, %v13712_v59  ;;  %v2611_v15 = vrot.slane %v13712_v59, 4  ;;  %v10844_v30 = vsel %vm1381_vm8, %v10275_v34, %v2723_v40  ;;  %v13716_v59 = vld [vmem:[#allocation151_spill] sm:$0xff]  ;;  %v13717_v34 = vld [vmem:[#allocation157_spill] sm:$0xff] }
 0x345   : > { %13711 = vst [vmem:[#allocation75_spill] sm:$0xff] %v10837_v57  ;;  %v6285_v9 = vpack.i.bf16 %v2722_v2, %v2610_v60  ;;  %v6290_v10 = vpack.i.bf16 %v2828_v12, %v2819_v31  ;;  %v2879_v51 = vsel %vm1381_vm8, %v2878_v4, %v10806_v19  ;;  %v13715_v38 = vrot.slane %v13714_v41, 4  ;;  %v13724_v4 = vld [vmem:[#allocation54_spill] sm:$0xff]  ;;  %v13735_v57 = vld [vmem:[#allocation60_spill] sm:$0xff] }
 0x346   : > { %v10854_v43 = vsel %vm1381_vm8, %v13694_v18, %v2611_v15  ;;  %v10857_v45 = vperm.slane %v3079_v33, %v7063_v3  ;;  %v13718_v40 = vrot.slane %v13717_v34, 4  ;;  %v13719_v2 = vrot.slane %v13670_v28, 4 }
 0x347   : > { %v3391_v16 = vsel %vm1381_vm8, %v13715_v38, %v13713_v17  ;;  %v13720_v18 = vpack.i.bf16 %v10620_v42, %v10638_v6  ;;  %v10877_v12 = vperm.slane %v2903_v7, %v7674_v46  ;;  %v3126_v15 = vrot.slane %v10833_v61, 4  ;;  %v13726_v42 = vld [vmem:[#allocation106_spill] sm:$0xff]  ;;  %v13729_v7 = vld [vmem:[#allocation96_spill] sm:$0xff] }
 0x348   : > { %v3103_v60 = vsel %vm1381_vm8, %v13718_v40, %v13716_v59  ;;  %v10867_v31 = vsel %vm1381_vm8, %v13671_v49, %v13719_v2  ;;  %6286 = vrot.lane.b32.xlu2 %v6285_v9, %s6673_s21  ;;  %v10882_v28 = vperm.slane %v10697_v14, %v7674_v46  ;;  %v10885_v49 = vperm.slane %v2879_v51, %v7674_v46  ;;  %v13727_v6 = vld [vmem:[#allocation110_spill] sm:$0xff]  ;;  %v13730_v2 = vld [vmem:[#allocation101_spill] sm:$0xff] }
 0x349   : > { %6266 = vrot.lane.b32.xlu1 %v13720_v18, %s6673_s21  ;;  %13721 = vst [vmem:[#allocation80_spill] sm:$0xff] %v10877_v12  ;;  %v10889_v33 = vperm.slane %v13724_v4, %v7674_v46  ;;  %v13728_v9 = vrot.slane %v13727_v6, 4  ;;  %v13731_v18 = vrot.slane %v13730_v2, 4  ;;  %v10901_v14 = vperm.slane %v2991_v35, %v7674_v46  ;;  %v13734_v4 = vld [vmem:[#allocation134_spill] sm:$0xff] }
 0x34a   : > { %13722 = vst [vmem:[#allocation86_spill] sm:$0xff] %v10882_v28  ;;  %v10904_v51 = vperm.slane %v3103_v60, %v7674_v46  ;;  %v13736_v34 = vrot.slane %v13735_v57, 4  ;;  %v13737_v59 = vld [vmem:[#allocation38_spill] sm:$0xff]  ;;  %v3127_v35 = vsel %vm1381_vm8, %v3126_v15, %v10857_v45  ;;  %v13742_v60 = vrot.slane %v10603_v58, 4 }
 0x34b   : > { %13723 = vst [vmem:[#allocation137_spill] sm:$0xff] %v10885_v49  ;;  %v3799_v40 = vsel %vm1381_vm8, %v13728_v9, %v13726_v42  ;;  %v3911_v38 = vsel %vm1381_vm8, %v13731_v18, %v13729_v7  ;;  %6291 = vrot.lane.b32.xlu0 %v6290_v10, %s6673_s21  ;;  %v13738_v42 = vld [vmem:[#allocation40_spill] sm:$0xff]  ;;  %v10915_v7 = vperm.slane %v3015_v22, %v7674_v46  ;;  %v13744_v57 = vld [vmem:[#allocation66_spill] sm:$0xff]  ;;  %v13746_v22 = vrot.slane %v13713_v17, 4 }
 0x34c   : > { %13725 = vst [vmem:[#allocation152_spill] sm:$0xff] %v10889_v33  ;;  %v3551_v6 = vsel %vm1381_vm8, %v13736_v34, %v13734_v4  ;;  %v13739_v9 = vrot.slane %v13738_v42, 4  ;;  %v10920_v10 = vperm.slane %v3215_v39, %v7674_v46  ;;  %v4199_v18 = vsel %vm1381_vm8, %v13742_v60, %v10617_v50  ;;  %v13743_v34 = vld [vmem:[#allocation148_spill] sm:$0xff] }
 0x34d   : > { %13732 = vst [vmem:[#allocation155_spill] sm:$0xff] %v10901_v14  ;;  %v13745_v4 = vrot.slane %v13744_v57, 4  ;;  %v10935_v15 = vsel %vm1381_vm8, %v13714_v41, %v13746_v22  ;;  %v13747_v39 = vrot.slane %v13737_v59, 4  ;;  %v10944_v60 = vperm.slane %v3239_v36, %v7674_v46  ;;  %v13752_v22 = vld [vmem:[#allocation20_spill] sm:$0xff] }
 0x34e   : > { %13733 = vst [vmem:[#allocation162_spill] sm:$0xff] %v10904_v51  ;;  %v3403_v2 = vsel %vm1381_vm8, %v13739_v9, %v13737_v59  ;;  %v3397_v9 = vperm.slane %v3391_v16, %v7063_v3  ;;  %v10947_v57 = vperm.slane %v3551_v6, %v7674_v46  ;;  %v3712_v16 = vrot.slane %v10889_v33, 4  ;;  %v13754_v33 = vld [vmem:[#allocation16_spill] sm:$0xff] }
 0x34f   : > { %13740 = vst [vmem:[#allocation35_spill] sm:$0xff] %v10915_v7  ;;  %v3575_v62 = vsel %vm1381_vm8, %v13745_v4, %v13743_v34  ;;  %v10941_v58 = vsel %vm1381_vm8, %v13738_v42, %v13747_v39  ;;  %v3409_v17 = vperm.slane %v3403_v2, %v7063_v3  ;;  %v2928_v4 = vrot.slane %v10885_v49, 4 }
 0x350   : > { %13741 = vst [vmem:[#allocation11_spill] sm:$0xff] %v10920_v10  ;;  %v3040_v41 = vrot.slane %v10901_v14, 4  ;;  %v10954_v59 = vperm.slane %v3127_v35, %v7674_v46  ;;  %v3152_v42 = vrot.slane %v10904_v51, 4  ;;  %v3264_v34 = vrot.slane %v10920_v10, 4  ;;  %v13832_v14 = vld [vmem:[#allocation103_spill] sm:$0xff]  ;;  %v13834_v51 = vld [vmem:[#allocation104_spill] sm:$0xff] }
 0x351   : > { %13748 = vst [vmem:[#allocation169_spill] sm:$0xff] %v10944_v60  ;;  %v10959_v36 = vperm.slane %v3575_v62, %v7674_v46  ;;  %v2820_v6 = vrot.slane %v10787_v63, 4  ;;  %v13753_v39 = vrot.slane %v13752_v22, 4  ;;  %v13755_v35 = vpack.i.bf16 %v10632_v47, %v10629_v29  ;;  %v13758_v22 = vld [vmem:[#allocation132_spill] sm:$0xff] }
 0x352   : > { %13749 = vst [vmem:[#allocation170_spill] sm:$0xff] %v10947_v57  ;;  %v13756_v49 = vpack.i.bf16 %v10663_v23, %v10652_v27  ;;  %v10978_v63 = vsel %vm1381_vm8, %v10877_v12, %v2928_v4  ;;  %v10982_v62 = vsel %vm1381_vm8, %v10915_v7, %v3040_v41  ;;  %v2880_v29 = vrot.slane %v10806_v19, 4  ;;  %v13761_v19 = vld [vmem:[#allocation43_spill] sm:$0xff] }
 0x353   : > { %13750 = vst [vmem:[#allocation39_spill] sm:$0xff] %v10954_v59  ;;  %v10966_v2 = vsel %vm1381_vm8, %v13754_v33, %v13753_v39  ;;  %6301 = vrot.lane.b32.xlu2 %v13755_v35, %s6674_s23  ;;  %v13757_v33 = vld [vmem:[#allocation167_spill] sm:$0xff]  ;;  %v13759_v39 = vrot.slane %v13758_v22, 4  ;;  %v10991_v47 = vsel %vm1381_vm8, %v10944_v60, %v3264_v34  ;;  %v3600_v27 = vrot.slane %v10947_v57, 4 }
 0x354   : > { %13751 = vst [vmem:[#allocation175_spill] sm:$0xff] %v10959_v36  ;;  %6281 = vrot.lane.b32.xlu1 %v13756_v49, %s6673_s21  ;;  %v10996_v23 = vsel %vm1381_vm8, %v10882_v28, %v3712_v16  ;;  %v3438_v49 = vrot.slane %v3409_v17, 4  ;;  %v13760_v4 = vpack.i.bf16 %v10656_v5, %v10667_v25  ;;  %v11004_v41 = vsel %vm1381_vm8, %v10954_v59, %v3152_v42  ;;  %v13774_v42 = vld [vmem:[#allocation122_spill] sm:$0xff]  ;;  %v13838_v59 = vld [vmem:[#allocation99_spill] sm:$0xff]  ;;  %v13845_v28 = vld [vmem:[#allocation25_spill] sm:$0xff] }
 0x355   : > { %v3327_v10 = vsel %vm1381_vm8, %v13759_v39, %v13757_v33  ;;  %v11008_v34 = vperm.slane %v13761_v19, %v7674_v46  ;;  %v13763_v35 = vrot.slane %v13681_v8, 4  ;;  %v13764_v39 = vrot.slane %v13687_v48, 4 }
 0x356   : > { %6306 = vrot.lane.b32.xlu0 %v13760_v4, %s6674_s23  ;;  %v11020_v5 = vsel %vm1381_vm8, %v10959_v36, %v3600_v27  ;;  %v11024_v25 = vsel %vm1381_vm8, %v10710_v21, %v2820_v6  ;;  %v11029_v8 = vsel %vm1381_vm8, %v10710_v21, %v10771_v0  ;;  %v6330_v48 = vpack.i.bf16 %v10982_v62, %v10978_v63 }
 0x357   : > { %13762 = vst [vmem:[#allocation71_spill] sm:$0xff] %v11008_v34  ;;  %v2905_v16 = vsel %vm1381_vm8, %v13682_v26, %v13763_v35  ;;  %v2993_v57 = vsel %vm1381_vm8, %v13688_v13, %v13764_v39  ;;  %v3439_v26 = vsel %vm1381_vm8, %v3438_v49, %v3397_v9  ;;  %v6335_v13 = vpack.i.bf16 %v10991_v47, %v11004_v41  ;;  %v13768_v49 = vld [vmem:[#allocation125_spill] sm:$0xff]  ;;  %v13769_v35 = vld [vmem:[#allocation131_spill] sm:$0xff] }
 0x358   : > { %v3440_v27 = vrot.slane %v3397_v9, 4  ;;  %v11039_v6 = vperm.slane %v3799_v40, %v7674_v46  ;;  %v11042_v4 = vperm.slane %v3911_v38, %v7674_v46  ;;  %v11045_v19 = vperm.slane %v4199_v18, %v7674_v46  ;;  %v13771_v9 = vld [vmem:[#allocation53_spill] sm:$0xff]  ;;  %v13773_v38 = vld [vmem:[#allocation112_spill] sm:$0xff] }
 0x359   : > { %v13770_v39 = vrot.slane %v13769_v35, 4  ;;  %v3824_v47 = vrot.slane %v11008_v34, 4  ;;  %v3936_v41 = vrot.slane %v13771_v9, 4  ;;  %v11056_v40 = vperm.slane %v3439_v26, %v7674_v46 }
 0x35a   : > { %13765 = vst [vmem:[#allocation63_spill] sm:$0xff] %v11039_v6  ;;  %v13775_v36 = vrot.slane %v13774_v42, 4  ;;  %v2881_v12 = vsel %vm1381_vm8, %v10781_v20, %v2880_v29  ;;  %v13777_v62 = vrot.slane %v13757_v33, 4  ;;  %v13778_v26 = vpack.i.bf16 %v10688_v54, %v10676_v53  ;;  %v13785_v42 = vld [vmem:[#allocation85_spill] sm:$0xff] }
 0x35b   : > { %13766 = vst [vmem:[#allocation49_spill] sm:$0xff] %v11042_v4  ;;  %v3463_v63 = vsel %vm1381_vm8, %v13770_v39, %v13768_v49  ;;  %v11065_v39 = vperm.slane %v2905_v16, %v7674_v46  ;;  %v11080_v20 = vperm.slane %v3327_v10, %v7674_v46  ;;  %v3441_v33 = vsel %vm1381_vm8, %v3409_v17, %v3440_v27 }
 0x35c   : > { %13767 = vst [vmem:[#allocation126_spill] sm:$0xff] %v11045_v19  ;;  %v3351_v18 = vsel %vm1381_vm8, %v13775_v36, %v13773_v38  ;;  %v3329_v34 = vsel %vm1381_vm8, %v13758_v22, %v13777_v62  ;;  %6316 = vrot.lane.b32.xlu2 %v13778_v26, %s6674_s23  ;;  %v13779_v36 = vpack.i.bf16 %v10734_v24, %v10730_v56  ;;  %v3128_v22 = vrot.slane %v10857_v45, 4  ;;  %v13782_v56 = vld [vmem:[#allocation24_spill] sm:$0xff] }
 0x35d   : > { %13772 = vst [vmem:[#allocation55_spill] sm:$0xff] %v11056_v40  ;;  %v11083_v29 = vperm.slane %v3463_v63, %v7674_v46  ;;  %v11089_v16 = vsel %vm1381_vm8, %v11042_v4, %v3936_v41  ;;  %v4223_v53 = vrot.slane %v11045_v19, 4  ;;  %v11094_v54 = vperm.slane %v10867_v31, %v7674_v46  ;;  %v13786_v63 = vld [vmem:[#allocation47_spill] sm:$0xff]  ;;  %v13787_v62 = vld [vmem:[#allocation172_spill] sm:$0xff] }
 0x35e   : > { %13776 = vst [vmem:[#allocation135_spill] sm:$0xff] %v11065_v39  ;;  %6296 = vrot.lane.b32.xlu1 %v13779_v36, %s6674_s23  ;;  %v11098_v24 = vperm.slane %v13782_v56, %v7674_v46  ;;  %v13783_v10 = vpack.i.bf16 %v10844_v30, %v10854_v43  ;;  %v11105_v45 = vperm.slane %v3351_v18, %v7674_v46  ;;  %v3488_v17 = vrot.slane %v11056_v40, 4  ;;  %v13815_v4 = vld [vmem:[#allocation128_spill] sm:$0xff] }
 0x35f   : > { %13780 = vst [vmem:[#allocation102_spill] sm:$0xff] %v11080_v20  ;;  %v3042_v27 = vrot.slane %v13785_v42, 4  ;;  %v13788_v31 = vrot.slane %v13787_v62, 4  ;;  %v11117_v38 = vsel %vm1381_vm8, %v11039_v6, %v3824_v47  ;;  %v11120_v30 = vperm.slane %v2881_v12, %v7674_v46  ;;  %v13807_v6 = vld [vmem:[#allocation30_spill] sm:$0xff]  ;;  %v13841_v42 = vld [vmem:[#allocation116_spill] sm:$0xff] }
 0x360   : > { %13781 = vst [vmem:[#allocation78_spill] sm:$0xff] %v11083_v29  ;;  %6321 = vrot.lane.b32.xlu0 %v13783_v10, %s6674_s23  ;;  %v2930_v43 = vrot.slane %v11065_v39, 4  ;;  %v11124_v18 = vperm.slane %v3441_v33, %v7674_v46  ;;  %v3376_v26 = vrot.slane %v11080_v20, 4  ;;  %v11129_v36 = vsel %vm1381_vm8, %v11083_v29, %v3488_v17  ;;  %v13792_v10 = vld [vmem:[#allocation17_spill] sm:$0xff] }
 0x361   : > { %13784 = vst [vmem:[#allocation62_spill] sm:$0xff] %v11105_v45  ;;  %v11113_v41 = vsel %vm1381_vm8, %v13788_v31, %v13786_v63  ;;  %v11132_v56 = vperm.slane %v2993_v57, %v7674_v46  ;;  %v3129_v47 = vsel %vm1381_vm8, %v10833_v61, %v3128_v22  ;;  %v6350_v12 = vpack.i.bf16 %v11089_v16, %v11117_v38  ;;  %v13793_v61 = vld [vmem:[#allocation26_spill] sm:$0xff]  ;;  %v13839_v39 = vld [vmem:[#allocation117_spill] sm:$0xff] }
 0x362   : > { %13789 = vst [vmem:[#allocation158_spill] sm:$0xff] %v11120_v30  ;;  %v11140_v63 = vsel %vm1381_vm8, %v13792_v10, %v4223_v53  ;;  %v11146_v17 = vsel %vm1381_vm8, %v11105_v45, %v3376_v26  ;;  %v13794_v22 = vrot.slane %v10182_v1, 4  ;;  %v11160_v53 = vperm.slane %v10966_v2, %v7674_v46  ;;  %v13795_v26 = vld [vmem:[#allocation77_spill] sm:$0xff]  ;;  %v13831_v45 = vld [vmem:[#allocation18_spill] sm:$0xff] }
 0x363   : > { %13790 = vst [vmem:[#allocation29_spill] sm:$0xff] %v11124_v18  ;;  %v11150_v57 = vsel %vm1381_vm8, %v3042_v27, %v11132_v56  ;;  %v11166_v38 = vsel %vm1381_vm8, %v2930_v43, %v11120_v30  ;;  %v13796_v27 = vrot.slane %v10168_v52, 4  ;;  %v11175_v1 = vperm.slane %v3129_v47, %v7674_v46  ;;  %v13799_v43 = vld [vmem:[#allocation41_spill] sm:$0xff] }
 0x364   : > { %13791 = vst [vmem:[#allocation156_spill] sm:$0xff] %v11132_v56  ;;  %v11156_v16 = vsel %vm1381_vm8, %v13794_v22, %v13793_v61  ;;  %6331 = vrot.lane.b32.xlu2 %v6330_v48, %s6668_s8  ;;  %v13798_v2 = vpack.i.bf16 %v10814_v44, %v10810_v55  ;;  %v11182_v61 = vpop.permute.xlu2 %6151  ;;  %v11186_v22 = vperm.slane %v13799_v43, %v7674_v46  ;;  %v13801_v52 = vunpack.i.l.bf16 %v10346_v32  ;;  %v13804_v48 = vld [vmem:[#allocation182_spill] sm:$0xff]  ;;  %v13843_v56 = vld [vmem:[#allocation91_spill] sm:$0xff] }
 0x365   : > { %v11172_v62 = vsel %vm1381_vm8, %v13796_v27, %v13795_v26  ;;  %13797 = vst [vmem:[#allocation27_spill] sm:$0xff] %v11175_v1  ;;  %v13802_v26 = vld [vmem:[#allocation183_spill] sm:$0xff]  ;;  %v13803_v47 = vunpack.i.h.bf16 %v10346_v32  ;;  %v13805_v55 = vld [vmem:[#allocation90_spill] sm:$0xff]  ;;  %v13806_v43 = vrot.slane %v13768_v49, 4  ;;  %v13808_v32 = vld [vmem:[#allocation21_spill] sm:$0xff]  ;;  %v13814_v9 = vrot.slane %v10617_v50, 4 }
 0x366   : > { %6311 = vrot.lane.b32.xlu1 %v13798_v2, %s6674_s23  ;;  %13800 = vst [vmem:[#allocation173_spill] sm:$0xff] %v11186_v22  ;;  %v11192_v27 = vsel %vm5005_vm12, %v13802_v26, %v13801_v52  ;;  %v4162_v44 = vrot.slane %v13805_v55, 4  ;;  %v11209_v52 = vperm.slane %v13807_v6, %v7674_v46  ;;  %v11213_v26 = vperm.slane %v13808_v32, %v7674_v46  ;;  %v13811_v2 = vld [vmem:[#allocation164_spill] sm:$0xff] }
 0x367   : > { %v11198_v33 = vsel %vm5005_vm12, %v13804_v48, %v13803_v47  ;;  %v3465_v31 = vsel %vm1381_vm8, %v13769_v35, %v13806_v43  ;;  %v11217_v47 = vperm.slane %v3329_v34, %v7674_v46  ;;  %v13810_v48 = vrot.slane %v13699_v37, 4  ;;  %v13813_v43 = vld [vmem:[#allocation163_spill] sm:$0xff] }
 0x368   : > { %6336 = vrot.lane.b32.xlu0 %v6335_v13, %s6668_s8  ;;  %v13812_v35 = vrot.slane %v13811_v2, 4  ;;  %v4201_v32 = vsel %vm1381_vm8, %v13815_v4, %v13814_v9  ;;  %v13816_v13 = vld [vmem:[#allocation141_spill] sm:$0xff]  ;;  %v4050_v34 = vrot.slane %v11209_v52, 4  ;;  %v11238_v37 = vsel %vm1381_vm8, %v4162_v44, %v11213_v26 }
 0x369   : > { %13809 = vst [vmem:[#allocation45_spill] sm:$0xff] %v11217_v47  ;;  %v3217_v49 = vsel %vm1381_vm8, %v13700_v11, %v13810_v48  ;;  %v11233_v19 = vperm.slane %v13816_v13, %v7674_v46  ;;  %v3378_v2 = vrot.slane %v11186_v22, 4  ;;  %v11245_v50 = vperm.slane %v3465_v31, %v7674_v46  ;;  %v13819_v4 = vld [vmem:[#allocation61_spill] sm:$0xff]  ;;  %v13824_v13 = vld [vmem:[#allocation19_spill] sm:$0xff]  ;;  %v13828_v48 = vld [vmem:[#allocation60_spill] sm:$0xff] }
 0x36a   : > { %v3241_v6 = vsel %vm1381_vm8, %v13813_v43, %v13812_v35  ;;  %v11249_v9 = vperm.slane %v13819_v4, %v7674_v46  ;;  %v13821_v35 = vld [vmem:[#allocation142_spill] sm:$0xff]  ;;  %v11266_v40 = vperm.slane %v13824_v13, %v7674_v46  ;;  %v4129_v13 = vperm.slane %v13831_v45, %v7674_v46  ;;  %v13850_v22 = vld [vmem:[#allocation127_spill] sm:$0xff] }
 0x36b   : > { %v11241_v11 = vperm.slane %v3241_v6, %v7674_v46  ;;  %13818 = vst [vmem:[#allocation165_spill] sm:$0xff] %v11245_v50  ;;  %v11254_v43 = vperm.slane %v13821_v35, %v7674_v46  ;;  %v11258_v44 = vsel %vm1381_vm8, %v4050_v34, %v11233_v19  ;;  %v11261_v6 = vperm.slane %v3217_v49, %v7674_v46  ;;  %v13826_v4 = vld [vmem:[#allocation134_spill] sm:$0xff] }
 0x36c   : > { %13820 = vst [vmem:[#allocation153_spill] sm:$0xff] %v11249_v9  ;;  %v13827_v29 = vrot.slane %v13826_v4, 4  ;;  %v13829_v35 = vld [vmem:[#allocation138_spill] sm:$0xff]  ;;  %v4166_v7 = vrot.slane %v13832_v14, 4  ;;  %v13833_v4 = vld [vmem:[#allocation133_spill] sm:$0xff]  ;;  %v13840_v30 = vrot.slane %v13839_v39, 4 }
 0x36d   : > { %13817 = vst [vmem:[#allocation168_spill] sm:$0xff] %v11241_v11  ;;  %v3266_v31 = vrot.slane %v11241_v11, 4  ;;  %v11274_v60 = vperm.slane %v13829_v35, %v7674_v46  ;;  %v11299_v35 = vperm.slane %v4201_v32, %v7674_v46  ;;  %v13837_v45 = vld [vmem:[#allocation70_spill] sm:$0xff]  ;;  %v4168_v32 = vrot.slane %v4129_v13, 4 }
 0x36e   : > { %13822 = vst [vmem:[#allocation93_spill] sm:$0xff] %v11254_v43  ;;  %v3553_v20 = vsel %vm1381_vm8, %v13828_v48, %v13827_v29  ;;  %v11288_v29 = vsel %vm1381_vm8, %v13834_v51, %v13833_v4  ;;  %v13835_v48 = vpack.i.bf16 %v10996_v23, %v11020_v5  ;;  %v11303_v34 = vperm.slane %v13837_v45, %v7674_v46 }
 0x36f   : > { %13823 = vst [vmem:[#allocation113_spill] sm:$0xff] %v11261_v6  ;;  %v11280_v49 = vsel %vm1381_vm8, %v3266_v31, %v11261_v6  ;;  %v13836_v31 = vpack.i.bf16 %v11029_v8, %v11024_v25  ;;  %v3826_v51 = vrot.slane %v13838_v59, 4  ;;  %v3889_v23 = vsel %vm1381_vm8, %v13841_v42, %v13840_v30  ;;  %v13842_v8 = vld [vmem:[#allocation13_spill] sm:$0xff] }
 0x370   : > { %13825 = vst [vmem:[#allocation107_spill] sm:$0xff] %v11266_v40  ;;  %6346 = vrot.lane.b32.xlu2 %v13835_v48, %s6668_s8  ;;  %v11311_v5 = vsel %vm1381_vm8, %v4166_v7, %v4129_v13  ;;  %v3897_v25 = vperm.slane %v3889_v23, %v7674_v46  ;;  %v3938_v48 = vrot.slane %v13842_v8, 4  ;;  %6351 = vrot.lane.b32.xlu0 %v6350_v12, %s6668_s8  ;;  %v3490_v45 = vrot.slane %v11245_v50, 4 }
 0x371   : > { %13830 = vst [vmem:[#allocation124_spill] sm:$0xff] %v11274_v60  ;;  %6326 = vrot.lane.b32.xlu1 %v13836_v31, %s6674_s23  ;;  %v11316_v31 = vpop.permute.xlu2 %6181  ;;  %v11323_v42 = vsel %vm1381_vm8, %v3826_v51, %v11303_v34  ;;  %v4229_v7 = vrot.slane %v13833_v4, 4  ;;  %v3379_v30 = vsel %vm1381_vm8, %v3378_v2, %v11217_v47  ;;  %v4048_v13 = vrot.slane %v11249_v9, 4  ;;  %v13846_v2 = vld [vmem:[#allocation100_spill] sm:$0xff]  ;;  %v13852_v4 = vld [vmem:[#allocation51_spill] sm:$0xff] }
 0x372   : > { %v11330_v12 = vsel %vm1381_vm8, %v3938_v48, %v3897_v25  ;;  %v11334_v23 = vsel %vm1381_vm8, %v13832_v14, %v4168_v32  ;;  %v13844_v39 = vrot.slane %v13843_v56, 4  ;;  %v4226_v50 = vrot.slane %v11299_v35, 4  ;;  %v13848_v56 = vld [vmem:[#allocation88_spill] sm:$0xff] }
 0x373   : > { %v11345_v9 = vsel %vm1381_vm8, %v13846_v2, %v4229_v7  ;;  %v11349_v48 = vperm.slane %v11113_v41, %v7674_v46  ;;  %v13849_v32 = vunpack.i.l.bf16 %v13848_v56  ;;  %v3491_v7 = vsel %vm1381_vm8, %v3490_v45, %v11124_v18  ;;  %v13860_v18 = vld [vmem:[#allocation157_spill] sm:$0xff] }
 0x374   : > { %v3665_v51 = vsel %vm1381_vm8, %v13845_v28, %v13844_v39  ;;  %v13851_v39 = vunpack.i.h.bf16 %v13848_v56  ;;  %v4160_v41 = vrot.slane %v11266_v40, 4  ;;  %v11369_v2 = vperm.slane %v3553_v20, %v7674_v46 }
 0x375   : > { %13847 = vst [vmem:[#allocation176_spill] sm:$0xff] %v11349_v48  ;;  %v11357_v28 = vsel %vm5020_vm13, %v13850_v22, %v13849_v32  ;;  %v3602_v14 = vrot.slane %v11274_v60, 4  ;;  %v4049_v22 = vsel %vm1381_vm8, %v11254_v43, %v4048_v13  ;;  %v11375_v32 = vperm.slane %v3665_v51, %v7674_v46  ;;  %v13856_v13 = vld [vmem:[#allocation181_spill] sm:$0xff]  ;;  %v13857_v43 = vld [vmem:[#allocation144_spill] sm:$0xff]  ;;  %v13858_v60 = vld [vmem:[#allocation151_spill] sm:$0xff] }
 0x376   : > { %v11363_v11 = vsel %vm5020_vm13, %v13852_v4, %v13851_v39  ;;  %13853 = vst [vmem:[#allocation171_spill] sm:$0xff] %v11369_v2  ;;  %v3940_v56 = vrot.slane %v3897_v25, 4  ;;  %v4052_v4 = vrot.slane %v11233_v19, 4  ;;  %v13854_v45 = vpack.i.bf16 %v11129_v36, %v11146_v17  ;;  %v13855_v39 = vld [vmem:[#allocation72_spill] sm:$0xff] }
 0x377   : > { %v4164_v20 = vrot.slane %v11213_v26, 4  ;;  %v11387_v40 = vsel %vm1381_vm8, %v13855_v39, %v4226_v50  ;;  %v4172_v51 = vrot.slane %v13856_v13, 4  ;;  %v4232_v25 = vrot.slane %v13857_v43, 4 }
 0x378   : > { %4663 = vrot.lane.b32.xlu2 %v11140_v63, %s6668_s8  ;;  %v4161_v19 = vsel %vm1381_vm8, %v11349_v48, %v4160_v41  ;;  %v13859_v63 = vrot.slane %v13858_v60, 4  ;;  %v11399_v36 = vsel %vm1381_vm8, %v13842_v8, %v3940_v56  ;;  %v11403_v17 = vsel %vm1381_vm8, %v11209_v52, %v4052_v4  ;;  %v13862_v41 = vld [vmem:[#allocation121_spill] sm:$0xff]  ;;  %v13869_v60 = vld [vmem:[#allocation187_spill] sm:$0xff] }
 0x379   : > { %6341 = vrot.lane.b32.xlu1 %v13854_v45, %s6668_s8  ;;  %v13861_v26 = vpack.i.bf16 %v11150_v57, %v11166_v38  ;;  %v6197_v50 = vpop.permute.xlu2 %6196  ;;  %v11417_v8 = vsel %vm1381_vm8, %v13862_v41, %v4172_v51  ;;  %v11421_v52 = vsel %vm1381_vm8, %v10710_v21, %v4232_v25  ;;  %v6157_v45 = vpop.permute.xlu0 %6156  ;;  %v6370_v39 = vpack.i.bf16 %v3491_v7, %v3379_v30  ;;  %v13864_v21 = vld [vmem:[#allocation188_spill] sm:$0xff] }
 0x37a   : > { %v3105_v47 = vsel %vm1381_vm8, %v13860_v18, %v13859_v63  ;;  %v11413_v18 = vsel %vm1381_vm8, %v13805_v55, %v4164_v20  ;;  %v6199_v56 = vunpack.i.h.bf16 %v6197_v50  ;;  %v6198_v4 = vunpack.i.l.bf16 %v6197_v50  ;;  %v13865_v63 = vld [vmem:[#allocation75_spill] sm:$0xff]  ;;  %v13867_v50 = vld [vmem:[#allocation57_spill] sm:$0xff] }
 0x37b   : > { %6361 = vrot.lane.b32.xlu0 %v13861_v26, %s6669_s9  ;;  %v3603_v55 = vsel %vm1381_vm8, %v3602_v14, %v11369_v2  ;;  %v13863_v20 = vrot.slane %v11094_v54, 4  ;;  %v2822_v25 = vsel %vm1381_vm8, %v13864_v21, %v13792_v10  ;;  %v6159_v30 = vunpack.i.h.bf16 %v6157_v45 }
 0x37c   : > { %v11438_v26 = vsel %vm5035_vm14, %v13865_v63, %v6199_v56  ;;  %v11442_v38 = vsel %vm5035_vm14, %v13867_v50, %v6198_v4  ;;  %v6158_v7 = vunpack.i.l.bf16 %v6157_v45  ;;  %v6154_v14 = vunpack.i.h.bf16 %v11182_v61  ;;  %v13871_v4 = vld [vmem:[#allocation161_spill] sm:$0xff]  ;;  %v13872_v63 = vld [vmem:[#allocation42_spill] sm:$0xff] }
 0x37d   : > { %v3715_v51 = vsel %vm1381_vm8, %v13863_v20, %v11375_v32  ;;  %13866 = vst [vmem:[#allocation79_spill] sm:$0xff] %v11438_v26  ;;  %v6355_v57 = vpack.i.bf16 %v4161_v19, %v4049_v22  ;;  %v2807_v20 = vsel %vm1381_vm8, %v13864_v21, %v13869_v60  ;;  %v11449_v48 = vperm.slane %v3105_v47, %v7674_v46  ;;  %v13873_v47 = vld [vmem:[#allocation14_spill] sm:$0xff]  ;;  %v13878_v26 = vld [vmem:[#allocation23_spill] sm:$0xff] }
 0x37e   : > { %13868 = vst [vmem:[#allocation177_spill] sm:$0xff] %v11442_v38  ;;  %v11453_v10 = vsel %vm4990_vm11, %v11156_v16, %v6159_v30  ;;  %v11457_v56 = vsel %vm4990_vm11, %v11172_v62, %v6158_v7  ;;  %v3929_v45 = vperm.slane %v13871_v4, %v7674_v46  ;;  %v3944_v22 = vrot.slane %v13872_v63, 4  ;;  %v6167_v62 = vpop.permute.xlu1 %6166  ;;  %v13874_v7 = vld [vmem:[#allocation120_spill] sm:$0xff] }
 0x37f   : > { %13870 = vst [vmem:[#allocation111_spill] sm:$0xff] %v11449_v48  ;;  %v6375_v19 = vpack.i.bf16 %v3715_v51, %v3603_v55  ;;  %v4056_v60 = vrot.slane %v13873_v47, 4  ;;  %v4170_v50 = vrot.slane %v13862_v41, 4  ;;  %v11469_v16 = vsel %vm1381_vm8, %v10771_v0, %v13857_v43 }
 0x380   : > { %6371 = vrot.lane.b32.xlu2 %v6370_v39, %s6669_s9  ;;  %v11472_v30 = vsel %vm1381_vm8, %v3929_v45, %v3944_v22  ;;  %v3909_v4 = vperm.slane %v13874_v7, %v7674_v46  ;;  %v13875_v39 = vld [vmem:[#allocation10_spill] sm:$0xff]  ;;  %v6169_v51 = vunpack.i.h.bf16 %v6167_v62  ;;  %v6168_v41 = vunpack.i.l.bf16 %v6167_v62 }
 0x381   : > { %6356 = vrot.lane.b32.xlu1 %v6355_v57, %s6668_s8  ;;  %v3946_v21 = vrot.slane %v13875_v39, 4  ;;  %v13876_v57 = vld [vmem:[#allocation83_spill] sm:$0xff]  ;;  %v11479_v38 = vpop.permute.xlu2 %6211  ;;  %v11483_v0 = vsel %vm1381_vm8, %v13878_v26, %v4056_v60  ;;  %v11487_v43 = vsel %vm1381_vm8, %v4170_v50, %v13856_v13  ;;  %v6153_v22 = vunpack.i.l.bf16 %v11182_v61  ;;  %v6162_v6 = vpop.permute.xlu0 %6161  ;;  %v13880_v61 = vld [vmem:[#allocation33_spill] sm:$0xff]  ;;  %s5255_s8 = scalar_lea.hbm %s12480_s3, %s5371_s5 }
 0x382   : > { %v4058_v55 = vrot.slane %v13876_v57, 4  ;;  %13877 = vst [vmem:[#allocation115_spill] sm:$0xff] %v11479_v38  ;;  %v13879_v7 = vrot.slane %v11175_v1, 4  ;;  %v5004_v60 = vsel %vm4990_vm11, %v2822_v25, %v6169_v51  ;;  %v5003_v38 = vsel %vm4990_vm11, %v2807_v20, %v6168_v41 }
 0x383   : > { %6376 = vrot.lane.b32.xlu0 %v6375_v19, %s6669_s9  ;;  %v11501_v13 = vsel %vm1381_vm8, %v3946_v21, %v3909_v4  ;;  %v6164_v1 = vunpack.i.h.bf16 %v6162_v6  ;;  %v5019_v19 = vsel %vm5005_vm12, %v5004_v60, %v6154_v14  ;;  %v3948_v20 = vrot.slane %v3909_v4, 4 }
 0x384   : > { %v3155_v2 = vsel %vm1381_vm8, %v13879_v7, %v11449_v48  ;;  %v11505_v50 = vsel %vm1381_vm8, %v4058_v55, %v13880_v61  ;;  %v6163_v7 = vunpack.i.l.bf16 %v6162_v6  ;;  %v5018_v48 = vsel %vm5005_vm12, %v5003_v38, %v6153_v22  ;;  %v13885_v22 = vld [vmem:[#allocation64_spill] sm:$0xff] }
 0x385   : > { %v6365_v62 = vpack.i.bf16 %v11280_v49, %v3155_v2  ;;  %v4060_v51 = vrot.slane %v13880_v61, 4  ;;  %v11515_v21 = vsel %vm5020_vm13, %v11198_v33, %v6164_v1  ;;  %v3722_v6 = vrot.slane %v11160_v53, 4 }
 0x386   : > { %v11519_v55 = vsel %vm5020_vm13, %v11192_v27, %v6163_v7  ;;  %v11524_v38 = vperm.slane %v10941_v58, %v7063_v3  ;;  %v13881_v49 = vpack.i.bf16 %v11238_v37, %v11258_v44  ;;  %v11533_v33 = vsel %vm1381_vm8, %v13875_v39, %v3948_v20  ;;  %v13882_v58 = vld [vmem:[#allocation184_spill] sm:$0xff]  ;;  %v13883_v44 = vld [vmem:[#allocation123_spill] sm:$0xff]  ;;  %v13884_v39 = vld [vmem:[#allocation166_spill] sm:$0xff] }
 0x387   : > { %v11537_v1 = vsel %vm1381_vm8, %v13876_v57, %v4060_v51  ;;  %v3942_v27 = vrot.slane %v3929_v45, 4  ;;  %v4054_v2 = vrot.slane %v13878_v26, 4  ;;  %v4225_v14 = vsel %vm1381_vm8, %v13882_v58, %v11299_v35  ;;  %v6172_v45 = vpop.permute.xlu1 %6171  ;;  %v13889_v37 = vld [vmem:[#allocation81_spill] sm:$0xff] }
 0x388   : > { %6386 = vrot.lane.b32.xlu2 %v13881_v49, %s6669_s9  ;;  %v11547_v4 = vperm.slane %v13883_v44, %v7674_v46  ;;  %v3830_v41 = vrot.slane %v13884_v39, 4  ;;  %v11567_v60 = vperm.slane %v10935_v15, %v7063_v3  ;;  %v6184_v61 = vunpack.i.h.bf16 %v11316_v31 }
 0x389   : > { %6366 = vrot.lane.b32.xlu1 %v6365_v62, %s6669_s9  ;;  %v11551_v57 = vpop.permute.xlu2 %6226  ;;  %v11555_v26 = vsel %vm1381_vm8, %v3942_v27, %v13872_v63  ;;  %v11559_v35 = vsel %vm1381_vm8, %v4054_v2, %v13873_v47  ;;  %v11563_v62 = vperm.slane %v13885_v22, %v7674_v46  ;;  %v6174_v7 = vunpack.i.h.bf16 %v6172_v45  ;;  %v6187_v49 = vpop.permute.xlu0 %6186  ;;  %v13887_v47 = vld [vmem:[#allocation143_spill] sm:$0xff] }
 0x38a   : > { %v6173_v20 = vunpack.i.l.bf16 %v6172_v45  ;;  %v3450_v51 = vrot.slane %v11524_v38, 4  ;;  %v6183_v63 = vunpack.i.l.bf16 %v11316_v31  ;;  %v13886_v27 = vrot.slane %v11098_v24, 4 }
 0x38b   : > { %4715 = vrot.lane.b32.xlu0 %v4225_v14, %s6669_s9  ;;  %v11582_v15 = vsel %vm1381_vm8, %v3830_v41, %v11563_v62  ;;  %v5017_v31 = vsel %vm5005_vm12, %v11453_v10, %v6174_v7  ;;  %v6189_v14 = vunpack.i.h.bf16 %v6187_v49  ;;  %v6188_v44 = vunpack.i.l.bf16 %v6187_v49  ;;  %v13894_v49 = vld [vmem:[#allocation149_spill] sm:$0xff] }
 0x38c   : > { %v11578_v2 = vsel %vm1381_vm8, %v13886_v27, %v11547_v4  ;;  %v5016_v58 = vsel %vm5005_vm12, %v11457_v56, %v6173_v20  ;;  %v11592_v22 = vsel %vm5020_vm13, %v5017_v31, %v6184_v61  ;;  %v13888_v41 = vrot.slane %v13887_v47, 4  ;;  %v13891_v20 = vld [vmem:[#allocation129_spill] sm:$0xff]  ;;  %v13897_v31 = vld [vmem:[#allocation147_spill] sm:$0xff] }
 0x38d   : > { %v11589_v45 = vsel %vm5020_vm13, %v5016_v58, %v6183_v63  ;;  %v11601_v56 = vsel %vm5020_vm13, %v5019_v19, %v6189_v14  ;;  %v11604_v10 = vsel %vm5020_vm13, %v5018_v48, %v6188_v44  ;;  %v3834_v61 = vrot.slane %v13891_v20, 4  ;;  %v13938_v27 = vld [vmem:[#allocation119_spill] sm:$0xff] }
 0x38e   : > { %v3677_v25 = vsel %vm1381_vm8, %v13889_v37, %v13888_v41  ;;  %13890 = vst [vmem:[#allocation109_spill] sm:$0xff] %v11604_v10  ;;  %v13892_v63 = vpack.i.bf16 %v11311_v5, %v11288_v29  ;;  %v13893_v37 = vpack.i.bf16 %v11330_v12, %v11323_v42  ;;  %v3716_v19 = vrot.slane %v11375_v32, 4  ;;  %v13895_v5 = vld [vmem:[#allocation154_spill] sm:$0xff] }
 0x38f   : > { %v11607_v7 = vperm.slane %v3677_v25, %v7674_v46  ;;  %v3828_v48 = vrot.slane %v11303_v34, 4  ;;  %v11626_v47 = vsel %vm1381_vm8, %v3834_v61, %v13894_v49  ;;  %v3451_v29 = vsel %vm1381_vm8, %v3450_v51, %v11567_v60  ;;  %v6177_v34 = vpop.permute.xlu1 %6176 }
 0x390   : > { %6396 = vrot.lane.b32.xlu2 %v13892_v63, %s6671_s11  ;;  %v3562_v58 = vrot.slane %v13895_v5, 4  ;;  %v13896_v42 = vpack.i.bf16 %v11334_v23, %v11345_v9  ;;  %v3481_v51 = vperm.slane %v13897_v31, %v7674_v46  ;;  %v6179_v14 = vunpack.i.h.bf16 %v6177_v34  ;;  %v13901_v31 = vld [vmem:[#allocation160_spill] sm:$0xff] }
 0x391   : > { %6381 = vrot.lane.b32.xlu1 %v13893_v37, %s6669_s9  ;;  %v11622_v25 = vsel %vm1381_vm8, %v3722_v6, %v11607_v7  ;;  %v11635_v12 = vpop.permute.xlu2 %6241  ;;  %v11641_v6 = vsel %vm1381_vm8, %v13838_v59, %v3828_v48  ;;  %v6178_v44 = vunpack.i.l.bf16 %v6177_v34  ;;  %v11647_v41 = vsel %vm1381_vm8, %v11094_v54, %v3716_v19  ;;  %v6202_v9 = vpop.permute.xlu0 %6201  ;;  %v13898_v37 = vld [vmem:[#allocation69_spill] sm:$0xff]  ;;  %v13899_v48 = vld [vmem:[#allocation130_spill] sm:$0xff]  ;;  %s5257_s9 = sshll.u32 %s204_s4, 4  ;;  %s5258_s9 = int_to_ptr.vmem [resolvable:$true] %s5257_s9 }
 0x392   : > { %v3457_v61 = vperm.slane %v3451_v29, %v7674_v46  ;;  %v3452_v63 = vrot.slane %v11567_v60, 4  ;;  %v11655_v59 = vsel %vm5020_vm13, %v13898_v37, %v6179_v14  ;;  %v6203_v34 = vunpack.i.l.bf16 %v6202_v9  ;;  %v13900_v54 = vld [vmem:[#allocation150_spill] sm:$0xff]  ;;  %v13902_v37 = vld [vmem:[#allocation140_spill] sm:$0xff] }
 0x393   : > { %6401 = vrot.lane.b32.xlu0 %v13896_v42, %s6672_s18  ;;  %v11659_v5 = vsel %vm5020_vm13, %v13899_v48, %v6178_v44  ;;  %v6204_v42 = vunpack.i.h.bf16 %v6202_v9  ;;  %v3563_v19 = vsel %vm1381_vm8, %v3562_v58, %v13900_v54  ;;  %v3593_v23 = vperm.slane %v13901_v31, %v7674_v46 }
 0x394   : > { %v11671_v60 = vsel %vm5035_vm14, %v11357_v28, %v6203_v34  ;;  %v3494_v14 = vrot.slane %v3481_v51, 4  ;;  %v3569_v44 = vperm.slane %v3563_v19, %v7674_v46  ;;  %v3362_v48 = vrot.slane %v13902_v37, 4  ;;  %v13905_v34 = vld [vmem:[#allocation146_spill] sm:$0xff] }
 0x395   : > { %v11667_v29 = vsel %vm5035_vm14, %v11363_v11, %v6204_v42  ;;  %v13903_v58 = vpack.i.bf16 %v11399_v36, %v11403_v17  ;;  %v13904_v9 = vpack.i.bf16 %v11413_v18, %v11387_v40  ;;  %v3606_v11 = vrot.slane %v3593_v23, 4  ;;  %v13906_v19 = vld [vmem:[#allocation74_spill] sm:$0xff] }
 0x396   : > { %v3720_v42 = vrot.slane %v11547_v4, 4  ;;  %v3832_v28 = vrot.slane %v11563_v62, 4  ;;  %v3476_v54 = vrot.slane %v13905_v34, 4  ;;  %v11688_v31 = vperm.slane %v13906_v19, %v7674_v46 }
 0x397   : > { %v3496_v32 = vrot.slane %v3457_v61, 4  ;;  %v3453_v36 = vsel %vm1381_vm8, %v11524_v38, %v3452_v63  ;;  %v13907_v40 = vpack.i.bf16 %v11417_v8, %v11421_v52  ;;  %v6192_v18 = vpop.permute.xlu1 %6191  ;;  %v11699_v4 = vsel %vm1381_vm8, %v3606_v11, %v3569_v44 }
 0x398   : > { %6411 = vrot.lane.b32.xlu2 %v13903_v58, %s6670_s10  ;;  %v11703_v62 = vsel %vm1381_vm8, %v13884_v39, %v3832_v28  ;;  %v3608_v58 = vrot.slane %v3569_v44, 4  ;;  %v6194_v19 = vunpack.i.h.bf16 %v6192_v18  ;;  %v6193_v38 = vunpack.i.l.bf16 %v6192_v18  ;;  %v13913_v39 = vld [vmem:[#allocation113_spill] sm:$0xff] }
 0x399   : > { %6391 = vrot.lane.b32.xlu1 %v13904_v9, %s6670_s10  ;;  %v11696_v17 = vpop.permute.xlu2 %6256  ;;  %v13908_v9 = vld [vmem:[#allocation32_spill] sm:$0xff]  ;;  %v11707_v63 = vsel %vm1381_vm8, %v3494_v14, %v3457_v61  ;;  %v11711_v8 = vsel %vm1381_vm8, %v11098_v24, %v3720_v42  ;;  %v6217_v52 = vpop.permute.xlu0 %6216  ;;  %v11718_v44 = vsel %vm1381_vm8, %v3481_v51, %v3496_v32  ;;  %v13911_v14 = vld [vmem:[#allocation189_spill] sm:$0xff]  ;;  %v3268_v11 = vrot.slane %v13913_v39, 4 }
 0x39a   : > { %v3092_v34 = vrot.slane %v13908_v9, 4  ;;  %v11721_v28 = vsel %vm1381_vm8, %v3593_v23, %v3608_v58  ;;  %v11729_v24 = vsel %vm5035_vm14, %v13911_v14, %v6193_v38  ;;  %v6219_v42 = vunpack.i.h.bf16 %v6217_v52  ;;  %v13914_v32 = vld [vmem:[#allocation45_spill] sm:$0xff]  ;;  %v13917_v38 = vld [vmem:[#allocation22_spill] sm:$0xff] }
 0x39b   : > { %6416 = vrot.lane.b32.xlu0 %v13907_v40, %s6674_s23  ;;  %v13909_v40 = vld [vmem:[#allocation190_spill] sm:$0xff]  ;;  %13912 = vst [vmem:[#allocation114_spill] sm:$0xff] %v11729_v24  ;;  %v6218_v18 = vunpack.i.l.bf16 %v6217_v52  ;;  %v3380_v51 = vrot.slane %v13914_v32, 4  ;;  %v3461_v23 = vperm.slane %v3453_v36, %v7674_v46  ;;  %v13918_v52 = vld [vmem:[#allocation28_spill] sm:$0xff]  ;;  %v13919_v39 = vpack.i.bf16 %v11472_v30, %v11483_v0  ;;  %v13923_v0 = vld [vmem:[#allocation145_spill] sm:$0xff] }
 0x39c   : > { %v11725_v61 = vsel %vm5035_vm14, %v13909_v40, %v6194_v19  ;;  %v11742_v19 = vsel %vm5035_vm14, %v11592_v22, %v6219_v42  ;;  %v3080_v40 = vrot.slane %v13917_v38, 4  ;;  %v3093_v14 = vsel %vm1381_vm8, %v13918_v52, %v3092_v34  ;;  %v13922_v22 = vld [vmem:[#allocation173_spill] sm:$0xff]  ;;  %v13925_v52 = vld [vmem:[#allocation31_spill] sm:$0xff]  ;;  %v13933_v30 = vld [vmem:[#allocation48_spill] sm:$0xff] }
 0x39d   : > { %13910 = vst [vmem:[#allocation97_spill] sm:$0xff] %v11725_v61  ;;  %v11738_v58 = vsel %vm5035_vm14, %v11589_v45, %v6218_v18  ;;  %v13920_v36 = vpack.i.bf16 %v11487_v43, %v11469_v16  ;;  %v13921_v45 = vld [vmem:[#allocation168_spill] sm:$0xff]  ;;  %v11761_v42 = vsel %vm1381_vm8, %v13922_v22, %v3380_v51  ;;  %v3724_v34 = vrot.slane %v11607_v7, 4  ;;  %v13924_v16 = vld [vmem:[#allocation95_spill] sm:$0xff]  ;;  %v13948_v61 = vld [vmem:[#allocation165_spill] sm:$0xff] }
 0x39e   : > { %13915 = vst [vmem:[#allocation98_spill] sm:$0xff] %v11738_v58  ;;  %v11757_v18 = vsel %vm1381_vm8, %v13921_v45, %v3268_v11  ;;  %v3836_v32 = vrot.slane %v13894_v49, 4  ;;  %v3477_v38 = vsel %vm1381_vm8, %v13923_v0, %v3476_v54  ;;  %v3597_v43 = vperm.slane %v13924_v16, %v7674_v46  ;;  %v13947_v24 = vld [vmem:[#allocation124_spill] sm:$0xff] }
 0x39f   : > { %13916 = vst [vmem:[#allocation178_spill] sm:$0xff] %v11742_v19  ;;  %v3081_v11 = vsel %vm1381_vm8, %v13925_v52, %v3080_v40  ;;  %v13926_v51 = vpack.i.bf16 %v11501_v13, %v11505_v50  ;;  %v6207_v49 = vpop.permute.xlu1 %6206  ;;  %v3485_v54 = vperm.slane %v3477_v38, %v7674_v46  ;;  %v3612_v45 = vrot.slane %v11688_v31, 4  ;;  %v13946_v19 = vld [vmem:[#allocation29_spill] sm:$0xff] }
 0x3a0   : > { %6426 = vrot.lane.b32.xlu2 %v13919_v39, %s6672_s18  ;;  %v11781_v39 = vsel %vm1381_vm8, %v13891_v20, %v3836_v32  ;;  %v6209_v22 = vunpack.i.h.bf16 %v6207_v49  ;;  %v6208_v0 = vunpack.i.l.bf16 %v6207_v49  ;;  %v11787_v40 = vsel %vm1381_vm8, %v11160_v53, %v3724_v34  ;;  %v13928_v34 = vld [vmem:[#allocation65_spill] sm:$0xff] }
 0x3a1   : > { %6406 = vrot.lane.b32.xlu1 %v13920_v36, %s6673_s21  ;;  %v11777_v7 = vpop.permute.xlu2 %6271  ;;  %v3500_v36 = vrot.slane %v3461_v23, 4  ;;  %v3101_v13 = vperm.slane %v3093_v14, %v7063_v3  ;;  %v11790_v50 = vpop.permute.xlu0 %6231  ;;  %v11795_v20 = vsel %vm1381_vm8, %v3597_v43, %v3612_v45  ;;  %v3089_v14 = vperm.slane %v3081_v11, %v7063_v3  ;;  %v13930_v45 = vld [vmem:[#allocation56_spill] sm:$0xff] }
 0x3a2   : > { %13927 = vst [vmem:[#allocation180_spill] sm:$0xff] %v11777_v7  ;;  %v11799_v32 = vsel %vm5035_vm14, %v11519_v55, %v6208_v0  ;;  %v11803_v38 = vsel %vm5035_vm14, %v11515_v21, %v6209_v22  ;;  %v3373_v16 = vperm.slane %v13930_v45, %v7674_v46  ;;  %v13931_v21 = vld [vmem:[#allocation108_spill] sm:$0xff]  ;;  %v3363_v11 = vsel %vm1381_vm8, %v3362_v48, %v13933_v30 }
 0x3a3   : > { %6431 = vrot.lane.b32.xlu0 %v13926_v51, %s6673_s21  ;;  %v11806_v53 = vsel %vm1381_vm8, %v3485_v54, %v3500_v36  ;;  %v13929_v51 = vld [vmem:[#allocation73_spill] sm:$0xff]  ;;  %v3233_v22 = vperm.slane %v13931_v21, %v7674_v46  ;;  %v13932_v36 = vld [vmem:[#allocation139_spill] sm:$0xff]  ;;  %v3138_v9 = vrot.slane %v3101_v13, 4  ;;  %v13935_v45 = vpack.i.bf16 %v11555_v26, %v11559_v35  ;;  %v13936_v21 = vld [vmem:[#allocation118_spill] sm:$0xff] }
 0x3a4   : > { %v11812_v49 = vperm.slane %v13929_v51, %v7063_v3  ;;  %v3345_v0 = vperm.slane %v13932_v36, %v7674_v46  ;;  %v13934_v51 = vpack.i.bf16 %v11533_v33, %v11537_v1  ;;  %v3257_v55 = vperm.slane %v13936_v21, %v7674_v46  ;;  %v13937_v48 = vld [vmem:[#allocation84_spill] sm:$0xff] }
 0x3a5   : > { %v3369_v36 = vperm.slane %v3363_v11, %v7674_v46  ;;  %v3498_v52 = vrot.slane %v3485_v54, 4  ;;  %v3610_v37 = vrot.slane %v3597_v43, 4  ;;  %v2989_v30 = vperm.slane %v13937_v48, %v7063_v3 }
 0x3a6   : > { %v3261_v7 = vperm.slane %v13938_v27, %v7674_v46  ;;  %v3139_v33 = vsel %vm1381_vm8, %v3138_v9, %v3089_v14  ;;  %v3140_v1 = vrot.slane %v3089_v14, 4  ;;  %v13939_v26 = vpack.i.bf16 %v11578_v2, %v11582_v15  ;;  %v13941_v27 = vld [vmem:[#allocation171_spill] sm:$0xff]  ;;  %v13942_v14 = vld [vmem:[#allocation105_spill] sm:$0xff]  ;;  %v13943_v15 = vld [vmem:[#allocation136_spill] sm:$0xff] }
 0x3a7   : > { %v3272_v54 = vrot.slane %v3233_v22, 4  ;;  %v3384_v43 = vrot.slane %v3345_v0, 4  ;;  %v11852_v11 = vsel %vm1381_vm8, %v3610_v37, %v11688_v31  ;;  %v3604_v21 = vrot.slane %v13941_v27, 4 }
 0x3a8   : > { %6441 = vrot.lane.b32.xlu2 %v13934_v51, %s6674_s23  ;;  %v11848_v51 = vpop.permute.xlu1 %6221  ;;  %v11856_v9 = vsel %vm1381_vm8, %v3498_v52, %v3461_v23  ;;  %v3237_v2 = vperm.slane %v13942_v14, %v7674_v46  ;;  %v3349_v48 = vperm.slane %v13943_v15, %v7674_v46  ;;  %v3274_v27 = vrot.slane %v3261_v7, 4  ;;  %v13945_v52 = vld [vmem:[#allocation89_spill] sm:$0xff] }
 0x3a9   : > { %6421 = vrot.lane.b32.xlu1 %v13935_v45, %s6671_s11  ;;  %v11846_v35 = vpop.permute.xlu2 %6286  ;;  %v3386_v45 = vrot.slane %v3373_v16, 4  ;;  %v11865_v58 = vsel %vm1381_vm8, %v3257_v55, %v3272_v54  ;;  %v11868_v31 = vsel %vm1381_vm8, %v3369_v36, %v3384_v43  ;;  %v3026_v23 = vrot.slane %v2989_v30, 4 }
 0x3aa   : > { %13940 = vst [vmem:[#allocation44_spill] sm:$0xff] %v11846_v35  ;;  %v3114_v35 = vrot.slane %v13945_v52, 4  ;;  %v3492_v14 = vrot.slane %v13946_v19, 4  ;;  %v3605_v15 = vsel %vm1381_vm8, %v13947_v24, %v3604_v21  ;;  %v11879_v54 = vsel %vm1381_vm8, %v3274_v27, %v3237_v2  ;;  %v13951_v19 = vld [vmem:[#allocation87_spill] sm:$0xff] }
 0x3ab   : > { %6446 = vrot.lane.b32.xlu0 %v13939_v26, %s6671_s11  ;;  %v11862_v26 = vpop.permute.xlu0 %6246  ;;  %v11882_v43 = vsel %vm1381_vm8, %v3386_v45, %v3349_v48  ;;  %v3141_v37 = vsel %vm1381_vm8, %v3101_v13, %v3140_v1  ;;  %v3276_v52 = vrot.slane %v3237_v2, 4  ;;  %v3145_v24 = vperm.slane %v3139_v33, %v7674_v46 }
 0x3ac   : > { %13944 = vst [vmem:[#allocation52_spill] sm:$0xff] %v11862_v26  ;;  %v6500_v26 = vpack.i.bf16 %v11865_v58, %v11868_v31  ;;  %v3493_v10 = vsel %vm1381_vm8, %v13948_v61, %v3492_v14  ;;  %v13949_v21 = vpack.i.bf16 %v11622_v25, %v11626_v47  ;;  %v13950_v45 = vpack.i.bf16 %v11647_v41, %v11641_v6  ;;  %v13967_v31 = vld [vmem:[#allocation152_spill] sm:$0xff] }
 0x3ad   : > { %v6460_v13 = vpack.i.bf16 %v3493_v10, %v3605_v15  ;;  %v3388_v1 = vrot.slane %v3349_v48, 4  ;;  %v3270_v27 = vrot.slane %v3257_v55, 4  ;;  %v3382_v61 = vrot.slane %v3369_v36, 4  ;;  %v13952_v55 = vld [vmem:[#allocation68_spill] sm:$0xff] }
 0x3ae   : > { %v3028_v14 = vrot.slane %v11812_v49, 4  ;;  %v11900_v2 = vsel %vm1381_vm8, %v3261_v7, %v3276_v52  ;;  %v3027_v33 = vsel %vm1381_vm8, %v3026_v23, %v11812_v49  ;;  %v3115_v25 = vsel %vm1381_vm8, %v3114_v35, %v13951_v19  ;;  %v13954_v52 = vld [vmem:[#allocation59_spill] sm:$0xff] }
 0x3af   : > { %v11912_v10 = vsel %vm1381_vm8, %v3373_v16, %v3388_v1  ;;  %v11915_v41 = vsel %vm1381_vm8, %v3270_v27, %v3233_v22  ;;  %v11918_v7 = vsel %vm1381_vm8, %v3382_v61, %v3345_v0  ;;  %v3033_v49 = vperm.slane %v3027_v33, %v7674_v46  ;;  %v13955_v1 = vld [vmem:[#allocation50_spill] sm:$0xff] }
 0x3b0   : > { %6456 = vrot.lane.b32.xlu2 %v13949_v21, %s6673_s21  ;;  %v11909_v6 = vpop.permute.xlu1 %6236  ;;  %v3009_v36 = vperm.slane %v13952_v55, %v7674_v46  ;;  %v3158_v35 = vrot.slane %v3145_v24, 4  ;;  %v3149_v48 = vperm.slane %v3141_v37, %v7674_v46  ;;  %v6515_v16 = vpack.i.bf16 %v11900_v2, %v11912_v10  ;;  %v13956_v33 = vld [vmem:[#allocation94_spill] sm:$0xff] }
 0x3b1   : > { %6436 = vrot.lane.b32.xlu1 %v13950_v45, %s6670_s10  ;;  %v11907_v47 = vpop.permute.xlu2 %6301  ;;  %v6495_v22 = vpack.i.bf16 %v11915_v41, %v11918_v7  ;;  %v3046_v15 = vrot.slane %v3033_v49, 4  ;;  %v3121_v0 = vperm.slane %v3115_v25, %v7674_v46  ;;  %v13953_v19 = vrot.slane %v13928_v34, 4 }
 0x3b2   : > { %v2877_v27 = vperm.slane %v13955_v1, %v7063_v3  ;;  %v3125_v25 = vperm.slane %v13956_v33, %v7674_v46  ;;  %v13957_v34 = vpack.i.bf16 %v11707_v63, %v11699_v4  ;;  %v13958_v10 = vpack.i.bf16 %v11711_v8, %v11703_v62  ;;  %v13960_v8 = vld [vmem:[#allocation46_spill] sm:$0xff] }
 0x3b3   : > { %6461 = vrot.lane.b32.xlu0 %v6460_v13, %s6670_s10  ;;  %v11924_v23 = vpop.permute.xlu0 %6261  ;;  %v3005_v21 = vsel %vm1381_vm8, %v13954_v52, %v13953_v19  ;;  %v3047_v45 = vsel %vm1381_vm8, %v3046_v15, %v3009_v36  ;;  %v3159_v37 = vsel %vm1381_vm8, %v3158_v35, %v3121_v0  ;;  %v3029_v13 = vsel %vm1381_vm8, %v2989_v30, %v3028_v14 }
 0x3b4   : > { %v6520_v61 = vpack.i.bf16 %v3047_v45, %v3159_v37  ;;  %v3037_v2 = vperm.slane %v3029_v13, %v7674_v46  ;;  %v3162_v30 = vrot.slane %v3149_v48, 4  ;;  %v13959_v41 = vpack.i.bf16 %v11718_v44, %v11721_v28 }
 0x3b5   : > { %v3013_v35 = vperm.slane %v3005_v21, %v7674_v46  ;;  %v2914_v63 = vrot.slane %v2877_v27, 4  ;;  %v2865_v19 = vperm.slane %v13960_v8, %v7063_v3  ;;  %v13961_v52 = vpack.i.bf16 %v11757_v18, %v11761_v42  ;;  %v13972_v8 = vld [vmem:[#allocation15_spill] sm:$0xff] }
 0x3b6   : > { %v3050_v14 = vrot.slane %v3037_v2, 4  ;;  %v11961_v4 = vsel %vm1381_vm8, %v3162_v30, %v3125_v25  ;;  %v13962_v21 = vpack.i.bf16 %v11787_v40, %v11781_v39  ;;  %v3048_v45 = vrot.slane %v3009_v36, 4 }
 0x3b7   : > { %v2915_v28 = vsel %vm1381_vm8, %v2914_v63, %v2865_v19  ;;  %v3160_v37 = vrot.slane %v3121_v0, 4  ;;  %v13963_v13 = vpack.i.bf16 %v11806_v53, %v11795_v20  ;;  %v2916_v40 = vrot.slane %v2865_v19, 4  ;;  %v13966_v0 = vld [vmem:[#allocation86_spill] sm:$0xff]  ;;  %v13971_v63 = vld [vmem:[#allocation9_spill] sm:$0xff] }
 0x3b8   : > { %6471 = vrot.lane.b32.xlu2 %v13957_v34, %s6671_s11  ;;  %v11957_v55 = vpop.permute.xlu1 %6251  ;;  %v3051_v62 = vsel %vm1381_vm8, %v3050_v14, %v3013_v35  ;;  %v11987_v34 = vsel %vm1381_vm8, %v3033_v49, %v3048_v45  ;;  %v13964_v20 = vpack.i.bf16 %v11856_v9, %v11852_v11  ;;  %v3052_v53 = vrot.slane %v3013_v35, 4  ;;  %v13968_v14 = vld [vmem:[#allocation8_spill] sm:$0xff] }
 0x3b9   : > { %6451 = vrot.lane.b32.xlu1 %v13958_v10, %s6672_s18  ;;  %v11955_v7 = vpop.permute.xlu2 %6316  ;;  %v6530_v44 = vpack.i.bf16 %v3051_v62, %v11961_v4  ;;  %v11990_v18 = vsel %vm1381_vm8, %v3145_v24, %v3160_v37  ;;  %v3164_v49 = vrot.slane %v3125_v25, 4  ;;  %v12005_v24 = vsel %vm1381_vm8, %v2877_v27, %v2916_v40  ;;  %v13970_v4 = vld [vmem:[#allocation12_spill] sm:$0xff] }
 0x3ba   : > { %v6525_v39 = vpack.i.bf16 %v11987_v34, %v11990_v18  ;;  %v13965_v36 = vpack.i.bf16 %v11879_v54, %v11882_v43  ;;  %v3710_v10 = vrot.slane %v13966_v0, 4  ;;  %v13973_v45 = vld [vmem:[#allocation156_spill] sm:$0xff]  ;;  %v6264_v34 = vunpack.i.h.bf16 %v11924_v23 }
 0x3bb   : > { %6476 = vrot.lane.b32.xlu0 %v13959_v41, %s6672_s18  ;;  %v11963_v15 = vpop.permute.xlu0 %6276  ;;  %v12020_v11 = vsel %vm1381_vm8, %v3149_v48, %v3164_v49  ;;  %v2844_v41 = vrot.slane %v13968_v14, 4  ;;  %v2832_v48 = vrot.slane %v13970_v4, 4  ;;  %v3044_v37 = vrot.slane %v13973_v45, 4 }
 0x3bc   : > { %v3711_v27 = vsel %vm1381_vm8, %v3710_v10, %v13967_v31  ;;  %v13977_v10 = vld [vmem:[#allocation158_spill] sm:$0xff]  ;;  %v6244_v31 = vunpack.i.h.bf16 %v11635_v12  ;;  %v6263_v18 = vunpack.i.l.bf16 %v11924_v23  ;;  %v13984_v23 = vld [vmem:[#allocation109_spill] sm:$0xff] }
 0x3bd   : > { %v2845_v62 = vsel %vm1381_vm8, %v13971_v63, %v2844_v41  ;;  %v2833_v19 = vsel %vm1381_vm8, %v13972_v8, %v2832_v48  ;;  %v13978_v48 = vld [vmem:[#allocation135_spill] sm:$0xff] }
 0x3c0   : > { %6486 = vrot.lane.b32.xlu2 %v13961_v52, %s6670_s10  ;;  %v11984_v33 = vpop.permute.xlu1 %6266 }
 0x3c1   : > { %6466 = vrot.lane.b32.xlu1 %v13962_v21, %s6674_s23  ;;  %v11982_v1 = vpop.permute.xlu2 %6331  ;;  %v2853_v21 = vperm.slane %v2845_v62, %v7063_v3  ;;  %v6238_v62 = vunpack.i.l.bf16 %v11909_v6 }
 0x3c3   : > { %6491 = vrot.lane.b32.xlu0 %v13963_v13, %s6674_s23  ;;  %v11992_v42 = vpop.permute.xlu0 %6291  ;;  %v13974_v13 = vld [vmem:[#allocation27_spill] sm:$0xff]  ;;  %v2890_v41 = vrot.slane %v2853_v21, 4 }
 0x3c8   : > { %6501 = vrot.lane.b32.xlu2 %v6500_v26, %s6672_s18  ;;  %v12014_v58 = vpop.permute.xlu1 %6281  ;;  %v12017_v26 = vsel %vm1381_vm8, %v3037_v2, %v3052_v53  ;;  %v13969_v2 = vld [vmem:[#allocation111_spill] sm:$0xff] }
 0x3c9   : > { %6481 = vrot.lane.b32.xlu1 %v13964_v20, %s6673_s21  ;;  %v6535_v54 = vpack.i.bf16 %v12017_v26, %v12020_v11  ;;  %v3156_v35 = vrot.slane %v13969_v2, 4  ;;  %v13975_v53 = vld [vmem:[#allocation115_spill] sm:$0xff]  ;;  %v13990_v11 = vld [vmem:[#allocation44_spill] sm:$0xff] }
 0x3ca   : > { %v12012_v30 = vpop.permute.xlu2 %6346  ;;  %v6213_v49 = vunpack.i.l.bf16 %v13975_v53 }
 0x3cb   : > { %6506 = vrot.lane.b32.xlu0 %v13965_v36, %s6673_s21  ;;  %v6349_v9 = vunpack.i.h.bf16 %v12012_v30  ;;  %v12025_v25 = vpop.permute.xlu0 %6306  ;;  %v3157_v40 = vsel %vm1381_vm8, %v13974_v13, %v3156_v35 }
 0x3cc   : > { %v12067_v35 = vsel %vm5035_vm14, %v11659_v5, %v6213_v49  ;;  %v6234_v5 = vunpack.i.h.bf16 %v11790_v50 }
 0x3cd   : > { %v12030_v43 = vsel %vm4990_vm11, %v3711_v27, %v6349_v9  ;;  %v2932_v9 = vrot.slane %v13977_v10, 4  ;;  %v6243_v27 = vunpack.i.l.bf16 %v11635_v12  ;;  %v12074_v12 = vsel %vm5050_vm15, %v11803_v38, %v6244_v31 }
 0x3ce   : > { %v6224_v38 = vunpack.i.h.bf16 %v11848_v51 }
 0x3d0   : > { %6516 = vrot.lane.b32.xlu2 %v6515_v16, %s6674_s23  ;;  %v12042_v52 = vpop.permute.xlu1 %6296  ;;  %v2841_v16 = vperm.slane %v2833_v19, %v7063_v3  ;;  %v2921_v3 = vperm.slane %v2915_v28, %v7674_v46  ;;  %v2933_v28 = vsel %vm1381_vm8, %v13978_v48, %v2932_v9  ;;  %v6223_v48 = vunpack.i.l.bf16 %v11848_v51 }
 0x3d1   : > { %6496 = vrot.lane.b32.xlu1 %v6495_v22, %s6671_s11  ;;  %v6214_v22 = vunpack.i.h.bf16 %v13975_v53 }
 0x3d2   : > { %v12053_v36 = vpop.permute.xlu2 %4663  ;;  %v2891_v4 = vsel %vm1381_vm8, %v2890_v41, %v2841_v16  ;;  %v2892_v63 = vrot.slane %v2841_v16, 4  ;;  %v2934_v45 = vrot.slane %v2921_v3, 4  ;;  %v13982_v41 = vld [vmem:[#allocation177_spill] sm:$0xff] }
 0x3d3   : > { %6521 = vrot.lane.b32.xlu0 %v6520_v61, %s6671_s11  ;;  %v12048_v20 = vpop.permute.xlu0 %6321  ;;  %v13976_v61 = vld [vmem:[#allocation85_spill] sm:$0xff]  ;;  %v12063_v2 = vsel %vm5035_vm14, %v11655_v59, %v6214_v22  ;;  %v12080_v59 = vsel %vm5050_vm15, %v11799_v32, %v6243_v27  ;;  %v2897_v19 = vperm.slane %v2891_v4, %v7674_v46  ;;  %v6233_v32 = vunpack.i.l.bf16 %v11790_v50 }
 0x3d4   : > { %v3045_v0 = vsel %vm1381_vm8, %v13976_v61, %v3044_v37  ;;  %v13979_v37 = vld [vmem:[#allocation39_spill] sm:$0xff]  ;;  %v2893_v53 = vsel %vm1381_vm8, %v2853_v21, %v2892_v63  ;;  %v12104_v61 = vsel %vm5050_vm15, %v11671_v60, %v6238_v62  ;;  %v5049_v50 = vsel %vm5035_vm14, %v11601_v56, %v6224_v38 }
 0x3d5   : > { %v6510_v14 = vpack.i.bf16 %v3045_v0, %v3157_v40  ;;  %v3150_v13 = vrot.slane %v13979_v37, 4  ;;  %v13981_v0 = vld [vmem:[#allocation79_spill] sm:$0xff]  ;;  %v2935_v31 = vsel %vm1381_vm8, %v2934_v45, %v2897_v19  ;;  %v6259_v27 = vunpack.i.h.bf16 %v11696_v17 }
 0x3d6   : > { %v12108_v10 = vsel %vm5050_vm15, %v13981_v0, %v6234_v5  ;;  %v6294_v60 = vunpack.i.h.bf16 %v11992_v42  ;;  %v12131_v4 = vsel %vm5050_vm15, %v13982_v41, %v6233_v32  ;;  %v6229_v5 = vunpack.i.h.bf16 %v11551_v57  ;;  %v13983_v38 = vld [vmem:[#allocation35_spill] sm:$0xff]  ;;  %v13986_v32 = vld [vmem:[#allocation114_spill] sm:$0xff] }
 0x3d8   : > { %6531 = vrot.lane.b32.xlu2 %v6530_v44, %s6673_s21  ;;  %v6239_v44 = vunpack.i.h.bf16 %v11909_v6  ;;  %v12086_v8 = vpop.permute.xlu1 %6311  ;;  %v13980_v6 = vld [vmem:[#allocation162_spill] sm:$0xff] }
 0x3d9   : > { %6511 = vrot.lane.b32.xlu1 %v6510_v14, %s6670_s10  ;;  %v3151_v22 = vsel %vm1381_vm8, %v3150_v13, %v13980_v6  ;;  %v12127_v14 = vperm.slane %v2893_v53, %v7674_v46  ;;  %v5048_v13 = vsel %vm5035_vm14, %v13984_v23, %v6223_v48  ;;  %v6293_v53 = vunpack.i.l.bf16 %v11992_v42  ;;  %v13987_v42 = vld [vmem:[#allocation52_spill] sm:$0xff] }
 0x3da   : > { %v12100_v49 = vsel %vm5050_vm15, %v11667_v29, %v6239_v44  ;;  %v12112_v9 = vpop.permute.xlu2 %6371  ;;  %v2936_v29 = vrot.slane %v2897_v19, 4  ;;  %v6228_v44 = vunpack.i.l.bf16 %v11551_v57  ;;  %v3038_v19 = vrot.slane %v13983_v38, 4 }
 0x3db   : > { %4743 = vrot.lane.b32.xlu0 %v2933_v28, %s6670_s10  ;;  %v12091_v40 = vpop.permute.xlu0 %6336  ;;  %v5064_v28 = vsel %vm5050_vm15, %v5049_v50, %v6259_v27  ;;  %v2940_v37 = vrot.slane %v12127_v14, 4  ;;  %v6258_v50 = vunpack.i.l.bf16 %v11696_v17  ;;  %v6249_v27 = vunpack.i.h.bf16 %v13987_v42  ;;  %s5259_s10 = sshll.u32 %s5255_s8, 4  ;;  %s5260_s10 = int_to_ptr.hbm [resolvable:$true] %s5259_s10 }
 0x3dc   : > { %v6338_v16 = vunpack.i.l.bf16 %v12091_v40  ;;  %v2937_v56 = vsel %vm1381_vm8, %v2921_v3, %v2936_v29  ;;  %v2925_v3 = vperm.slane %v12005_v24, %v7674_v46  ;;  %v5079_v51 = vsel %vm5065_vm0, %v5064_v28, %v6294_v60  ;;  %v13985_v24 = vld [vmem:[#allocation97_spill] sm:$0xff]  ;;  %v13988_v60 = vld [vmem:[#allocation155_spill] sm:$0xff] }
 0x3dd   : > { %v6254_v46 = vunpack.i.h.bf16 %v11957_v55  ;;  %v5052_v57 = vsel %vm5050_vm15, %v13985_v24, %v6229_v5  ;;  %v6334_v17 = vunpack.i.h.bf16 %v11982_v1  ;;  %v5063_v28 = vsel %vm5050_vm15, %v5048_v13, %v6258_v50 }
 0x3de   : > { %v12115_v21 = vsel %vm4990_vm11, %v3151_v22, %v6338_v16  ;;  %v5051_v16 = vsel %vm5050_vm15, %v13986_v32, %v6228_v44  ;;  %v2941_v6 = vsel %vm1381_vm8, %v2925_v3, %v2940_v37  ;;  %v12158_v22 = vsel %vm5065_vm0, %v5052_v57, %v6264_v34 }
 0x3df   : > { %v12161_v0 = vsel %vm5065_vm0, %v5051_v16, %v6263_v18  ;;  %v6284_v34 = vunpack.i.h.bf16 %v12014_v58  ;;  %v5078_v18 = vsel %vm5065_vm0, %v5063_v28, %v6293_v53  ;;  %v6248_v5 = vunpack.i.l.bf16 %v13987_v42 }
 0x3e0   : > { %4795 = vrot.lane.b32.xlu2 %v2935_v31, %s6671_s11  ;;  %v6253_v31 = vunpack.i.l.bf16 %v11957_v55  ;;  %v6324_v55 = vunpack.i.h.bf16 %v12048_v20  ;;  %v6323_v44 = vunpack.i.l.bf16 %v12048_v20  ;;  %v6288_v23 = vunpack.i.l.bf16 %v13990_v11  ;;  %s5242_s11 = scalar_lea.sflag [#allocation4], %s6770_s19 }
 0x3e1   : > { %6526 = vrot.lane.b32.xlu1 %v6525_v39, %s6672_s18  ;;  %v6283_v13 = vunpack.i.l.bf16 %v12014_v58  ;;  %v5060_v24 = vsel %vm5050_vm15, %v12063_v2, %v6249_v27  ;;  %v6319_v53 = vunpack.i.h.bf16 %v11955_v7  ;;  %v5059_v2 = vsel %vm5050_vm15, %v12067_v35, %v6248_v5 }
 0x3e2   : > { %v12173_v41 = vpop.permute.xlu2 %6386  ;;  %v5075_v16 = vsel %vm5065_vm0, %v5060_v24, %v6284_v34  ;;  %v6279_v50 = vunpack.i.h.bf16 %v11963_v15  ;;  %v6313_v35 = vunpack.i.l.bf16 %v12086_v8 }
 0x3e3   : > { %4847 = vrot.lane.b32.xlu0 %v2937_v56, %s6672_s18  ;;  %v6327_v63 = vpop.permute.xlu1 %6326  ;;  %v12143_v62 = vpop.permute.xlu0 %6351  ;;  %v3039_v56 = vsel %vm1381_vm8, %v3038_v19, %v13988_v60  ;;  %v13991_v19 = vld [vmem:[#allocation98_spill] sm:$0xff]  ;;  %v5090_v27 = vsel %vm5080_vm1, %v5075_v16, %v6319_v53  ;;  %v6278_v60 = vunpack.i.l.bf16 %v11963_v15  ;;  %v13993_v15 = vld [vmem:[#allocation169_spill] sm:$0xff]  ;;  %v6304_v16 = vunpack.i.h.bf16 %v11907_v47  ;;  %s6585_s18 = sshra.s32 %s5260_s10, 4  ;;  %s6586_s18 = int_to_ptr.hbm [resolvable:$true] %s6585_s18 }
 0x3e4   : > { %v6329_v39 = vunpack.i.h.bf16 %v6327_v63  ;;  %v6328_v29 = vunpack.i.l.bf16 %v6327_v63  ;;  %v13989_v63 = vld [vmem:[#allocation178_spill] sm:$0xff]  ;;  %v5061_v37 = vsel %vm5050_vm15, %v13991_v19, %v6253_v31  ;;  %v5074_v31 = vsel %vm5065_vm0, %v5059_v2, %v6283_v13  ;;  %p6592_p7 = scmp.lt.s32.totalorder %s6586_s18, %s12480_s3 }
 0x3e5   : > { %v5062_v26 = vsel %vm5050_vm15, %v13989_v63, %v6254_v46  ;;  %v5096_v46 = vsel %vm4990_vm11, %v3039_v56, %v6334_v17  ;;  %v5076_v58 = vsel %vm5065_vm0, %v5061_v37, %v6288_v23  ;;  %v13992_v17 = vld [vmem:[#allocation62_spill] sm:$0xff]  ;;  %v5072_v5 = vsel %vm5065_vm0, %v12080_v59, %v6278_v60 }
 0x3e6   : > { %v5094_v45 = vsel %vm5080_vm1, %v5079_v51, %v6329_v39  ;;  %v2938_v39 = vrot.slane %v2925_v3, 4  ;;  %v5093_v38 = vsel %vm5080_vm1, %v5078_v18, %v6328_v29  ;;  %v6314_v29 = vunpack.i.h.bf16 %v12086_v8  ;;  %v13994_v18 = vld [vmem:[#allocation180_spill] sm:$0xff]  ;;  %v13995_v19 = vld [vmem:[#allocation102_spill] sm:$0xff] }
 0x3e7   : > { %5193 = vmatpush.msra.mxu0 %v5094_v45  ;;  %5213 = vmatpush.msra.mxu1 %v5094_v45  ;;  %v6274_v8 = vunpack.i.h.bf16 %v13994_v18  ;;  %v5087_v37 = vsel %vm5080_vm1, %v5072_v5, %v6313_v35  ;;  %v6273_v23 = vunpack.i.l.bf16 %v13994_v18  ;;  %v6268_v13 = vunpack.i.l.bf16 %v11984_v33 }
 0x3e8   : > { %4951 = vrot.lane.b32.xlu2 %v2941_v6, %s6674_s23  ;;  %v2939_v32 = vsel %vm1381_vm8, %v2938_v39, %v12127_v14  ;;  %v5091_v6 = vsel %vm5080_vm1, %v5076_v58, %v6323_v44  ;;  %v6318_v14 = vunpack.i.l.bf16 %v11955_v7  ;;  %v6269_v39 = vunpack.i.h.bf16 %v11984_v33 }
 0x3e9   : > { %6536 = vrot.lane.b32.xlu1 %v6535_v54, %s6674_s23  ;;  %5194 = vmatpush.msra.mxu0 %v5094_v45  ;;  %v6289_v54 = vunpack.i.h.bf16 %v13990_v11  ;;  %v6309_v11 = vunpack.i.h.bf16 %v12025_v25  ;;  %v6308_v44 = vunpack.i.l.bf16 %v12025_v25  ;;  %v6373_v59 = vunpack.i.l.bf16 %v12112_v9  ;;  %v13996_v25 = vld [vmem:[#allocation11_spill] sm:$0xff] }
 0x3ea   : > { %5214 = vmatpush.msra.mxu1 %v5094_v45  ;;  %v12220_v56 = vpop.permute.xlu2 %6396  ;;  %v5089_v63 = vsel %vm5080_vm1, %v5074_v31, %v6318_v14  ;;  %v5070_v33 = vsel %vm5065_vm0, %v12104_v61, %v6273_v23  ;;  %v5069_v58 = vsel %vm5065_vm0, %v12108_v10, %v6269_v39  ;;  %v5068_v10 = vsel %vm5065_vm0, %v12131_v4, %v6268_v13 }
 0x3eb   : > { %v12177_v48 = vpop.permute.xlu1 %6341  ;;  %5195 = vmatpush.msra.mxu0 %v5094_v45  ;;  %v5077_v3 = vsel %vm5065_vm0, %v5062_v26, %v6289_v54  ;;  %v5073_v26 = vsel %vm5065_vm0, %v12074_v12, %v6279_v50  ;;  %v3262_v54 = vrot.slane %v13993_v15, 4  ;;  %v6303_v14 = vunpack.i.l.bf16 %v11907_v47  ;;  %v13999_v15 = vld [vmem:[#allocation176_spill] sm:$0xff] }
 0x3ec   : > { %5215 = vmatpush.msra.mxu1 %v5094_v45  ;;  %v5092_v20 = vsel %vm5080_vm1, %v5077_v3, %v6324_v55  ;;  %v3374_v55 = vrot.slane %v13992_v17, 4  ;;  %v6343_v7 = vunpack.i.l.bf16 %v12177_v48  ;;  %v5088_v34 = vsel %vm5080_vm1, %v5073_v26, %v6314_v29 }
 0x3ed   : > { %v12187_v51 = vpop.permute.xlu0 %6361  ;;  %5196 = vmatpush.msra.mxu0 %v5093_v38  ;;  %v6339_v38 = vunpack.i.h.bf16 %v12091_v40  ;;  %v5071_v3 = vsel %vm5065_vm0, %v12100_v49, %v6274_v8  ;;  %v3263_v40 = vsel %vm1381_vm8, %v3262_v54, %v13996_v25  ;;  %v6299_v29 = vunpack.i.h.bf16 %v12042_v52 }
 0x3ee   : > { %v6364_v45 = vunpack.i.h.bf16 %v12187_v51  ;;  %v3375_v12 = vsel %vm1381_vm8, %v3374_v55, %v13995_v19  ;;  %v5084_v35 = vsel %vm5080_vm1, %v5069_v58, %v6304_v16  ;;  %v6344_v17 = vunpack.i.h.bf16 %v12177_v48 }
 0x3ef   : > { %5197 = vmatpush.msra.mxu0 %v5092_v20  ;;  %v5086_v20 = vsel %vm5080_vm1, %v5071_v3, %v6309_v11  ;;  %v5098_v49 = vsel %vm4990_vm11, %v3263_v40, %v6339_v38  ;;  %v5083_v55 = vsel %vm5080_vm1, %v5068_v10, %v6303_v14  ;;  %v5082_v47 = vsel %vm5080_vm1, %v12158_v22, %v6299_v29  ;;  %v14000_v22 = vld [vmem:[#allocation107_spill] sm:$0xff]  ;;  %v14002_v38 = vld [vmem:[#allocation188_spill] sm:$0xff] }
 0x3f0   : > { %v12201_v57 = vsel %vm5005_vm12, %v5096_v46, %v6364_v45  ;;  %v5099_v45 = vsel %vm4990_vm11, %v3375_v12, %v6343_v7  ;;  %v6374_v11 = vunpack.i.h.bf16 %v12112_v9  ;;  %v4158_v54 = vrot.slane %v13999_v15, 4 }
 0x3f1   : > { %4899 = vrot.lane.b32.xlu1 %v2939_v32, %s6673_s21  ;;  %5198 = vmatpush.msra.mxu0 %v5091_v6  ;;  %v5085_v6 = vsel %vm5080_vm1, %v5070_v33, %v6308_v44  ;;  %v12259_v2 = vsel %vm5005_vm12, %v5099_v45, %v6373_v59  ;;  %v14001_v44 = vld [vmem:[#allocation126_spill] sm:$0xff]  ;;  %v6389_v19 = vunpack.i.h.bf16 %v12173_v41  ;;  %v6399_v40 = vunpack.i.h.bf16 %v12220_v56  ;;  %s6587_s21 = scalar_lea.hbm %s6586_s18, 16 }
 0x3f2   : > { %v12261_v50 = vpop.permute.xlu2 %6411  ;;  %v4159_v39 = vsel %vm1381_vm8, %v4158_v54, %v14000_v22  ;;  %p6588_p4 = scmp.ne.s32.totalorder %s6586_s18, %s6587_s21  ;;  %p6593_p8 = scmp.lt.s32.totalorder %s6591_s29, %s6587_s21 }
 0x3f3   : > { %v12216_v42 = vpop.permute.xlu1 %6356  ;;  %5199 = vmatpush.msra.mxu0 %v5090_v27  ;;  %v13997_v27 = vld [vmem:[#allocation78_spill] sm:$0xff] }
 0x3f4   : > { %v3486_v60 = vrot.slane %v13997_v27, 4  ;;  %v6358_v58 = vunpack.i.l.bf16 %v12216_v42  ;;  %v6354_v27 = vunpack.i.h.bf16 %v12143_v62  ;;  %p6589_p5 = pnand %p6588_p4, %p6747_p9  ;;  %p6594_p10 = por %p6593_p8, %p6592_p7 }
 0x3f5   : > { %v12224_v28 = vpop.permute.xlu0 %6376  ;;  %5200 = vmatpush.msra.mxu0 %v5089_v63  ;;  %v13998_v63 = vld [vmem:[#allocation55_spill] sm:$0xff] }
 0x3f6   : > { %v3487_v7 = vsel %vm1381_vm8, %v3486_v60, %v13998_v63  ;;  %p6590_p6 = pneg %p6589_p5 }
 0x3f7   : > { %5201 = vmatpush.msra.mxu0 %v5088_v34  ;;  %v5100_v26 = vsel %vm4990_vm11, %v3487_v7, %v6344_v17  ;;  %v6359_v34 = vunpack.i.h.bf16 %v12216_v42 }
 0x3f8   : > { %v12292_v18 = vsel %vm5005_vm12, %v5100_v26, %v6374_v11  ;;  %p6595_p13 = pnand %p6594_p10, %p6590_p6 }
 0x3f9   : > { %5202 = vmatpush.msra.mxu0 %v5087_v37  ;;  %v5106_v5 = vsel %vm4990_vm11, %v4159_v39, %v6359_v34 }
 0x3fa   : > { %v12294_v8 = vpop.permute.xlu2 %6426  ;;  %v5119_v3 = vsel %vm5005_vm12, %v5106_v5, %v6389_v19  ;;  %v6414_v5 = vunpack.i.h.bf16 %v12261_v50 }
 0x3fb   : > { %v6367_v46 = vpop.permute.xlu1 %6366  ;;  %5203 = vmatpush.msra.mxu0 %v5086_v20  ;;  %v14003_v20 = vld [vmem:[#allocation93_spill] sm:$0xff]  ;;  %v6429_v19 = vunpack.i.h.bf16 %v12294_v8 }
 0x3fc   : > { %v6369_v24 = vunpack.i.h.bf16 %v6367_v46  ;;  %v6368_v32 = vunpack.i.l.bf16 %v6367_v46  ;;  %v6398_v46 = vunpack.i.l.bf16 %v12220_v56 }
 0x3fd   : > { %v4716_v53 = vpop.permute.xlu0 %4715  ;;  %5204 = vmatpush.msra.mxu0 %v5085_v6  ;;  %v14004_v6 = vld [vmem:[#allocation49_spill] sm:$0xff] }
 0x3fe   : > { %v12265_v31 = vsel %vm5005_vm12, %v12115_v21, %v6368_v32  ;;  %v12268_v61 = vsel %vm5005_vm12, %v5098_v49, %v6369_v24  ;;  %v6298_v21 = vunpack.i.l.bf16 %v12042_v52  ;;  %v4046_v24 = vrot.slane %v14003_v20, 4 }
 0x3ff   : > { %5205 = vmatpush.msra.mxu0 %v5084_v35  ;;  %v3934_v10 = vrot.slane %v14004_v6, 4 }
 0x400   : > { %v5081_v52 = vsel %vm5080_vm1, %v12161_v0, %v6298_v21  ;;  %v4222_v0 = vsel %vm1381_vm8, %v14002_v38, %v14001_v44  ;;  %v14005_v21 = vld [vmem:[#allocation153_spill] sm:$0xff] }
 0x401   : > { %5206 = vmatpush.msra.mxu0 %v5083_v55  ;;  %v5107_v23 = vsel %vm4990_vm11, %v4222_v0, %v12053_v36  ;;  %v4047_v55 = vsel %vm1381_vm8, %v4046_v24, %v14005_v21 }
 0x402   : > { %v5120_v45 = vsel %vm5005_vm12, %v5107_v23, %v4716_v53  ;;  %v6442_v32 = vpop.permute.xlu2 %6441 }
 0x403   : > { %v12281_v4 = vpop.permute.xlu1 %6381  ;;  %5207 = vmatpush.msra.mxu0 %v5082_v47  ;;  %v5105_v47 = vsel %vm4990_vm11, %v4047_v55, %v6358_v58  ;;  %v6444_v24 = vunpack.i.h.bf16 %v6442_v32 }
 0x404   : > { %v6384_v42 = vunpack.i.h.bf16 %v12281_v4 }
 0x405   : > { %v6402_v48 = vpop.permute.xlu0 %6401  ;;  %5208 = vmatpush.msra.mxu0 %v5081_v52  ;;  %v14006_v52 = vld [vmem:[#allocation53_spill] sm:$0xff] }
 0x406   : > { %v6404_v16 = vunpack.i.h.bf16 %v6402_v48  ;;  %v6403_v49 = vunpack.i.l.bf16 %v6402_v48  ;;  %v6388_v48 = vunpack.i.l.bf16 %v12173_v41  ;;  %v3935_v15 = vsel %vm1381_vm8, %v3934_v10, %v14006_v52 }
 0x407   : > { %v5104_v54 = vsel %vm4990_vm11, %v3935_v15, %v6354_v27  ;;  %v6353_v10 = vunpack.i.l.bf16 %v12143_v62  ;;  %v14008_v27 = vld [vmem:[#allocation80_spill] sm:$0xff] }
 0x408   : > { %v5118_v22 = vsel %vm5005_vm12, %v5105_v47, %v6388_v48  ;;  %v5117_v39 = vsel %vm5005_vm12, %v5104_v54, %v6384_v42  ;;  %v6363_v42 = vunpack.i.l.bf16 %v12187_v51 }
 0x40a   : > { %v12335_v38 = vpop.permute.xlu2 %6456 }
 0x40b   : > { %v6392_v9 = vpop.permute.xlu1 %6391 }
 0x40c   : > { %v6394_v12 = vunpack.i.h.bf16 %v6392_v9  ;;  %v6393_v37 = vunpack.i.l.bf16 %v6392_v9  ;;  %v6413_v9 = vunpack.i.l.bf16 %v12261_v50 }
 0x40d   : > { %v6417_v13 = vpop.permute.xlu0 %6416 }
 0x40e   : > { %v5132_v59 = vsel %vm5020_vm13, %v5119_v3, %v6394_v12  ;;  %v5133_v25 = vsel %vm5020_vm13, %v5120_v45, %v6393_v37  ;;  %v6418_v60 = vunpack.i.l.bf16 %v6417_v13  ;;  %v6419_v26 = vunpack.i.h.bf16 %v6417_v13 }
 0x40f   : > { %v5146_v33 = vsel %vm5035_vm14, %v5133_v25, %v6398_v46  ;;  %v5145_v36 = vsel %vm5035_vm14, %v5132_v59, %v6399_v40  ;;  %v6428_v12 = vunpack.i.l.bf16 %v12294_v8  ;;  %v5130_v37 = vsel %vm5020_vm13, %v5117_v39, %v6414_v5  ;;  %v14011_v5 = vld [vmem:[#allocation175_spill] sm:$0xff] }
 0x410   : > { %v5159_v35 = vsel %vm5050_vm15, %v5146_v33, %v6403_v49  ;;  %v5158_v17 = vsel %vm5050_vm15, %v5145_v36, %v6404_v16  ;;  %v5131_v23 = vsel %vm5020_vm13, %v5118_v22, %v6413_v9  ;;  %v6443_v25 = vunpack.i.l.bf16 %v6442_v32 }
 0x411   : > { %v6333_v32 = vunpack.i.l.bf16 %v11982_v1  ;;  %v3598_v9 = vrot.slane %v14011_v5, 4 }
 0x412   : > { %v12349_v49 = vpop.permute.xlu2 %6471 }
 0x413   : > { %v6407_v53 = vpop.permute.xlu1 %6406 }
 0x414   : > { %v6409_v14 = vunpack.i.h.bf16 %v6407_v53  ;;  %v6408_v29 = vunpack.i.l.bf16 %v6407_v53  ;;  %v14007_v53 = vld [vmem:[#allocation63_spill] sm:$0xff] }
 0x415   : > { %v6432_v56 = vpop.permute.xlu0 %6431  ;;  %v3822_v6 = vrot.slane %v14007_v53, 4  ;;  %v6473_v53 = vunpack.i.l.bf16 %v12349_v49 }
 0x416   : > { %v5172_v63 = vsel %vm5065_vm0, %v5159_v35, %v6408_v29  ;;  %v5171_v7 = vsel %vm5065_vm0, %v5158_v17, %v6409_v14  ;;  %v6434_v45 = vunpack.i.h.bf16 %v6432_v56  ;;  %v6433_v3 = vunpack.i.l.bf16 %v6432_v56  ;;  %v14009_v56 = vld [vmem:[#allocation71_spill] sm:$0xff] }
 0x417   : > { %v5185_v11 = vsel %vm5080_vm1, %v5172_v63, %v6418_v60  ;;  %v5184_v34 = vsel %vm5080_vm1, %v5171_v7, %v6419_v26  ;;  %v6383_v14 = vunpack.i.l.bf16 %v12281_v4  ;;  %v2926_v60 = vrot.slane %v14008_v27, 4  ;;  %v14010_v26 = vld [vmem:[#allocation137_spill] sm:$0xff] }
 0x418   : > { %5216 = vmatpush.msra.mxu1 %v5185_v11  ;;  %v3823_v35 = vsel %vm1381_vm8, %v3822_v6, %v14009_v56  ;;  %v6379_v17 = vunpack.i.h.bf16 %v12224_v28 }
 0x419   : > { %v5103_v55 = vsel %vm4990_vm11, %v3823_v35, %v6353_v10  ;;  %v2927_v1 = vsel %vm1381_vm8, %v2926_v60, %v14010_v26 }
 0x41a   : > { %5217 = vmatpush.msra.mxu1 %v5184_v34  ;;  %v5116_v62 = vsel %vm5005_vm12, %v5103_v55, %v6383_v14  ;;  %v5115_v11 = vsel %vm5005_vm12, %v12030_v43, %v6379_v17  ;;  %v5095_v52 = vsel %vm4990_vm11, %v2927_v1, %v6333_v32  ;;  %v6487_v15 = vpop.permute.xlu2 %6486  ;;  %v6458_v43 = vunpack.i.l.bf16 %v12335_v38  ;;  %v5186_v1 = vld [vmem:[%s12478_s1] sm:$0xff] }
 0x41b   : > { %v6422_v44 = vpop.permute.xlu1 %6421  ;;  %v12370_v34 = vsel %vm5005_vm12, %v5095_v52, %v6363_v42  ;;  %v6489_v55 = vunpack.i.h.bf16 %v6487_v15  ;;  %v6488_v42 = vunpack.i.l.bf16 %v6487_v15  ;;  %5209 = vmatmul.f32.vlgmr.msra.gmra.mxu0 %v5186_v1 }
 0x41c   : > { %v6424_v41 = vunpack.i.h.bf16 %v6422_v44  ;;  %v6423_v0 = vunpack.i.l.bf16 %v6422_v44 }
 0x41d   : > { %v6447_v13 = vpop.permute.xlu0 %6446 }
 0x41e   : > { %v5143_v59 = vsel %vm5035_vm14, %v5130_v37, %v6424_v41  ;;  %v5144_v50 = vsel %vm5035_vm14, %v5131_v23, %v6423_v0  ;;  %v6448_v48 = vunpack.i.l.bf16 %v6447_v13  ;;  %v6449_v22 = vunpack.i.h.bf16 %v6447_v13 }
 0x41f   : > { %v5157_v40 = vsel %vm5050_vm15, %v5144_v50, %v6428_v12  ;;  %v5156_v46 = vsel %vm5050_vm15, %v5143_v59, %v6429_v19  ;;  %v6348_v41 = vunpack.i.l.bf16 %v12012_v30  ;;  %v6378_v12 = vunpack.i.l.bf16 %v12224_v28 }
 0x420   : > { %v5170_v20 = vsel %vm5065_vm0, %v5157_v40, %v6433_v3  ;;  %v5169_v8 = vsel %vm5065_vm0, %v5156_v46, %v6434_v45  ;;  %v6459_v13 = vunpack.i.h.bf16 %v12335_v38 }
 0x421   : > { %v5183_v33 = vsel %vm5080_vm1, %v5170_v20, %v6443_v25  ;;  %v5182_v58 = vsel %vm5080_vm1, %v5169_v8, %v6444_v24  ;;  %v14012_v25 = vld [vmem:[#allocation170_spill] sm:$0xff] }
 0x422   : > { %5218 = vmatpush.msra.mxu1 %v5183_v33  ;;  %v3599_v30 = vsel %vm1381_vm8, %v3598_v9, %v14012_v25  ;;  %v6502_v6 = vpop.permute.xlu2 %6501 }
 0x423   : > { %v6437_v36 = vpop.permute.xlu1 %6436  ;;  %v5101_v46 = vsel %vm4990_vm11, %v3599_v30, %v6348_v41  ;;  %v6504_v52 = vunpack.i.h.bf16 %v6502_v6  ;;  %v6503_v15 = vunpack.i.l.bf16 %v6502_v6 }
 0x424   : > { %5219 = vmatpush.msra.mxu1 %v5182_v58  ;;  %v6438_v29 = vunpack.i.l.bf16 %v6437_v36  ;;  %v6439_v63 = vunpack.i.h.bf16 %v6437_v36  ;;  %v5114_v20 = vsel %vm5005_vm12, %v5101_v46, %v6378_v12 }
 0x425   : > { %v6462_v16 = vpop.permute.xlu0 %6461 }
 0x426   : > { %v5129_v4 = vsel %vm5020_vm13, %v5116_v62, %v6438_v29  ;;  %v5128_v54 = vsel %vm5020_vm13, %v5115_v11, %v6439_v63  ;;  %v6464_v3 = vunpack.i.h.bf16 %v6462_v16  ;;  %v6463_v59 = vunpack.i.l.bf16 %v6462_v16 }
 0x427   : > { %v5142_v39 = vsel %vm5035_vm14, %v5129_v4, %v6448_v48  ;;  %v5141_v19 = vsel %vm5035_vm14, %v5128_v54, %v6449_v22  ;;  %v6474_v16 = vunpack.i.h.bf16 %v12349_v49  ;;  %v5124_v11 = vsel %vm5020_vm13, %v12268_v61, %v6489_v55  ;;  %v5187_v61 = vld [vmem:[%s12479_s2] sm:$0xff] }
 0x428   : > { %v5126_v38 = vsel %vm5020_vm13, %v12292_v18, %v6464_v3  ;;  %v5127_v33 = vsel %vm5020_vm13, %v5114_v20, %v6463_v59  ;;  %v5125_v48 = vsel %vm5020_vm13, %v12259_v2, %v6488_v42 }
 0x429   : > { %v5140_v27 = vsel %vm5035_vm14, %v5127_v33, %v6473_v53  ;;  %v5139_v60 = vsel %vm5035_vm14, %v5126_v38, %v6474_v16 }
 0x42b   : > { %v6452_v21 = vpop.permute.xlu1 %6451 }
 0x42c   : > { %v6453_v7 = vunpack.i.l.bf16 %v6452_v21  ;;  %v6454_v51 = vunpack.i.h.bf16 %v6452_v21 }
 0x42d   : > { %v6477_v47 = vpop.permute.xlu0 %6476 }
 0x42e   : > { %v5155_v44 = vsel %vm5050_vm15, %v5142_v39, %v6453_v7  ;;  %v5154_v45 = vsel %vm5050_vm15, %v5141_v19, %v6454_v51  ;;  %v6479_v36 = vunpack.i.h.bf16 %v6477_v47  ;;  %v6478_v58 = vunpack.i.l.bf16 %v6477_v47  ;;  %v6517_v7 = vpop.permute.xlu2 %6516 }
 0x42f   : > { %v5168_v50 = vsel %vm5065_vm0, %v5155_v44, %v6458_v43  ;;  %v5167_v28 = vsel %vm5065_vm0, %v5154_v45, %v6459_v13  ;;  %v6518_v5 = vunpack.i.l.bf16 %v6517_v7  ;;  %v6675_v43 = vmov 0  }
 0x430   : > { %v5153_v18 = vsel %vm5050_vm15, %v5140_v27, %v6478_v58  ;;  %v5152_v56 = vsel %vm5050_vm15, %v5139_v60, %v6479_v36  ;;  %6540 = vset.pattern.permute.xlu0 %v6675_v43 }
 0x431   : > { %5190 = vperm.xlu0 %6540, %v5187_v61  }
 0x433   : > { %v6467_v0 = vpop.permute.xlu1 %6466 }
 0x434   : > { %v6469_v37 = vunpack.i.h.bf16 %v6467_v0  ;;  %v6468_v23 = vunpack.i.l.bf16 %v6467_v0  ;;  %v6519_v0 = vunpack.i.h.bf16 %v6517_v7 }
 0x435   : > { %v6492_v8 = vpop.permute.xlu0 %6491 }
 0x436   : > { %v5181_v40 = vsel %vm5080_vm1, %v5168_v50, %v6468_v23  ;;  %v5180_v24 = vsel %vm5080_vm1, %v5167_v28, %v6469_v37  ;;  %v6493_v32 = vunpack.i.l.bf16 %v6492_v8  ;;  %v6494_v21 = vunpack.i.h.bf16 %v6492_v8  ;;  %v6532_v45 = vpop.permute.xlu2 %6531 }
 0x437   : > { %5220 = vmatpush.msra.mxu1 %v5181_v40  ;;  %v6533_v33 = vunpack.i.l.bf16 %v6532_v45  ;;  %v6534_v6 = vunpack.i.h.bf16 %v6532_v45 }
 0x439   : > { %5221 = vmatpush.msra.mxu1 %v5180_v24 }
 0x43b   : > { %v6482_v10 = vpop.permute.xlu1 %6481 }
 0x43c   : > { %v6484_v14 = vunpack.i.h.bf16 %v6482_v10  ;;  %v6483_v29 = vunpack.i.l.bf16 %v6482_v10 }
 0x43d   : > { %v6507_v62 = vpop.permute.xlu0 %6506 }
 0x43e   : > { %v5166_v35 = vsel %vm5065_vm0, %v5153_v18, %v6483_v29  ;;  %v5165_v17 = vsel %vm5065_vm0, %v5152_v56, %v6484_v14  ;;  %v6509_v54 = vunpack.i.h.bf16 %v6507_v62  ;;  %v6508_v51 = vunpack.i.l.bf16 %v6507_v62  ;;  %v4796_v24 = vpop.permute.xlu2 %4795 }
 0x43f   : > { %v5179_v49 = vsel %vm5080_vm1, %v5166_v35, %v6493_v32  ;;  %v5178_v63 = vsel %vm5080_vm1, %v5165_v17, %v6494_v21 }
 0x440   : > { %5222 = vmatpush.msra.mxu1 %v5179_v49 }
 0x442   : > { %5223 = vmatpush.msra.mxu1 %v5178_v63 }
 0x443   : > { %v6497_v4 = vpop.permute.xlu1 %6496 }
 0x444   : > { %v6499_v47 = vunpack.i.h.bf16 %v6497_v4  ;;  %v6498_v26 = vunpack.i.l.bf16 %v6497_v4 }
 0x445   : > { %v6522_v23 = vpop.permute.xlu0 %6521 }
 0x446   : > { %v5137_v22 = vsel %vm5035_vm14, %v5124_v11, %v6499_v47  ;;  %v5138_v39 = vsel %vm5035_vm14, %v5125_v48, %v6498_v26  ;;  %v6523_v40 = vunpack.i.l.bf16 %v6522_v23  ;;  %v6524_v20 = vunpack.i.h.bf16 %v6522_v23  ;;  %v4952_v35 = vpop.permute.xlu2 %4951 }
 0x447   : > { %v5151_v9 = vsel %vm5050_vm15, %v5138_v39, %v6503_v15  ;;  %v5150_v44 = vsel %vm5050_vm15, %v5137_v22, %v6504_v52 }
 0x448   : > { %v5164_v2 = vsel %vm5065_vm0, %v5151_v9, %v6508_v51  ;;  %v5163_v41 = vsel %vm5065_vm0, %v5150_v44, %v6509_v54 }
 0x449   : > { %v5177_v19 = vsel %vm5080_vm1, %v5164_v2, %v6518_v5  ;;  %v5176_v37 = vsel %vm5080_vm1, %v5163_v41, %v6519_v0 }
 0x44a   : > { %5224 = vmatpush.msra.mxu1 %v5177_v19 }
 0x44b   : > { %v6512_v12 = vpop.permute.xlu1 %6511 }
 0x44c   : > { %5225 = vmatpush.msra.mxu1 %v5176_v37  ;;  %v6513_v13 = vunpack.i.l.bf16 %v6512_v12  ;;  %v6514_v59 = vunpack.i.h.bf16 %v6512_v12 }
 0x44d   : > { %v4744_v25 = vpop.permute.xlu0 %4743 }
 0x44e   : > { %v5123_v50 = vsel %vm5020_vm13, %v12265_v31, %v6513_v13  ;;  %v5122_v46 = vsel %vm5020_vm13, %v12201_v57, %v6514_v59  ;;  %v5121_v14 = vsel %vm5020_vm13, %v12370_v34, %v4744_v25 }
 0x44f   : > { %v5136_v8 = vsel %vm5035_vm14, %v5123_v50, %v6523_v40  ;;  %v5135_v58 = vsel %vm5035_vm14, %v5122_v46, %v6524_v20  ;;  %v5134_v32 = vsel %vm5035_vm14, %v5121_v14, %v4796_v24 }
 0x453   : > { %v6527_v3 = vpop.permute.xlu1 %6526 }
 0x454   : > { %v6528_v30 = vunpack.i.l.bf16 %v6527_v3  ;;  %v6529_v28 = vunpack.i.h.bf16 %v6527_v3 }
 0x455   : > { %v4848_v27 = vpop.permute.xlu0 %4847 }
 0x456   : > { %v5149_v38 = vsel %vm5050_vm15, %v5136_v8, %v6528_v30  ;;  %v5148_v31 = vsel %vm5050_vm15, %v5135_v58, %v6529_v28  ;;  %v5147_v18 = vsel %vm5050_vm15, %v5134_v32, %v4848_v27 }
 0x457   : > { %v5162_v10 = vsel %vm5065_vm0, %v5149_v38, %v6533_v33  ;;  %v5161_v29 = vsel %vm5065_vm0, %v5148_v31, %v6534_v6 }
 0x45b   : > { %v6537_v36 = vpop.permute.xlu1 %6536 }
 0x45c   : > { %v6539_v16 = vunpack.i.h.bf16 %v6537_v36  ;;  %v6538_v53 = vunpack.i.l.bf16 %v6537_v36 }
 0x45e   : > { %v5175_v57 = vsel %vm5080_vm1, %v5162_v10, %v6538_v53  ;;  %v5174_v60 = vsel %vm5080_vm1, %v5161_v29, %v6539_v16 }
 0x45f   : > { %5226 = vmatpush.msra.mxu1 %v5175_v57 }
 0x461   : > { %5227 = vmatpush.msra.mxu1 %v5174_v60 }
 0x463   : > { %v4900_v56 = vpop.permute.xlu1 %4899 }
 0x464   : > { %v5160_v17 = vsel %vm5065_vm0, %v5147_v18, %v4900_v56 }
 0x465   : > { %v5173_v21 = vsel %vm5080_vm1, %v5160_v17, %v4952_v35 }
 0x466   : > { %5228 = vmatpush.msra.mxu1 %v5173_v21 }
 0x467   : > { %5229 = vmatmul.f32.vlgmr.msra.gmra.mxu1 %v5186_v1 }
 0x498   : > { %v5210_v49 = vpop.f32.mrf.mxu0 }
 0x4a3   : > { %v5191_v34 = vpop.permute.xlu0 %5190 }
 0x4a4   : > { %v5211_v55 = vadd.f32 %v5210_v49, %v5191_v34 }
 0x4a6   : > { %vm5233_vm2 = vcmp.ge.f32.partialorder %v5211_v55, 0.0  ;;  %v5235_v42 = vmul.f32 0.01, %v5211_v55 }
 0x4a8   : > { %v5237_v63 = vsel %vm5233_vm2, %v5211_v55, %v5235_v42 }
 0x4a9   : > { %5239 = vst [vmem:[%s204_s4] sm:$0xff] %v5237_v63 }
 0x4e4   : > { %v5230_v62 = vpop.f32.mrf.mxu1 }
 0x4e5   : > { %v5231_v4 = vadd.f32 %v5230_v62, %v5191_v34 }
 0x4e7   : > { %vm5234_vm3 = vcmp.ge.f32.partialorder %v5231_v4, 0.0  ;;  %v5236_v7 = vmul.f32 0.01, %v5231_v4 }
 0x4e9   : > { %v5238_v47 = vsel %vm5234_vm3, %v5231_v4, %v5236_v7 }
 0x4ea   : > { %5240 = vst [vmem:[%s204_s4 + $0x8] sm:$0xff] %v5238_v47 }
 0x4eb   : > { %6598 = shalt.err (!%p6595_p13)
}
 0x4ec   : > { %5374 = dma.vmem_to_hbm [thread:$0]  (%p6747_p9), %s5258_s9, 256, %s5260_s10, %s5242_s11  }
 0x4ed PF: > { %s5271_s19 = sand.u32 1, %s6633_s12   ;;  %p5381_p0 = pnand %p5350_p12, %p6754_p11 }
 0x4ee   : > { %s5272_s28 = scalar_lea.sflag [#allocation4], %s5271_s19 }
 0x4ef   : > { %p5382_p1 = pneg %p5381_p0 }
 0x4f1   : > { %6628 = dma.done.wait (%p5382_p1), %s5272_s28, 256  }
 0x4f2   : > { %6630 = vsyncadd (%p5382_p1), %s5272_s28, 4294967040  ;;  %s19_s17 = sadd.s32 1, %s6653_s17   ;;  %s14013_s12 = smov %s6637_s13 }
 0x4f3   : > { %p16_p2 = scmp.ge.s32.totalorder %s19_s17, 4   ;;  %s14014_s13 = smov %s6641_s14 }
 0x4f4   : > { %s14015_s14 = smov %s6752_s26  ;;  %s14016_s15 = smov %s6649_s16 }
 0x4f5   : > { %s14017_s16 = smov %s14019_s20  ;;  %18 = sbr.rel (!%p16_p2) target bundleno = 6 (0x6), region = 82 }
 0x4fa   :  { %5278 = vsyncpa [#allocation3], 1 }
 0x4fb   :  { %5280 = vsyncpa [#allocation3 + $0x1], 1 }
 0x4fc   :  { %5281 = vsyncpa [#allocation4], 1 }
 0x4fd   :  { %5283 = vsyncpa [#allocation4 + $0x1], 1 }

</bundles_post_ra>
